<compile_context>
chip_gen: v7x
topology: tpu7x:2x2x1
jax: 0.10.0
libtpu: 0.0.40
codegen_flags: <defaults>
</compile_context>

<pallas_src>
import math

import jax
import jax.numpy as jnp
from jax import lax
from jax.experimental import pallas as pl
from jax.experimental.pallas import tpu as pltpu

MODEL_DTYPE = jnp.bfloat16

# ---- small, self-consistent configuration (mirrors AyanamiMT1_4 hyper-params) ----
MAX_LENS   = 16          # max_lens
VOCAB      = 64          # vocab_size
D_MODEL    = 32          # d_model
N_LAYER    = 2           # num_layer
N_HEAD     = 4           # num_head
MEM_LEN    = 8           # memory_length
BATCH      = 2           # batch_size (model memory parameter batch)
LORA_DIM   = 16          # fixed by PositionWiseFFN_Lora
FFN_HIDDEN = 4 * D_MODEL # ffn_num_hidden
SEQ_TOTAL  = MAX_LENS + 2 * (MEM_LEN + 2)   # 36
HEAD_DIM   = D_MODEL // N_HEAD              # 8

_VMEM = pl.BlockSpec(memory_space=pltpu.MemorySpace.VMEM)


# ----------------------------- in-kernel math helpers ------------------------------

def _layernorm(xf, w, b):
    # xf: (S, D) f32 ; w, b: (1, D) f32
    mean = jnp.mean(xf, axis=-1, keepdims=True)
    xc = xf - mean
    var = jnp.mean(xc * xc, axis=-1, keepdims=True)
    return xc * lax.rsqrt(var + 1e-5) * w + b


def _gelu(x):
    # tanh-GELU: deviation from exact erf-GELU is far below bf16 rounding.
    c = math.sqrt(2.0 / math.pi)
    return 0.5 * x * (1.0 + jnp.tanh(c * (x + 0.044715 * x * x * x)))


def _softmax_rows(s):
    m = jnp.max(s, axis=-1, keepdims=True)
    e = jnp.exp(s - m)
    return e * pl.reciprocal(jnp.sum(e, axis=-1, keepdims=True), approx=True)


def _head_masks():
    # Constant (1, D) lane masks selecting each head's feature slice; avoids head
    # split/merge transposes and narrow (., 8) slices entirely.
    lane = lax.broadcasted_iota(jnp.int32, (1, D_MODEL), 1)
    return [((lane >= h * HEAD_DIM) & (lane < (h + 1) * HEAD_DIM)).astype(MODEL_DTYPE)
            for h in range(N_HEAD)]


def _attention_branch(xb, mask, hmasks, ln1w, ln1b, wq_t, wk_t, wv_t, qb, vb, wo_t, wob):
    """xb: (S, D) f32 residual for one batch -> attention branch output (S, D) f32."""
    xn = _layernorm(xb, ln1w, ln1b).astype(MODEL_DTYPE)
    q = (jnp.dot(xn, wq_t, preferred_element_type=jnp.float32) + qb).astype(MODEL_DTYPE)
    k = jnp.dot(xn, wk_t, preferred_element_type=jnp.float32).astype(MODEL_DTYPE)   # no bias
    v = (jnp.dot(xn, wv_t, preferred_element_type=jnp.float32) + vb).astype(MODEL_DTYPE)
    scale = 1.0 / math.sqrt(HEAD_DIM)
    att = jnp.zeros((SEQ_TOTAL, D_MODEL), jnp.float32)
    for hm in hmasks:
        # scores for head h: contraction only over head-h lanes (other lanes are zeroed)
        s = lax.dot_general(q * hm, k, (((1,), (1,)), ((), ())),
                            preferred_element_type=jnp.float32)
        s = s * scale + mask
        p = _softmax_rows(s).astype(MODEL_DTYPE)
        # p @ v restricted to head-h output lanes; heads accumulate into disjoint lanes
        att = att + jnp.dot(p, v * hm, preferred_element_type=jnp.float32)
    return jnp.dot(att.astype(MODEL_DTYPE), wo_t, preferred_element_type=jnp.float32) + wob


def _ffn_lora_branch(xn2_b, m1t_b, m2t_b, w1_t, b1, w2_t, b2):
    """xn2_b: (S, D) f32 (LN2 output); m1t_b (D, H) / m2t_b (H, D): pre-scaled LoRA deltas."""
    xb = xn2_b.astype(MODEL_DTYPE)
    h = (jnp.dot(xb, w1_t, preferred_element_type=jnp.float32)
         + jnp.dot(xb, m1t_b, preferred_element_type=jnp.float32) + b1)
    g = _gelu(h).astype(MODEL_DTYPE)
    return (jnp.dot(g, w2_t, preferred_element_type=jnp.float32)
            + jnp.dot(g, m2t_b, preferred_element_type=jnp.float32) + b2)


# ----------------------------------- kernels ----------------------------------------

def _attn_front_kernel(x0_ref, mask_ref,
                       ln1w_ref, ln1b_ref, wq_ref, wk_ref, wv_ref, qb_ref, vb_ref,
                       wo_ref, wob_ref, ln2w_ref, ln2b_ref,
                       xmid_ref, xn2_ref):
    mask = mask_ref[...]
    hm = _head_masks()
    ln1w, ln1b = ln1w_ref[...], ln1b_ref[...]
    wq, wk, wv = wq_ref[...], wk_ref[...], wv_ref[...]
    qb, vb = qb_ref[...], vb_ref[...]
    wo, wob = wo_ref[...], wob_ref[...]
    ln2w, ln2b = ln2w_ref[...], ln2b_ref[...]
    for b in range(BATCH):
        xb = x0_ref[b]                                    # (S, D) f32
        proj = _attention_branch(xb, mask, hm, ln1w, ln1b, wq, wk, wv, qb, vb, wo, wob)
        xmid = xb + proj
        xmid_ref[b] = xmid
        xn2_ref[b] = _layernorm(xmid, ln2w, ln2b)


def _ffn_attn_kernel(xmid_ref, xn2_ref, m1t_ref, m2t_ref,
                     w1_ref, b1_ref, w2_ref, b2_ref,
                     mask_ref, ln1w_ref, ln1b_ref, wq_ref, wk_ref, wv_ref, qb_ref, vb_ref,
                     wo_ref, wob_ref, ln2w_ref, ln2b_ref,
                     xmid_o_ref, xn2_o_ref):
    mask = mask_ref[...]
    hm = _head_masks()
    w1, b1, w2, b2 = w1_ref[...], b1_ref[...], w2_ref[...], b2_ref[...]
    ln1w, ln1b = ln1w_ref[...], ln1b_ref[...]
    wq, wk, wv = wq_ref[...], wk_ref[...], wv_ref[...]
    qb, vb = qb_ref[...], vb_ref[...]
    wo, wob = wo_ref[...], wob_ref[...]
    ln2w, ln2b = ln2w_ref[...], ln2b_ref[...]
    for b in range(BATCH):
        # finish layer i: LoRA FFN + residual
        x_new = xmid_ref[b] + _ffn_lora_branch(xn2_ref[b], m1t_ref[b], m2t_ref[b],
                                               w1, b1, w2, b2)
        # layer i+1: attention half + residual + LN2
        proj = _attention_branch(x_new, mask, hm, ln1w, ln1b, wq, wk, wv, qb, vb, wo, wob)
        xm2 = x_new + proj
        xmid_o_ref[b] = xm2
        xn2_o_ref[b] = _layernorm(xm2, ln2w, ln2b)


def _ffn_tail_kernel(xmid_ref, xn2_ref, m1t_ref, m2t_ref,
                     w1_ref, b1_ref, w2_ref, b2_ref, embt_ref,
                     logits_ref, newmem_ref):
    w1, b1, w2, b2 = w1_ref[...], b1_ref[...], w2_ref[...], b2_ref[...]
    embt = embt_ref[...]
    for b in range(BATCH):
        x_fin = xmid_ref[b] + _ffn_lora_branch(xn2_ref[b], m1t_ref[b], m2t_ref[b],
                                               w1, b1, w2, b2)
        main = x_fin[MEM_LEN + 2:MEM_LEN + 2 + MAX_LENS, :]           # (T, D)
        logits_ref[b] = jnp.dot(main.astype(MODEL_DTYPE), embt,
                                preferred_element_type=jnp.float32)   # (T, V) f32
        newmem_ref[b] = x_fin[SEQ_TOTAL - 1 - MEM_LEN:SEQ_TOTAL - 1, :]


# ------------------------------- pallas_call wrappers -------------------------------

def _attn_inputs(lp):
    return (lp['ln1_w'], lp['ln1_b'], lp['wq_t'], lp['wk_t'], lp['wv_t'],
            lp['wq_b'], lp['wv_b'], lp['wo_t'], lp['wo_b'], lp['ln2_w'], lp['ln2_b'])


_F32_ACT = jax.ShapeDtypeStruct((BATCH, SEQ_TOTAL, D_MODEL), jnp.float32)


def attn_front(x0, mask, lp_attn):
    args = (x0, mask) + _attn_inputs(lp_attn)
    return pl.pallas_call(
        _attn_front_kernel,
        out_shape=(_F32_ACT, _F32_ACT),
        in_specs=[_VMEM] * len(args),
        out_specs=(_VMEM, _VMEM),
    )(*args)


def ffn_attn(xmid, xn2, m1t, m2t, lp_ffn, lp_attn, mask):
    args = (xmid, xn2, m1t, m2t,
            lp_ffn['w1_t'], lp_ffn['b1'], lp_ffn['w2_t'], lp_ffn['b2'],
            mask) + _attn_inputs(lp_attn)
    return pl.pallas_call(
        _ffn_attn_kernel,
        out_shape=(_F32_ACT, _F32_ACT),
        in_specs=[_VMEM] * len(args),
        out_specs=(_VMEM, _VMEM),
    )(*args)


def ffn_tail(xmid, xn2, m1t, m2t, lp_ffn, emb_t):
    args = (xmid, xn2, m1t, m2t,
            lp_ffn['w1_t'], lp_ffn['b1'], lp_ffn['w2_t'], lp_ffn['b2'], emb_t)
    return pl.pallas_call(
        _ffn_tail_kernel,
        out_shape=(jax.ShapeDtypeStruct((BATCH, MAX_LENS, VOCAB), jnp.float32),
                   jax.ShapeDtypeStruct((BATCH, MEM_LEN, D_MODEL), jnp.float32)),
        in_specs=[_VMEM] * len(args),
        out_specs=(_VMEM, _VMEM),
    )(*args)


# ------------------------- LoRA delta matrices (tiny XLA glue) ----------------------

def lora_mats(xn2, scale, layer_idx):
    """Replicates PositionWiseFFN_Lora's outer-product + .view() weight deltas.

    xn2: (B, S, D) f32 layer-norm output.  Returns pre-scaled, pre-transposed deltas
    m1t (B, D, H), m2t (B, H, D) in bf16 so the kernel can apply them as extra
    x @ m  matmul terms (f32 accumulation).
    """
    idx = LORA_DIM * layer_idx + 1
    lora = xn2[:, idx:idx + LORA_DIM, :]                       # (B, 16, D)
    even = lora[:, 0::2, :]                                    # (B, 8, D)
    odd = lora[:, 1::2, :]                                     # (B, 8, D)
    rm = jnp.einsum('bjd,bje->bjde', even, odd)                # (B, 8, D, D) f32
    half = rm.shape[1] // 2
    m1 = rm[:, :half].reshape(BATCH, FFN_HIDDEN, D_MODEL)      # (B, H, D)
    m2 = rm[:, half:].reshape(BATCH, D_MODEL, FFN_HIDDEN)      # (B, D, H)
    m1t = (jnp.swapaxes(m1, 1, 2) * scale).astype(MODEL_DTYPE) # (B, D, H)
    m2t = (jnp.swapaxes(m2, 1, 2) * scale).astype(MODEL_DTYPE) # (B, H, D)
    return m1t, m2t


# ----------------------------- model forward (glue) ---------------------------------

def train_block(params, ids_blk, memory):
    B, T = ids_blk.shape
    x_tok = jnp.take(params['emb'], ids_blk, axis=0) + params['pos_emb'][None, :T]  # bf16
    mem_tok = jnp.broadcast_to(params['memory_token'], (B, 1, D_MODEL)).astype(jnp.float32)
    mem = memory.astype(jnp.float32)
    x0 = jnp.concatenate([mem_tok, mem, mem_tok, x_tok.astype(jnp.float32),
                          mem_tok, mem, mem_tok], axis=1)      # (B, S_total, D) f32

    mask = params['mask']
    layers = params['layers']

    xmid, xn2 = attn_front(x0, mask, layers[0])
    logits = new_mem = None
    for i in range(N_LAYER):
        m1t, m2t = lora_mats(xn2, layers[i]['scale'], i)
        if i + 1 < N_LAYER:
            xmid, xn2 = ffn_attn(xmid, xn2, m1t, m2t, layers[i], layers[i + 1], mask)
        else:
            logits, new_mem = ffn_tail(xmid, xn2, m1t, m2t, layers[i], params['emb_t'])
    return logits, new_mem


def model_forward(params, x_ids):
    B, Ttot = x_ids.shape
    block_times = Ttot // MAX_LENS
    memory = params['memory']                                   # f32 nn.Parameter
    outs = []
    for i in range(block_times):
        blk = lax.dynamic_slice_in_dim(x_ids, i * MAX_LENS, MAX_LENS, axis=1)
        logits, new_memory = train_block(params, blk, memory)
        outs.append(logits)
        memory = (memory + new_memory) / 2.0
    return jnp.concatenate(outs, axis=1)


# ----------------------------- deterministic parameters -----------------------------

def make_params(seed=0):
    key = jax.random.PRNGKey(seed)
    counter = [0]

    def nk():
        counter[0] += 1
        return jax.random.fold_in(key, counter[0])

    def normal(shape, std=0.02):
        return jax.random.normal(nk(), shape, jnp.float32) * std

    def xavier_uniform(shape, fan_in, fan_out):
        bound = math.sqrt(6.0 / (fan_in + fan_out))
        return jax.random.uniform(nk(), shape, jnp.float32, -bound, bound)

    emb = normal((VOCAB, D_MODEL)).astype(MODEL_DTYPE)
    params = {
        'emb': emb,
        'emb_t': jnp.transpose(emb),                            # (D, V) bf16, tied logits
        'pos_emb': normal((MAX_LENS, D_MODEL)).astype(MODEL_DTYPE),
        'memory_token': xavier_uniform((1, 1, D_MODEL), D_MODEL, D_MODEL),
        'memory': xavier_uniform((BATCH, MEM_LEN, D_MODEL), MEM_LEN * D_MODEL, BATCH * D_MODEL),
    }

    layers = []
    for _ in range(N_LAYER):
        wq, wk = normal((D_MODEL, D_MODEL)), normal((D_MODEL, D_MODEL))
        wv, wo = normal((D_MODEL, D_MODEL)), normal((D_MODEL, D_MODEL))
        w1 = normal((FFN_HIDDEN, D_MODEL))
        w2 = normal((D_MODEL, FFN_HIDDEN))
        lp = {
            # weights pre-transposed to (in, out) and pre-cast to bf16 (hoisted once)
            'wq_t': jnp.transpose(wq).astype(MODEL_DTYPE),
            'wk_t': jnp.transpose(wk).astype(MODEL_DTYPE),      # wk has no bias
            'wv_t': jnp.transpose(wv).astype(MODEL_DTYPE),
            'wo_t': jnp.transpose(wo).astype(MODEL_DTYPE),
            'wq_b': jnp.zeros((1, D_MODEL), jnp.float32),
            'wv_b': jnp.zeros((1, D_MODEL), jnp.float32),
            'wo_b': jnp.zeros((1, D_MODEL), jnp.float32),
            'ln1_w': jnp.ones((1, D_MODEL), jnp.float32),
            'ln1_b': jnp.zeros((1, D_MODEL), jnp.float32),
            'ln2_w': jnp.ones((1, D_MODEL), jnp.float32),
            'ln2_b': jnp.zeros((1, D_MODEL), jnp.float32),
            'w1_t': jnp.transpose(w1).astype(MODEL_DTYPE),      # (D, H)
            'b1': jnp.zeros((1, FFN_HIDDEN), jnp.float32),
            'w2_t': jnp.transpose(w2).astype(MODEL_DTYPE),      # (H, D)
            'b2': jnp.zeros((1, D_MODEL), jnp.float32),
            'scale': jnp.float32(0.001),
        }
        layers.append(lp)
    params['layers'] = layers

    # the registered `mask` buffer (memory_mask) from __init__, kept in f32
    S = SEQ_TOTAL
    ninf = -jnp.inf
    causal = jnp.triu(jnp.full((MAX_LENS, MAX_LENS), ninf, jnp.float32), k=1)
    mm = jnp.zeros((S, S), jnp.float32)
    mm = mm.at[MEM_LEN + 2:S - MEM_LEN - 2, MEM_LEN + 2:S - MEM_LEN - 2].add(causal)
    mm = mm.at[:MEM_LEN + 2, MEM_LEN + 2:].set(ninf)
    mm = mm.at[MEM_LEN + 2:MEM_LEN + 2 + MAX_LENS, S - MEM_LEN - 2:].set(ninf)
    params['mask'] = mm
    return params


# ----------------------------------- main --------------------------------------------

if __name__ == "__main__":
    # TODO(synk): dropout (p=0) and torch.utils.checkpoint are forward no-ops and are omitted.
    params = make_params(seed=0)

    # input token ids: (BATCH, 2 * MAX_LENS) -> 2 memory-recurrence blocks
    key_in = jax.random.PRNGKey(0)
    x_ids = jax.random.randint(key_in, (BATCH, 2 * MAX_LENS), 0, VOCAB, dtype=jnp.int32)

    fwd = jax.jit(model_forward)
    logits = jax.block_until_ready(fwd(params, x_ids))

    assert logits.shape == (BATCH, 2 * MAX_LENS, VOCAB), logits.shape
    assert bool(jnp.all(jnp.isfinite(logits))), "non-finite logits"
    print("KERNEL_OK")
</pallas_src>

<mosaic_0001>
module attributes {stable_mosaic.version = 11 : i64} {
  func.func @_attn_front_kernel(%arg0: memref<2x36x32xf32, #tpu.memory_space<vmem>>, %arg1: memref<36x36xf32, #tpu.memory_space<vmem>>, %arg2: memref<1x32xf32, #tpu.memory_space<vmem>>, %arg3: memref<1x32xf32, #tpu.memory_space<vmem>>, %arg4: memref<32x32xbf16, #tpu.memory_space<vmem>>, %arg5: memref<32x32xbf16, #tpu.memory_space<vmem>>, %arg6: memref<32x32xbf16, #tpu.memory_space<vmem>>, %arg7: memref<1x32xf32, #tpu.memory_space<vmem>>, %arg8: memref<1x32xf32, #tpu.memory_space<vmem>>, %arg9: memref<32x32xbf16, #tpu.memory_space<vmem>>, %arg10: memref<1x32xf32, #tpu.memory_space<vmem>>, %arg11: memref<1x32xf32, #tpu.memory_space<vmem>>, %arg12: memref<1x32xf32, #tpu.memory_space<vmem>>, %arg13: memref<2x36x32xf32, #tpu.memory_space<vmem>>, %arg14: memref<2x36x32xf32, #tpu.memory_space<vmem>>) attributes {dimension_semantics = [], scalar_prefetch = 0 : i64, scratch_operands = 0 : i64, tpu.core_type = #tpu.core_type<tc>} {
    %c0 = arith.constant 0 : index
    %c0_0 = arith.constant 0 : index
    %0 = vector.load %arg1[%c0, %c0_0] : memref<36x36xf32, #tpu.memory_space<vmem>>, vector<36x36xf32>
    %1 = tpu.iota {dimensions = array<i32: 1>} : vector<1x32xi32>
    %c0_i32 = arith.constant 0 : i32
    %2 = vector.broadcast %c0_i32 : i32 to vector<1x32xi32>
    %3 = arith.cmpi sge, %1, %2 : vector<1x32xi32>
    %c8_i32 = arith.constant 8 : i32
    %4 = vector.broadcast %c8_i32 : i32 to vector<1x32xi32>
    %5 = arith.cmpi slt, %1, %4 : vector<1x32xi32>
    %6 = arith.andi %3, %5 : vector<1x32xi1>
    %7 = arith.extui %6 : vector<1x32xi1> to vector<1x32xi32>
    %8 = arith.sitofp %7 : vector<1x32xi32> to vector<1x32xf32>
    %9 = arith.truncf %8 : vector<1x32xf32> to vector<1x32xbf16>
    %c8_i32_1 = arith.constant 8 : i32
    %10 = vector.broadcast %c8_i32_1 : i32 to vector<1x32xi32>
    %11 = arith.cmpi sge, %1, %10 : vector<1x32xi32>
    %c16_i32 = arith.constant 16 : i32
    %12 = vector.broadcast %c16_i32 : i32 to vector<1x32xi32>
    %13 = arith.cmpi slt, %1, %12 : vector<1x32xi32>
    %14 = arith.andi %11, %13 : vector<1x32xi1>
    %15 = arith.extui %14 : vector<1x32xi1> to vector<1x32xi32>
    %16 = arith.sitofp %15 : vector<1x32xi32> to vector<1x32xf32>
    %17 = arith.truncf %16 : vector<1x32xf32> to vector<1x32xbf16>
    %c16_i32_2 = arith.constant 16 : i32
    %18 = vector.broadcast %c16_i32_2 : i32 to vector<1x32xi32>
    %19 = arith.cmpi sge, %1, %18 : vector<1x32xi32>
    %c24_i32 = arith.constant 24 : i32
    %20 = vector.broadcast %c24_i32 : i32 to vector<1x32xi32>
    %21 = arith.cmpi slt, %1, %20 : vector<1x32xi32>
    %22 = arith.andi %19, %21 : vector<1x32xi1>
    %23 = arith.extui %22 : vector<1x32xi1> to vector<1x32xi32>
    %24 = arith.sitofp %23 : vector<1x32xi32> to vector<1x32xf32>
    %25 = arith.truncf %24 : vector<1x32xf32> to vector<1x32xbf16>
    %c24_i32_3 = arith.constant 24 : i32
    %26 = vector.broadcast %c24_i32_3 : i32 to vector<1x32xi32>
    %27 = arith.cmpi sge, %1, %26 : vector<1x32xi32>
    %c32_i32 = arith.constant 32 : i32
    %28 = vector.broadcast %c32_i32 : i32 to vector<1x32xi32>
    %29 = arith.cmpi slt, %1, %28 : vector<1x32xi32>
    %30 = arith.andi %27, %29 : vector<1x32xi1>
    %31 = arith.extui %30 : vector<1x32xi1> to vector<1x32xi32>
    %32 = arith.sitofp %31 : vector<1x32xi32> to vector<1x32xf32>
    %33 = arith.truncf %32 : vector<1x32xf32> to vector<1x32xbf16>
    %c0_4 = arith.constant 0 : index
    %c0_5 = arith.constant 0 : index
    %34 = vector.load %arg2[%c0_4, %c0_5] : memref<1x32xf32, #tpu.memory_space<vmem>>, vector<1x32xf32>
    %c0_6 = arith.constant 0 : index
    %c0_7 = arith.constant 0 : index
    %35 = vector.load %arg3[%c0_6, %c0_7] : memref<1x32xf32, #tpu.memory_space<vmem>>, vector<1x32xf32>
    %c0_8 = arith.constant 0 : index
    %c0_9 = arith.constant 0 : index
    %36 = vector.load %arg4[%c0_8, %c0_9] : memref<32x32xbf16, #tpu.memory_space<vmem>>, vector<32x32xbf16>
    %c0_10 = arith.constant 0 : index
    %c0_11 = arith.constant 0 : index
    %37 = vector.load %arg5[%c0_10, %c0_11] : memref<32x32xbf16, #tpu.memory_space<vmem>>, vector<32x32xbf16>
    %c0_12 = arith.constant 0 : index
    %c0_13 = arith.constant 0 : index
    %38 = vector.load %arg6[%c0_12, %c0_13] : memref<32x32xbf16, #tpu.memory_space<vmem>>, vector<32x32xbf16>
    %c0_14 = arith.constant 0 : index
    %c0_15 = arith.constant 0 : index
    %39 = vector.load %arg7[%c0_14, %c0_15] : memref<1x32xf32, #tpu.memory_space<vmem>>, vector<1x32xf32>
    %c0_16 = arith.constant 0 : index
    %c0_17 = arith.constant 0 : index
    %40 = vector.load %arg8[%c0_16, %c0_17] : memref<1x32xf32, #tpu.memory_space<vmem>>, vector<1x32xf32>
    %c0_18 = arith.constant 0 : index
    %c0_19 = arith.constant 0 : index
    %41 = vector.load %arg9[%c0_18, %c0_19] : memref<32x32xbf16, #tpu.memory_space<vmem>>, vector<32x32xbf16>
    %c0_20 = arith.constant 0 : index
    %c0_21 = arith.constant 0 : index
    %42 = vector.load %arg10[%c0_20, %c0_21] : memref<1x32xf32, #tpu.memory_space<vmem>>, vector<1x32xf32>
    %c0_22 = arith.constant 0 : index
    %c0_23 = arith.constant 0 : index
    %43 = vector.load %arg11[%c0_22, %c0_23] : memref<1x32xf32, #tpu.memory_space<vmem>>, vector<1x32xf32>
    %c0_24 = arith.constant 0 : index
    %c0_25 = arith.constant 0 : index
    %44 = vector.load %arg12[%c0_24, %c0_25] : memref<1x32xf32, #tpu.memory_space<vmem>>, vector<1x32xf32>
    %c0_26 = arith.constant 0 : index
    %c0_27 = arith.constant 0 : index
    %c0_28 = arith.constant 0 : index
    %45 = vector.load %arg0[%c0_26, %c0_27, %c0_28] : memref<2x36x32xf32, #tpu.memory_space<vmem>>, vector<1x36x32xf32>
    %46 = vector.shape_cast %45 : vector<1x36x32xf32> to vector<36x32xf32>
    %cst = arith.constant dense<0.000000e+00> : vector<36xf32>
    %47 = vector.multi_reduction <add>, %46, %cst [1] : vector<36x32xf32> to vector<36xf32>
    %48 = vector.shape_cast %47 : vector<36xf32> to vector<36x1xf32>
    %cst_29 = arith.constant 3.200000e+01 : f32
    %49 = vector.broadcast %cst_29 : f32 to vector<36x1xf32>
    %50 = arith.divf %48, %49 : vector<36x1xf32>
    %51 = vector.broadcast %50 : vector<36x1xf32> to vector<36x32xf32>
    %52 = arith.subf %46, %51 : vector<36x32xf32>
    %53 = arith.mulf %52, %52 : vector<36x32xf32>
    %cst_30 = arith.constant dense<0.000000e+00> : vector<36xf32>
    %54 = vector.multi_reduction <add>, %53, %cst_30 [1] : vector<36x32xf32> to vector<36xf32>
    %55 = vector.shape_cast %54 : vector<36xf32> to vector<36x1xf32>
    %cst_31 = arith.constant 3.200000e+01 : f32
    %56 = vector.broadcast %cst_31 : f32 to vector<36x1xf32>
    %57 = arith.divf %55, %56 : vector<36x1xf32>
    %cst_32 = arith.constant 9.99999974E-6 : f32
    %58 = vector.broadcast %cst_32 : f32 to vector<36x1xf32>
    %59 = arith.addf %57, %58 : vector<36x1xf32>
    %60 = math.rsqrt %59 : vector<36x1xf32>
    %61 = vector.broadcast %60 : vector<36x1xf32> to vector<36x32xf32>
    %62 = arith.mulf %52, %61 : vector<36x32xf32>
    %63 = vector.broadcast %34 : vector<1x32xf32> to vector<36x32xf32>
    %64 = arith.mulf %62, %63 : vector<36x32xf32>
    %65 = vector.broadcast %35 : vector<1x32xf32> to vector<36x32xf32>
    %66 = arith.addf %64, %65 : vector<36x32xf32>
    %67 = arith.truncf %66 : vector<36x32xf32> to vector<36x32xbf16>
    %cst_33 = arith.constant dense<0.000000e+00> : vector<36x32xf32>
    %68 = tpu.matmul %67, %36, %cst_33 {dimension_numbers = #tpu.dot_dimension_numbers<[1], [0], [0], [1], [0, 0, 1, 1], [], []>} : vector<36x32xbf16>, vector<32x32xbf16>, vector<36x32xf32> -> vector<36x32xf32>
    %69 = vector.broadcast %39 : vector<1x32xf32> to vector<36x32xf32>
    %70 = arith.addf %68, %69 : vector<36x32xf32>
    %71 = arith.truncf %70 : vector<36x32xf32> to vector<36x32xbf16>
    %cst_34 = arith.constant dense<0.000000e+00> : vector<36x32xf32>
    %72 = tpu.matmul %67, %37, %cst_34 {dimension_numbers = #tpu.dot_dimension_numbers<[1], [0], [0], [1], [0, 0, 1, 1], [], []>} : vector<36x32xbf16>, vector<32x32xbf16>, vector<36x32xf32> -> vector<36x32xf32>
    %73 = arith.truncf %72 : vector<36x32xf32> to vector<36x32xbf16>
    %cst_35 = arith.constant dense<0.000000e+00> : vector<36x32xf32>
    %74 = tpu.matmul %67, %38, %cst_35 {dimension_numbers = #tpu.dot_dimension_numbers<[1], [0], [0], [1], [0, 0, 1, 1], [], []>} : vector<36x32xbf16>, vector<32x32xbf16>, vector<36x32xf32> -> vector<36x32xf32>
    %75 = vector.broadcast %40 : vector<1x32xf32> to vector<36x32xf32>
    %76 = arith.addf %74, %75 : vector<36x32xf32>
    %77 = arith.truncf %76 : vector<36x32xf32> to vector<36x32xbf16>
    %cst_36 = arith.constant 0.000000e+00 : f32
    %78 = vector.broadcast %cst_36 : f32 to vector<36x32xf32>
    %79 = vector.broadcast %9 : vector<1x32xbf16> to vector<36x32xbf16>
    %80 = arith.mulf %71, %79 : vector<36x32xbf16>
    %cst_37 = arith.constant dense<0.000000e+00> : vector<36x36xf32>
    %81 = tpu.matmul %80, %73, %cst_37 {dimension_numbers = #tpu.dot_dimension_numbers<[1], [1], [0], [0], [0, 0, 1, 0], [], []>} : vector<36x32xbf16>, vector<36x32xbf16>, vector<36x36xf32> -> vector<36x36xf32>
    %cst_38 = arith.constant 0.353553385 : f32
    %82 = vector.broadcast %cst_38 : f32 to vector<36x36xf32>
    %83 = arith.mulf %81, %82 : vector<36x36xf32>
    %84 = arith.addf %83, %0 : vector<36x36xf32>
    %cst_39 = arith.constant dense<0xFF800000> : vector<36xf32>
    %85 = vector.multi_reduction <maximumf>, %84, %cst_39 [1] : vector<36x36xf32> to vector<36xf32>
    %86 = vector.shape_cast %85 : vector<36xf32> to vector<36x1xf32>
    %87 = vector.broadcast %86 : vector<36x1xf32> to vector<36x36xf32>
    %88 = arith.subf %84, %87 : vector<36x36xf32>
    %89 = math.exp %88 : vector<36x36xf32>
    %cst_40 = arith.constant dense<0.000000e+00> : vector<36xf32>
    %90 = vector.multi_reduction <add>, %89, %cst_40 [1] : vector<36x36xf32> to vector<36xf32>
    %91 = vector.shape_cast %90 : vector<36xf32> to vector<36x1xf32>
    %92 = tpu.reciprocal %91 {approx = true} : vector<36x1xf32> -> vector<36x1xf32>
    %93 = vector.broadcast %92 : vector<36x1xf32> to vector<36x36xf32>
    %94 = arith.mulf %89, %93 : vector<36x36xf32>
    %95 = arith.truncf %94 : vector<36x36xf32> to vector<36x36xbf16>
    %96 = vector.broadcast %9 : vector<1x32xbf16> to vector<36x32xbf16>
    %97 = arith.mulf %77, %96 : vector<36x32xbf16>
    %cst_41 = arith.constant dense<0.000000e+00> : vector<36x32xf32>
    %98 = tpu.matmul %95, %97, %cst_41 {dimension_numbers = #tpu.dot_dimension_numbers<[1], [0], [0], [1], [0, 0, 1, 1], [], []>} : vector<36x36xbf16>, vector<36x32xbf16>, vector<36x32xf32> -> vector<36x32xf32>
    %99 = arith.addf %78, %98 : vector<36x32xf32>
    %100 = vector.broadcast %17 : vector<1x32xbf16> to vector<36x32xbf16>
    %101 = arith.mulf %71, %100 : vector<36x32xbf16>
    %cst_42 = arith.constant dense<0.000000e+00> : vector<36x36xf32>
    %102 = tpu.matmul %101, %73, %cst_42 {dimension_numbers = #tpu.dot_dimension_numbers<[1], [1], [0], [0], [0, 0, 1, 0], [], []>} : vector<36x32xbf16>, vector<36x32xbf16>, vector<36x36xf32> -> vector<36x36xf32>
    %cst_43 = arith.constant 0.353553385 : f32
    %103 = vector.broadcast %cst_43 : f32 to vector<36x36xf32>
    %104 = arith.mulf %102, %103 : vector<36x36xf32>
    %105 = arith.addf %104, %0 : vector<36x36xf32>
    %cst_44 = arith.constant dense<0xFF800000> : vector<36xf32>
    %106 = vector.multi_reduction <maximumf>, %105, %cst_44 [1] : vector<36x36xf32> to vector<36xf32>
    %107 = vector.shape_cast %106 : vector<36xf32> to vector<36x1xf32>
    %108 = vector.broadcast %107 : vector<36x1xf32> to vector<36x36xf32>
    %109 = arith.subf %105, %108 : vector<36x36xf32>
    %110 = math.exp %109 : vector<36x36xf32>
    %cst_45 = arith.constant dense<0.000000e+00> : vector<36xf32>
    %111 = vector.multi_reduction <add>, %110, %cst_45 [1] : vector<36x36xf32> to vector<36xf32>
    %112 = vector.shape_cast %111 : vector<36xf32> to vector<36x1xf32>
    %113 = tpu.reciprocal %112 {approx = true} : vector<36x1xf32> -> vector<36x1xf32>
    %114 = vector.broadcast %113 : vector<36x1xf32> to vector<36x36xf32>
    %115 = arith.mulf %110, %114 : vector<36x36xf32>
    %116 = arith.truncf %115 : vector<36x36xf32> to vector<36x36xbf16>
    %117 = vector.broadcast %17 : vector<1x32xbf16> to vector<36x32xbf16>
    %118 = arith.mulf %77, %117 : vector<36x32xbf16>
    %cst_46 = arith.constant dense<0.000000e+00> : vector<36x32xf32>
    %119 = tpu.matmul %116, %118, %cst_46 {dimension_numbers = #tpu.dot_dimension_numbers<[1], [0], [0], [1], [0, 0, 1, 1], [], []>} : vector<36x36xbf16>, vector<36x32xbf16>, vector<36x32xf32> -> vector<36x32xf32>
    %120 = arith.addf %99, %119 : vector<36x32xf32>
    %121 = vector.broadcast %25 : vector<1x32xbf16> to vector<36x32xbf16>
    %122 = arith.mulf %71, %121 : vector<36x32xbf16>
    %cst_47 = arith.constant dense<0.000000e+00> : vector<36x36xf32>
    %123 = tpu.matmul %122, %73, %cst_47 {dimension_numbers = #tpu.dot_dimension_numbers<[1], [1], [0], [0], [0, 0, 1, 0], [], []>} : vector<36x32xbf16>, vector<36x32xbf16>, vector<36x36xf32> -> vector<36x36xf32>
    %cst_48 = arith.constant 0.353553385 : f32
    %124 = vector.broadcast %cst_48 : f32 to vector<36x36xf32>
    %125 = arith.mulf %123, %124 : vector<36x36xf32>
    %126 = arith.addf %125, %0 : vector<36x36xf32>
    %cst_49 = arith.constant dense<0xFF800000> : vector<36xf32>
    %127 = vector.multi_reduction <maximumf>, %126, %cst_49 [1] : vector<36x36xf32> to vector<36xf32>
    %128 = vector.shape_cast %127 : vector<36xf32> to vector<36x1xf32>
    %129 = vector.broadcast %128 : vector<36x1xf32> to vector<36x36xf32>
    %130 = arith.subf %126, %129 : vector<36x36xf32>
    %131 = math.exp %130 : vector<36x36xf32>
    %cst_50 = arith.constant dense<0.000000e+00> : vector<36xf32>
    %132 = vector.multi_reduction <add>, %131, %cst_50 [1] : vector<36x36xf32> to vector<36xf32>
    %133 = vector.shape_cast %132 : vector<36xf32> to vector<36x1xf32>
    %134 = tpu.reciprocal %133 {approx = true} : vector<36x1xf32> -> vector<36x1xf32>
    %135 = vector.broadcast %134 : vector<36x1xf32> to vector<36x36xf32>
    %136 = arith.mulf %131, %135 : vector<36x36xf32>
    %137 = arith.truncf %136 : vector<36x36xf32> to vector<36x36xbf16>
    %138 = vector.broadcast %25 : vector<1x32xbf16> to vector<36x32xbf16>
    %139 = arith.mulf %77, %138 : vector<36x32xbf16>
    %cst_51 = arith.constant dense<0.000000e+00> : vector<36x32xf32>
    %140 = tpu.matmul %137, %139, %cst_51 {dimension_numbers = #tpu.dot_dimension_numbers<[1], [0], [0], [1], [0, 0, 1, 1], [], []>} : vector<36x36xbf16>, vector<36x32xbf16>, vector<36x32xf32> -> vector<36x32xf32>
    %141 = arith.addf %120, %140 : vector<36x32xf32>
    %142 = vector.broadcast %33 : vector<1x32xbf16> to vector<36x32xbf16>
    %143 = arith.mulf %71, %142 : vector<36x32xbf16>
    %cst_52 = arith.constant dense<0.000000e+00> : vector<36x36xf32>
    %144 = tpu.matmul %143, %73, %cst_52 {dimension_numbers = #tpu.dot_dimension_numbers<[1], [1], [0], [0], [0, 0, 1, 0], [], []>} : vector<36x32xbf16>, vector<36x32xbf16>, vector<36x36xf32> -> vector<36x36xf32>
    %cst_53 = arith.constant 0.353553385 : f32
    %145 = vector.broadcast %cst_53 : f32 to vector<36x36xf32>
    %146 = arith.mulf %144, %145 : vector<36x36xf32>
    %147 = arith.addf %146, %0 : vector<36x36xf32>
    %cst_54 = arith.constant dense<0xFF800000> : vector<36xf32>
    %148 = vector.multi_reduction <maximumf>, %147, %cst_54 [1] : vector<36x36xf32> to vector<36xf32>
    %149 = vector.shape_cast %148 : vector<36xf32> to vector<36x1xf32>
    %150 = vector.broadcast %149 : vector<36x1xf32> to vector<36x36xf32>
    %151 = arith.subf %147, %150 : vector<36x36xf32>
    %152 = math.exp %151 : vector<36x36xf32>
    %cst_55 = arith.constant dense<0.000000e+00> : vector<36xf32>
    %153 = vector.multi_reduction <add>, %152, %cst_55 [1] : vector<36x36xf32> to vector<36xf32>
    %154 = vector.shape_cast %153 : vector<36xf32> to vector<36x1xf32>
    %155 = tpu.reciprocal %154 {approx = true} : vector<36x1xf32> -> vector<36x1xf32>
    %156 = vector.broadcast %155 : vector<36x1xf32> to vector<36x36xf32>
    %157 = arith.mulf %152, %156 : vector<36x36xf32>
    %158 = arith.truncf %157 : vector<36x36xf32> to vector<36x36xbf16>
    %159 = vector.broadcast %33 : vector<1x32xbf16> to vector<36x32xbf16>
    %160 = arith.mulf %77, %159 : vector<36x32xbf16>
    %cst_56 = arith.constant dense<0.000000e+00> : vector<36x32xf32>
    %161 = tpu.matmul %158, %160, %cst_56 {dimension_numbers = #tpu.dot_dimension_numbers<[1], [0], [0], [1], [0, 0, 1, 1], [], []>} : vector<36x36xbf16>, vector<36x32xbf16>, vector<36x32xf32> -> vector<36x32xf32>
    %162 = arith.addf %141, %161 : vector<36x32xf32>
    %163 = arith.truncf %162 : vector<36x32xf32> to vector<36x32xbf16>
    %cst_57 = arith.constant dense<0.000000e+00> : vector<36x32xf32>
    %164 = tpu.matmul %163, %41, %cst_57 {dimension_numbers = #tpu.dot_dimension_numbers<[1], [0], [0], [1], [0, 0, 1, 1], [], []>} : vector<36x32xbf16>, vector<32x32xbf16>, vector<36x32xf32> -> vector<36x32xf32>
    %165 = vector.broadcast %42 : vector<1x32xf32> to vector<36x32xf32>
    %166 = arith.addf %164, %165 : vector<36x32xf32>
    %167 = arith.addf %46, %166 : vector<36x32xf32>
    %c0_58 = arith.constant 0 : index
    %c0_59 = arith.constant 0 : index
    %c0_60 = arith.constant 0 : index
    %168 = vector.load %arg13[%c0_58, %c0_59, %c0_60] : memref<2x36x32xf32, #tpu.memory_space<vmem>>, vector<1x36x32xf32>
    %169 = vector.shape_cast %168 : vector<1x36x32xf32> to vector<36x32xf32>
    %170 = vector.shape_cast %167 : vector<36x32xf32> to vector<1x36x32xf32>
    tpu.vector_store %arg13[%c0_58, %c0_59, %c0_60], %170 {strides = array<i32>} : memref<2x36x32xf32, #tpu.memory_space<vmem>>, vector<1x36x32xf32>,
    %cst_61 = arith.constant dense<0.000000e+00> : vector<36xf32>
    %171 = vector.multi_reduction <add>, %167, %cst_61 [1] : vector<36x32xf32> to vector<36xf32>
    %172 = vector.shape_cast %171 : vector<36xf32> to vector<36x1xf32>
    %cst_62 = arith.constant 3.200000e+01 : f32
    %173 = vector.broadcast %cst_62 : f32 to vector<36x1xf32>
    %174 = arith.divf %172, %173 : vector<36x1xf32>
    %175 = vector.broadcast %174 : vector<36x1xf32> to vector<36x32xf32>
    %176 = arith.subf %167, %175 : vector<36x32xf32>
    %177 = arith.mulf %176, %176 : vector<36x32xf32>
    %cst_63 = arith.constant dense<0.000000e+00> : vector<36xf32>
    %178 = vector.multi_reduction <add>, %177, %cst_63 [1] : vector<36x32xf32> to vector<36xf32>
    %179 = vector.shape_cast %178 : vector<36xf32> to vector<36x1xf32>
    %cst_64 = arith.constant 3.200000e+01 : f32
    %180 = vector.broadcast %cst_64 : f32 to vector<36x1xf32>
    %181 = arith.divf %179, %180 : vector<36x1xf32>
    %cst_65 = arith.constant 9.99999974E-6 : f32
    %182 = vector.broadcast %cst_65 : f32 to vector<36x1xf32>
    %183 = arith.addf %181, %182 : vector<36x1xf32>
    %184 = math.rsqrt %183 : vector<36x1xf32>
    %185 = vector.broadcast %184 : vector<36x1xf32> to vector<36x32xf32>
    %186 = arith.mulf %176, %185 : vector<36x32xf32>
    %187 = vector.broadcast %43 : vector<1x32xf32> to vector<36x32xf32>
    %188 = arith.mulf %186, %187 : vector<36x32xf32>
    %189 = vector.broadcast %44 : vector<1x32xf32> to vector<36x32xf32>
    %190 = arith.addf %188, %189 : vector<36x32xf32>
    %c0_66 = arith.constant 0 : index
    %c0_67 = arith.constant 0 : index
    %c0_68 = arith.constant 0 : index
    %191 = vector.load %arg14[%c0_66, %c0_67, %c0_68] : memref<2x36x32xf32, #tpu.memory_space<vmem>>, vector<1x36x32xf32>
    %192 = vector.shape_cast %191 : vector<1x36x32xf32> to vector<36x32xf32>
    %193 = vector.shape_cast %190 : vector<36x32xf32> to vector<1x36x32xf32>
    tpu.vector_store %arg14[%c0_66, %c0_67, %c0_68], %193 {strides = array<i32>} : memref<2x36x32xf32, #tpu.memory_space<vmem>>, vector<1x36x32xf32>,
    %c1 = arith.constant 1 : index
    %c0_69 = arith.constant 0 : index
    %c0_70 = arith.constant 0 : index
    %194 = vector.load %arg0[%c1, %c0_69, %c0_70] : memref<2x36x32xf32, #tpu.memory_space<vmem>>, vector<1x36x32xf32>
    %195 = vector.shape_cast %194 : vector<1x36x32xf32> to vector<36x32xf32>
    %cst_71 = arith.constant dense<0.000000e+00> : vector<36xf32>
    %196 = vector.multi_reduction <add>, %195, %cst_71 [1] : vector<36x32xf32> to vector<36xf32>
    %197 = vector.shape_cast %196 : vector<36xf32> to vector<36x1xf32>
    %cst_72 = arith.constant 3.200000e+01 : f32
    %198 = vector.broadcast %cst_72 : f32 to vector<36x1xf32>
    %199 = arith.divf %197, %198 : vector<36x1xf32>
    %200 = vector.broadcast %199 : vector<36x1xf32> to vector<36x32xf32>
    %201 = arith.subf %195, %200 : vector<36x32xf32>
    %202 = arith.mulf %201, %201 : vector<36x32xf32>
    %cst_73 = arith.constant dense<0.000000e+00> : vector<36xf32>
    %203 = vector.multi_reduction <add>, %202, %cst_73 [1] : vector<36x32xf32> to vector<36xf32>
    %204 = vector.shape_cast %203 : vector<36xf32> to vector<36x1xf32>
    %cst_74 = arith.constant 3.200000e+01 : f32
    %205 = vector.broadcast %cst_74 : f32 to vector<36x1xf32>
    %206 = arith.divf %204, %205 : vector<36x1xf32>
    %cst_75 = arith.constant 9.99999974E-6 : f32
    %207 = vector.broadcast %cst_75 : f32 to vector<36x1xf32>
    %208 = arith.addf %206, %207 : vector<36x1xf32>
    %209 = math.rsqrt %208 : vector<36x1xf32>
    %210 = vector.broadcast %209 : vector<36x1xf32> to vector<36x32xf32>
    %211 = arith.mulf %201, %210 : vector<36x32xf32>
    %212 = vector.broadcast %34 : vector<1x32xf32> to vector<36x32xf32>
    %213 = arith.mulf %211, %212 : vector<36x32xf32>
    %214 = vector.broadcast %35 : vector<1x32xf32> to vector<36x32xf32>
    %215 = arith.addf %213, %214 : vector<36x32xf32>
    %216 = arith.truncf %215 : vector<36x32xf32> to vector<36x32xbf16>
    %cst_76 = arith.constant dense<0.000000e+00> : vector<36x32xf32>
    %217 = tpu.matmul %216, %36, %cst_76 {dimension_numbers = #tpu.dot_dimension_numbers<[1], [0], [0], [1], [0, 0, 1, 1], [], []>} : vector<36x32xbf16>, vector<32x32xbf16>, vector<36x32xf32> -> vector<36x32xf32>
    %218 = vector.broadcast %39 : vector<1x32xf32> to vector<36x32xf32>
    %219 = arith.addf %217, %218 : vector<36x32xf32>
    %220 = arith.truncf %219 : vector<36x32xf32> to vector<36x32xbf16>
    %cst_77 = arith.constant dense<0.000000e+00> : vector<36x32xf32>
    %221 = tpu.matmul %216, %37, %cst_77 {dimension_numbers = #tpu.dot_dimension_numbers<[1], [0], [0], [1], [0, 0, 1, 1], [], []>} : vector<36x32xbf16>, vector<32x32xbf16>, vector<36x32xf32> -> vector<36x32xf32>
    %222 = arith.truncf %221 : vector<36x32xf32> to vector<36x32xbf16>
    %cst_78 = arith.constant dense<0.000000e+00> : vector<36x32xf32>
    %223 = tpu.matmul %216, %38, %cst_78 {dimension_numbers = #tpu.dot_dimension_numbers<[1], [0], [0], [1], [0, 0, 1, 1], [], []>} : vector<36x32xbf16>, vector<32x32xbf16>, vector<36x32xf32> -> vector<36x32xf32>
    %224 = vector.broadcast %40 : vector<1x32xf32> to vector<36x32xf32>
    %225 = arith.addf %223, %224 : vector<36x32xf32>
    %226 = arith.truncf %225 : vector<36x32xf32> to vector<36x32xbf16>
    %cst_79 = arith.constant 0.000000e+00 : f32
    %227 = vector.broadcast %cst_79 : f32 to vector<36x32xf32>
    %228 = vector.broadcast %9 : vector<1x32xbf16> to vector<36x32xbf16>
    %229 = arith.mulf %220, %228 : vector<36x32xbf16>
    %cst_80 = arith.constant dense<0.000000e+00> : vector<36x36xf32>
    %230 = tpu.matmul %229, %222, %cst_80 {dimension_numbers = #tpu.dot_dimension_numbers<[1], [1], [0], [0], [0, 0, 1, 0], [], []>} : vector<36x32xbf16>, vector<36x32xbf16>, vector<36x36xf32> -> vector<36x36xf32>
    %cst_81 = arith.constant 0.353553385 : f32
    %231 = vector.broadcast %cst_81 : f32 to vector<36x36xf32>
    %232 = arith.mulf %230, %231 : vector<36x36xf32>
    %233 = arith.addf %232, %0 : vector<36x36xf32>
    %cst_82 = arith.constant dense<0xFF800000> : vector<36xf32>
    %234 = vector.multi_reduction <maximumf>, %233, %cst_82 [1] : vector<36x36xf32> to vector<36xf32>
    %235 = vector.shape_cast %234 : vector<36xf32> to vector<36x1xf32>
    %236 = vector.broadcast %235 : vector<36x1xf32> to vector<36x36xf32>
    %237 = arith.subf %233, %236 : vector<36x36xf32>
    %238 = math.exp %237 : vector<36x36xf32>
    %cst_83 = arith.constant dense<0.000000e+00> : vector<36xf32>
    %239 = vector.multi_reduction <add>, %238, %cst_83 [1] : vector<36x36xf32> to vector<36xf32>
    %240 = vector.shape_cast %239 : vector<36xf32> to vector<36x1xf32>
    %241 = tpu.reciprocal %240 {approx = true} : vector<36x1xf32> -> vector<36x1xf32>
    %242 = vector.broadcast %241 : vector<36x1xf32> to vector<36x36xf32>
    %243 = arith.mulf %238, %242 : vector<36x36xf32>
    %244 = arith.truncf %243 : vector<36x36xf32> to vector<36x36xbf16>
    %245 = vector.broadcast %9 : vector<1x32xbf16> to vector<36x32xbf16>
    %246 = arith.mulf %226, %245 : vector<36x32xbf16>
    %cst_84 = arith.constant dense<0.000000e+00> : vector<36x32xf32>
    %247 = tpu.matmul %244, %246, %cst_84 {dimension_numbers = #tpu.dot_dimension_numbers<[1], [0], [0], [1], [0, 0, 1, 1], [], []>} : vector<36x36xbf16>, vector<36x32xbf16>, vector<36x32xf32> -> vector<36x32xf32>
    %248 = arith.addf %227, %247 : vector<36x32xf32>
    %249 = vector.broadcast %17 : vector<1x32xbf16> to vector<36x32xbf16>
    %250 = arith.mulf %220, %249 : vector<36x32xbf16>
    %cst_85 = arith.constant dense<0.000000e+00> : vector<36x36xf32>
    %251 = tpu.matmul %250, %222, %cst_85 {dimension_numbers = #tpu.dot_dimension_numbers<[1], [1], [0], [0], [0, 0, 1, 0], [], []>} : vector<36x32xbf16>, vector<36x32xbf16>, vector<36x36xf32> -> vector<36x36xf32>
    %cst_86 = arith.constant 0.353553385 : f32
    %252 = vector.broadcast %cst_86 : f32 to vector<36x36xf32>
    %253 = arith.mulf %251, %252 : vector<36x36xf32>
    %254 = arith.addf %253, %0 : vector<36x36xf32>
    %cst_87 = arith.constant dense<0xFF800000> : vector<36xf32>
    %255 = vector.multi_reduction <maximumf>, %254, %cst_87 [1] : vector<36x36xf32> to vector<36xf32>
    %256 = vector.shape_cast %255 : vector<36xf32> to vector<36x1xf32>
    %257 = vector.broadcast %256 : vector<36x1xf32> to vector<36x36xf32>
    %258 = arith.subf %254, %257 : vector<36x36xf32>
    %259 = math.exp %258 : vector<36x36xf32>
    %cst_88 = arith.constant dense<0.000000e+00> : vector<36xf32>
    %260 = vector.multi_reduction <add>, %259, %cst_88 [1] : vector<36x36xf32> to vector<36xf32>
    %261 = vector.shape_cast %260 : vector<36xf32> to vector<36x1xf32>
    %262 = tpu.reciprocal %261 {approx = true} : vector<36x1xf32> -> vector<36x1xf32>
    %263 = vector.broadcast %262 : vector<36x1xf32> to vector<36x36xf32>
    %264 = arith.mulf %259, %263 : vector<36x36xf32>
    %265 = arith.truncf %264 : vector<36x36xf32> to vector<36x36xbf16>
    %266 = vector.broadcast %17 : vector<1x32xbf16> to vector<36x32xbf16>
    %267 = arith.mulf %226, %266 : vector<36x32xbf16>
    %cst_89 = arith.constant dense<0.000000e+00> : vector<36x32xf32>
    %268 = tpu.matmul %265, %267, %cst_89 {dimension_numbers = #tpu.dot_dimension_numbers<[1], [0], [0], [1], [0, 0, 1, 1], [], []>} : vector<36x36xbf16>, vector<36x32xbf16>, vector<36x32xf32> -> vector<36x32xf32>
    %269 = arith.addf %248, %268 : vector<36x32xf32>
    %270 = vector.broadcast %25 : vector<1x32xbf16> to vector<36x32xbf16>
    %271 = arith.mulf %220, %270 : vector<36x32xbf16>
    %cst_90 = arith.constant dense<0.000000e+00> : vector<36x36xf32>
    %272 = tpu.matmul %271, %222, %cst_90 {dimension_numbers = #tpu.dot_dimension_numbers<[1], [1], [0], [0], [0, 0, 1, 0], [], []>} : vector<36x32xbf16>, vector<36x32xbf16>, vector<36x36xf32> -> vector<36x36xf32>
    %cst_91 = arith.constant 0.353553385 : f32
    %273 = vector.broadcast %cst_91 : f32 to vector<36x36xf32>
    %274 = arith.mulf %272, %273 : vector<36x36xf32>
    %275 = arith.addf %274, %0 : vector<36x36xf32>
    %cst_92 = arith.constant dense<0xFF800000> : vector<36xf32>
    %276 = vector.multi_reduction <maximumf>, %275, %cst_92 [1] : vector<36x36xf32> to vector<36xf32>
    %277 = vector.shape_cast %276 : vector<36xf32> to vector<36x1xf32>
    %278 = vector.broadcast %277 : vector<36x1xf32> to vector<36x36xf32>
    %279 = arith.subf %275, %278 : vector<36x36xf32>
    %280 = math.exp %279 : vector<36x36xf32>
    %cst_93 = arith.constant dense<0.000000e+00> : vector<36xf32>
    %281 = vector.multi_reduction <add>, %280, %cst_93 [1] : vector<36x36xf32> to vector<36xf32>
    %282 = vector.shape_cast %281 : vector<36xf32> to vector<36x1xf32>
    %283 = tpu.reciprocal %282 {approx = true} : vector<36x1xf32> -> vector<36x1xf32>
    %284 = vector.broadcast %283 : vector<36x1xf32> to vector<36x36xf32>
    %285 = arith.mulf %280, %284 : vector<36x36xf32>
    %286 = arith.truncf %285 : vector<36x36xf32> to vector<36x36xbf16>
    %287 = vector.broadcast %25 : vector<1x32xbf16> to vector<36x32xbf16>
    %288 = arith.mulf %226, %287 : vector<36x32xbf16>
    %cst_94 = arith.constant dense<0.000000e+00> : vector<36x32xf32>
    %289 = tpu.matmul %286, %288, %cst_94 {dimension_numbers = #tpu.dot_dimension_numbers<[1], [0], [0], [1], [0, 0, 1, 1], [], []>} : vector<36x36xbf16>, vector<36x32xbf16>, vector<36x32xf32> -> vector<36x32xf32>
    %290 = arith.addf %269, %289 : vector<36x32xf32>
    %291 = vector.broadcast %33 : vector<1x32xbf16> to vector<36x32xbf16>
    %292 = arith.mulf %220, %291 : vector<36x32xbf16>
    %cst_95 = arith.constant dense<0.000000e+00> : vector<36x36xf32>
    %293 = tpu.matmul %292, %222, %cst_95 {dimension_numbers = #tpu.dot_dimension_numbers<[1], [1], [0], [0], [0, 0, 1, 0], [], []>} : vector<36x32xbf16>, vector<36x32xbf16>, vector<36x36xf32> -> vector<36x36xf32>
    %cst_96 = arith.constant 0.353553385 : f32
    %294 = vector.broadcast %cst_96 : f32 to vector<36x36xf32>
    %295 = arith.mulf %293, %294 : vector<36x36xf32>
    %296 = arith.addf %295, %0 : vector<36x36xf32>
    %cst_97 = arith.constant dense<0xFF800000> : vector<36xf32>
    %297 = vector.multi_reduction <maximumf>, %296, %cst_97 [1] : vector<36x36xf32> to vector<36xf32>
    %298 = vector.shape_cast %297 : vector<36xf32> to vector<36x1xf32>
    %299 = vector.broadcast %298 : vector<36x1xf32> to vector<36x36xf32>
    %300 = arith.subf %296, %299 : vector<36x36xf32>
    %301 = math.exp %300 : vector<36x36xf32>
    %cst_98 = arith.constant dense<0.000000e+00> : vector<36xf32>
    %302 = vector.multi_reduction <add>, %301, %cst_98 [1] : vector<36x36xf32> to vector<36xf32>
    %303 = vector.shape_cast %302 : vector<36xf32> to vector<36x1xf32>
    %304 = tpu.reciprocal %303 {approx = true} : vector<36x1xf32> -> vector<36x1xf32>
    %305 = vector.broadcast %304 : vector<36x1xf32> to vector<36x36xf32>
    %306 = arith.mulf %301, %305 : vector<36x36xf32>
    %307 = arith.truncf %306 : vector<36x36xf32> to vector<36x36xbf16>
    %308 = vector.broadcast %33 : vector<1x32xbf16> to vector<36x32xbf16>
    %309 = arith.mulf %226, %308 : vector<36x32xbf16>
    %cst_99 = arith.constant dense<0.000000e+00> : vector<36x32xf32>
    %310 = tpu.matmul %307, %309, %cst_99 {dimension_numbers = #tpu.dot_dimension_numbers<[1], [0], [0], [1], [0, 0, 1, 1], [], []>} : vector<36x36xbf16>, vector<36x32xbf16>, vector<36x32xf32> -> vector<36x32xf32>
    %311 = arith.addf %290, %310 : vector<36x32xf32>
    %312 = arith.truncf %311 : vector<36x32xf32> to vector<36x32xbf16>
    %cst_100 = arith.constant dense<0.000000e+00> : vector<36x32xf32>
    %313 = tpu.matmul %312, %41, %cst_100 {dimension_numbers = #tpu.dot_dimension_numbers<[1], [0], [0], [1], [0, 0, 1, 1], [], []>} : vector<36x32xbf16>, vector<32x32xbf16>, vector<36x32xf32> -> vector<36x32xf32>
    %314 = vector.broadcast %42 : vector<1x32xf32> to vector<36x32xf32>
    %315 = arith.addf %313, %314 : vector<36x32xf32>
    %316 = arith.addf %195, %315 : vector<36x32xf32>
    %c1_101 = arith.constant 1 : index
    %c0_102 = arith.constant 0 : index
    %c0_103 = arith.constant 0 : index
    %317 = vector.load %arg13[%c1_101, %c0_102, %c0_103] : memref<2x36x32xf32, #tpu.memory_space<vmem>>, vector<1x36x32xf32>
    %318 = vector.shape_cast %317 : vector<1x36x32xf32> to vector<36x32xf32>
    %319 = vector.shape_cast %316 : vector<36x32xf32> to vector<1x36x32xf32>
    tpu.vector_store %arg13[%c1_101, %c0_102, %c0_103], %319 {strides = array<i32>} : memref<2x36x32xf32, #tpu.memory_space<vmem>>, vector<1x36x32xf32>,
    %cst_104 = arith.constant dense<0.000000e+00> : vector<36xf32>
    %320 = vector.multi_reduction <add>, %316, %cst_104 [1] : vector<36x32xf32> to vector<36xf32>
    %321 = vector.shape_cast %320 : vector<36xf32> to vector<36x1xf32>
    %cst_105 = arith.constant 3.200000e+01 : f32
    %322 = vector.broadcast %cst_105 : f32 to vector<36x1xf32>
    %323 = arith.divf %321, %322 : vector<36x1xf32>
    %324 = vector.broadcast %323 : vector<36x1xf32> to vector<36x32xf32>
    %325 = arith.subf %316, %324 : vector<36x32xf32>
    %326 = arith.mulf %325, %325 : vector<36x32xf32>
    %cst_106 = arith.constant dense<0.000000e+00> : vector<36xf32>
    %327 = vector.multi_reduction <add>, %326, %cst_106 [1] : vector<36x32xf32> to vector<36xf32>
    %328 = vector.shape_cast %327 : vector<36xf32> to vector<36x1xf32>
    %cst_107 = arith.constant 3.200000e+01 : f32
    %329 = vector.broadcast %cst_107 : f32 to vector<36x1xf32>
    %330 = arith.divf %328, %329 : vector<36x1xf32>
    %cst_108 = arith.constant 9.99999974E-6 : f32
    %331 = vector.broadcast %cst_108 : f32 to vector<36x1xf32>
    %332 = arith.addf %330, %331 : vector<36x1xf32>
    %333 = math.rsqrt %332 : vector<36x1xf32>
    %334 = vector.broadcast %333 : vector<36x1xf32> to vector<36x32xf32>
    %335 = arith.mulf %325, %334 : vector<36x32xf32>
    %336 = vector.broadcast %43 : vector<1x32xf32> to vector<36x32xf32>
    %337 = arith.mulf %335, %336 : vector<36x32xf32>
    %338 = vector.broadcast %44 : vector<1x32xf32> to vector<36x32xf32>
    %339 = arith.addf %337, %338 : vector<36x32xf32>
    %c1_109 = arith.constant 1 : index
    %c0_110 = arith.constant 0 : index
    %c0_111 = arith.constant 0 : index
    %340 = vector.load %arg14[%c1_109, %c0_110, %c0_111] : memref<2x36x32xf32, #tpu.memory_space<vmem>>, vector<1x36x32xf32>
    %341 = vector.shape_cast %340 : vector<1x36x32xf32> to vector<36x32xf32>
    %342 = vector.shape_cast %339 : vector<36x32xf32> to vector<1x36x32xf32>
    tpu.vector_store %arg14[%c1_109, %c0_110, %c0_111], %342 {strides = array<i32>} : memref<2x36x32xf32, #tpu.memory_space<vmem>>, vector<1x36x32xf32>,
    return
  }
}

module attributes {stable_mosaic.version = 11 : i64} {
  func.func @_ffn_tail_kernel(%arg0: memref<2x36x32xf32, #tpu.memory_space<vmem>>, %arg1: memref<2x36x32xf32, #tpu.memory_space<vmem>>, %arg2: memref<2x32x128xbf16, #tpu.memory_space<vmem>>, %arg3: memref<2x128x32xbf16, #tpu.memory_space<vmem>>, %arg4: memref<32x128xbf16, #tpu.memory_space<vmem>>, %arg5: memref<1x128xf32, #tpu.memory_space<vmem>>, %arg6: memref<128x32xbf16, #tpu.memory_space<vmem>>, %arg7: memref<1x32xf32, #tpu.memory_space<vmem>>, %arg8: memref<32x64xbf16, #tpu.memory_space<vmem>>, %arg9: memref<2x16x64xf32, #tpu.memory_space<vmem>>, %arg10: memref<2x8x32xf32, #tpu.memory_space<vmem>>) attributes {dimension_semantics = [], scalar_prefetch = 0 : i64, scratch_operands = 0 : i64, tpu.core_type = #tpu.core_type<tc>} {
    %c0 = arith.constant 0 : index
    %c0_0 = arith.constant 0 : index
    %0 = vector.load %arg4[%c0, %c0_0] : memref<32x128xbf16, #tpu.memory_space<vmem>>, vector<32x128xbf16>
    %c0_1 = arith.constant 0 : index
    %c0_2 = arith.constant 0 : index
    %1 = vector.load %arg5[%c0_1, %c0_2] : memref<1x128xf32, #tpu.memory_space<vmem>>, vector<1x128xf32>
    %c0_3 = arith.constant 0 : index
    %c0_4 = arith.constant 0 : index
    %2 = vector.load %arg6[%c0_3, %c0_4] : memref<128x32xbf16, #tpu.memory_space<vmem>>, vector<128x32xbf16>
    %c0_5 = arith.constant 0 : index
    %c0_6 = arith.constant 0 : index
    %3 = vector.load %arg7[%c0_5, %c0_6] : memref<1x32xf32, #tpu.memory_space<vmem>>, vector<1x32xf32>
    %c0_7 = arith.constant 0 : index
    %c0_8 = arith.constant 0 : index
    %4 = vector.load %arg8[%c0_7, %c0_8] : memref<32x64xbf16, #tpu.memory_space<vmem>>, vector<32x64xbf16>
    %c0_9 = arith.constant 0 : index
    %c0_10 = arith.constant 0 : index
    %c0_11 = arith.constant 0 : index
    %5 = vector.load %arg0[%c0_9, %c0_10, %c0_11] : memref<2x36x32xf32, #tpu.memory_space<vmem>>, vector<1x36x32xf32>
    %6 = vector.shape_cast %5 : vector<1x36x32xf32> to vector<36x32xf32>
    %c0_12 = arith.constant 0 : index
    %c0_13 = arith.constant 0 : index
    %c0_14 = arith.constant 0 : index
    %7 = vector.load %arg1[%c0_12, %c0_13, %c0_14] : memref<2x36x32xf32, #tpu.memory_space<vmem>>, vector<1x36x32xf32>
    %8 = vector.shape_cast %7 : vector<1x36x32xf32> to vector<36x32xf32>
    %c0_15 = arith.constant 0 : index
    %c0_16 = arith.constant 0 : index
    %c0_17 = arith.constant 0 : index
    %9 = vector.load %arg2[%c0_15, %c0_16, %c0_17] : memref<2x32x128xbf16, #tpu.memory_space<vmem>>, vector<1x32x128xbf16>
    %10 = vector.shape_cast %9 : vector<1x32x128xbf16> to vector<32x128xbf16>
    %c0_18 = arith.constant 0 : index
    %c0_19 = arith.constant 0 : index
    %c0_20 = arith.constant 0 : index
    %11 = vector.load %arg3[%c0_18, %c0_19, %c0_20] : memref<2x128x32xbf16, #tpu.memory_space<vmem>>, vector<1x128x32xbf16>
    %12 = vector.shape_cast %11 : vector<1x128x32xbf16> to vector<128x32xbf16>
    %13 = arith.truncf %8 : vector<36x32xf32> to vector<36x32xbf16>
    %cst = arith.constant dense<0.000000e+00> : vector<36x128xf32>
    %14 = tpu.matmul %13, %0, %cst {dimension_numbers = #tpu.dot_dimension_numbers<[1], [0], [0], [1], [0, 0, 1, 1], [], []>} : vector<36x32xbf16>, vector<32x128xbf16>, vector<36x128xf32> -> vector<36x128xf32>
    %cst_21 = arith.constant dense<0.000000e+00> : vector<36x128xf32>
    %15 = tpu.matmul %13, %10, %cst_21 {dimension_numbers = #tpu.dot_dimension_numbers<[1], [0], [0], [1], [0, 0, 1, 1], [], []>} : vector<36x32xbf16>, vector<32x128xbf16>, vector<36x128xf32> -> vector<36x128xf32>
    %16 = arith.addf %14, %15 : vector<36x128xf32>
    %17 = vector.broadcast %1 : vector<1x128xf32> to vector<36x128xf32>
    %18 = arith.addf %16, %17 : vector<36x128xf32>
    %cst_22 = arith.constant 5.000000e-01 : f32
    %19 = vector.broadcast %cst_22 : f32 to vector<36x128xf32>
    %20 = arith.mulf %19, %18 : vector<36x128xf32>
    %cst_23 = arith.constant 4.471500e-02 : f32
    %21 = vector.broadcast %cst_23 : f32 to vector<36x128xf32>
    %22 = arith.mulf %21, %18 : vector<36x128xf32>
    %23 = arith.mulf %22, %18 : vector<36x128xf32>
    %24 = arith.mulf %23, %18 : vector<36x128xf32>
    %25 = arith.addf %18, %24 : vector<36x128xf32>
    %cst_24 = arith.constant 0.797884583 : f32
    %26 = vector.broadcast %cst_24 : f32 to vector<36x128xf32>
    %27 = arith.mulf %26, %25 : vector<36x128xf32>
    %28 = math.tanh %27 : vector<36x128xf32>
    %cst_25 = arith.constant 1.000000e+00 : f32
    %29 = vector.broadcast %cst_25 : f32 to vector<36x128xf32>
    %30 = arith.addf %29, %28 : vector<36x128xf32>
    %31 = arith.mulf %20, %30 : vector<36x128xf32>
    %32 = arith.truncf %31 : vector<36x128xf32> to vector<36x128xbf16>
    %cst_26 = arith.constant dense<0.000000e+00> : vector<36x32xf32>
    %33 = tpu.matmul %32, %2, %cst_26 {dimension_numbers = #tpu.dot_dimension_numbers<[1], [0], [0], [1], [0, 0, 1, 1], [], []>} : vector<36x128xbf16>, vector<128x32xbf16>, vector<36x32xf32> -> vector<36x32xf32>
    %cst_27 = arith.constant dense<0.000000e+00> : vector<36x32xf32>
    %34 = tpu.matmul %32, %12, %cst_27 {dimension_numbers = #tpu.dot_dimension_numbers<[1], [0], [0], [1], [0, 0, 1, 1], [], []>} : vector<36x128xbf16>, vector<128x32xbf16>, vector<36x32xf32> -> vector<36x32xf32>
    %35 = arith.addf %33, %34 : vector<36x32xf32>
    %36 = vector.broadcast %3 : vector<1x32xf32> to vector<36x32xf32>
    %37 = arith.addf %35, %36 : vector<36x32xf32>
    %38 = arith.addf %6, %37 : vector<36x32xf32>
    %39 = vector.extract_strided_slice %38 {offsets = [10, 0], sizes = [16, 32], strides = [1, 1]} : vector<36x32xf32> to vector<16x32xf32>
    %40 = arith.truncf %39 : vector<16x32xf32> to vector<16x32xbf16>
    %cst_28 = arith.constant dense<0.000000e+00> : vector<16x64xf32>
    %41 = tpu.matmul %40, %4, %cst_28 {dimension_numbers = #tpu.dot_dimension_numbers<[1], [0], [0], [1], [0, 0, 1, 1], [], []>} : vector<16x32xbf16>, vector<32x64xbf16>, vector<16x64xf32> -> vector<16x64xf32>
    %c0_29 = arith.constant 0 : index
    %c0_30 = arith.constant 0 : index
    %c0_31 = arith.constant 0 : index
    %42 = vector.load %arg9[%c0_29, %c0_30, %c0_31] : memref<2x16x64xf32, #tpu.memory_space<vmem>>, vector<1x16x64xf32>
    %43 = vector.shape_cast %42 : vector<1x16x64xf32> to vector<16x64xf32>
    %44 = vector.shape_cast %41 : vector<16x64xf32> to vector<1x16x64xf32>
    tpu.vector_store %arg9[%c0_29, %c0_30, %c0_31], %44 {strides = array<i32>} : memref<2x16x64xf32, #tpu.memory_space<vmem>>, vector<1x16x64xf32>,
    %45 = vector.extract_strided_slice %38 {offsets = [27, 0], sizes = [8, 32], strides = [1, 1]} : vector<36x32xf32> to vector<8x32xf32>
    %c0_32 = arith.constant 0 : index
    %c0_33 = arith.constant 0 : index
    %c0_34 = arith.constant 0 : index
    %46 = vector.load %arg10[%c0_32, %c0_33, %c0_34] : memref<2x8x32xf32, #tpu.memory_space<vmem>>, vector<1x8x32xf32>
    %47 = vector.shape_cast %46 : vector<1x8x32xf32> to vector<8x32xf32>
    %48 = vector.shape_cast %45 : vector<8x32xf32> to vector<1x8x32xf32>
    tpu.vector_store %arg10[%c0_32, %c0_33, %c0_34], %48 {strides = array<i32>} : memref<2x8x32xf32, #tpu.memory_space<vmem>>, vector<1x8x32xf32>,
    %c1 = arith.constant 1 : index
    %c0_35 = arith.constant 0 : index
    %c0_36 = arith.constant 0 : index
    %49 = vector.load %arg0[%c1, %c0_35, %c0_36] : memref<2x36x32xf32, #tpu.memory_space<vmem>>, vector<1x36x32xf32>
    %50 = vector.shape_cast %49 : vector<1x36x32xf32> to vector<36x32xf32>
    %c1_37 = arith.constant 1 : index
    %c0_38 = arith.constant 0 : index
    %c0_39 = arith.constant 0 : index
    %51 = vector.load %arg1[%c1_37, %c0_38, %c0_39] : memref<2x36x32xf32, #tpu.memory_space<vmem>>, vector<1x36x32xf32>
    %52 = vector.shape_cast %51 : vector<1x36x32xf32> to vector<36x32xf32>
    %c1_40 = arith.constant 1 : index
    %c0_41 = arith.constant 0 : index
    %c0_42 = arith.constant 0 : index
    %53 = vector.load %arg2[%c1_40, %c0_41, %c0_42] : memref<2x32x128xbf16, #tpu.memory_space<vmem>>, vector<1x32x128xbf16>
    %54 = vector.shape_cast %53 : vector<1x32x128xbf16> to vector<32x128xbf16>
    %c1_43 = arith.constant 1 : index
    %c0_44 = arith.constant 0 : index
    %c0_45 = arith.constant 0 : index
    %55 = vector.load %arg3[%c1_43, %c0_44, %c0_45] : memref<2x128x32xbf16, #tpu.memory_space<vmem>>, vector<1x128x32xbf16>
    %56 = vector.shape_cast %55 : vector<1x128x32xbf16> to vector<128x32xbf16>
    %57 = arith.truncf %52 : vector<36x32xf32> to vector<36x32xbf16>
    %cst_46 = arith.constant dense<0.000000e+00> : vector<36x128xf32>
    %58 = tpu.matmul %57, %0, %cst_46 {dimension_numbers = #tpu.dot_dimension_numbers<[1], [0], [0], [1], [0, 0, 1, 1], [], []>} : vector<36x32xbf16>, vector<32x128xbf16>, vector<36x128xf32> -> vector<36x128xf32>
    %cst_47 = arith.constant dense<0.000000e+00> : vector<36x128xf32>
    %59 = tpu.matmul %57, %54, %cst_47 {dimension_numbers = #tpu.dot_dimension_numbers<[1], [0], [0], [1], [0, 0, 1, 1], [], []>} : vector<36x32xbf16>, vector<32x128xbf16>, vector<36x128xf32> -> vector<36x128xf32>
    %60 = arith.addf %58, %59 : vector<36x128xf32>
    %61 = vector.broadcast %1 : vector<1x128xf32> to vector<36x128xf32>
    %62 = arith.addf %60, %61 : vector<36x128xf32>
    %cst_48 = arith.constant 5.000000e-01 : f32
    %63 = vector.broadcast %cst_48 : f32 to vector<36x128xf32>
    %64 = arith.mulf %63, %62 : vector<36x128xf32>
    %cst_49 = arith.constant 4.471500e-02 : f32
    %65 = vector.broadcast %cst_49 : f32 to vector<36x128xf32>
    %66 = arith.mulf %65, %62 : vector<36x128xf32>
    %67 = arith.mulf %66, %62 : vector<36x128xf32>
    %68 = arith.mulf %67, %62 : vector<36x128xf32>
    %69 = arith.addf %62, %68 : vector<36x128xf32>
    %cst_50 = arith.constant 0.797884583 : f32
    %70 = vector.broadcast %cst_50 : f32 to vector<36x128xf32>
    %71 = arith.mulf %70, %69 : vector<36x128xf32>
    %72 = math.tanh %71 : vector<36x128xf32>
    %cst_51 = arith.constant 1.000000e+00 : f32
    %73 = vector.broadcast %cst_51 : f32 to vector<36x128xf32>
    %74 = arith.addf %73, %72 : vector<36x128xf32>
    %75 = arith.mulf %64, %74 : vector<36x128xf32>
    %76 = arith.truncf %75 : vector<36x128xf32> to vector<36x128xbf16>
    %cst_52 = arith.constant dense<0.000000e+00> : vector<36x32xf32>
    %77 = tpu.matmul %76, %2, %cst_52 {dimension_numbers = #tpu.dot_dimension_numbers<[1], [0], [0], [1], [0, 0, 1, 1], [], []>} : vector<36x128xbf16>, vector<128x32xbf16>, vector<36x32xf32> -> vector<36x32xf32>
    %cst_53 = arith.constant dense<0.000000e+00> : vector<36x32xf32>
    %78 = tpu.matmul %76, %56, %cst_53 {dimension_numbers = #tpu.dot_dimension_numbers<[1], [0], [0], [1], [0, 0, 1, 1], [], []>} : vector<36x128xbf16>, vector<128x32xbf16>, vector<36x32xf32> -> vector<36x32xf32>
    %79 = arith.addf %77, %78 : vector<36x32xf32>
    %80 = vector.broadcast %3 : vector<1x32xf32> to vector<36x32xf32>
    %81 = arith.addf %79, %80 : vector<36x32xf32>
    %82 = arith.addf %50, %81 : vector<36x32xf32>
    %83 = vector.extract_strided_slice %82 {offsets = [10, 0], sizes = [16, 32], strides = [1, 1]} : vector<36x32xf32> to vector<16x32xf32>
    %84 = arith.truncf %83 : vector<16x32xf32> to vector<16x32xbf16>
    %cst_54 = arith.constant dense<0.000000e+00> : vector<16x64xf32>
    %85 = tpu.matmul %84, %4, %cst_54 {dimension_numbers = #tpu.dot_dimension_numbers<[1], [0], [0], [1], [0, 0, 1, 1], [], []>} : vector<16x32xbf16>, vector<32x64xbf16>, vector<16x64xf32> -> vector<16x64xf32>
    %c1_55 = arith.constant 1 : index
    %c0_56 = arith.constant 0 : index
    %c0_57 = arith.constant 0 : index
    %86 = vector.load %arg9[%c1_55, %c0_56, %c0_57] : memref<2x16x64xf32, #tpu.memory_space<vmem>>, vector<1x16x64xf32>
    %87 = vector.shape_cast %86 : vector<1x16x64xf32> to vector<16x64xf32>
    %88 = vector.shape_cast %85 : vector<16x64xf32> to vector<1x16x64xf32>
    tpu.vector_store %arg9[%c1_55, %c0_56, %c0_57], %88 {strides = array<i32>} : memref<2x16x64xf32, #tpu.memory_space<vmem>>, vector<1x16x64xf32>,
    %89 = vector.extract_strided_slice %82 {offsets = [27, 0], sizes = [8, 32], strides = [1, 1]} : vector<36x32xf32> to vector<8x32xf32>
    %c1_58 = arith.constant 1 : index
    %c0_59 = arith.constant 0 : index
    %c0_60 = arith.constant 0 : index
    %90 = vector.load %arg10[%c1_58, %c0_59, %c0_60] : memref<2x8x32xf32, #tpu.memory_space<vmem>>, vector<1x8x32xf32>
    %91 = vector.shape_cast %90 : vector<1x8x32xf32> to vector<8x32xf32>
    %92 = vector.shape_cast %89 : vector<8x32xf32> to vector<1x8x32xf32>
    tpu.vector_store %arg10[%c1_58, %c0_59, %c0_60], %92 {strides = array<i32>} : memref<2x8x32xf32, #tpu.memory_space<vmem>>, vector<1x8x32xf32>,
    return
  }
}

module attributes {stable_mosaic.version = 11 : i64} {
  func.func @_ffn_attn_kernel(%arg0: memref<2x36x32xf32, #tpu.memory_space<vmem>>, %arg1: memref<2x36x32xf32, #tpu.memory_space<vmem>>, %arg2: memref<2x32x128xbf16, #tpu.memory_space<vmem>>, %arg3: memref<2x128x32xbf16, #tpu.memory_space<vmem>>, %arg4: memref<32x128xbf16, #tpu.memory_space<vmem>>, %arg5: memref<1x128xf32, #tpu.memory_space<vmem>>, %arg6: memref<128x32xbf16, #tpu.memory_space<vmem>>, %arg7: memref<1x32xf32, #tpu.memory_space<vmem>>, %arg8: memref<36x36xf32, #tpu.memory_space<vmem>>, %arg9: memref<1x32xf32, #tpu.memory_space<vmem>>, %arg10: memref<1x32xf32, #tpu.memory_space<vmem>>, %arg11: memref<32x32xbf16, #tpu.memory_space<vmem>>, %arg12: memref<32x32xbf16, #tpu.memory_space<vmem>>, %arg13: memref<32x32xbf16, #tpu.memory_space<vmem>>, %arg14: memref<1x32xf32, #tpu.memory_space<vmem>>, %arg15: memref<1x32xf32, #tpu.memory_space<vmem>>, %arg16: memref<32x32xbf16, #tpu.memory_space<vmem>>, %arg17: memref<1x32xf32, #tpu.memory_space<vmem>>, %arg18: memref<1x32xf32, #tpu.memory_space<vmem>>, %arg19: memref<1x32xf32, #tpu.memory_space<vmem>>, %arg20: memref<2x36x32xf32, #tpu.memory_space<vmem>>, %arg21: memref<2x36x32xf32, #tpu.memory_space<vmem>>) attributes {dimension_semantics = [], scalar_prefetch = 0 : i64, scratch_operands = 0 : i64, tpu.core_type = #tpu.core_type<tc>} {
    %c0 = arith.constant 0 : index
    %c0_0 = arith.constant 0 : index
    %0 = vector.load %arg8[%c0, %c0_0] : memref<36x36xf32, #tpu.memory_space<vmem>>, vector<36x36xf32>
    %1 = tpu.iota {dimensions = array<i32: 1>} : vector<1x32xi32>
    %c0_i32 = arith.constant 0 : i32
    %2 = vector.broadcast %c0_i32 : i32 to vector<1x32xi32>
    %3 = arith.cmpi sge, %1, %2 : vector<1x32xi32>
    %c8_i32 = arith.constant 8 : i32
    %4 = vector.broadcast %c8_i32 : i32 to vector<1x32xi32>
    %5 = arith.cmpi slt, %1, %4 : vector<1x32xi32>
    %6 = arith.andi %3, %5 : vector<1x32xi1>
    %7 = arith.extui %6 : vector<1x32xi1> to vector<1x32xi32>
    %8 = arith.sitofp %7 : vector<1x32xi32> to vector<1x32xf32>
    %9 = arith.truncf %8 : vector<1x32xf32> to vector<1x32xbf16>
    %c8_i32_1 = arith.constant 8 : i32
    %10 = vector.broadcast %c8_i32_1 : i32 to vector<1x32xi32>
    %11 = arith.cmpi sge, %1, %10 : vector<1x32xi32>
    %c16_i32 = arith.constant 16 : i32
    %12 = vector.broadcast %c16_i32 : i32 to vector<1x32xi32>
    %13 = arith.cmpi slt, %1, %12 : vector<1x32xi32>
    %14 = arith.andi %11, %13 : vector<1x32xi1>
    %15 = arith.extui %14 : vector<1x32xi1> to vector<1x32xi32>
    %16 = arith.sitofp %15 : vector<1x32xi32> to vector<1x32xf32>
    %17 = arith.truncf %16 : vector<1x32xf32> to vector<1x32xbf16>
    %c16_i32_2 = arith.constant 16 : i32
    %18 = vector.broadcast %c16_i32_2 : i32 to vector<1x32xi32>
    %19 = arith.cmpi sge, %1, %18 : vector<1x32xi32>
    %c24_i32 = arith.constant 24 : i32
    %20 = vector.broadcast %c24_i32 : i32 to vector<1x32xi32>
    %21 = arith.cmpi slt, %1, %20 : vector<1x32xi32>
    %22 = arith.andi %19, %21 : vector<1x32xi1>
    %23 = arith.extui %22 : vector<1x32xi1> to vector<1x32xi32>
    %24 = arith.sitofp %23 : vector<1x32xi32> to vector<1x32xf32>
    %25 = arith.truncf %24 : vector<1x32xf32> to vector<1x32xbf16>
    %c24_i32_3 = arith.constant 24 : i32
    %26 = vector.broadcast %c24_i32_3 : i32 to vector<1x32xi32>
    %27 = arith.cmpi sge, %1, %26 : vector<1x32xi32>
    %c32_i32 = arith.constant 32 : i32
    %28 = vector.broadcast %c32_i32 : i32 to vector<1x32xi32>
    %29 = arith.cmpi slt, %1, %28 : vector<1x32xi32>
    %30 = arith.andi %27, %29 : vector<1x32xi1>
    %31 = arith.extui %30 : vector<1x32xi1> to vector<1x32xi32>
    %32 = arith.sitofp %31 : vector<1x32xi32> to vector<1x32xf32>
    %33 = arith.truncf %32 : vector<1x32xf32> to vector<1x32xbf16>
    %c0_4 = arith.constant 0 : index
    %c0_5 = arith.constant 0 : index
    %34 = vector.load %arg4[%c0_4, %c0_5] : memref<32x128xbf16, #tpu.memory_space<vmem>>, vector<32x128xbf16>
    %c0_6 = arith.constant 0 : index
    %c0_7 = arith.constant 0 : index
    %35 = vector.load %arg5[%c0_6, %c0_7] : memref<1x128xf32, #tpu.memory_space<vmem>>, vector<1x128xf32>
    %c0_8 = arith.constant 0 : index
    %c0_9 = arith.constant 0 : index
    %36 = vector.load %arg6[%c0_8, %c0_9] : memref<128x32xbf16, #tpu.memory_space<vmem>>, vector<128x32xbf16>
    %c0_10 = arith.constant 0 : index
    %c0_11 = arith.constant 0 : index
    %37 = vector.load %arg7[%c0_10, %c0_11] : memref<1x32xf32, #tpu.memory_space<vmem>>, vector<1x32xf32>
    %c0_12 = arith.constant 0 : index
    %c0_13 = arith.constant 0 : index
    %38 = vector.load %arg9[%c0_12, %c0_13] : memref<1x32xf32, #tpu.memory_space<vmem>>, vector<1x32xf32>
    %c0_14 = arith.constant 0 : index
    %c0_15 = arith.constant 0 : index
    %39 = vector.load %arg10[%c0_14, %c0_15] : memref<1x32xf32, #tpu.memory_space<vmem>>, vector<1x32xf32>
    %c0_16 = arith.constant 0 : index
    %c0_17 = arith.constant 0 : index
    %40 = vector.load %arg11[%c0_16, %c0_17] : memref<32x32xbf16, #tpu.memory_space<vmem>>, vector<32x32xbf16>
    %c0_18 = arith.constant 0 : index
    %c0_19 = arith.constant 0 : index
    %41 = vector.load %arg12[%c0_18, %c0_19] : memref<32x32xbf16, #tpu.memory_space<vmem>>, vector<32x32xbf16>
    %c0_20 = arith.constant 0 : index
    %c0_21 = arith.constant 0 : index
    %42 = vector.load %arg13[%c0_20, %c0_21] : memref<32x32xbf16, #tpu.memory_space<vmem>>, vector<32x32xbf16>
    %c0_22 = arith.constant 0 : index
    %c0_23 = arith.constant 0 : index
    %43 = vector.load %arg14[%c0_22, %c0_23] : memref<1x32xf32, #tpu.memory_space<vmem>>, vector<1x32xf32>
    %c0_24 = arith.constant 0 : index
    %c0_25 = arith.constant 0 : index
    %44 = vector.load %arg15[%c0_24, %c0_25] : memref<1x32xf32, #tpu.memory_space<vmem>>, vector<1x32xf32>
    %c0_26 = arith.constant 0 : index
    %c0_27 = arith.constant 0 : index
    %45 = vector.load %arg16[%c0_26, %c0_27] : memref<32x32xbf16, #tpu.memory_space<vmem>>, vector<32x32xbf16>
    %c0_28 = arith.constant 0 : index
    %c0_29 = arith.constant 0 : index
    %46 = vector.load %arg17[%c0_28, %c0_29] : memref<1x32xf32, #tpu.memory_space<vmem>>, vector<1x32xf32>
    %c0_30 = arith.constant 0 : index
    %c0_31 = arith.constant 0 : index
    %47 = vector.load %arg18[%c0_30, %c0_31] : memref<1x32xf32, #tpu.memory_space<vmem>>, vector<1x32xf32>
    %c0_32 = arith.constant 0 : index
    %c0_33 = arith.constant 0 : index
    %48 = vector.load %arg19[%c0_32, %c0_33] : memref<1x32xf32, #tpu.memory_space<vmem>>, vector<1x32xf32>
    %c0_34 = arith.constant 0 : index
    %c0_35 = arith.constant 0 : index
    %c0_36 = arith.constant 0 : index
    %49 = vector.load %arg0[%c0_34, %c0_35, %c0_36] : memref<2x36x32xf32, #tpu.memory_space<vmem>>, vector<1x36x32xf32>
    %50 = vector.shape_cast %49 : vector<1x36x32xf32> to vector<36x32xf32>
    %c0_37 = arith.constant 0 : index
    %c0_38 = arith.constant 0 : index
    %c0_39 = arith.constant 0 : index
    %51 = vector.load %arg1[%c0_37, %c0_38, %c0_39] : memref<2x36x32xf32, #tpu.memory_space<vmem>>, vector<1x36x32xf32>
    %52 = vector.shape_cast %51 : vector<1x36x32xf32> to vector<36x32xf32>
    %c0_40 = arith.constant 0 : index
    %c0_41 = arith.constant 0 : index
    %c0_42 = arith.constant 0 : index
    %53 = vector.load %arg2[%c0_40, %c0_41, %c0_42] : memref<2x32x128xbf16, #tpu.memory_space<vmem>>, vector<1x32x128xbf16>
    %54 = vector.shape_cast %53 : vector<1x32x128xbf16> to vector<32x128xbf16>
    %c0_43 = arith.constant 0 : index
    %c0_44 = arith.constant 0 : index
    %c0_45 = arith.constant 0 : index
    %55 = vector.load %arg3[%c0_43, %c0_44, %c0_45] : memref<2x128x32xbf16, #tpu.memory_space<vmem>>, vector<1x128x32xbf16>
    %56 = vector.shape_cast %55 : vector<1x128x32xbf16> to vector<128x32xbf16>
    %57 = arith.truncf %52 : vector<36x32xf32> to vector<36x32xbf16>
    %cst = arith.constant dense<0.000000e+00> : vector<36x128xf32>
    %58 = tpu.matmul %57, %34, %cst {dimension_numbers = #tpu.dot_dimension_numbers<[1], [0], [0], [1], [0, 0, 1, 1], [], []>} : vector<36x32xbf16>, vector<32x128xbf16>, vector<36x128xf32> -> vector<36x128xf32>
    %cst_46 = arith.constant dense<0.000000e+00> : vector<36x128xf32>
    %59 = tpu.matmul %57, %54, %cst_46 {dimension_numbers = #tpu.dot_dimension_numbers<[1], [0], [0], [1], [0, 0, 1, 1], [], []>} : vector<36x32xbf16>, vector<32x128xbf16>, vector<36x128xf32> -> vector<36x128xf32>
    %60 = arith.addf %58, %59 : vector<36x128xf32>
    %61 = vector.broadcast %35 : vector<1x128xf32> to vector<36x128xf32>
    %62 = arith.addf %60, %61 : vector<36x128xf32>
    %cst_47 = arith.constant 5.000000e-01 : f32
    %63 = vector.broadcast %cst_47 : f32 to vector<36x128xf32>
    %64 = arith.mulf %63, %62 : vector<36x128xf32>
    %cst_48 = arith.constant 4.471500e-02 : f32
    %65 = vector.broadcast %cst_48 : f32 to vector<36x128xf32>
    %66 = arith.mulf %65, %62 : vector<36x128xf32>
    %67 = arith.mulf %66, %62 : vector<36x128xf32>
    %68 = arith.mulf %67, %62 : vector<36x128xf32>
    %69 = arith.addf %62, %68 : vector<36x128xf32>
    %cst_49 = arith.constant 0.797884583 : f32
    %70 = vector.broadcast %cst_49 : f32 to vector<36x128xf32>
    %71 = arith.mulf %70, %69 : vector<36x128xf32>
    %72 = math.tanh %71 : vector<36x128xf32>
    %cst_50 = arith.constant 1.000000e+00 : f32
    %73 = vector.broadcast %cst_50 : f32 to vector<36x128xf32>
    %74 = arith.addf %73, %72 : vector<36x128xf32>
    %75 = arith.mulf %64, %74 : vector<36x128xf32>
    %76 = arith.truncf %75 : vector<36x128xf32> to vector<36x128xbf16>
    %cst_51 = arith.constant dense<0.000000e+00> : vector<36x32xf32>
    %77 = tpu.matmul %76, %36, %cst_51 {dimension_numbers = #tpu.dot_dimension_numbers<[1], [0], [0], [1], [0, 0, 1, 1], [], []>} : vector<36x128xbf16>, vector<128x32xbf16>, vector<36x32xf32> -> vector<36x32xf32>
    %cst_52 = arith.constant dense<0.000000e+00> : vector<36x32xf32>
    %78 = tpu.matmul %76, %56, %cst_52 {dimension_numbers = #tpu.dot_dimension_numbers<[1], [0], [0], [1], [0, 0, 1, 1], [], []>} : vector<36x128xbf16>, vector<128x32xbf16>, vector<36x32xf32> -> vector<36x32xf32>
    %79 = arith.addf %77, %78 : vector<36x32xf32>
    %80 = vector.broadcast %37 : vector<1x32xf32> to vector<36x32xf32>
    %81 = arith.addf %79, %80 : vector<36x32xf32>
    %82 = arith.addf %50, %81 : vector<36x32xf32>
    %cst_53 = arith.constant dense<0.000000e+00> : vector<36xf32>
    %83 = vector.multi_reduction <add>, %82, %cst_53 [1] : vector<36x32xf32> to vector<36xf32>
    %84 = vector.shape_cast %83 : vector<36xf32> to vector<36x1xf32>
    %cst_54 = arith.constant 3.200000e+01 : f32
    %85 = vector.broadcast %cst_54 : f32 to vector<36x1xf32>
    %86 = arith.divf %84, %85 : vector<36x1xf32>
    %87 = vector.broadcast %86 : vector<36x1xf32> to vector<36x32xf32>
    %88 = arith.subf %82, %87 : vector<36x32xf32>
    %89 = arith.mulf %88, %88 : vector<36x32xf32>
    %cst_55 = arith.constant dense<0.000000e+00> : vector<36xf32>
    %90 = vector.multi_reduction <add>, %89, %cst_55 [1] : vector<36x32xf32> to vector<36xf32>
    %91 = vector.shape_cast %90 : vector<36xf32> to vector<36x1xf32>
    %cst_56 = arith.constant 3.200000e+01 : f32
    %92 = vector.broadcast %cst_56 : f32 to vector<36x1xf32>
    %93 = arith.divf %91, %92 : vector<36x1xf32>
    %cst_57 = arith.constant 9.99999974E-6 : f32
    %94 = vector.broadcast %cst_57 : f32 to vector<36x1xf32>
    %95 = arith.addf %93, %94 : vector<36x1xf32>
    %96 = math.rsqrt %95 : vector<36x1xf32>
    %97 = vector.broadcast %96 : vector<36x1xf32> to vector<36x32xf32>
    %98 = arith.mulf %88, %97 : vector<36x32xf32>
    %99 = vector.broadcast %38 : vector<1x32xf32> to vector<36x32xf32>
    %100 = arith.mulf %98, %99 : vector<36x32xf32>
    %101 = vector.broadcast %39 : vector<1x32xf32> to vector<36x32xf32>
    %102 = arith.addf %100, %101 : vector<36x32xf32>
    %103 = arith.truncf %102 : vector<36x32xf32> to vector<36x32xbf16>
    %cst_58 = arith.constant dense<0.000000e+00> : vector<36x32xf32>
    %104 = tpu.matmul %103, %40, %cst_58 {dimension_numbers = #tpu.dot_dimension_numbers<[1], [0], [0], [1], [0, 0, 1, 1], [], []>} : vector<36x32xbf16>, vector<32x32xbf16>, vector<36x32xf32> -> vector<36x32xf32>
    %105 = vector.broadcast %43 : vector<1x32xf32> to vector<36x32xf32>
    %106 = arith.addf %104, %105 : vector<36x32xf32>
    %107 = arith.truncf %106 : vector<36x32xf32> to vector<36x32xbf16>
    %cst_59 = arith.constant dense<0.000000e+00> : vector<36x32xf32>
    %108 = tpu.matmul %103, %41, %cst_59 {dimension_numbers = #tpu.dot_dimension_numbers<[1], [0], [0], [1], [0, 0, 1, 1], [], []>} : vector<36x32xbf16>, vector<32x32xbf16>, vector<36x32xf32> -> vector<36x32xf32>
    %109 = arith.truncf %108 : vector<36x32xf32> to vector<36x32xbf16>
    %cst_60 = arith.constant dense<0.000000e+00> : vector<36x32xf32>
    %110 = tpu.matmul %103, %42, %cst_60 {dimension_numbers = #tpu.dot_dimension_numbers<[1], [0], [0], [1], [0, 0, 1, 1], [], []>} : vector<36x32xbf16>, vector<32x32xbf16>, vector<36x32xf32> -> vector<36x32xf32>
    %111 = vector.broadcast %44 : vector<1x32xf32> to vector<36x32xf32>
    %112 = arith.addf %110, %111 : vector<36x32xf32>
    %113 = arith.truncf %112 : vector<36x32xf32> to vector<36x32xbf16>
    %cst_61 = arith.constant 0.000000e+00 : f32
    %114 = vector.broadcast %cst_61 : f32 to vector<36x32xf32>
    %115 = vector.broadcast %9 : vector<1x32xbf16> to vector<36x32xbf16>
    %116 = arith.mulf %107, %115 : vector<36x32xbf16>
    %cst_62 = arith.constant dense<0.000000e+00> : vector<36x36xf32>
    %117 = tpu.matmul %116, %109, %cst_62 {dimension_numbers = #tpu.dot_dimension_numbers<[1], [1], [0], [0], [0, 0, 1, 0], [], []>} : vector<36x32xbf16>, vector<36x32xbf16>, vector<36x36xf32> -> vector<36x36xf32>
    %cst_63 = arith.constant 0.353553385 : f32
    %118 = vector.broadcast %cst_63 : f32 to vector<36x36xf32>
    %119 = arith.mulf %117, %118 : vector<36x36xf32>
    %120 = arith.addf %119, %0 : vector<36x36xf32>
    %cst_64 = arith.constant dense<0xFF800000> : vector<36xf32>
    %121 = vector.multi_reduction <maximumf>, %120, %cst_64 [1] : vector<36x36xf32> to vector<36xf32>
    %122 = vector.shape_cast %121 : vector<36xf32> to vector<36x1xf32>
    %123 = vector.broadcast %122 : vector<36x1xf32> to vector<36x36xf32>
    %124 = arith.subf %120, %123 : vector<36x36xf32>
    %125 = math.exp %124 : vector<36x36xf32>
    %cst_65 = arith.constant dense<0.000000e+00> : vector<36xf32>
    %126 = vector.multi_reduction <add>, %125, %cst_65 [1] : vector<36x36xf32> to vector<36xf32>
    %127 = vector.shape_cast %126 : vector<36xf32> to vector<36x1xf32>
    %128 = tpu.reciprocal %127 {approx = true} : vector<36x1xf32> -> vector<36x1xf32>
    %129 = vector.broadcast %128 : vector<36x1xf32> to vector<36x36xf32>
    %130 = arith.mulf %125, %129 : vector<36x36xf32>
    %131 = arith.truncf %130 : vector<36x36xf32> to vector<36x36xbf16>
    %132 = vector.broadcast %9 : vector<1x32xbf16> to vector<36x32xbf16>
    %133 = arith.mulf %113, %132 : vector<36x32xbf16>
    %cst_66 = arith.constant dense<0.000000e+00> : vector<36x32xf32>
    %134 = tpu.matmul %131, %133, %cst_66 {dimension_numbers = #tpu.dot_dimension_numbers<[1], [0], [0], [1], [0, 0, 1, 1], [], []>} : vector<36x36xbf16>, vector<36x32xbf16>, vector<36x32xf32> -> vector<36x32xf32>
    %135 = arith.addf %114, %134 : vector<36x32xf32>
    %136 = vector.broadcast %17 : vector<1x32xbf16> to vector<36x32xbf16>
    %137 = arith.mulf %107, %136 : vector<36x32xbf16>
    %cst_67 = arith.constant dense<0.000000e+00> : vector<36x36xf32>
    %138 = tpu.matmul %137, %109, %cst_67 {dimension_numbers = #tpu.dot_dimension_numbers<[1], [1], [0], [0], [0, 0, 1, 0], [], []>} : vector<36x32xbf16>, vector<36x32xbf16>, vector<36x36xf32> -> vector<36x36xf32>
    %cst_68 = arith.constant 0.353553385 : f32
    %139 = vector.broadcast %cst_68 : f32 to vector<36x36xf32>
    %140 = arith.mulf %138, %139 : vector<36x36xf32>
    %141 = arith.addf %140, %0 : vector<36x36xf32>
    %cst_69 = arith.constant dense<0xFF800000> : vector<36xf32>
    %142 = vector.multi_reduction <maximumf>, %141, %cst_69 [1] : vector<36x36xf32> to vector<36xf32>
    %143 = vector.shape_cast %142 : vector<36xf32> to vector<36x1xf32>
    %144 = vector.broadcast %143 : vector<36x1xf32> to vector<36x36xf32>
    %145 = arith.subf %141, %144 : vector<36x36xf32>
    %146 = math.exp %145 : vector<36x36xf32>
    %cst_70 = arith.constant dense<0.000000e+00> : vector<36xf32>
    %147 = vector.multi_reduction <add>, %146, %cst_70 [1] : vector<36x36xf32> to vector<36xf32>
    %148 = vector.shape_cast %147 : vector<36xf32> to vector<36x1xf32>
    %149 = tpu.reciprocal %148 {approx = true} : vector<36x1xf32> -> vector<36x1xf32>
    %150 = vector.broadcast %149 : vector<36x1xf32> to vector<36x36xf32>
    %151 = arith.mulf %146, %150 : vector<36x36xf32>
    %152 = arith.truncf %151 : vector<36x36xf32> to vector<36x36xbf16>
    %153 = vector.broadcast %17 : vector<1x32xbf16> to vector<36x32xbf16>
    %154 = arith.mulf %113, %153 : vector<36x32xbf16>
    %cst_71 = arith.constant dense<0.000000e+00> : vector<36x32xf32>
    %155 = tpu.matmul %152, %154, %cst_71 {dimension_numbers = #tpu.dot_dimension_numbers<[1], [0], [0], [1], [0, 0, 1, 1], [], []>} : vector<36x36xbf16>, vector<36x32xbf16>, vector<36x32xf32> -> vector<36x32xf32>
    %156 = arith.addf %135, %155 : vector<36x32xf32>
    %157 = vector.broadcast %25 : vector<1x32xbf16> to vector<36x32xbf16>
    %158 = arith.mulf %107, %157 : vector<36x32xbf16>
    %cst_72 = arith.constant dense<0.000000e+00> : vector<36x36xf32>
    %159 = tpu.matmul %158, %109, %cst_72 {dimension_numbers = #tpu.dot_dimension_numbers<[1], [1], [0], [0], [0, 0, 1, 0], [], []>} : vector<36x32xbf16>, vector<36x32xbf16>, vector<36x36xf32> -> vector<36x36xf32>
    %cst_73 = arith.constant 0.353553385 : f32
    %160 = vector.broadcast %cst_73 : f32 to vector<36x36xf32>
    %161 = arith.mulf %159, %160 : vector<36x36xf32>
    %162 = arith.addf %161, %0 : vector<36x36xf32>
    %cst_74 = arith.constant dense<0xFF800000> : vector<36xf32>
    %163 = vector.multi_reduction <maximumf>, %162, %cst_74 [1] : vector<36x36xf32> to vector<36xf32>
    %164 = vector.shape_cast %163 : vector<36xf32> to vector<36x1xf32>
    %165 = vector.broadcast %164 : vector<36x1xf32> to vector<36x36xf32>
    %166 = arith.subf %162, %165 : vector<36x36xf32>
    %167 = math.exp %166 : vector<36x36xf32>
    %cst_75 = arith.constant dense<0.000000e+00> : vector<36xf32>
    %168 = vector.multi_reduction <add>, %167, %cst_75 [1] : vector<36x36xf32> to vector<36xf32>
    %169 = vector.shape_cast %168 : vector<36xf32> to vector<36x1xf32>
    %170 = tpu.reciprocal %169 {approx = true} : vector<36x1xf32> -> vector<36x1xf32>
    %171 = vector.broadcast %170 : vector<36x1xf32> to vector<36x36xf32>
    %172 = arith.mulf %167, %171 : vector<36x36xf32>
    %173 = arith.truncf %172 : vector<36x36xf32> to vector<36x36xbf16>
    %174 = vector.broadcast %25 : vector<1x32xbf16> to vector<36x32xbf16>
    %175 = arith.mulf %113, %174 : vector<36x32xbf16>
    %cst_76 = arith.constant dense<0.000000e+00> : vector<36x32xf32>
    %176 = tpu.matmul %173, %175, %cst_76 {dimension_numbers = #tpu.dot_dimension_numbers<[1], [0], [0], [1], [0, 0, 1, 1], [], []>} : vector<36x36xbf16>, vector<36x32xbf16>, vector<36x32xf32> -> vector<36x32xf32>
    %177 = arith.addf %156, %176 : vector<36x32xf32>
    %178 = vector.broadcast %33 : vector<1x32xbf16> to vector<36x32xbf16>
    %179 = arith.mulf %107, %178 : vector<36x32xbf16>
    %cst_77 = arith.constant dense<0.000000e+00> : vector<36x36xf32>
    %180 = tpu.matmul %179, %109, %cst_77 {dimension_numbers = #tpu.dot_dimension_numbers<[1], [1], [0], [0], [0, 0, 1, 0], [], []>} : vector<36x32xbf16>, vector<36x32xbf16>, vector<36x36xf32> -> vector<36x36xf32>
    %cst_78 = arith.constant 0.353553385 : f32
    %181 = vector.broadcast %cst_78 : f32 to vector<36x36xf32>
    %182 = arith.mulf %180, %181 : vector<36x36xf32>
    %183 = arith.addf %182, %0 : vector<36x36xf32>
    %cst_79 = arith.constant dense<0xFF800000> : vector<36xf32>
    %184 = vector.multi_reduction <maximumf>, %183, %cst_79 [1] : vector<36x36xf32> to vector<36xf32>
    %185 = vector.shape_cast %184 : vector<36xf32> to vector<36x1xf32>
    %186 = vector.broadcast %185 : vector<36x1xf32> to vector<36x36xf32>
    %187 = arith.subf %183, %186 : vector<36x36xf32>
    %188 = math.exp %187 : vector<36x36xf32>
    %cst_80 = arith.constant dense<0.000000e+00> : vector<36xf32>
    %189 = vector.multi_reduction <add>, %188, %cst_80 [1] : vector<36x36xf32> to vector<36xf32>
    %190 = vector.shape_cast %189 : vector<36xf32> to vector<36x1xf32>
    %191 = tpu.reciprocal %190 {approx = true} : vector<36x1xf32> -> vector<36x1xf32>
    %192 = vector.broadcast %191 : vector<36x1xf32> to vector<36x36xf32>
    %193 = arith.mulf %188, %192 : vector<36x36xf32>
    %194 = arith.truncf %193 : vector<36x36xf32> to vector<36x36xbf16>
    %195 = vector.broadcast %33 : vector<1x32xbf16> to vector<36x32xbf16>
    %196 = arith.mulf %113, %195 : vector<36x32xbf16>
    %cst_81 = arith.constant dense<0.000000e+00> : vector<36x32xf32>
    %197 = tpu.matmul %194, %196, %cst_81 {dimension_numbers = #tpu.dot_dimension_numbers<[1], [0], [0], [1], [0, 0, 1, 1], [], []>} : vector<36x36xbf16>, vector<36x32xbf16>, vector<36x32xf32> -> vector<36x32xf32>
    %198 = arith.addf %177, %197 : vector<36x32xf32>
    %199 = arith.truncf %198 : vector<36x32xf32> to vector<36x32xbf16>
    %cst_82 = arith.constant dense<0.000000e+00> : vector<36x32xf32>
    %200 = tpu.matmul %199, %45, %cst_82 {dimension_numbers = #tpu.dot_dimension_numbers<[1], [0], [0], [1], [0, 0, 1, 1], [], []>} : vector<36x32xbf16>, vector<32x32xbf16>, vector<36x32xf32> -> vector<36x32xf32>
    %201 = vector.broadcast %46 : vector<1x32xf32> to vector<36x32xf32>
    %202 = arith.addf %200, %201 : vector<36x32xf32>
    %203 = arith.addf %82, %202 : vector<36x32xf32>
    %c0_83 = arith.constant 0 : index
    %c0_84 = arith.constant 0 : index
    %c0_85 = arith.constant 0 : index
    %204 = vector.load %arg20[%c0_83, %c0_84, %c0_85] : memref<2x36x32xf32, #tpu.memory_space<vmem>>, vector<1x36x32xf32>
    %205 = vector.shape_cast %204 : vector<1x36x32xf32> to vector<36x32xf32>
    %206 = vector.shape_cast %203 : vector<36x32xf32> to vector<1x36x32xf32>
    tpu.vector_store %arg20[%c0_83, %c0_84, %c0_85], %206 {strides = array<i32>} : memref<2x36x32xf32, #tpu.memory_space<vmem>>, vector<1x36x32xf32>,
    %cst_86 = arith.constant dense<0.000000e+00> : vector<36xf32>
    %207 = vector.multi_reduction <add>, %203, %cst_86 [1] : vector<36x32xf32> to vector<36xf32>
    %208 = vector.shape_cast %207 : vector<36xf32> to vector<36x1xf32>
    %cst_87 = arith.constant 3.200000e+01 : f32
    %209 = vector.broadcast %cst_87 : f32 to vector<36x1xf32>
    %210 = arith.divf %208, %209 : vector<36x1xf32>
    %211 = vector.broadcast %210 : vector<36x1xf32> to vector<36x32xf32>
    %212 = arith.subf %203, %211 : vector<36x32xf32>
    %213 = arith.mulf %212, %212 : vector<36x32xf32>
    %cst_88 = arith.constant dense<0.000000e+00> : vector<36xf32>
    %214 = vector.multi_reduction <add>, %213, %cst_88 [1] : vector<36x32xf32> to vector<36xf32>
    %215 = vector.shape_cast %214 : vector<36xf32> to vector<36x1xf32>
    %cst_89 = arith.constant 3.200000e+01 : f32
    %216 = vector.broadcast %cst_89 : f32 to vector<36x1xf32>
    %217 = arith.divf %215, %216 : vector<36x1xf32>
    %cst_90 = arith.constant 9.99999974E-6 : f32
    %218 = vector.broadcast %cst_90 : f32 to vector<36x1xf32>
    %219 = arith.addf %217, %218 : vector<36x1xf32>
    %220 = math.rsqrt %219 : vector<36x1xf32>
    %221 = vector.broadcast %220 : vector<36x1xf32> to vector<36x32xf32>
    %222 = arith.mulf %212, %221 : vector<36x32xf32>
    %223 = vector.broadcast %47 : vector<1x32xf32> to vector<36x32xf32>
    %224 = arith.mulf %222, %223 : vector<36x32xf32>
    %225 = vector.broadcast %48 : vector<1x32xf32> to vector<36x32xf32>
    %226 = arith.addf %224, %225 : vector<36x32xf32>
    %c0_91 = arith.constant 0 : index
    %c0_92 = arith.constant 0 : index
    %c0_93 = arith.constant 0 : index
    %227 = vector.load %arg21[%c0_91, %c0_92, %c0_93] : memref<2x36x32xf32, #tpu.memory_space<vmem>>, vector<1x36x32xf32>
    %228 = vector.shape_cast %227 : vector<1x36x32xf32> to vector<36x32xf32>
    %229 = vector.shape_cast %226 : vector<36x32xf32> to vector<1x36x32xf32>
    tpu.vector_store %arg21[%c0_91, %c0_92, %c0_93], %229 {strides = array<i32>} : memref<2x36x32xf32, #tpu.memory_space<vmem>>, vector<1x36x32xf32>,
    %c1 = arith.constant 1 : index
    %c0_94 = arith.constant 0 : index
    %c0_95 = arith.constant 0 : index
    %230 = vector.load %arg0[%c1, %c0_94, %c0_95] : memref<2x36x32xf32, #tpu.memory_space<vmem>>, vector<1x36x32xf32>
    %231 = vector.shape_cast %230 : vector<1x36x32xf32> to vector<36x32xf32>
    %c1_96 = arith.constant 1 : index
    %c0_97 = arith.constant 0 : index
    %c0_98 = arith.constant 0 : index
    %232 = vector.load %arg1[%c1_96, %c0_97, %c0_98] : memref<2x36x32xf32, #tpu.memory_space<vmem>>, vector<1x36x32xf32>
    %233 = vector.shape_cast %232 : vector<1x36x32xf32> to vector<36x32xf32>
    %c1_99 = arith.constant 1 : index
    %c0_100 = arith.constant 0 : index
    %c0_101 = arith.constant 0 : index
    %234 = vector.load %arg2[%c1_99, %c0_100, %c0_101] : memref<2x32x128xbf16, #tpu.memory_space<vmem>>, vector<1x32x128xbf16>
    %235 = vector.shape_cast %234 : vector<1x32x128xbf16> to vector<32x128xbf16>
    %c1_102 = arith.constant 1 : index
    %c0_103 = arith.constant 0 : index
    %c0_104 = arith.constant 0 : index
    %236 = vector.load %arg3[%c1_102, %c0_103, %c0_104] : memref<2x128x32xbf16, #tpu.memory_space<vmem>>, vector<1x128x32xbf16>
    %237 = vector.shape_cast %236 : vector<1x128x32xbf16> to vector<128x32xbf16>
    %238 = arith.truncf %233 : vector<36x32xf32> to vector<36x32xbf16>
    %cst_105 = arith.constant dense<0.000000e+00> : vector<36x128xf32>
    %239 = tpu.matmul %238, %34, %cst_105 {dimension_numbers = #tpu.dot_dimension_numbers<[1], [0], [0], [1], [0, 0, 1, 1], [], []>} : vector<36x32xbf16>, vector<32x128xbf16>, vector<36x128xf32> -> vector<36x128xf32>
    %cst_106 = arith.constant dense<0.000000e+00> : vector<36x128xf32>
    %240 = tpu.matmul %238, %235, %cst_106 {dimension_numbers = #tpu.dot_dimension_numbers<[1], [0], [0], [1], [0, 0, 1, 1], [], []>} : vector<36x32xbf16>, vector<32x128xbf16>, vector<36x128xf32> -> vector<36x128xf32>
    %241 = arith.addf %239, %240 : vector<36x128xf32>
    %242 = vector.broadcast %35 : vector<1x128xf32> to vector<36x128xf32>
    %243 = arith.addf %241, %242 : vector<36x128xf32>
    %cst_107 = arith.constant 5.000000e-01 : f32
    %244 = vector.broadcast %cst_107 : f32 to vector<36x128xf32>
    %245 = arith.mulf %244, %243 : vector<36x128xf32>
    %cst_108 = arith.constant 4.471500e-02 : f32
    %246 = vector.broadcast %cst_108 : f32 to vector<36x128xf32>
    %247 = arith.mulf %246, %243 : vector<36x128xf32>
    %248 = arith.mulf %247, %243 : vector<36x128xf32>
    %249 = arith.mulf %248, %243 : vector<36x128xf32>
    %250 = arith.addf %243, %249 : vector<36x128xf32>
    %cst_109 = arith.constant 0.797884583 : f32
    %251 = vector.broadcast %cst_109 : f32 to vector<36x128xf32>
    %252 = arith.mulf %251, %250 : vector<36x128xf32>
    %253 = math.tanh %252 : vector<36x128xf32>
    %cst_110 = arith.constant 1.000000e+00 : f32
    %254 = vector.broadcast %cst_110 : f32 to vector<36x128xf32>
    %255 = arith.addf %254, %253 : vector<36x128xf32>
    %256 = arith.mulf %245, %255 : vector<36x128xf32>
    %257 = arith.truncf %256 : vector<36x128xf32> to vector<36x128xbf16>
    %cst_111 = arith.constant dense<0.000000e+00> : vector<36x32xf32>
    %258 = tpu.matmul %257, %36, %cst_111 {dimension_numbers = #tpu.dot_dimension_numbers<[1], [0], [0], [1], [0, 0, 1, 1], [], []>} : vector<36x128xbf16>, vector<128x32xbf16>, vector<36x32xf32> -> vector<36x32xf32>
    %cst_112 = arith.constant dense<0.000000e+00> : vector<36x32xf32>
    %259 = tpu.matmul %257, %237, %cst_112 {dimension_numbers = #tpu.dot_dimension_numbers<[1], [0], [0], [1], [0, 0, 1, 1], [], []>} : vector<36x128xbf16>, vector<128x32xbf16>, vector<36x32xf32> -> vector<36x32xf32>
    %260 = arith.addf %258, %259 : vector<36x32xf32>
    %261 = vector.broadcast %37 : vector<1x32xf32> to vector<36x32xf32>
    %262 = arith.addf %260, %261 : vector<36x32xf32>
    %263 = arith.addf %231, %262 : vector<36x32xf32>
    %cst_113 = arith.constant dense<0.000000e+00> : vector<36xf32>
    %264 = vector.multi_reduction <add>, %263, %cst_113 [1] : vector<36x32xf32> to vector<36xf32>
    %265 = vector.shape_cast %264 : vector<36xf32> to vector<36x1xf32>
    %cst_114 = arith.constant 3.200000e+01 : f32
    %266 = vector.broadcast %cst_114 : f32 to vector<36x1xf32>
    %267 = arith.divf %265, %266 : vector<36x1xf32>
    %268 = vector.broadcast %267 : vector<36x1xf32> to vector<36x32xf32>
    %269 = arith.subf %263, %268 : vector<36x32xf32>
    %270 = arith.mulf %269, %269 : vector<36x32xf32>
    %cst_115 = arith.constant dense<0.000000e+00> : vector<36xf32>
    %271 = vector.multi_reduction <add>, %270, %cst_115 [1] : vector<36x32xf32> to vector<36xf32>
    %272 = vector.shape_cast %271 : vector<36xf32> to vector<36x1xf32>
    %cst_116 = arith.constant 3.200000e+01 : f32
    %273 = vector.broadcast %cst_116 : f32 to vector<36x1xf32>
    %274 = arith.divf %272, %273 : vector<36x1xf32>
    %cst_117 = arith.constant 9.99999974E-6 : f32
    %275 = vector.broadcast %cst_117 : f32 to vector<36x1xf32>
    %276 = arith.addf %274, %275 : vector<36x1xf32>
    %277 = math.rsqrt %276 : vector<36x1xf32>
    %278 = vector.broadcast %277 : vector<36x1xf32> to vector<36x32xf32>
    %279 = arith.mulf %269, %278 : vector<36x32xf32>
    %280 = vector.broadcast %38 : vector<1x32xf32> to vector<36x32xf32>
    %281 = arith.mulf %279, %280 : vector<36x32xf32>
    %282 = vector.broadcast %39 : vector<1x32xf32> to vector<36x32xf32>
    %283 = arith.addf %281, %282 : vector<36x32xf32>
    %284 = arith.truncf %283 : vector<36x32xf32> to vector<36x32xbf16>
    %cst_118 = arith.constant dense<0.000000e+00> : vector<36x32xf32>
    %285 = tpu.matmul %284, %40, %cst_118 {dimension_numbers = #tpu.dot_dimension_numbers<[1], [0], [0], [1], [0, 0, 1, 1], [], []>} : vector<36x32xbf16>, vector<32x32xbf16>, vector<36x32xf32> -> vector<36x32xf32>
    %286 = vector.broadcast %43 : vector<1x32xf32> to vector<36x32xf32>
    %287 = arith.addf %285, %286 : vector<36x32xf32>
    %288 = arith.truncf %287 : vector<36x32xf32> to vector<36x32xbf16>
    %cst_119 = arith.constant dense<0.000000e+00> : vector<36x32xf32>
    %289 = tpu.matmul %284, %41, %cst_119 {dimension_numbers = #tpu.dot_dimension_numbers<[1], [0], [0], [1], [0, 0, 1, 1], [], []>} : vector<36x32xbf16>, vector<32x32xbf16>, vector<36x32xf32> -> vector<36x32xf32>
    %290 = arith.truncf %289 : vector<36x32xf32> to vector<36x32xbf16>
    %cst_120 = arith.constant dense<0.000000e+00> : vector<36x32xf32>
    %291 = tpu.matmul %284, %42, %cst_120 {dimension_numbers = #tpu.dot_dimension_numbers<[1], [0], [0], [1], [0, 0, 1, 1], [], []>} : vector<36x32xbf16>, vector<32x32xbf16>, vector<36x32xf32> -> vector<36x32xf32>
    %292 = vector.broadcast %44 : vector<1x32xf32> to vector<36x32xf32>
    %293 = arith.addf %291, %292 : vector<36x32xf32>
    %294 = arith.truncf %293 : vector<36x32xf32> to vector<36x32xbf16>
    %cst_121 = arith.constant 0.000000e+00 : f32
    %295 = vector.broadcast %cst_121 : f32 to vector<36x32xf32>
    %296 = vector.broadcast %9 : vector<1x32xbf16> to vector<36x32xbf16>
    %297 = arith.mulf %288, %296 : vector<36x32xbf16>
    %cst_122 = arith.constant dense<0.000000e+00> : vector<36x36xf32>
    %298 = tpu.matmul %297, %290, %cst_122 {dimension_numbers = #tpu.dot_dimension_numbers<[1], [1], [0], [0], [0, 0, 1, 0], [], []>} : vector<36x32xbf16>, vector<36x32xbf16>, vector<36x36xf32> -> vector<36x36xf32>
    %cst_123 = arith.constant 0.353553385 : f32
    %299 = vector.broadcast %cst_123 : f32 to vector<36x36xf32>
    %300 = arith.mulf %298, %299 : vector<36x36xf32>
    %301 = arith.addf %300, %0 : vector<36x36xf32>
    %cst_124 = arith.constant dense<0xFF800000> : vector<36xf32>
    %302 = vector.multi_reduction <maximumf>, %301, %cst_124 [1] : vector<36x36xf32> to vector<36xf32>
    %303 = vector.shape_cast %302 : vector<36xf32> to vector<36x1xf32>
    %304 = vector.broadcast %303 : vector<36x1xf32> to vector<36x36xf32>
    %305 = arith.subf %301, %304 : vector<36x36xf32>
    %306 = math.exp %305 : vector<36x36xf32>
    %cst_125 = arith.constant dense<0.000000e+00> : vector<36xf32>
    %307 = vector.multi_reduction <add>, %306, %cst_125 [1] : vector<36x36xf32> to vector<36xf32>
    %308 = vector.shape_cast %307 : vector<36xf32> to vector<36x1xf32>
    %309 = tpu.reciprocal %308 {approx = true} : vector<36x1xf32> -> vector<36x1xf32>
    %310 = vector.broadcast %309 : vector<36x1xf32> to vector<36x36xf32>
    %311 = arith.mulf %306, %310 : vector<36x36xf32>
    %312 = arith.truncf %311 : vector<36x36xf32> to vector<36x36xbf16>
    %313 = vector.broadcast %9 : vector<1x32xbf16> to vector<36x32xbf16>
    %314 = arith.mulf %294, %313 : vector<36x32xbf16>
    %cst_126 = arith.constant dense<0.000000e+00> : vector<36x32xf32>
    %315 = tpu.matmul %312, %314, %cst_126 {dimension_numbers = #tpu.dot_dimension_numbers<[1], [0], [0], [1], [0, 0, 1, 1], [], []>} : vector<36x36xbf16>, vector<36x32xbf16>, vector<36x32xf32> -> vector<36x32xf32>
    %316 = arith.addf %295, %315 : vector<36x32xf32>
    %317 = vector.broadcast %17 : vector<1x32xbf16> to vector<36x32xbf16>
    %318 = arith.mulf %288, %317 : vector<36x32xbf16>
    %cst_127 = arith.constant dense<0.000000e+00> : vector<36x36xf32>
    %319 = tpu.matmul %318, %290, %cst_127 {dimension_numbers = #tpu.dot_dimension_numbers<[1], [1], [0], [0], [0, 0, 1, 0], [], []>} : vector<36x32xbf16>, vector<36x32xbf16>, vector<36x36xf32> -> vector<36x36xf32>
    %cst_128 = arith.constant 0.353553385 : f32
    %320 = vector.broadcast %cst_128 : f32 to vector<36x36xf32>
    %321 = arith.mulf %319, %320 : vector<36x36xf32>
    %322 = arith.addf %321, %0 : vector<36x36xf32>
    %cst_129 = arith.constant dense<0xFF800000> : vector<36xf32>
    %323 = vector.multi_reduction <maximumf>, %322, %cst_129 [1] : vector<36x36xf32> to vector<36xf32>
    %324 = vector.shape_cast %323 : vector<36xf32> to vector<36x1xf32>
    %325 = vector.broadcast %324 : vector<36x1xf32> to vector<36x36xf32>
    %326 = arith.subf %322, %325 : vector<36x36xf32>
    %327 = math.exp %326 : vector<36x36xf32>
    %cst_130 = arith.constant dense<0.000000e+00> : vector<36xf32>
    %328 = vector.multi_reduction <add>, %327, %cst_130 [1] : vector<36x36xf32> to vector<36xf32>
    %329 = vector.shape_cast %328 : vector<36xf32> to vector<36x1xf32>
    %330 = tpu.reciprocal %329 {approx = true} : vector<36x1xf32> -> vector<36x1xf32>
    %331 = vector.broadcast %330 : vector<36x1xf32> to vector<36x36xf32>
    %332 = arith.mulf %327, %331 : vector<36x36xf32>
    %333 = arith.truncf %332 : vector<36x36xf32> to vector<36x36xbf16>
    %334 = vector.broadcast %17 : vector<1x32xbf16> to vector<36x32xbf16>
    %335 = arith.mulf %294, %334 : vector<36x32xbf16>
    %cst_131 = arith.constant dense<0.000000e+00> : vector<36x32xf32>
    %336 = tpu.matmul %333, %335, %cst_131 {dimension_numbers = #tpu.dot_dimension_numbers<[1], [0], [0], [1], [0, 0, 1, 1], [], []>} : vector<36x36xbf16>, vector<36x32xbf16>, vector<36x32xf32> -> vector<36x32xf32>
    %337 = arith.addf %316, %336 : vector<36x32xf32>
    %338 = vector.broadcast %25 : vector<1x32xbf16> to vector<36x32xbf16>
    %339 = arith.mulf %288, %338 : vector<36x32xbf16>
    %cst_132 = arith.constant dense<0.000000e+00> : vector<36x36xf32>
    %340 = tpu.matmul %339, %290, %cst_132 {dimension_numbers = #tpu.dot_dimension_numbers<[1], [1], [0], [0], [0, 0, 1, 0], [], []>} : vector<36x32xbf16>, vector<36x32xbf16>, vector<36x36xf32> -> vector<36x36xf32>
    %cst_133 = arith.constant 0.353553385 : f32
    %341 = vector.broadcast %cst_133 : f32 to vector<36x36xf32>
    %342 = arith.mulf %340, %341 : vector<36x36xf32>
    %343 = arith.addf %342, %0 : vector<36x36xf32>
    %cst_134 = arith.constant dense<0xFF800000> : vector<36xf32>
    %344 = vector.multi_reduction <maximumf>, %343, %cst_134 [1] : vector<36x36xf32> to vector<36xf32>
    %345 = vector.shape_cast %344 : vector<36xf32> to vector<36x1xf32>
    %346 = vector.broadcast %345 : vector<36x1xf32> to vector<36x36xf32>
    %347 = arith.subf %343, %346 : vector<36x36xf32>
    %348 = math.exp %347 : vector<36x36xf32>
    %cst_135 = arith.constant dense<0.000000e+00> : vector<36xf32>
    %349 = vector.multi_reduction <add>, %348, %cst_135 [1] : vector<36x36xf32> to vector<36xf32>
    %350 = vector.shape_cast %349 : vector<36xf32> to vector<36x1xf32>
    %351 = tpu.reciprocal %350 {approx = true} : vector<36x1xf32> -> vector<36x1xf32>
    %352 = vector.broadcast %351 : vector<36x1xf32> to vector<36x36xf32>
    %353 = arith.mulf %348, %352 : vector<36x36xf32>
    %354 = arith.truncf %353 : vector<36x36xf32> to vector<36x36xbf16>
    %355 = vector.broadcast %25 : vector<1x32xbf16> to vector<36x32xbf16>
    %356 = arith.mulf %294, %355 : vector<36x32xbf16>
    %cst_136 = arith.constant dense<0.000000e+00> : vector<36x32xf32>
    %357 = tpu.matmul %354, %356, %cst_136 {dimension_numbers = #tpu.dot_dimension_numbers<[1], [0], [0], [1], [0, 0, 1, 1], [], []>} : vector<36x36xbf16>, vector<36x32xbf16>, vector<36x32xf32> -> vector<36x32xf32>
    %358 = arith.addf %337, %357 : vector<36x32xf32>
    %359 = vector.broadcast %33 : vector<1x32xbf16> to vector<36x32xbf16>
    %360 = arith.mulf %288, %359 : vector<36x32xbf16>
    %cst_137 = arith.constant dense<0.000000e+00> : vector<36x36xf32>
    %361 = tpu.matmul %360, %290, %cst_137 {dimension_numbers = #tpu.dot_dimension_numbers<[1], [1], [0], [0], [0, 0, 1, 0], [], []>} : vector<36x32xbf16>, vector<36x32xbf16>, vector<36x36xf32> -> vector<36x36xf32>
    %cst_138 = arith.constant 0.353553385 : f32
    %362 = vector.broadcast %cst_138 : f32 to vector<36x36xf32>
    %363 = arith.mulf %361, %362 : vector<36x36xf32>
    %364 = arith.addf %363, %0 : vector<36x36xf32>
    %cst_139 = arith.constant dense<0xFF800000> : vector<36xf32>
    %365 = vector.multi_reduction <maximumf>, %364, %cst_139 [1] : vector<36x36xf32> to vector<36xf32>
    %366 = vector.shape_cast %365 : vector<36xf32> to vector<36x1xf32>
    %367 = vector.broadcast %366 : vector<36x1xf32> to vector<36x36xf32>
    %368 = arith.subf %364, %367 : vector<36x36xf32>
    %369 = math.exp %368 : vector<36x36xf32>
    %cst_140 = arith.constant dense<0.000000e+00> : vector<36xf32>
    %370 = vector.multi_reduction <add>, %369, %cst_140 [1] : vector<36x36xf32> to vector<36xf32>
    %371 = vector.shape_cast %370 : vector<36xf32> to vector<36x1xf32>
    %372 = tpu.reciprocal %371 {approx = true} : vector<36x1xf32> -> vector<36x1xf32>
    %373 = vector.broadcast %372 : vector<36x1xf32> to vector<36x36xf32>
    %374 = arith.mulf %369, %373 : vector<36x36xf32>
    %375 = arith.truncf %374 : vector<36x36xf32> to vector<36x36xbf16>
    %376 = vector.broadcast %33 : vector<1x32xbf16> to vector<36x32xbf16>
    %377 = arith.mulf %294, %376 : vector<36x32xbf16>
    %cst_141 = arith.constant dense<0.000000e+00> : vector<36x32xf32>
    %378 = tpu.matmul %375, %377, %cst_141 {dimension_numbers = #tpu.dot_dimension_numbers<[1], [0], [0], [1], [0, 0, 1, 1], [], []>} : vector<36x36xbf16>, vector<36x32xbf16>, vector<36x32xf32> -> vector<36x32xf32>
    %379 = arith.addf %358, %378 : vector<36x32xf32>
    %380 = arith.truncf %379 : vector<36x32xf32> to vector<36x32xbf16>
    %cst_142 = arith.constant dense<0.000000e+00> : vector<36x32xf32>
    %381 = tpu.matmul %380, %45, %cst_142 {dimension_numbers = #tpu.dot_dimension_numbers<[1], [0], [0], [1], [0, 0, 1, 1], [], []>} : vector<36x32xbf16>, vector<32x32xbf16>, vector<36x32xf32> -> vector<36x32xf32>
    %382 = vector.broadcast %46 : vector<1x32xf32> to vector<36x32xf32>
    %383 = arith.addf %381, %382 : vector<36x32xf32>
    %384 = arith.addf %263, %383 : vector<36x32xf32>
    %c1_143 = arith.constant 1 : index
    %c0_144 = arith.constant 0 : index
    %c0_145 = arith.constant 0 : index
    %385 = vector.load %arg20[%c1_143, %c0_144, %c0_145] : memref<2x36x32xf32, #tpu.memory_space<vmem>>, vector<1x36x32xf32>
    %386 = vector.shape_cast %385 : vector<1x36x32xf32> to vector<36x32xf32>
    %387 = vector.shape_cast %384 : vector<36x32xf32> to vector<1x36x32xf32>
    tpu.vector_store %arg20[%c1_143, %c0_144, %c0_145], %387 {strides = array<i32>} : memref<2x36x32xf32, #tpu.memory_space<vmem>>, vector<1x36x32xf32>,
    %cst_146 = arith.constant dense<0.000000e+00> : vector<36xf32>
    %388 = vector.multi_reduction <add>, %384, %cst_146 [1] : vector<36x32xf32> to vector<36xf32>
    %389 = vector.shape_cast %388 : vector<36xf32> to vector<36x1xf32>
    %cst_147 = arith.constant 3.200000e+01 : f32
    %390 = vector.broadcast %cst_147 : f32 to vector<36x1xf32>
    %391 = arith.divf %389, %390 : vector<36x1xf32>
    %392 = vector.broadcast %391 : vector<36x1xf32> to vector<36x32xf32>
    %393 = arith.subf %384, %392 : vector<36x32xf32>
    %394 = arith.mulf %393, %393 : vector<36x32xf32>
    %cst_148 = arith.constant dense<0.000000e+00> : vector<36xf32>
    %395 = vector.multi_reduction <add>, %394, %cst_148 [1] : vector<36x32xf32> to vector<36xf32>
    %396 = vector.shape_cast %395 : vector<36xf32> to vector<36x1xf32>
    %cst_149 = arith.constant 3.200000e+01 : f32
    %397 = vector.broadcast %cst_149 : f32 to vector<36x1xf32>
    %398 = arith.divf %396, %397 : vector<36x1xf32>
    %cst_150 = arith.constant 9.99999974E-6 : f32
    %399 = vector.broadcast %cst_150 : f32 to vector<36x1xf32>
    %400 = arith.addf %398, %399 : vector<36x1xf32>
    %401 = math.rsqrt %400 : vector<36x1xf32>
    %402 = vector.broadcast %401 : vector<36x1xf32> to vector<36x32xf32>
    %403 = arith.mulf %393, %402 : vector<36x32xf32>
    %404 = vector.broadcast %47 : vector<1x32xf32> to vector<36x32xf32>
    %405 = arith.mulf %403, %404 : vector<36x32xf32>
    %406 = vector.broadcast %48 : vector<1x32xf32> to vector<36x32xf32>
    %407 = arith.addf %405, %406 : vector<36x32xf32>
    %c1_151 = arith.constant 1 : index
    %c0_152 = arith.constant 0 : index
    %c0_153 = arith.constant 0 : index
    %408 = vector.load %arg21[%c1_151, %c0_152, %c0_153] : memref<2x36x32xf32, #tpu.memory_space<vmem>>, vector<1x36x32xf32>
    %409 = vector.shape_cast %408 : vector<1x36x32xf32> to vector<36x32xf32>
    %410 = vector.shape_cast %407 : vector<36x32xf32> to vector<1x36x32xf32>
    tpu.vector_store %arg21[%c1_151, %c0_152, %c0_153], %410 {strides = array<i32>} : memref<2x36x32xf32, #tpu.memory_space<vmem>>, vector<1x36x32xf32>,
    return
  }
}

module attributes {stable_mosaic.version = 11 : i64} {
  func.func @_ffn_tail_kernel(%arg0: memref<2x36x32xf32, #tpu.memory_space<vmem>>, %arg1: memref<2x36x32xf32, #tpu.memory_space<vmem>>, %arg2: memref<2x32x128xbf16, #tpu.memory_space<vmem>>, %arg3: memref<2x128x32xbf16, #tpu.memory_space<vmem>>, %arg4: memref<32x128xbf16, #tpu.memory_space<vmem>>, %arg5: memref<1x128xf32, #tpu.memory_space<vmem>>, %arg6: memref<128x32xbf16, #tpu.memory_space<vmem>>, %arg7: memref<1x32xf32, #tpu.memory_space<vmem>>, %arg8: memref<32x64xbf16, #tpu.memory_space<vmem>>, %arg9: memref<2x16x64xf32, #tpu.memory_space<vmem>>, %arg10: memref<2x8x32xf32, #tpu.memory_space<vmem>>) attributes {dimension_semantics = [], scalar_prefetch = 0 : i64, scratch_operands = 0 : i64, tpu.core_type = #tpu.core_type<tc>} {
    %c0 = arith.constant 0 : index
    %c0_0 = arith.constant 0 : index
    %0 = vector.load %arg4[%c0, %c0_0] : memref<32x128xbf16, #tpu.memory_space<vmem>>, vector<32x128xbf16>
    %c0_1 = arith.constant 0 : index
    %c0_2 = arith.constant 0 : index
    %1 = vector.load %arg5[%c0_1, %c0_2] : memref<1x128xf32, #tpu.memory_space<vmem>>, vector<1x128xf32>
    %c0_3 = arith.constant 0 : index
    %c0_4 = arith.constant 0 : index
    %2 = vector.load %arg6[%c0_3, %c0_4] : memref<128x32xbf16, #tpu.memory_space<vmem>>, vector<128x32xbf16>
    %c0_5 = arith.constant 0 : index
    %c0_6 = arith.constant 0 : index
    %3 = vector.load %arg7[%c0_5, %c0_6] : memref<1x32xf32, #tpu.memory_space<vmem>>, vector<1x32xf32>
    %c0_7 = arith.constant 0 : index
    %c0_8 = arith.constant 0 : index
    %4 = vector.load %arg8[%c0_7, %c0_8] : memref<32x64xbf16, #tpu.memory_space<vmem>>, vector<32x64xbf16>
    %c0_9 = arith.constant 0 : index
    %c0_10 = arith.constant 0 : index
    %c0_11 = arith.constant 0 : index
    %5 = vector.load %arg0[%c0_9, %c0_10, %c0_11] : memref<2x36x32xf32, #tpu.memory_space<vmem>>, vector<1x36x32xf32>
    %6 = vector.shape_cast %5 : vector<1x36x32xf32> to vector<36x32xf32>
    %c0_12 = arith.constant 0 : index
    %c0_13 = arith.constant 0 : index
    %c0_14 = arith.constant 0 : index
    %7 = vector.load %arg1[%c0_12, %c0_13, %c0_14] : memref<2x36x32xf32, #tpu.memory_space<vmem>>, vector<1x36x32xf32>
    %8 = vector.shape_cast %7 : vector<1x36x32xf32> to vector<36x32xf32>
    %c0_15 = arith.constant 0 : index
    %c0_16 = arith.constant 0 : index
    %c0_17 = arith.constant 0 : index
    %9 = vector.load %arg2[%c0_15, %c0_16, %c0_17] : memref<2x32x128xbf16, #tpu.memory_space<vmem>>, vector<1x32x128xbf16>
    %10 = vector.shape_cast %9 : vector<1x32x128xbf16> to vector<32x128xbf16>
    %c0_18 = arith.constant 0 : index
    %c0_19 = arith.constant 0 : index
    %c0_20 = arith.constant 0 : index
    %11 = vector.load %arg3[%c0_18, %c0_19, %c0_20] : memref<2x128x32xbf16, #tpu.memory_space<vmem>>, vector<1x128x32xbf16>
    %12 = vector.shape_cast %11 : vector<1x128x32xbf16> to vector<128x32xbf16>
    %13 = arith.truncf %8 : vector<36x32xf32> to vector<36x32xbf16>
    %cst = arith.constant dense<0.000000e+00> : vector<36x128xf32>
    %14 = tpu.matmul %13, %0, %cst {dimension_numbers = #tpu.dot_dimension_numbers<[1], [0], [0], [1], [0, 0, 1, 1], [], []>} : vector<36x32xbf16>, vector<32x128xbf16>, vector<36x128xf32> -> vector<36x128xf32>
    %cst_21 = arith.constant dense<0.000000e+00> : vector<36x128xf32>
    %15 = tpu.matmul %13, %10, %cst_21 {dimension_numbers = #tpu.dot_dimension_numbers<[1], [0], [0], [1], [0, 0, 1, 1], [], []>} : vector<36x32xbf16>, vector<32x128xbf16>, vector<36x128xf32> -> vector<36x128xf32>
    %16 = arith.addf %14, %15 : vector<36x128xf32>
    %17 = vector.broadcast %1 : vector<1x128xf32> to vector<36x128xf32>
    %18 = arith.addf %16, %17 : vector<36x128xf32>
    %cst_22 = arith.constant 5.000000e-01 : f32
    %19 = vector.broadcast %cst_22 : f32 to vector<36x128xf32>
    %20 = arith.mulf %19, %18 : vector<36x128xf32>
    %cst_23 = arith.constant 4.471500e-02 : f32
    %21 = vector.broadcast %cst_23 : f32 to vector<36x128xf32>
    %22 = arith.mulf %21, %18 : vector<36x128xf32>
    %23 = arith.mulf %22, %18 : vector<36x128xf32>
    %24 = arith.mulf %23, %18 : vector<36x128xf32>
    %25 = arith.addf %18, %24 : vector<36x128xf32>
    %cst_24 = arith.constant 0.797884583 : f32
    %26 = vector.broadcast %cst_24 : f32 to vector<36x128xf32>
    %27 = arith.mulf %26, %25 : vector<36x128xf32>
    %28 = math.tanh %27 : vector<36x128xf32>
    %cst_25 = arith.constant 1.000000e+00 : f32
    %29 = vector.broadcast %cst_25 : f32 to vector<36x128xf32>
    %30 = arith.addf %29, %28 : vector<36x128xf32>
    %31 = arith.mulf %20, %30 : vector<36x128xf32>
    %32 = arith.truncf %31 : vector<36x128xf32> to vector<36x128xbf16>
    %cst_26 = arith.constant dense<0.000000e+00> : vector<36x32xf32>
    %33 = tpu.matmul %32, %2, %cst_26 {dimension_numbers = #tpu.dot_dimension_numbers<[1], [0], [0], [1], [0, 0, 1, 1], [], []>} : vector<36x128xbf16>, vector<128x32xbf16>, vector<36x32xf32> -> vector<36x32xf32>
    %cst_27 = arith.constant dense<0.000000e+00> : vector<36x32xf32>
    %34 = tpu.matmul %32, %12, %cst_27 {dimension_numbers = #tpu.dot_dimension_numbers<[1], [0], [0], [1], [0, 0, 1, 1], [], []>} : vector<36x128xbf16>, vector<128x32xbf16>, vector<36x32xf32> -> vector<36x32xf32>
    %35 = arith.addf %33, %34 : vector<36x32xf32>
    %36 = vector.broadcast %3 : vector<1x32xf32> to vector<36x32xf32>
    %37 = arith.addf %35, %36 : vector<36x32xf32>
    %38 = arith.addf %6, %37 : vector<36x32xf32>
    %39 = vector.extract_strided_slice %38 {offsets = [10, 0], sizes = [16, 32], strides = [1, 1]} : vector<36x32xf32> to vector<16x32xf32>
    %40 = arith.truncf %39 : vector<16x32xf32> to vector<16x32xbf16>
    %cst_28 = arith.constant dense<0.000000e+00> : vector<16x64xf32>
    %41 = tpu.matmul %40, %4, %cst_28 {dimension_numbers = #tpu.dot_dimension_numbers<[1], [0], [0], [1], [0, 0, 1, 1], [], []>} : vector<16x32xbf16>, vector<32x64xbf16>, vector<16x64xf32> -> vector<16x64xf32>
    %c0_29 = arith.constant 0 : index
    %c0_30 = arith.constant 0 : index
    %c0_31 = arith.constant 0 : index
    %42 = vector.load %arg9[%c0_29, %c0_30, %c0_31] : memref<2x16x64xf32, #tpu.memory_space<vmem>>, vector<1x16x64xf32>
    %43 = vector.shape_cast %42 : vector<1x16x64xf32> to vector<16x64xf32>
    %44 = vector.shape_cast %41 : vector<16x64xf32> to vector<1x16x64xf32>
    tpu.vector_store %arg9[%c0_29, %c0_30, %c0_31], %44 {strides = array<i32>} : memref<2x16x64xf32, #tpu.memory_space<vmem>>, vector<1x16x64xf32>,
    %45 = vector.extract_strided_slice %38 {offsets = [27, 0], sizes = [8, 32], strides = [1, 1]} : vector<36x32xf32> to vector<8x32xf32>
    %c0_32 = arith.constant 0 : index
    %c0_33 = arith.constant 0 : index
    %c0_34 = arith.constant 0 : index
    %46 = vector.load %arg10[%c0_32, %c0_33, %c0_34] : memref<2x8x32xf32, #tpu.memory_space<vmem>>, vector<1x8x32xf32>
    %47 = vector.shape_cast %46 : vector<1x8x32xf32> to vector<8x32xf32>
    %48 = vector.shape_cast %45 : vector<8x32xf32> to vector<1x8x32xf32>
    tpu.vector_store %arg10[%c0_32, %c0_33, %c0_34], %48 {strides = array<i32>} : memref<2x8x32xf32, #tpu.memory_space<vmem>>, vector<1x8x32xf32>,
    %c1 = arith.constant 1 : index
    %c0_35 = arith.constant 0 : index
    %c0_36 = arith.constant 0 : index
    %49 = vector.load %arg0[%c1, %c0_35, %c0_36] : memref<2x36x32xf32, #tpu.memory_space<vmem>>, vector<1x36x32xf32>
    %50 = vector.shape_cast %49 : vector<1x36x32xf32> to vector<36x32xf32>
    %c1_37 = arith.constant 1 : index
    %c0_38 = arith.constant 0 : index
    %c0_39 = arith.constant 0 : index
    %51 = vector.load %arg1[%c1_37, %c0_38, %c0_39] : memref<2x36x32xf32, #tpu.memory_space<vmem>>, vector<1x36x32xf32>
    %52 = vector.shape_cast %51 : vector<1x36x32xf32> to vector<36x32xf32>
    %c1_40 = arith.constant 1 : index
    %c0_41 = arith.constant 0 : index
    %c0_42 = arith.constant 0 : index
    %53 = vector.load %arg2[%c1_40, %c0_41, %c0_42] : memref<2x32x128xbf16, #tpu.memory_space<vmem>>, vector<1x32x128xbf16>
    %54 = vector.shape_cast %53 : vector<1x32x128xbf16> to vector<32x128xbf16>
    %c1_43 = arith.constant 1 : index
    %c0_44 = arith.constant 0 : index
    %c0_45 = arith.constant 0 : index
    %55 = vector.load %arg3[%c1_43, %c0_44, %c0_45] : memref<2x128x32xbf16, #tpu.memory_space<vmem>>, vector<1x128x32xbf16>
    %56 = vector.shape_cast %55 : vector<1x128x32xbf16> to vector<128x32xbf16>
    %57 = arith.truncf %52 : vector<36x32xf32> to vector<36x32xbf16>
    %cst_46 = arith.constant dense<0.000000e+00> : vector<36x128xf32>
    %58 = tpu.matmul %57, %0, %cst_46 {dimension_numbers = #tpu.dot_dimension_numbers<[1], [0], [0], [1], [0, 0, 1, 1], [], []>} : vector<36x32xbf16>, vector<32x128xbf16>, vector<36x128xf32> -> vector<36x128xf32>
    %cst_47 = arith.constant dense<0.000000e+00> : vector<36x128xf32>
    %59 = tpu.matmul %57, %54, %cst_47 {dimension_numbers = #tpu.dot_dimension_numbers<[1], [0], [0], [1], [0, 0, 1, 1], [], []>} : vector<36x32xbf16>, vector<32x128xbf16>, vector<36x128xf32> -> vector<36x128xf32>
    %60 = arith.addf %58, %59 : vector<36x128xf32>
    %61 = vector.broadcast %1 : vector<1x128xf32> to vector<36x128xf32>
    %62 = arith.addf %60, %61 : vector<36x128xf32>
    %cst_48 = arith.constant 5.000000e-01 : f32
    %63 = vector.broadcast %cst_48 : f32 to vector<36x128xf32>
    %64 = arith.mulf %63, %62 : vector<36x128xf32>
    %cst_49 = arith.constant 4.471500e-02 : f32
    %65 = vector.broadcast %cst_49 : f32 to vector<36x128xf32>
    %66 = arith.mulf %65, %62 : vector<36x128xf32>
    %67 = arith.mulf %66, %62 : vector<36x128xf32>
    %68 = arith.mulf %67, %62 : vector<36x128xf32>
    %69 = arith.addf %62, %68 : vector<36x128xf32>
    %cst_50 = arith.constant 0.797884583 : f32
    %70 = vector.broadcast %cst_50 : f32 to vector<36x128xf32>
    %71 = arith.mulf %70, %69 : vector<36x128xf32>
    %72 = math.tanh %71 : vector<36x128xf32>
    %cst_51 = arith.constant 1.000000e+00 : f32
    %73 = vector.broadcast %cst_51 : f32 to vector<36x128xf32>
    %74 = arith.addf %73, %72 : vector<36x128xf32>
    %75 = arith.mulf %64, %74 : vector<36x128xf32>
    %76 = arith.truncf %75 : vector<36x128xf32> to vector<36x128xbf16>
    %cst_52 = arith.constant dense<0.000000e+00> : vector<36x32xf32>
    %77 = tpu.matmul %76, %2, %cst_52 {dimension_numbers = #tpu.dot_dimension_numbers<[1], [0], [0], [1], [0, 0, 1, 1], [], []>} : vector<36x128xbf16>, vector<128x32xbf16>, vector<36x32xf32> -> vector<36x32xf32>
    %cst_53 = arith.constant dense<0.000000e+00> : vector<36x32xf32>
    %78 = tpu.matmul %76, %56, %cst_53 {dimension_numbers = #tpu.dot_dimension_numbers<[1], [0], [0], [1], [0, 0, 1, 1], [], []>} : vector<36x128xbf16>, vector<128x32xbf16>, vector<36x32xf32> -> vector<36x32xf32>
    %79 = arith.addf %77, %78 : vector<36x32xf32>
    %80 = vector.broadcast %3 : vector<1x32xf32> to vector<36x32xf32>
    %81 = arith.addf %79, %80 : vector<36x32xf32>
    %82 = arith.addf %50, %81 : vector<36x32xf32>
    %83 = vector.extract_strided_slice %82 {offsets = [10, 0], sizes = [16, 32], strides = [1, 1]} : vector<36x32xf32> to vector<16x32xf32>
    %84 = arith.truncf %83 : vector<16x32xf32> to vector<16x32xbf16>
    %cst_54 = arith.constant dense<0.000000e+00> : vector<16x64xf32>
    %85 = tpu.matmul %84, %4, %cst_54 {dimension_numbers = #tpu.dot_dimension_numbers<[1], [0], [0], [1], [0, 0, 1, 1], [], []>} : vector<16x32xbf16>, vector<32x64xbf16>, vector<16x64xf32> -> vector<16x64xf32>
    %c1_55 = arith.constant 1 : index
    %c0_56 = arith.constant 0 : index
    %c0_57 = arith.constant 0 : index
    %86 = vector.load %arg9[%c1_55, %c0_56, %c0_57] : memref<2x16x64xf32, #tpu.memory_space<vmem>>, vector<1x16x64xf32>
    %87 = vector.shape_cast %86 : vector<1x16x64xf32> to vector<16x64xf32>
    %88 = vector.shape_cast %85 : vector<16x64xf32> to vector<1x16x64xf32>
    tpu.vector_store %arg9[%c1_55, %c0_56, %c0_57], %88 {strides = array<i32>} : memref<2x16x64xf32, #tpu.memory_space<vmem>>, vector<1x16x64xf32>,
    %89 = vector.extract_strided_slice %82 {offsets = [27, 0], sizes = [8, 32], strides = [1, 1]} : vector<36x32xf32> to vector<8x32xf32>
    %c1_58 = arith.constant 1 : index
    %c0_59 = arith.constant 0 : index
    %c0_60 = arith.constant 0 : index
    %90 = vector.load %arg10[%c1_58, %c0_59, %c0_60] : memref<2x8x32xf32, #tpu.memory_space<vmem>>, vector<1x8x32xf32>
    %91 = vector.shape_cast %90 : vector<1x8x32xf32> to vector<8x32xf32>
    %92 = vector.shape_cast %89 : vector<8x32xf32> to vector<1x8x32xf32>
    tpu.vector_store %arg10[%c1_58, %c0_59, %c0_60], %92 {strides = array<i32>} : memref<2x8x32xf32, #tpu.memory_space<vmem>>, vector<1x8x32xf32>,
    return
  }
}

</mosaic_0001>

<bundles_post_ra>
// kernel: model_forward.8
= control target key start
LH: loop header
LB: loop body
LE: loop exit
PB: predicated region body
PF: predicated region fallthrough
CT: control target
= control target key end

     0   :  { %v1439_v0 = vmov 0.0   ;;  %vm1440_vm0 = vmmov 0   ;;  %vm105_vm1 = vcmask 261120   ;;  %vm585_vm2 = vcmask 261123   ;;  %s1874_s2 = inlined_call_operand.vmem [shape: bf16[2,32,128], index: 2, kind: input, shape index: {}]   ;;  %s1875_s4 = inlined_call_operand.vmem [shape: bf16[32,128], index: 4, kind: input, shape index: {}]   ;;  %s1876_s1 = inlined_call_operand.vmem [shape: f32[2,36,32], index: 1, kind: input, shape index: {}]   ;;  %s1877_s3 = inlined_call_operand.vmem [shape: bf16[2,128,32], index: 3, kind: input, shape index: {}]   ;;  %s1878_s6 = inlined_call_operand.vmem [shape: bf16[128,32], index: 6, kind: input, shape index: {}]   ;;  %s1879_s8 = inlined_call_operand.vmem [shape: bf16[32,64], index: 8, kind: input, shape index: {}]   ;;  %s1880_s5 = inlined_call_operand.vmem [shape: f32[1,128], index: 5, kind: input, shape index: {}]   ;;  %s1881_s7 = inlined_call_operand.vmem [shape: f32[1,32], index: 7, kind: input, shape index: {}]   ;;  %s1882_s0 = inlined_call_operand.vmem [shape: f32[2,36,32], index: 0, kind: input, shape index: {}]   ;;  %s1883_s10 = inlined_call_operand.vmem [shape: f32[2,8,32], index: 10, kind: output, shape index: {1}]   ;;  %s1884_s9 = inlined_call_operand.vmem [shape: f32[2,16,64], index: 9, kind: output, shape index: {0}]  }
   0x1   :  { %1193 = vmatprep.subr.bf16.mxu0 %v1439_v0  ;;  %1209 = vmatprep.subr.bf16.mxu1 %v1439_v0  ;;  %v1387_v1 = vld [vmem:[%s1874_s2] sm:$0xff]   ;;  %v1389_v3 = vld [vmem:[%s1874_s2 + $0x8] sm:$0xff]   ;;  %v67_v8 = vld [vmem:[%s1876_s1 + $0x10] sm:$0xff]  ;;  %vm522_vm3 = vcmask 1046528   ;;  %vm587_vm4 = vcmask 256000   ;;  %vm582_vm5 = vcmask 523264  }
   0x2   :  { %v1504_v2 = vld [vmem:[%s1875_s4] sm:$0xff]   ;;  %1197 = vmatprep.mubr.msk.bf16.mxu0 %vm1440_vm0, %v1439_v0  ;;  %1213 = vmatprep.mubr.msk.bf16.mxu1 %vm1440_vm0, %v1439_v0  ;;  %v1518_v4 = vld [vmem:[%s1875_s4 + $0x8] sm:$0xff]   ;;  %v68_v9 = vld [vmem:[%s1876_s1 + $0x18] sm:$0xff] }
   0x3   :  { %1194 = vmatpush3.bf16.msra.mxu0 %v1387_v1  ;;  %1210 = vmatpush3.bf16.msra.mxu1 %v1504_v2  ;;  %v65_v5 = vld [vmem:[%s1876_s1] sm:$0xff]  ;;  %v66_v6 = vld [vmem:[%s1876_s1 + $0x8] sm:$0xff]  ;;  %v91_v10 = vpack.c.bf16 %v68_v9, %v67_v8  ;;  %v1395_v17 = vld [vmem:[%s1877_s3 + $0x10] sm:$0xff]  }
   0x4   :  { %1195 = vmatprep.subr.bf16.mxu0 %v1439_v0  ;;  %1211 = vmatprep.subr.bf16.mxu1 %v1439_v0  ;;  %v90_v7 = vpack.c.bf16 %v66_v6, %v65_v5  ;;  %v69_v11 = vld [vmem:[%s1876_s1 + $0x20] sm:$0xf]  ;;  %v1393_v15 = vld [vmem:[%s1877_s3 + $0x8] sm:$0xff]   ;;  %v1585_v18 = vld [vmem:[%s1878_s6 + $0x10] sm:$0xff]  }
   0x5   :  { %v92_v12 = vpack.c.bf16 %v69_v11, %v69_v11  ;;  %v1391_v13 = vld [vmem:[%s1877_s3] sm:$0xff]   ;;  %v1574_v16 = vld [vmem:[%s1878_s6 + $0x8] sm:$0xff]   ;;  %v1397_v19 = vld [vmem:[%s1877_s3 + $0x18] sm:$0xff]  }
   0x6   :  { %v1563_v14 = vld [vmem:[%s1878_s6] sm:$0xff]   ;;  %v1596_v20 = vld [vmem:[%s1878_s6 + $0x18] sm:$0xff]   ;;  %v1401_v23 = vld [vmem:[%s1877_s3 + $0x28] sm:$0xff]  }
   0x7   :  { %1196 = vmatpush3.bf16.msra.mxu0 %v1389_v3  ;;  %1212 = vmatpush3.bf16.msra.mxu1 %v1518_v4  ;;  %v1399_v21 = vld [vmem:[%s1877_s3 + $0x20] sm:$0xff]   ;;  %v1615_v24 = vld [vmem:[%s1878_s6 + $0x28] sm:$0xff]   ;;  %v1403_v25 = vld [vmem:[%s1877_s3 + $0x30] sm:$0xff]  }
   0x8   :  { %1225 = vmatprep.subr.bf16.mxu0 %v1439_v0  ;;  %1253 = vmatprep.subr.bf16.mxu1 %v1439_v0  ;;  %v1607_v22 = vld [vmem:[%s1878_s6 + $0x20] sm:$0xff]   ;;  %v1628_v26 = vld [vmem:[%s1878_s6 + $0x30] sm:$0xff]   ;;  %v1405_v27 = vld [vmem:[%s1877_s3 + $0x38] sm:$0xff]  }
   0x9   :  { %v1639_v28 = vld [vmem:[%s1878_s6 + $0x38] sm:$0xff]   ;;  %v1648_v30 = vld [vmem:[%s1880_s5] ss:$0 sm:$0xff] }
   0xa   :  { %1198 = vmatmul.mubr.msk.bf16.vlgmr.msra.gmra.mrb[0].mxu0 %vm105_vm1, %v90_v7  ;;  %1214 = vmatmul.mubr.msk.bf16.vlgmr.msra.gmra.mrb[0].mxu1 %vm105_vm1, %v90_v7 }
   0xb   :  { %1201 = vmatprep.mubr.msk.bf16.mxu0 %vm1440_vm0, %v1439_v0  ;;  %1217 = vmatprep.mubr.msk.bf16.mxu1 %vm1440_vm0, %v1439_v0 }
   0xc   :  { %1226 = vmatpush3.bf16.msra.mxu0 %v1391_v13  ;;  %1254 = vmatpush3.bf16.msra.mxu1 %v1563_v14 }
   0xd   :  { %1227 = vmatprep.subr.bf16.mxu0 %v1439_v0  ;;  %1255 = vmatprep.subr.bf16.mxu1 %v1439_v0 }
  0x10   :  { %1228 = vmatpush3.bf16.msra.mxu0 %v1393_v15  ;;  %1256 = vmatpush3.bf16.msra.mxu1 %v1574_v16 }
  0x11   :  { %1229 = vmatprep.subr.bf16.mxu0 %v1439_v0  ;;  %1257 = vmatprep.subr.bf16.mxu1 %v1439_v0 }
  0x12   :  { %1202 = vmatmul.mubr.msk.bf16.gmra.mrb[4].mxu0 %vm105_vm1, %v91_v10  ;;  %1218 = vmatmul.mubr.msk.bf16.gmra.mrb[4].mxu1 %vm105_vm1, %v91_v10 }
  0x13   :  { %1205 = vmatprep.mubr.msk.bf16.mxu0 %vm1440_vm0, %v1439_v0  ;;  %1221 = vmatprep.mubr.msk.bf16.mxu1 %vm1440_vm0, %v1439_v0 }
  0x14   :  { %1230 = vmatpush3.bf16.msra.mxu0 %v1395_v17  ;;  %1258 = vmatpush3.bf16.msra.mxu1 %v1585_v18 }
  0x15   :  { %1231 = vmatprep.subr.bf16.mxu0 %v1439_v0  ;;  %1259 = vmatprep.subr.bf16.mxu1 %v1439_v0 }
  0x18   :  { %1232 = vmatpush3.bf16.msra.mxu0 %v1397_v19  ;;  %1260 = vmatpush3.bf16.msra.mxu1 %v1596_v20 }
  0x19   :  { %1233 = vmatprep.subr.bf16.mxu0 %v1439_v0  ;;  %1261 = vmatprep.subr.bf16.mxu1 %v1439_v0 }
  0x1a   :  { %1206 = vmatmul.mubr.msk.bf16.gmra.mrb[8].mxu0 %vm105_vm1, %v92_v12  ;;  %1222 = vmatmul.mubr.msk.bf16.gmra.mrb[8].mxu1 %vm105_vm1, %v92_v12 }
  0x1b   :  { %1241 = vmatprep.mubr.msk.bf16.mxu0 %vm1440_vm0, %v1439_v0  ;;  %1269 = vmatprep.mubr.msk.bf16.mxu1 %vm1440_vm0, %v1439_v0 }
  0x1c   :  { %1234 = vmatpush3.bf16.msra.mxu0 %v1399_v21  ;;  %1262 = vmatpush3.bf16.msra.mxu1 %v1607_v22 }
  0x1d   :  { %1235 = vmatprep.subr.bf16.mxu0 %v1439_v0  ;;  %1263 = vmatprep.subr.bf16.mxu1 %v1439_v0 }
  0x20   :  { %1236 = vmatpush3.bf16.msra.mxu0 %v1401_v23  ;;  %1264 = vmatpush3.bf16.msra.mxu1 %v1615_v24 }
  0x21   :  { %1237 = vmatprep.subr.bf16.mxu0 %v1439_v0  ;;  %1265 = vmatprep.subr.bf16.mxu1 %v1439_v0 }
  0x24   :  { %1238 = vmatpush3.bf16.msra.mxu0 %v1403_v25  ;;  %1266 = vmatpush3.bf16.msra.mxu1 %v1628_v26 }
  0x25   :  { %1239 = vmatprep.subr.bf16.mxu0 %v1439_v0  ;;  %1267 = vmatprep.subr.bf16.mxu1 %v1439_v0 }
  0x28   :  { %1240 = vmatpush3.bf16.msra.mxu0 %v1405_v27  ;;  %1268 = vmatpush3.bf16.msra.mxu1 %v1639_v28 }
  0x29   :  { %1281 = vmatprep.subr.bf16.mxu0 %v1439_v0  ;;  %1289 = vmatprep.subr.bf16.mxu1 %v1439_v0 }
  0xdd   :  { %v149_v29 = vpop.f32.mrb[0].mxu0  ;;  %v217_v31 = vpop.f32.mrb[0].mxu1 }
  0xde   :  { %v1199_v32 = vpop.f32.mrb[1].mxu0  ;;  %v218_v33 = vadd.f32 %v217_v31, %v149_v29  ;;  %v1215_v34 = vpop.f32.mrb[1].mxu1 }
  0xdf   :  { %v152_v35 = vpop.f32.mrb[2].mxu0  ;;  %v220_v36 = vpop.f32.mrb[2].mxu1 }
  0xe0   :  { %v1200_v37 = vpop.f32.mrb[3].mxu0  ;;  %v245_v38 = vadd.f32 %v1648_v30, %v218_v33  ;;  %v221_v39 = vadd.f32 %v220_v36, %v152_v35  ;;  %v1216_v40 = vpop.f32.mrb[3].mxu1 }
  0xe2   :  { %v255_v41 = vmul.f32 0.044715, %v245_v38  ;;  %v246_v42 = vadd.f32 %v1648_v30, %v221_v39  ;;  %v250_v40 = vmul.f32 0.5, %v245_v38 }
  0xe4   :  { %v260_v43 = vmul.f32 %v255_v41, %v245_v38  ;;  %v256_v44 = vmul.f32 0.044715, %v246_v42  ;;  %v251_v41 = vmul.f32 0.5, %v246_v42 }
  0xe5   :  { %v157_v45 = vpop.f32.mrb[4].mxu0  ;;  %v225_v46 = vpop.f32.mrb[4].mxu1 }
  0xe6   :  { %v1203_v47 = vpop.f32.mrb[5].mxu0  ;;  %v265_v48 = vmul.f32 %v260_v43, %v245_v38  ;;  %v261_v49 = vmul.f32 %v256_v44, %v246_v42  ;;  %v226_v50 = vadd.f32 %v225_v46, %v157_v45  ;;  %v1219_v51 = vpop.f32.mrb[5].mxu1 }
  0xe7   :  { %v160_v52 = vpop.f32.mrb[6].mxu0  ;;  %v228_v53 = vpop.f32.mrb[6].mxu1 }
  0xe8   :  { %v1204_v54 = vpop.f32.mrb[7].mxu0  ;;  %v270_v55 = vadd.f32 %v265_v48, %v245_v38  ;;  %v266_v56 = vmul.f32 %v261_v49, %v246_v42  ;;  %v247_v57 = vadd.f32 %v1648_v30, %v226_v50  ;;  %v229_v58 = vadd.f32 %v228_v53, %v160_v52  ;;  %v1220_v59 = vpop.f32.mrb[7].mxu1  ;;  %v1658_v48 = vld [vmem:[%s1879_s8] sm:$0xff]  }
  0xea   :  { %v275_v60 = vmul.f32 0.7978846, %v270_v55  ;;  %v271_v61 = vadd.f32 %v266_v56, %v246_v42  ;;  %v257_v62 = vmul.f32 0.044715, %v247_v57  ;;  %v248_v63 = vadd.f32 %v1648_v30, %v229_v58 }
  0xeb   :  { %v252_v38 = vmul.f32 0.5, %v247_v57 }
  0xec   :  { %1419 = vtanh.f32 %v275_v60  ;;  %v276_v1 = vmul.f32 0.7978846, %v271_v61  ;;  %v262_v3 = vmul.f32 %v257_v62, %v247_v57  ;;  %v258_v5 = vmul.f32 0.044715, %v248_v63  ;;  %v1408_v61 = vld [vmem:[%s1874_s2 + $0x10] sm:$0xff]   ;;  %v1681_v62 = vld [vmem:[%s1879_s8 + $0x8] sm:$0xff]  }
  0xed   :  { %v165_v6 = vpop.f32.mrb[8].mxu0  ;;  %v233_v7 = vpop.f32.mrb[8].mxu1  ;;  %v253_v42 = vmul.f32 0.5, %v248_v63 }
  0xee   :  { %v1207_v8 = vpop.f32.mrb[9].mxu0  ;;  %1421 = vtanh.f32 %v276_v1  ;;  %v263_v9 = vmul.f32 %v258_v5, %v248_v63  ;;  %v267_v10 = vmul.f32 %v262_v3, %v247_v57  ;;  %v234_v11 = vadd.f32 %v233_v7, %v165_v6  ;;  %v1223_v12 = vpop.f32.mrb[9].mxu1  ;;  %v1077_v1 = vld [vmem:[%s1876_s1 + $0x28] sm:$0xff]  ;;  %v1078_v3 = vld [vmem:[%s1876_s1 + $0x30] sm:$0xff]  ;;  %v1079_v6 = vld [vmem:[%s1876_s1 + $0x38] sm:$0xff] }
  0xef   :  { %v168_v13 = vpop.f32.mrb[10].mxu0  ;;  %v236_v15 = vpop.f32.mrb[10].mxu1  ;;  %v1695_v5 = vpack.c.bf16 %v1078_v3, %v1077_v1  ;;  %v1080_v7 = vld [vmem:[%s1876_s1 + $0x40] sm:$0xff] }
  0xf0   :  { %v1208_v17 = vpop.f32.mrb[11].mxu0  ;;  %v268_v19 = vmul.f32 %v263_v9, %v248_v63  ;;  %v272_v21 = vadd.f32 %v267_v10, %v247_v57  ;;  %v249_v23 = vadd.f32 %v1648_v30, %v234_v11  ;;  %v1224_v25 = vpop.f32.mrb[11].mxu1  ;;  %v1707_v8 = vpack.c.bf16 %v1080_v7, %v1079_v6  ;;  %v1413_v7 = vld [vmem:[%s1877_s3 + $0x50] sm:$0xff]  }
  0xf2   :  { %v273_v27 = vadd.f32 %v268_v19, %v248_v63  ;;  %v277_v29 = vmul.f32 0.7978846, %v272_v21  ;;  %v259_v31 = vmul.f32 0.044715, %v249_v23  ;;  %v254_v56 = vmul.f32 0.5, %v249_v23  ;;  %v1410_v63 = vld [vmem:[%s1874_s2 + $0x18] sm:$0xff]  }
  0xf4   :  { %v278_v32 = vmul.f32 0.7978846, %v273_v27  ;;  %1423 = vtanh.f32 %v277_v29  ;;  %v264_v33 = vmul.f32 %v259_v31, %v249_v23 }
  0xf6   :  { %v1420_v34 = vpop.eup %1419  ;;  %1425 = vtanh.f32 %v278_v32  ;;  %v269_v35 = vmul.f32 %v264_v33, %v249_v23 }
  0xf7   :  { %v285_v36 = vadd.f32 1.0, %v1420_v34  ;;  %v61_v34 = vld [vmem:[%s1882_s0 + $0x8] sm:$0xff] }
  0xf8   :  { %v1422_v37 = vpop.eup %1421  ;;  %v274_v39 = vadd.f32 %v269_v35, %v249_v23  ;;  %v1716_v23 = vld [vmem:[%s1881_s7] ss:$0 sm:$0xff]  ;;  %v62_v35 = vld [vmem:[%s1882_s0 + $0x10] sm:$0xff] }
  0xf9   :  { %v286_v43 = vadd.f32 1.0, %v1422_v37  ;;  %v290_v45 = vmul.f32 %v285_v36, %v250_v40 }
  0xfa   :  { %v279_v44 = vmul.f32 0.7978846, %v274_v39 }
  0xfb   :  { %v291_v46 = vmul.f32 %v286_v43, %v251_v41 }
  0xfc   :  { %1427 = vtanh.f32 %v279_v44  ;;  %v63_v44 = vld [vmem:[%s1882_s0 + $0x18] sm:$0xff] }
  0xfd   :  { %v295_v47 = vpack.c.bf16 %v291_v46, %v290_v45 }
  0xfe   :  { %v1424_v49 = vpop.eup %1423 }
  0xff   :  { %1242 = vmatmul.mubr.bf16.vlgmr.msra.gmra.mrb[12].mxu0 %v295_v47  ;;  %1270 = vmatmul.mubr.bf16.vlgmr.msra.gmra.mrb[12].mxu1 %v295_v47  ;;  %v287_v50 = vadd.f32 1.0, %v1424_v49 }
 0x100   :  { %v1426_v51 = vpop.eup %1425  ;;  %1245 = vmatprep.mubr.msk.bf16.mxu0 %vm1440_vm0, %v1439_v0  ;;  %1273 = vmatprep.mubr.msk.bf16.mxu1 %vm1440_vm0, %v1439_v0 }
 0x101   :  { %v288_v52 = vadd.f32 1.0, %v1426_v51  ;;  %1282 = vmatpush3.bf16.msra.mxu0 %v1658_v48  ;;  %v292_v53 = vmul.f32 %v287_v50, %v252_v38  ;;  %1290 = vmatpush3.bf16.msra.mxu1 %v1408_v61 }
 0x102   :  { %1283 = vmatprep.subr.bf16.mxu0 %v1439_v0  ;;  %1291 = vmatprep.subr.bf16.mxu1 %v1439_v0 }
 0x103   :  { %v293_v54 = vmul.f32 %v288_v52, %v253_v42 }
 0x105   :  { %v296_v55 = vpack.c.bf16 %v293_v54, %v292_v53  ;;  %1284 = vmatpush3.bf16.msra.mxu0 %v1681_v62  ;;  %1292 = vmatpush3.bf16.msra.mxu1 %v1410_v63 }
 0x106   :  { %v1428_v58 = vpop.eup %1427  ;;  %1305 = vmatprep.subr.bf16.mxu0 %v1439_v0  ;;  %1321 = vmatprep.subr.bf16.mxu1 %v1439_v0 }
 0x107   :  { %1246 = vmatmul.mubr.bf16.gmra.mrb[16].mxu0 %v296_v55  ;;  %1274 = vmatmul.mubr.bf16.gmra.mrb[16].mxu1 %v296_v55  ;;  %v289_v59 = vadd.f32 1.0, %v1428_v58  ;;  %v64_v55 = vld [vmem:[%s1882_s0 + $0x20] sm:$0xf] }
 0x108   :  { %1249 = vmatprep.mubr.msk.bf16.mxu0 %vm1440_vm0, %v1439_v0  ;;  %1277 = vmatprep.mubr.msk.bf16.mxu1 %vm1440_vm0, %v1439_v0 }
 0x109   :  { %v294_v57 = vmul.f32 %v289_v59, %v254_v56 }
 0x10b   :  { %v297_v60 = vpack.c.bf16 %v294_v57, %v294_v57 }
 0x10f   :  { %1250 = vmatmul.mubr.bf16.gmra.mrb[20].mxu0 %v297_v60  ;;  %1278 = vmatmul.mubr.bf16.gmra.mrb[20].mxu1 %v297_v60 }
 0x110   :  { %1285 = vmatprep.mubr.msk.bf16.mxu0 %vm1440_vm0, %v1439_v0  ;;  %1293 = vmatprep.mubr.msk.bf16.mxu1 %vm1440_vm0, %v1439_v0 }
 0x117   :  { %1294 = vmatmul.mubr.msk.bf16.vlgmr.msra.gmra.mrb[24].mxu1 %vm105_vm1, %v1695_v5 }
 0x118   :  { %1297 = vmatprep.mubr.msk.bf16.mxu1 %vm1440_vm0, %v1439_v0 }
 0x11f   :  { %1298 = vmatmul.mubr.msk.bf16.gmra.mrb[28].mxu1 %vm105_vm1, %v1707_v8 }
 0x120   :  { %1301 = vmatprep.mubr.msk.bf16.mxu1 %vm1440_vm0, %v1439_v0 }
 0x1d2   :  { %v380_v9 = vpop.f32.mrb[12].mxu0  ;;  %v483_v10 = vpop.f32.mrb[12].mxu1 }
 0x1d3   :  { %v1243_v11 = vpop.f32.mrb[13].mxu0  ;;  %v1271_v12 = vpop.f32.mrb[13].mxu1  ;;  %v1415_v9 = vld [vmem:[%s1877_s3 + $0x60] sm:$0xff]   ;;  %v1416_v10 = vld [vmem:[%s1877_s3 + $0x68] sm:$0xff]  }
 0x1d4   :  { %v382_v13 = vpop.f32.mrb[14].mxu0  ;;  %v485_v15 = vpop.f32.mrb[14].mxu1  ;;  %v1417_v11 = vld [vmem:[%s1877_s3 + $0x70] sm:$0xff]   ;;  %v1418_v12 = vld [vmem:[%s1877_s3 + $0x78] sm:$0xff]  }
 0x1d5   :  { %v486_v17 = vadd.f32 %v485_v15, %v382_v13  ;;  %v1244_v19 = vpop.f32.mrb[15].mxu0  ;;  %v1272_v21 = vpop.f32.mrb[15].mxu1 }
 0x1d7   :  { %v510_v29 = vadd.f32 %v1716_v23, %v486_v17 }
 0x1d9   :  { %v514_v45 = vadd.f32 %v510_v29, %v61_v34 }
 0x1da   :  { %v387_v25 = vpop.f32.mrb[16].mxu0  ;;  %v490_v27 = vpop.f32.mrb[16].mxu1 }
 0x1db   :  { %v491_v31 = vadd.f32 %v490_v27, %v387_v25  ;;  %v1247_v32 = vpop.f32.mrb[17].mxu0  ;;  %v1275_v33 = vpop.f32.mrb[17].mxu1 }
 0x1dc   :  { %v390_v36 = vpop.f32.mrb[18].mxu0  ;;  %v493_v37 = vpop.f32.mrb[18].mxu1 }
 0x1dd   :  { %v511_v39 = vadd.f32 %v1716_v23, %v491_v31  ;;  %v494_v40 = vadd.f32 %v493_v37, %v390_v36  ;;  %v1248_v41 = vpop.f32.mrb[19].mxu0  ;;  %v1276_v43 = vpop.f32.mrb[19].mxu1 }
 0x1df   :  { %v515_v46 = vadd.f32 %v511_v39, %v62_v35  ;;  %v512_v47 = vadd.f32 %v1716_v23, %v494_v40 }
 0x1e1   :  { %v518_v49 = vpack.c.bf16 %v515_v46, %v514_v45  ;;  %v516_v50 = vadd.f32 %v512_v47, %v63_v44 }
 0x1e2   :  { %v395_v51 = vpop.f32.mrb[20].mxu0  ;;  %v498_v38 = vpop.f32.mrb[20].mxu1 }
 0x1e3   :  { %v519_v42 = vpack.c.bf16 %v516_v50, %v516_v50  ;;  %586 = vst.msk [vmem:[%s1883_s10 - $0x3] sm:$0xf8] %vm585_vm2, %v516_v50  ;;  %v499_v52 = vadd.f32 %v498_v38, %v395_v51  ;;  %v1251_v53 = vpop.f32.mrb[21].mxu0  ;;  %v1279_v54 = vpop.f32.mrb[21].mxu1  ;;  %v523_v59 = vrot.slane %v518_v49, 1 }
 0x1e4   :  { %v398_v56 = vpop.f32.mrb[22].mxu0  ;;  %v501_v58 = vpop.f32.mrb[22].mxu1 }
 0x1e5   :  { %v524_v57 = vrot.slane %v519_v42, 1  ;;  %v513_v60 = vadd.f32 %v1716_v23, %v499_v52  ;;  %v1252_v61 = vpop.f32.mrb[23].mxu0  ;;  %v1280_v63 = vpop.f32.mrb[23].mxu1 }
 0x1e7   :  { %v525_v1 = vsel %vm522_vm3, %v523_v59, %v524_v57  ;;  %v517_v3 = vadd.f32 %v513_v60, %v64_v55 }
 0x1e8   :  { %1286 = vmatmul.mubr.msk.bf16.vlgmr.msra.gmra.mrb[24].mxu0 %vm105_vm1, %v525_v1 }
 0x1e9   :  { %1306 = vmatpush3.bf16.msra.mxu0 %v1504_v2  ;;  %1309 = vmatprep.mubr.msk.bf16.mxu0 %vm1440_vm0, %v1439_v0  ;;  %588 = vst.msk [vmem:[%s1883_s10 + $0x5] sm:$0x7] %vm587_vm4, %v517_v3  ;;  %v1081_v2 = vld [vmem:[%s1876_s1 + $0x48] sm:$0xf] }
 0x1ea   :  { %1307 = vmatprep.subr.bf16.mxu0 %v1439_v0 }
 0x1ed   :  { %1308 = vmatpush3.bf16.msra.mxu0 %v1518_v4  ;;  %v624_v4 = vpack.c.bf16 %v1081_v2, %v1081_v2 }
 0x1ee   :  { %1349 = vmatprep.subr.bf16.mxu0 %v1439_v0 }
 0x1ef   :  { %1302 = vmatmul.mubr.msk.bf16.gmra.mrb[32].mxu1 %vm105_vm1, %v624_v4 }
 0x1f0   :  { %1310 = vmatmul.mubr.msk.bf16.vlgmr.msra.gmra.mrb[28].mxu0 %vm105_vm1, %v1695_v5  ;;  %1337 = vmatprep.mubr.msk.bf16.mxu1 %vm1440_vm0, %v1439_v0 }
 0x1f1   :  { %1313 = vmatprep.mubr.msk.bf16.mxu0 %vm1440_vm0, %v1439_v0  ;;  %1350 = vmatpush3.bf16.msra.mxu0 %v1563_v14  ;;  %v680_v14 = vpop.f32.mrb[24].mxu1 }
 0x1f2   :  { %1351 = vmatprep.subr.bf16.mxu0 %v1439_v0 }
 0x1f5   :  { %1352 = vmatpush3.bf16.msra.mxu0 %v1574_v16  ;;  %v1295_v16 = vpop.f32.mrb[25].mxu1 }
 0x1f6   :  { %1353 = vmatprep.subr.bf16.mxu0 %v1439_v0 }
 0x1f8   :  { %1314 = vmatmul.mubr.msk.bf16.gmra.mrb[32].mxu0 %vm105_vm1, %v1707_v8  ;;  %v1414_v8 = vld [vmem:[%s1877_s3 + $0x58] sm:$0xff]  }
 0x1f9   :  { %1317 = vmatprep.mubr.msk.bf16.mxu0 %vm1440_vm0, %v1439_v0  ;;  %1354 = vmatpush3.bf16.msra.mxu0 %v1585_v18  ;;  %v683_v18 = vpop.f32.mrb[26].mxu1 }
 0x1fa   :  { %1355 = vmatprep.subr.bf16.mxu0 %v1439_v0 }
 0x1fd   :  { %1356 = vmatpush3.bf16.msra.mxu0 %v1596_v20  ;;  %v1296_v20 = vpop.f32.mrb[27].mxu1 }
 0x1fe   :  { %1357 = vmatprep.subr.bf16.mxu0 %v1439_v0 }
 0x200   :  { %1318 = vmatmul.mubr.msk.bf16.gmra.mrb[36].mxu0 %vm105_vm1, %v624_v4 }
 0x201   :  { %1358 = vmatpush3.bf16.msra.mxu0 %v1607_v22  ;;  %1365 = vmatprep.mubr.msk.bf16.mxu0 %vm1440_vm0, %v1439_v0  ;;  %v1411_v22 = vld [vmem:[%s1877_s3 + $0x40] sm:$0xff]  }
 0x202   :  { %1359 = vmatprep.subr.bf16.mxu0 %v1439_v0  ;;  %1322 = vmatpush3.bf16.msra.mxu1 %v1411_v22 }
 0x203   :  { %1323 = vmatprep.subr.bf16.mxu1 %v1439_v0 }
 0x205   :  { %1360 = vmatpush3.bf16.msra.mxu0 %v1615_v24  ;;  %v688_v24 = vpop.f32.mrb[28].mxu1 }
 0x206   :  { %1361 = vmatprep.subr.bf16.mxu0 %v1439_v0 }
 0x209   :  { %1362 = vmatpush3.bf16.msra.mxu0 %v1628_v26  ;;  %v1412_v26 = vld [vmem:[%s1877_s3 + $0x48] sm:$0xff]  }
 0x20a   :  { %1363 = vmatprep.subr.bf16.mxu0 %v1439_v0  ;;  %1324 = vmatpush3.bf16.msra.mxu1 %v1412_v26 }
 0x20b   :  { %1325 = vmatprep.subr.bf16.mxu1 %v1439_v0 }
 0x20d   :  { %1364 = vmatpush3.bf16.msra.mxu0 %v1639_v28  ;;  %v1299_v28 = vpop.f32.mrb[29].mxu1 }
 0x20e   :  { %v691_v5 = vpop.f32.mrb[30].mxu1  ;;  %1326 = vmatpush3.bf16.msra.mxu1 %v1413_v7 }
 0x20f   :  { %v1300_v6 = vpop.f32.mrb[31].mxu1  ;;  %1327 = vmatprep.subr.bf16.mxu1 %v1439_v0 }
 0x212   :  { %1328 = vmatpush3.bf16.msra.mxu1 %v1414_v8 }
 0x213   :  { %1329 = vmatprep.subr.bf16.mxu1 %v1439_v0 }
 0x216   :  { %1330 = vmatpush3.bf16.msra.mxu1 %v1415_v9 }
 0x217   :  { %1331 = vmatprep.subr.bf16.mxu1 %v1439_v0 }
 0x21a   :  { %1332 = vmatpush3.bf16.msra.mxu1 %v1416_v10 }
 0x21b   :  { %1333 = vmatprep.subr.bf16.mxu1 %v1439_v0 }
 0x21e   :  { %1334 = vmatpush3.bf16.msra.mxu1 %v1417_v11 }
 0x21f   :  { %1335 = vmatprep.subr.bf16.mxu1 %v1439_v0 }
 0x222   :  { %1336 = vmatpush3.bf16.msra.mxu1 %v1418_v12 }
 0x223   :  { %1377 = vmatprep.subr.bf16.mxu1 %v1439_v0 }
 0x2bb   :  { %v575_v13 = vpop.f32.mrb[24].mxu0 }
 0x2bc   :  { %583 = vst.msk [vmem:[%s1884_s9] sm:$0xff] %vm582_vm5, %v575_v13  ;;  %v1287_v15 = vpop.f32.mrb[25].mxu0 }
 0x2bd   :  { %v578_v17 = vpop.f32.mrb[26].mxu0 }
 0x2be   :  { %584 = vst.msk [vmem:[%s1884_s9 + $0x8] sm:$0xff] %vm582_vm5, %v578_v17  ;;  %v1288_v19 = vpop.f32.mrb[27].mxu0 }
 0x2c2   :  { %v696_v12 = vpop.f32.mrb[32].mxu1 }
 0x2c3   :  { %v736_v21 = vpop.f32.mrb[28].mxu0  ;;  %v1303_v17 = vpop.f32.mrb[33].mxu1 }
 0x2c4   :  { %v737_v25 = vadd.f32 %v736_v21, %v680_v14  ;;  %v1311_v27 = vpop.f32.mrb[29].mxu0  ;;  %v699_v19 = vpop.f32.mrb[34].mxu1 }
 0x2c5   :  { %v739_v29 = vpop.f32.mrb[30].mxu0  ;;  %v1304_v27 = vpop.f32.mrb[35].mxu1 }
 0x2c6   :  { %v758_v31 = vadd.f32 %v1648_v30, %v737_v25  ;;  %v740_v32 = vadd.f32 %v739_v29, %v683_v18  ;;  %v1312_v33 = vpop.f32.mrb[31].mxu0 }
 0x2c8   :  { %v768_v34 = vmul.f32 0.044715, %v758_v31  ;;  %v759_v35 = vadd.f32 %v1648_v30, %v740_v32  ;;  %v763_v14 = vmul.f32 0.5, %v758_v31 }
 0x2ca   :  { %v773_v36 = vmul.f32 %v768_v34, %v758_v31  ;;  %v769_v37 = vmul.f32 0.044715, %v759_v35  ;;  %v764_v16 = vmul.f32 0.5, %v759_v35 }
 0x2cb   :  { %v744_v39 = vpop.f32.mrb[32].mxu0 }
 0x2cc   :  { %v778_v40 = vmul.f32 %v773_v36, %v758_v31  ;;  %v774_v41 = vmul.f32 %v769_v37, %v759_v35  ;;  %v745_v43 = vadd.f32 %v744_v39, %v688_v24  ;;  %v1315_v44 = vpop.f32.mrb[33].mxu0 }
 0x2cd   :  { %v747_v45 = vpop.f32.mrb[34].mxu0 }
 0x2ce   :  { %v783_v46 = vadd.f32 %v778_v40, %v758_v31  ;;  %v779_v47 = vmul.f32 %v774_v41, %v759_v35  ;;  %v760_v49 = vadd.f32 %v1648_v30, %v745_v43  ;;  %v748_v50 = vadd.f32 %v747_v45, %v691_v5  ;;  %v1316_v51 = vpop.f32.mrb[35].mxu0 }
 0x2d0   :  { %v788_v38 = vmul.f32 0.7978846, %v783_v46  ;;  %v784_v42 = vadd.f32 %v779_v47, %v759_v35  ;;  %v770_v52 = vmul.f32 0.044715, %v760_v49  ;;  %v761_v53 = vadd.f32 %v1648_v30, %v748_v50 }
 0x2d1   :  { %v765_v6 = vmul.f32 0.5, %v760_v49 }
 0x2d2   :  { %1429 = vtanh.f32 %v788_v38  ;;  %v789_v54 = vmul.f32 0.7978846, %v784_v42  ;;  %v775_v55 = vmul.f32 %v770_v52, %v760_v49  ;;  %v771_v56 = vmul.f32 0.044715, %v761_v53 }
 0x2d3   :  { %v766_v7 = vmul.f32 0.5, %v761_v53  ;;  %v752_v13 = vpop.f32.mrb[36].mxu0 }
 0x2d4   :  { %1431 = vtanh.f32 %v789_v54  ;;  %v776_v58 = vmul.f32 %v771_v56, %v761_v53  ;;  %v780_v59 = vmul.f32 %v775_v55, %v760_v49  ;;  %v753_v15 = vadd.f32 %v752_v13, %v696_v12  ;;  %v1074_v55 = vld [vmem:[%s1882_s0 + $0x38] sm:$0xff] }
 0x2d6   :  { %v781_v57 = vmul.f32 %v776_v58, %v761_v53  ;;  %v785_v60 = vadd.f32 %v780_v59, %v760_v49  ;;  %v762_v25 = vadd.f32 %v1648_v30, %v753_v15 }
 0x2d8   :  { %v786_v61 = vadd.f32 %v781_v57, %v761_v53  ;;  %v790_v63 = vmul.f32 0.7978846, %v785_v60  ;;  %v767_v35 = vmul.f32 0.5, %v762_v25 }
 0x2da   :  { %v791_v1 = vmul.f32 0.7978846, %v786_v61  ;;  %1433 = vtanh.f32 %v790_v63  ;;  %v1075_v63 = vld [vmem:[%s1882_s0 + $0x40] sm:$0xff] }
 0x2dc   :  { %v1430_v3 = vpop.eup %1429  ;;  %1435 = vtanh.f32 %v791_v1 }
 0x2dd   :  { %v798_v2 = vadd.f32 1.0, %v1430_v3 }
 0x2de   :  { %v1432_v4 = vpop.eup %1431 }
 0x2df   :  { %v799_v18 = vadd.f32 1.0, %v1432_v4  ;;  %v803_v20 = vmul.f32 %v798_v2, %v763_v14 }
 0x2e1   :  { %v804_v22 = vmul.f32 %v799_v18, %v764_v16 }
 0x2e3   :  { %v808_v24 = vpack.c.bf16 %v804_v22, %v803_v20 }
 0x2e4   :  { %v1434_v26 = vpop.eup %1433 }
 0x2e5   :  { %1338 = vmatmul.mubr.bf16.vlgmr.msra.gmra.mrb[36].mxu1 %v808_v24  ;;  %1366 = vmatmul.mubr.bf16.vlgmr.msra.gmra.mrb[40].mxu0 %v808_v24  ;;  %v800_v28 = vadd.f32 1.0, %v1434_v26 }
 0x2e6   :  { %v1436_v5 = vpop.eup %1435  ;;  %1341 = vmatprep.mubr.msk.bf16.mxu1 %vm1440_vm0, %v1439_v0  ;;  %1369 = vmatprep.mubr.msk.bf16.mxu0 %vm1440_vm0, %v1439_v0 }
 0x2e7   :  { %v801_v8 = vadd.f32 1.0, %v1436_v5  ;;  %1378 = vmatpush3.bf16.msra.mxu1 %v1658_v48  ;;  %v805_v9 = vmul.f32 %v800_v28, %v765_v6  ;;  %v1319_v48 = vpop.f32.mrb[37].mxu0 }
 0x2e8   :  { %1379 = vmatprep.subr.bf16.mxu1 %v1439_v0  ;;  %v755_v21 = vpop.f32.mrb[38].mxu0 }
 0x2e9   :  { %v806_v10 = vmul.f32 %v801_v8, %v766_v7  ;;  %v1320_v29 = vpop.f32.mrb[39].mxu0  ;;  %v1076_v7 = vld [vmem:[%s1882_s0 + $0x48] sm:$0xf] }
 0x2eb   :  { %v809_v11 = vpack.c.bf16 %v806_v10, %v805_v9  ;;  %1380 = vmatpush3.bf16.msra.mxu1 %v1681_v62  ;;  %v772_v62 = vmul.f32 0.044715, %v762_v25 }
 0x2ed   :  { %1342 = vmatmul.mubr.bf16.gmra.mrb[40].mxu1 %v809_v11  ;;  %1370 = vmatmul.mubr.bf16.gmra.mrb[44].mxu0 %v809_v11  ;;  %v777_v31 = vmul.f32 %v772_v62, %v762_v25 }
 0x2ee   :  { %1345 = vmatprep.mubr.msk.bf16.mxu1 %vm1440_vm0, %v1439_v0  ;;  %1373 = vmatprep.mubr.msk.bf16.mxu0 %vm1440_vm0, %v1439_v0 }
 0x2ef   :  { %v782_v32 = vmul.f32 %v777_v31, %v762_v25 }
 0x2f1   :  { %v787_v33 = vadd.f32 %v782_v32, %v762_v25 }
 0x2f3   :  { %v792_v34 = vmul.f32 0.7978846, %v787_v33 }
 0x2f5   :  { %1437 = vtanh.f32 %v792_v34 }
 0x2ff   :  { %v1438_v36 = vpop.eup %1437 }
 0x300   :  { %v802_v37 = vadd.f32 1.0, %v1438_v36 }
 0x302   :  { %v807_v39 = vmul.f32 %v802_v37, %v767_v35 }
 0x304   :  { %v810_v40 = vpack.c.bf16 %v807_v39, %v807_v39 }
 0x306   :  { %1346 = vmatmul.mubr.bf16.gmra.mrb[44].mxu1 %v810_v40  ;;  %1374 = vmatmul.mubr.bf16.gmra.mrb[48].mxu0 %v810_v40 }
 0x307   :  { %1381 = vmatprep.mubr.msk.bf16.mxu1 %vm1440_vm0, %v1439_v0  ;;  %v1073_v0 = vld [vmem:[%s1882_s0 + $0x30] sm:$0xff] }
 0x3b8   :  { %v893_v41 = vpop.f32.mrb[36].mxu1  ;;  %v948_v30 = vpop.f32.mrb[40].mxu0 }
 0x3b9   :  { %v1339_v43 = vpop.f32.mrb[37].mxu1  ;;  %v1367_v44 = vpop.f32.mrb[41].mxu0 }
 0x3ba   :  { %v895_v45 = vpop.f32.mrb[38].mxu1  ;;  %v950_v46 = vpop.f32.mrb[42].mxu0 }
 0x3bb   :  { %v951_v47 = vadd.f32 %v950_v46, %v895_v45  ;;  %v1340_v49 = vpop.f32.mrb[39].mxu1  ;;  %v1368_v50 = vpop.f32.mrb[43].mxu0 }
 0x3bd   :  { %v969_v42 = vadd.f32 %v1716_v23, %v951_v47 }
 0x3bf   :  { %v973_v1 = vadd.f32 %v1073_v0, %v969_v42 }
 0x3c0   :  { %v900_v51 = vpop.f32.mrb[40].mxu1  ;;  %v955_v38 = vpop.f32.mrb[44].mxu0 }
 0x3c1   :  { %v956_v52 = vadd.f32 %v955_v38, %v900_v51  ;;  %v1343_v53 = vpop.f32.mrb[41].mxu1  ;;  %v1371_v54 = vpop.f32.mrb[45].mxu0 }
 0x3c2   :  { %v903_v56 = vpop.f32.mrb[42].mxu1  ;;  %v958_v58 = vpop.f32.mrb[46].mxu0 }
 0x3c3   :  { %v970_v59 = vadd.f32 %v1716_v23, %v956_v52  ;;  %v959_v57 = vadd.f32 %v958_v58, %v903_v56  ;;  %v1344_v60 = vpop.f32.mrb[43].mxu1  ;;  %v1372_v61 = vpop.f32.mrb[47].mxu0 }
 0x3c5   :  { %v974_v3 = vadd.f32 %v1074_v55, %v970_v59  ;;  %v971_v2 = vadd.f32 %v1716_v23, %v959_v57 }
 0x3c7   :  { %v977_v4 = vpack.c.bf16 %v974_v3, %v973_v1  ;;  %v975_v14 = vadd.f32 %v1075_v63, %v971_v2 }
 0x3c9   :  { %v978_v16 = vpack.c.bf16 %v975_v14, %v975_v14  ;;  %1121 = vst.msk [vmem:[%s1883_s10 + $0x5] sm:$0xf8] %vm585_vm2, %v975_v14  ;;  %v981_v18 = vrot.slane %v977_v4, 1 }
 0x3cb   :  { %v982_v20 = vrot.slane %v978_v16, 1 }
 0x3cd   :  { %v983_v22 = vsel %vm522_vm3, %v981_v18, %v982_v20 }
 0x3ce   :  { %1382 = vmatmul.mubr.msk.bf16.vlgmr.msra.gmra.mrb[48].mxu1 %vm105_vm1, %v983_v22 }
 0x3d9   :  { %v908_v24 = vpop.f32.mrb[44].mxu1  ;;  %v963_v26 = vpop.f32.mrb[48].mxu0 }
 0x3da   :  { %v964_v28 = vadd.f32 %v963_v26, %v908_v24  ;;  %v1347_v5 = vpop.f32.mrb[45].mxu1  ;;  %v1375_v6 = vpop.f32.mrb[49].mxu0 }
 0x3db   :  { %v911_v8 = vpop.f32.mrb[46].mxu1  ;;  %v966_v9 = vpop.f32.mrb[50].mxu0 }
 0x3dc   :  { %v972_v10 = vadd.f32 %v1716_v23, %v964_v28  ;;  %v1348_v11 = vpop.f32.mrb[47].mxu1  ;;  %v1376_v12 = vpop.f32.mrb[51].mxu0 }
 0x3de   :  { %v976_v13 = vadd.f32 %v1076_v7, %v972_v10 }
 0x3e0   :  { %1122 = vst.msk [vmem:[%s1883_s10 + $0xd] sm:$0x7] %vm587_vm4, %v976_v13 }
 0x4a1   :  { %v1021_v15 = vpop.f32.mrb[48].mxu1 }
 0x4a2   :  { %1119 = vst.msk [vmem:[%s1884_s9 + $0x10] sm:$0xff] %vm582_vm5, %v1021_v15  ;;  %v1383_v17 = vpop.f32.mrb[49].mxu1 }
 0x4a3   :  { %v1024_v48 = vpop.f32.mrb[50].mxu1 }
 0x4a4   :  { %1120 = vst.msk [vmem:[%s1884_s9 + $0x18] sm:$0xff] %vm582_vm5, %v1024_v48  ;;  %v1384_v23 = vpop.f32.mrb[51].mxu1 }

// kernel: model_forward.11
= control target key start
LH: loop header
LB: loop body
LE: loop exit
PB: predicated region body
PF: predicated region fallthrough
CT: control target
= control target key end

     0   :  { %v1477_v1 = vmov 0.0   ;;  %vm1478_vm0 = vmmov 0   ;;  %vm106_vm1 = vcmask 261120   ;;  %s1915_s0 = inlined_call_operand.vmem [shape: f32[2,36,32], index: 0, kind: input, shape index: {}]   ;;  %s1916_s1 = inlined_call_operand.vmem [shape: f32[2,36,32], index: 1, kind: input, shape index: {}]   ;;  %s1917_s2 = inlined_call_operand.vmem [shape: bf16[2,32,128], index: 2, kind: input, shape index: {}]   ;;  %s1918_s3 = inlined_call_operand.vmem [shape: bf16[2,128,32], index: 3, kind: input, shape index: {}]   ;;  %s1919_s4 = inlined_call_operand.vmem [shape: bf16[32,128], index: 4, kind: input, shape index: {}]   ;;  %s1920_s5 = inlined_call_operand.vmem [shape: f32[1,128], index: 5, kind: input, shape index: {}]   ;;  %s1921_s6 = inlined_call_operand.vmem [shape: bf16[128,32], index: 6, kind: input, shape index: {}]   ;;  %s1922_s7 = inlined_call_operand.vmem [shape: f32[1,32], index: 7, kind: input, shape index: {}]   ;;  %s1923_s8 = inlined_call_operand.vmem [shape: bf16[32,64], index: 8, kind: input, shape index: {}]   ;;  %s1924_s9 = inlined_call_operand.vmem [shape: f32[2,16,64], index: 9, kind: output, shape index: {0}]   ;;  %s1925_s10 = inlined_call_operand.hbm [shape: f32[2,8,32], index: 10, kind: output, shape index: {1}]  }
   0x1   :  { %v1401_v0 = vld [vmem:[%s1917_s2] sm:$0xff]   ;;  %1204 = vmatprep.subr.bf16.mxu0 %v1477_v1  ;;  %1220 = vmatprep.subr.bf16.mxu1 %v1477_v1  ;;  %v1403_v3 = vld [vmem:[%s1917_s2 + $0x8] sm:$0xff]   ;;  %v68_v8 = vld [vmem:[%s1916_s1 + $0x10] sm:$0xff] }
   0x2   :  { %v1545_v2 = vld [vmem:[%s1919_s4] sm:$0xff]   ;;  %1205 = vmatpush3.bf16.msra.mxu0 %v1401_v0  ;;  %1208 = vmatprep.mubr.msk.bf16.mxu0 %vm1478_vm0, %v1477_v1  ;;  %v1557_v4 = vld [vmem:[%s1919_s4 + $0x8] sm:$0xff]   ;;  %v69_v9 = vld [vmem:[%s1916_s1 + $0x18] sm:$0xff] }
   0x3   :  { %1221 = vmatpush3.bf16.msra.mxu1 %v1545_v2  ;;  %1206 = vmatprep.subr.bf16.mxu0 %v1477_v1  ;;  %v66_v5 = vld [vmem:[%s1916_s1] sm:$0xff]  ;;  %v67_v6 = vld [vmem:[%s1916_s1 + $0x8] sm:$0xff]  ;;  %v92_v10 = vpack.c.bf16 %v69_v9, %v68_v8 }
   0x4   :  { %1222 = vmatprep.subr.bf16.mxu1 %v1477_v1  ;;  %1224 = vmatprep.mubr.msk.bf16.mxu1 %vm1478_vm0, %v1477_v1  ;;  %v91_v7 = vpack.c.bf16 %v67_v6, %v66_v5  ;;  %v70_v11 = vld [vmem:[%s1916_s1 + $0x20] sm:$0xf] }
   0x5   :  { %v93_v12 = vpack.c.bf16 %v70_v11, %v70_v11 }
   0x6   :  { %1207 = vmatpush3.bf16.msra.mxu0 %v1403_v3 }
   0x7   :  { %1223 = vmatpush3.bf16.msra.mxu1 %v1557_v4  ;;  %1236 = vmatprep.subr.bf16.mxu0 %v1477_v1 }
   0x8   :  { %1264 = vmatprep.subr.bf16.mxu1 %v1477_v1 }
   0x9   :  { %1209 = vmatmul.mubr.msk.bf16.vlgmr.msra.gmra.mrb[0].mxu0 %vm106_vm1, %v91_v7 }
   0xa   :  { %1225 = vmatmul.mubr.msk.bf16.vlgmr.msra.gmra.mrb[0].mxu1 %vm106_vm1, %v91_v7  ;;  %1212 = vmatprep.mubr.msk.bf16.mxu0 %vm1478_vm0, %v1477_v1 }
   0xb   :  { %1228 = vmatprep.mubr.msk.bf16.mxu1 %vm1478_vm0, %v1477_v1 }
  0x11   :  { %1213 = vmatmul.mubr.msk.bf16.gmra.mrb[4].mxu0 %vm106_vm1, %v92_v10 }
  0x12   :  { %1229 = vmatmul.mubr.msk.bf16.gmra.mrb[4].mxu1 %vm106_vm1, %v92_v10  ;;  %1216 = vmatprep.mubr.msk.bf16.mxu0 %vm1478_vm0, %v1477_v1 }
  0x13   :  { %1232 = vmatprep.mubr.msk.bf16.mxu1 %vm1478_vm0, %v1477_v1 }
  0x14   :  { %16 = vsyncpa [#allocation3], 0  ;;  %v1405_v13 = vld [vmem:[%s1918_s3] sm:$0xff]   ;;  %v1407_v15 = vld [vmem:[%s1918_s3 + $0x8] sm:$0xff]   ;;  %vm586_vm2 = vcmask 261123   ;;  %vm523_vm3 = vcmask 1046528  }
  0x15   :  { %v1604_v14 = vld [vmem:[%s1921_s6] sm:$0xff]   ;;  %1237 = vmatpush3.bf16.msra.mxu0 %v1405_v13  ;;  %v1615_v16 = vld [vmem:[%s1921_s6 + $0x8] sm:$0xff]   ;;  %v1409_v17 = vld [vmem:[%s1918_s3 + $0x10] sm:$0xff]   ;;  %vm588_vm4 = vcmask 256000   ;;  %vm583_vm5 = vcmask 523264   ;;  %s1479_s23 = smov [#allocation2]  }
  0x16   :  { %1265 = vmatpush3.bf16.msra.mxu1 %v1604_v14  ;;  %1238 = vmatprep.subr.bf16.mxu0 %v1477_v1  ;;  %v1626_v18 = vld [vmem:[%s1921_s6 + $0x10] sm:$0xff]   ;;  %v1411_v19 = vld [vmem:[%s1918_s3 + $0x18] sm:$0xff]   ;;  %v1413_v21 = vld [vmem:[%s1918_s3 + $0x20] sm:$0xff]   ;;  %s1042_s24 = sshll.u32 %s1479_s23, 4  ;;  %s1043_s24 = int_to_ptr.vmem [resolvable:$true] %s1042_s24 }
  0x17   :  { %1266 = vmatprep.subr.bf16.mxu1 %v1477_v1  ;;  %v1637_v20 = vld [vmem:[%s1921_s6 + $0x18] sm:$0xff]   ;;  %v1648_v22 = vld [vmem:[%s1921_s6 + $0x20] sm:$0xff]   ;;  %v1415_v23 = vld [vmem:[%s1918_s3 + $0x28] sm:$0xff]   ;;  %p1458_p1 = scmp.lt.s32.totalorder %s1043_s24, %s1043_s24 }
  0x18   :  { %v1657_v24 = vld [vmem:[%s1921_s6 + $0x28] sm:$0xff]   ;;  %v1417_v25 = vld [vmem:[%s1918_s3 + $0x30] sm:$0xff]   ;;  %v1419_v27 = vld [vmem:[%s1918_s3 + $0x38] sm:$0xff]  }
  0x19   :  { %1217 = vmatmul.mubr.msk.bf16.gmra.mrb[8].mxu0 %vm106_vm1, %v93_v12  ;;  %v1668_v26 = vld [vmem:[%s1921_s6 + $0x30] sm:$0xff]   ;;  %v1679_v28 = vld [vmem:[%s1921_s6 + $0x38] sm:$0xff]   ;;  %v1689_v30 = vld [vmem:[%s1920_s5] ss:$0 sm:$0xff] }
  0x1a   :  { %1233 = vmatmul.mubr.msk.bf16.gmra.mrb[8].mxu1 %vm106_vm1, %v93_v12  ;;  %1252 = vmatprep.mubr.msk.bf16.mxu0 %vm1478_vm0, %v1477_v1 }
  0x1b   :  { %1280 = vmatprep.mubr.msk.bf16.mxu1 %vm1478_vm0, %v1477_v1  ;;  %1239 = vmatpush3.bf16.msra.mxu0 %v1407_v15 }
  0x1c   :  { %1267 = vmatpush3.bf16.msra.mxu1 %v1615_v16  ;;  %1240 = vmatprep.subr.bf16.mxu0 %v1477_v1 }
  0x1d   :  { %1268 = vmatprep.subr.bf16.mxu1 %v1477_v1 }
  0x1f   :  { %1241 = vmatpush3.bf16.msra.mxu0 %v1409_v17 }
  0x20   :  { %1269 = vmatpush3.bf16.msra.mxu1 %v1626_v18  ;;  %1242 = vmatprep.subr.bf16.mxu0 %v1477_v1 }
  0x21   :  { %1270 = vmatprep.subr.bf16.mxu1 %v1477_v1 }
  0x23   :  { %1243 = vmatpush3.bf16.msra.mxu0 %v1411_v19 }
  0x24   :  { %1271 = vmatpush3.bf16.msra.mxu1 %v1637_v20  ;;  %1244 = vmatprep.subr.bf16.mxu0 %v1477_v1 }
  0x25   :  { %1272 = vmatprep.subr.bf16.mxu1 %v1477_v1 }
  0x27   :  { %1245 = vmatpush3.bf16.msra.mxu0 %v1413_v21 }
  0x28   :  { %1273 = vmatpush3.bf16.msra.mxu1 %v1648_v22  ;;  %1246 = vmatprep.subr.bf16.mxu0 %v1477_v1 }
  0x29   :  { %1274 = vmatprep.subr.bf16.mxu1 %v1477_v1 }
  0x2b   :  { %1247 = vmatpush3.bf16.msra.mxu0 %v1415_v23 }
  0x2c   :  { %1275 = vmatpush3.bf16.msra.mxu1 %v1657_v24  ;;  %1248 = vmatprep.subr.bf16.mxu0 %v1477_v1 }
  0x2d   :  { %1276 = vmatprep.subr.bf16.mxu1 %v1477_v1 }
  0x2f   :  { %1249 = vmatpush3.bf16.msra.mxu0 %v1417_v25 }
  0x30   :  { %1277 = vmatpush3.bf16.msra.mxu1 %v1668_v26  ;;  %1250 = vmatprep.subr.bf16.mxu0 %v1477_v1 }
  0x31   :  { %1278 = vmatprep.subr.bf16.mxu1 %v1477_v1 }
  0x33   :  { %1251 = vmatpush3.bf16.msra.mxu0 %v1419_v27 }
  0x34   :  { %1279 = vmatpush3.bf16.msra.mxu1 %v1679_v28  ;;  %1292 = vmatprep.subr.bf16.mxu0 %v1477_v1 }
  0x35   :  { %1300 = vmatprep.subr.bf16.mxu1 %v1477_v1 }
  0xdc   :  { %v150_v29 = vpop.f32.mrb[0].mxu0 }
  0xdd   :  { %v218_v31 = vpop.f32.mrb[0].mxu1  ;;  %v1210_v32 = vpop.f32.mrb[1].mxu0 }
  0xde   :  { %v219_v33 = vadd.f32 %v218_v31, %v150_v29  ;;  %v1226_v34 = vpop.f32.mrb[1].mxu1  ;;  %v153_v35 = vpop.f32.mrb[2].mxu0 }
  0xdf   :  { %v221_v36 = vpop.f32.mrb[2].mxu1  ;;  %v1211_v37 = vpop.f32.mrb[3].mxu0 }
  0xe0   :  { %v246_v38 = vadd.f32 %v1689_v30, %v219_v33  ;;  %v222_v39 = vadd.f32 %v221_v36, %v153_v35  ;;  %v1227_v40 = vpop.f32.mrb[3].mxu1 }
  0xe2   :  { %v256_v41 = vmul.f32 0.044715, %v246_v38  ;;  %v247_v42 = vadd.f32 %v1689_v30, %v222_v39  ;;  %v251_v40 = vmul.f32 0.5, %v246_v38 }
  0xe4   :  { %v261_v43 = vmul.f32 %v256_v41, %v246_v38  ;;  %v257_v44 = vmul.f32 0.044715, %v247_v42  ;;  %v158_v45 = vpop.f32.mrb[4].mxu0  ;;  %v252_v41 = vmul.f32 0.5, %v247_v42 }
  0xe5   :  { %v226_v46 = vpop.f32.mrb[4].mxu1  ;;  %v1214_v47 = vpop.f32.mrb[5].mxu0 }
  0xe6   :  { %v266_v48 = vmul.f32 %v261_v43, %v246_v38  ;;  %v262_v49 = vmul.f32 %v257_v44, %v247_v42  ;;  %v227_v50 = vadd.f32 %v226_v46, %v158_v45  ;;  %v1230_v51 = vpop.f32.mrb[5].mxu1  ;;  %v161_v52 = vpop.f32.mrb[6].mxu0 }
  0xe7   :  { %v229_v53 = vpop.f32.mrb[6].mxu1  ;;  %v1215_v54 = vpop.f32.mrb[7].mxu0 }
  0xe8   :  { %v271_v55 = vadd.f32 %v266_v48, %v246_v38  ;;  %v267_v56 = vmul.f32 %v262_v49, %v247_v42  ;;  %v248_v57 = vadd.f32 %v1689_v30, %v227_v50  ;;  %v230_v58 = vadd.f32 %v229_v53, %v161_v52  ;;  %v1231_v59 = vpop.f32.mrb[7].mxu1  ;;  %v1699_v48 = vld [vmem:[%s1923_s8] sm:$0xff]  }
  0xea   :  { %v276_v60 = vmul.f32 0.7978846, %v271_v55  ;;  %v272_v61 = vadd.f32 %v267_v56, %v247_v42  ;;  %v258_v62 = vmul.f32 0.044715, %v248_v57  ;;  %v249_v63 = vadd.f32 %v1689_v30, %v230_v58 }
  0xeb   :  { %v253_v38 = vmul.f32 0.5, %v248_v57 }
  0xec   :  { %1433 = vtanh.f32 %v276_v60  ;;  %v277_v0 = vmul.f32 0.7978846, %v272_v61  ;;  %v263_v3 = vmul.f32 %v258_v62, %v248_v57  ;;  %v259_v5 = vmul.f32 0.044715, %v249_v63  ;;  %v166_v6 = vpop.f32.mrb[8].mxu0  ;;  %v1422_v61 = vld [vmem:[%s1917_s2 + $0x10] sm:$0xff]  }
  0xed   :  { %v234_v7 = vpop.f32.mrb[8].mxu1  ;;  %v1218_v8 = vpop.f32.mrb[9].mxu0  ;;  %v254_v42 = vmul.f32 0.5, %v249_v63  ;;  %v1722_v62 = vld [vmem:[%s1923_s8 + $0x8] sm:$0xff]  }
  0xee   :  { %1435 = vtanh.f32 %v277_v0  ;;  %v264_v9 = vmul.f32 %v259_v5, %v249_v63  ;;  %v268_v10 = vmul.f32 %v263_v3, %v248_v57  ;;  %v235_v11 = vadd.f32 %v234_v7, %v166_v6  ;;  %v1234_v12 = vpop.f32.mrb[9].mxu1  ;;  %v169_v13 = vpop.f32.mrb[10].mxu0  ;;  %v1090_v0 = vld [vmem:[%s1916_s1 + $0x28] sm:$0xff]  ;;  %v1091_v3 = vld [vmem:[%s1916_s1 + $0x30] sm:$0xff]  ;;  %v1092_v6 = vld [vmem:[%s1916_s1 + $0x38] sm:$0xff] }
  0xef   :  { %v237_v15 = vpop.f32.mrb[10].mxu1  ;;  %v1219_v17 = vpop.f32.mrb[11].mxu0  ;;  %v1736_v5 = vpack.c.bf16 %v1091_v3, %v1090_v0  ;;  %v1093_v7 = vld [vmem:[%s1916_s1 + $0x40] sm:$0xff] }
  0xf0   :  { %v269_v19 = vmul.f32 %v264_v9, %v249_v63  ;;  %v273_v21 = vadd.f32 %v268_v10, %v248_v57  ;;  %v250_v23 = vadd.f32 %v1689_v30, %v235_v11  ;;  %v1235_v25 = vpop.f32.mrb[11].mxu1  ;;  %v1748_v8 = vpack.c.bf16 %v1093_v7, %v1092_v6  ;;  %v1427_v7 = vld [vmem:[%s1918_s3 + $0x50] sm:$0xff]  }
  0xf2   :  { %v274_v27 = vadd.f32 %v269_v19, %v249_v63  ;;  %v278_v29 = vmul.f32 0.7978846, %v273_v21  ;;  %v260_v31 = vmul.f32 0.044715, %v250_v23  ;;  %v255_v56 = vmul.f32 0.5, %v250_v23  ;;  %v1424_v63 = vld [vmem:[%s1917_s2 + $0x18] sm:$0xff]  }
  0xf4   :  { %v279_v32 = vmul.f32 0.7978846, %v274_v27  ;;  %1437 = vtanh.f32 %v278_v29  ;;  %v265_v33 = vmul.f32 %v260_v31, %v250_v23 }
  0xf6   :  { %v1434_v34 = vpop.eup %1433  ;;  %1439 = vtanh.f32 %v279_v32  ;;  %v270_v35 = vmul.f32 %v265_v33, %v250_v23 }
  0xf7   :  { %v286_v36 = vadd.f32 1.0, %v1434_v34  ;;  %v62_v34 = vld [vmem:[%s1915_s0 + $0x8] sm:$0xff] }
  0xf8   :  { %v1436_v37 = vpop.eup %1435  ;;  %v275_v39 = vadd.f32 %v270_v35, %v250_v23  ;;  %v1757_v23 = vld [vmem:[%s1922_s7] ss:$0 sm:$0xff]  ;;  %v63_v35 = vld [vmem:[%s1915_s0 + $0x10] sm:$0xff] }
  0xf9   :  { %v287_v43 = vadd.f32 1.0, %v1436_v37  ;;  %v291_v45 = vmul.f32 %v286_v36, %v251_v40 }
  0xfa   :  { %v280_v44 = vmul.f32 0.7978846, %v275_v39 }
  0xfb   :  { %v292_v46 = vmul.f32 %v287_v43, %v252_v41 }
  0xfc   :  { %1441 = vtanh.f32 %v280_v44  ;;  %v64_v44 = vld [vmem:[%s1915_s0 + $0x18] sm:$0xff] }
  0xfd   :  { %v296_v47 = vpack.c.bf16 %v292_v46, %v291_v45 }
  0xfe   :  { %v1438_v49 = vpop.eup %1437 }
  0xff   :  { %1253 = vmatmul.mubr.bf16.vlgmr.msra.gmra.mrb[12].mxu0 %v296_v47  ;;  %1281 = vmatmul.mubr.bf16.vlgmr.msra.gmra.mrb[12].mxu1 %v296_v47  ;;  %v288_v50 = vadd.f32 1.0, %v1438_v49 }
 0x100   :  { %v1440_v51 = vpop.eup %1439  ;;  %1256 = vmatprep.mubr.msk.bf16.mxu0 %vm1478_vm0, %v1477_v1  ;;  %1284 = vmatprep.mubr.msk.bf16.mxu1 %vm1478_vm0, %v1477_v1 }
 0x101   :  { %v289_v52 = vadd.f32 1.0, %v1440_v51  ;;  %1293 = vmatpush3.bf16.msra.mxu0 %v1699_v48  ;;  %v293_v53 = vmul.f32 %v288_v50, %v253_v38  ;;  %1301 = vmatpush3.bf16.msra.mxu1 %v1422_v61 }
 0x102   :  { %1294 = vmatprep.subr.bf16.mxu0 %v1477_v1  ;;  %1302 = vmatprep.subr.bf16.mxu1 %v1477_v1 }
 0x103   :  { %v294_v54 = vmul.f32 %v289_v52, %v254_v42 }
 0x105   :  { %v297_v55 = vpack.c.bf16 %v294_v54, %v293_v53  ;;  %1295 = vmatpush3.bf16.msra.mxu0 %v1722_v62  ;;  %1303 = vmatpush3.bf16.msra.mxu1 %v1424_v63 }
 0x106   :  { %v1442_v58 = vpop.eup %1441  ;;  %1316 = vmatprep.subr.bf16.mxu0 %v1477_v1  ;;  %1332 = vmatprep.subr.bf16.mxu1 %v1477_v1 }
 0x107   :  { %1257 = vmatmul.mubr.bf16.gmra.mrb[16].mxu0 %v297_v55  ;;  %1285 = vmatmul.mubr.bf16.gmra.mrb[16].mxu1 %v297_v55  ;;  %v290_v59 = vadd.f32 1.0, %v1442_v58  ;;  %v65_v55 = vld [vmem:[%s1915_s0 + $0x20] sm:$0xf] }
 0x108   :  { %1260 = vmatprep.mubr.msk.bf16.mxu0 %vm1478_vm0, %v1477_v1  ;;  %1288 = vmatprep.mubr.msk.bf16.mxu1 %vm1478_vm0, %v1477_v1 }
 0x109   :  { %v295_v57 = vmul.f32 %v290_v59, %v255_v56 }
 0x10b   :  { %v298_v60 = vpack.c.bf16 %v295_v57, %v295_v57 }
 0x10f   :  { %1261 = vmatmul.mubr.bf16.gmra.mrb[20].mxu0 %v298_v60  ;;  %1289 = vmatmul.mubr.bf16.gmra.mrb[20].mxu1 %v298_v60 }
 0x110   :  { %1296 = vmatprep.mubr.msk.bf16.mxu0 %vm1478_vm0, %v1477_v1  ;;  %1304 = vmatprep.mubr.msk.bf16.mxu1 %vm1478_vm0, %v1477_v1 }
 0x117   :  { %1305 = vmatmul.mubr.msk.bf16.vlgmr.msra.gmra.mrb[24].mxu1 %vm106_vm1, %v1736_v5 }
 0x118   :  { %1308 = vmatprep.mubr.msk.bf16.mxu1 %vm1478_vm0, %v1477_v1 }
 0x11f   :  { %1309 = vmatmul.mubr.msk.bf16.gmra.mrb[28].mxu1 %vm106_vm1, %v1748_v8 }
 0x120   :  { %1312 = vmatprep.mubr.msk.bf16.mxu1 %vm1478_vm0, %v1477_v1 }
 0x1d2   :  { %v381_v9 = vpop.f32.mrb[12].mxu0  ;;  %v484_v10 = vpop.f32.mrb[12].mxu1 }
 0x1d3   :  { %v1254_v11 = vpop.f32.mrb[13].mxu0  ;;  %v1282_v12 = vpop.f32.mrb[13].mxu1  ;;  %v1429_v9 = vld [vmem:[%s1918_s3 + $0x60] sm:$0xff]   ;;  %v1430_v10 = vld [vmem:[%s1918_s3 + $0x68] sm:$0xff]  }
 0x1d4   :  { %v383_v13 = vpop.f32.mrb[14].mxu0  ;;  %v486_v15 = vpop.f32.mrb[14].mxu1  ;;  %v1431_v11 = vld [vmem:[%s1918_s3 + $0x70] sm:$0xff]   ;;  %v1432_v12 = vld [vmem:[%s1918_s3 + $0x78] sm:$0xff]  }
 0x1d5   :  { %v487_v17 = vadd.f32 %v486_v15, %v383_v13  ;;  %v1255_v19 = vpop.f32.mrb[15].mxu0  ;;  %v1283_v21 = vpop.f32.mrb[15].mxu1 }
 0x1d7   :  { %v511_v29 = vadd.f32 %v1757_v23, %v487_v17 }
 0x1d9   :  { %v515_v45 = vadd.f32 %v511_v29, %v62_v34 }
 0x1da   :  { %v388_v25 = vpop.f32.mrb[16].mxu0  ;;  %v491_v27 = vpop.f32.mrb[16].mxu1 }
 0x1db   :  { %v492_v31 = vadd.f32 %v491_v27, %v388_v25  ;;  %v1258_v32 = vpop.f32.mrb[17].mxu0  ;;  %v1286_v33 = vpop.f32.mrb[17].mxu1 }
 0x1dc   :  { %v391_v36 = vpop.f32.mrb[18].mxu0  ;;  %v494_v37 = vpop.f32.mrb[18].mxu1 }
 0x1dd   :  { %v512_v39 = vadd.f32 %v1757_v23, %v492_v31  ;;  %v495_v40 = vadd.f32 %v494_v37, %v391_v36  ;;  %v1259_v41 = vpop.f32.mrb[19].mxu0  ;;  %v1287_v43 = vpop.f32.mrb[19].mxu1 }
 0x1df   :  { %v516_v46 = vadd.f32 %v512_v39, %v63_v35  ;;  %v513_v47 = vadd.f32 %v1757_v23, %v495_v40 }
 0x1e1   :  { %v519_v49 = vpack.c.bf16 %v516_v46, %v515_v45  ;;  %v517_v50 = vadd.f32 %v513_v47, %v64_v44 }
 0x1e2   :  { %v396_v51 = vpop.f32.mrb[20].mxu0  ;;  %v499_v38 = vpop.f32.mrb[20].mxu1 }
 0x1e3   :  { %v520_v42 = vpack.c.bf16 %v517_v50, %v517_v50  ;;  %587 = vst.msk [vmem:[#allocation2 - $0x3] sm:$0xf8] %vm586_vm2, %v517_v50  ;;  %v500_v52 = vadd.f32 %v499_v38, %v396_v51  ;;  %v1262_v53 = vpop.f32.mrb[21].mxu0  ;;  %v1290_v54 = vpop.f32.mrb[21].mxu1  ;;  %v524_v59 = vrot.slane %v519_v49, 1 }
 0x1e4   :  { %v399_v56 = vpop.f32.mrb[22].mxu0  ;;  %v502_v58 = vpop.f32.mrb[22].mxu1 }
 0x1e5   :  { %v525_v57 = vrot.slane %v520_v42, 1  ;;  %v514_v60 = vadd.f32 %v1757_v23, %v500_v52  ;;  %v1263_v61 = vpop.f32.mrb[23].mxu0  ;;  %v1291_v63 = vpop.f32.mrb[23].mxu1 }
 0x1e7   :  { %v526_v0 = vsel %vm523_vm3, %v524_v59, %v525_v57  ;;  %v518_v3 = vadd.f32 %v514_v60, %v65_v55 }
 0x1e8   :  { %1297 = vmatmul.mubr.msk.bf16.vlgmr.msra.gmra.mrb[24].mxu0 %vm106_vm1, %v526_v0 }
 0x1e9   :  { %1317 = vmatpush3.bf16.msra.mxu0 %v1545_v2  ;;  %1320 = vmatprep.mubr.msk.bf16.mxu0 %vm1478_vm0, %v1477_v1  ;;  %589 = vst.msk [vmem:[#allocation2 + $0x5] sm:$0x7] %vm588_vm4, %v518_v3  ;;  %v1094_v2 = vld [vmem:[%s1916_s1 + $0x48] sm:$0xf]  ;;  %s1453_s1 = scalar_lea.vmem %s1043_s24, 256 }
 0x1ea   :  { %1318 = vmatprep.subr.bf16.mxu0 %v1477_v1  ;;  %p1454_p0 = scmp.ne.s32.totalorder %s1043_s24, %s1453_s1  ;;  %p1459_p2 = scmp.lt.s32.totalorder %s1453_s1, %s1453_s1 }
 0x1ec   :  { %p1460_p3 = por %p1459_p2, %p1458_p1 }
 0x1ed   :  { %1319 = vmatpush3.bf16.msra.mxu0 %v1557_v4  ;;  %v625_v4 = vpack.c.bf16 %v1094_v2, %v1094_v2 }
 0x1ee   :  { %1360 = vmatprep.subr.bf16.mxu0 %v1477_v1  ;;  %p1461_p4 = pnand %p1460_p3, %p1454_p0 }
 0x1ef   :  { %1313 = vmatmul.mubr.msk.bf16.gmra.mrb[32].mxu1 %vm106_vm1, %v625_v4 }
 0x1f0   :  { %1321 = vmatmul.mubr.msk.bf16.vlgmr.msra.gmra.mrb[28].mxu0 %vm106_vm1, %v1736_v5  ;;  %1348 = vmatprep.mubr.msk.bf16.mxu1 %vm1478_vm0, %v1477_v1 }
 0x1f1   :  { %1324 = vmatprep.mubr.msk.bf16.mxu0 %vm1478_vm0, %v1477_v1  ;;  %1361 = vmatpush3.bf16.msra.mxu0 %v1604_v14  ;;  %v681_v14 = vpop.f32.mrb[24].mxu1 }
 0x1f2   :  { %1362 = vmatprep.subr.bf16.mxu0 %v1477_v1 }
 0x1f5   :  { %1363 = vmatpush3.bf16.msra.mxu0 %v1615_v16  ;;  %v1306_v16 = vpop.f32.mrb[25].mxu1 }
 0x1f6   :  { %1364 = vmatprep.subr.bf16.mxu0 %v1477_v1 }
 0x1f8   :  { %1325 = vmatmul.mubr.msk.bf16.gmra.mrb[32].mxu0 %vm106_vm1, %v1748_v8  ;;  %v1428_v8 = vld [vmem:[%s1918_s3 + $0x58] sm:$0xff]  }
 0x1f9   :  { %1328 = vmatprep.mubr.msk.bf16.mxu0 %vm1478_vm0, %v1477_v1  ;;  %1365 = vmatpush3.bf16.msra.mxu0 %v1626_v18  ;;  %v684_v18 = vpop.f32.mrb[26].mxu1 }
 0x1fa   :  { %1366 = vmatprep.subr.bf16.mxu0 %v1477_v1 }
 0x1fd   :  { %1367 = vmatpush3.bf16.msra.mxu0 %v1637_v20  ;;  %v1307_v20 = vpop.f32.mrb[27].mxu1 }
 0x1fe   :  { %1368 = vmatprep.subr.bf16.mxu0 %v1477_v1 }
 0x200   :  { %1329 = vmatmul.mubr.msk.bf16.gmra.mrb[36].mxu0 %vm106_vm1, %v625_v4 }
 0x201   :  { %1369 = vmatpush3.bf16.msra.mxu0 %v1648_v22  ;;  %1376 = vmatprep.mubr.msk.bf16.mxu0 %vm1478_vm0, %v1477_v1  ;;  %v1425_v22 = vld [vmem:[%s1918_s3 + $0x40] sm:$0xff]  }
 0x202   :  { %1370 = vmatprep.subr.bf16.mxu0 %v1477_v1  ;;  %1333 = vmatpush3.bf16.msra.mxu1 %v1425_v22 }
 0x203   :  { %1334 = vmatprep.subr.bf16.mxu1 %v1477_v1 }
 0x205   :  { %1371 = vmatpush3.bf16.msra.mxu0 %v1657_v24  ;;  %v689_v24 = vpop.f32.mrb[28].mxu1 }
 0x206   :  { %1372 = vmatprep.subr.bf16.mxu0 %v1477_v1 }
 0x209   :  { %1373 = vmatpush3.bf16.msra.mxu0 %v1668_v26  ;;  %v1426_v26 = vld [vmem:[%s1918_s3 + $0x48] sm:$0xff]  }
 0x20a   :  { %1374 = vmatprep.subr.bf16.mxu0 %v1477_v1  ;;  %1335 = vmatpush3.bf16.msra.mxu1 %v1426_v26 }
 0x20b   :  { %1336 = vmatprep.subr.bf16.mxu1 %v1477_v1 }
 0x20d   :  { %1375 = vmatpush3.bf16.msra.mxu0 %v1679_v28  ;;  %v1310_v28 = vpop.f32.mrb[29].mxu1 }
 0x20e   :  { %v692_v5 = vpop.f32.mrb[30].mxu1  ;;  %1337 = vmatpush3.bf16.msra.mxu1 %v1427_v7 }
 0x20f   :  { %v1311_v6 = vpop.f32.mrb[31].mxu1  ;;  %1338 = vmatprep.subr.bf16.mxu1 %v1477_v1 }
 0x212   :  { %1339 = vmatpush3.bf16.msra.mxu1 %v1428_v8 }
 0x213   :  { %1340 = vmatprep.subr.bf16.mxu1 %v1477_v1 }
 0x216   :  { %1341 = vmatpush3.bf16.msra.mxu1 %v1429_v9 }
 0x217   :  { %1342 = vmatprep.subr.bf16.mxu1 %v1477_v1 }
 0x21a   :  { %1343 = vmatpush3.bf16.msra.mxu1 %v1430_v10 }
 0x21b   :  { %1344 = vmatprep.subr.bf16.mxu1 %v1477_v1 }
 0x21e   :  { %1345 = vmatpush3.bf16.msra.mxu1 %v1431_v11 }
 0x21f   :  { %1346 = vmatprep.subr.bf16.mxu1 %v1477_v1 }
 0x222   :  { %1347 = vmatpush3.bf16.msra.mxu1 %v1432_v12 }
 0x223   :  { %1388 = vmatprep.subr.bf16.mxu1 %v1477_v1 }
 0x2bb   :  { %v576_v13 = vpop.f32.mrb[24].mxu0 }
 0x2bc   :  { %584 = vst.msk [vmem:[%s1924_s9] sm:$0xff] %vm583_vm5, %v576_v13  ;;  %v1298_v15 = vpop.f32.mrb[25].mxu0 }
 0x2bd   :  { %v579_v17 = vpop.f32.mrb[26].mxu0 }
 0x2be   :  { %585 = vst.msk [vmem:[%s1924_s9 + $0x8] sm:$0xff] %vm583_vm5, %v579_v17  ;;  %v1299_v19 = vpop.f32.mrb[27].mxu0 }
 0x2c2   :  { %v697_v12 = vpop.f32.mrb[32].mxu1 }
 0x2c3   :  { %v737_v21 = vpop.f32.mrb[28].mxu0  ;;  %v1314_v17 = vpop.f32.mrb[33].mxu1 }
 0x2c4   :  { %v738_v25 = vadd.f32 %v737_v21, %v681_v14  ;;  %v1322_v27 = vpop.f32.mrb[29].mxu0  ;;  %v700_v19 = vpop.f32.mrb[34].mxu1 }
 0x2c5   :  { %v740_v29 = vpop.f32.mrb[30].mxu0  ;;  %v1315_v27 = vpop.f32.mrb[35].mxu1 }
 0x2c6   :  { %v759_v31 = vadd.f32 %v1689_v30, %v738_v25  ;;  %v741_v32 = vadd.f32 %v740_v29, %v684_v18  ;;  %v1323_v33 = vpop.f32.mrb[31].mxu0 }
 0x2c8   :  { %v769_v34 = vmul.f32 0.044715, %v759_v31  ;;  %v760_v35 = vadd.f32 %v1689_v30, %v741_v32  ;;  %v764_v14 = vmul.f32 0.5, %v759_v31 }
 0x2ca   :  { %v774_v36 = vmul.f32 %v769_v34, %v759_v31  ;;  %v770_v37 = vmul.f32 0.044715, %v760_v35  ;;  %v765_v16 = vmul.f32 0.5, %v760_v35 }
 0x2cb   :  { %v745_v39 = vpop.f32.mrb[32].mxu0 }
 0x2cc   :  { %v779_v40 = vmul.f32 %v774_v36, %v759_v31  ;;  %v775_v41 = vmul.f32 %v770_v37, %v760_v35  ;;  %v746_v43 = vadd.f32 %v745_v39, %v689_v24  ;;  %v1326_v44 = vpop.f32.mrb[33].mxu0 }
 0x2cd   :  { %v748_v45 = vpop.f32.mrb[34].mxu0 }
 0x2ce   :  { %v784_v46 = vadd.f32 %v779_v40, %v759_v31  ;;  %v780_v47 = vmul.f32 %v775_v41, %v760_v35  ;;  %v761_v49 = vadd.f32 %v1689_v30, %v746_v43  ;;  %v749_v50 = vadd.f32 %v748_v45, %v692_v5  ;;  %v1327_v51 = vpop.f32.mrb[35].mxu0 }
 0x2d0   :  { %v789_v38 = vmul.f32 0.7978846, %v784_v46  ;;  %v785_v42 = vadd.f32 %v780_v47, %v760_v35  ;;  %v771_v52 = vmul.f32 0.044715, %v761_v49  ;;  %v762_v53 = vadd.f32 %v1689_v30, %v749_v50 }
 0x2d1   :  { %v766_v6 = vmul.f32 0.5, %v761_v49 }
 0x2d2   :  { %1443 = vtanh.f32 %v789_v38  ;;  %v790_v54 = vmul.f32 0.7978846, %v785_v42  ;;  %v776_v55 = vmul.f32 %v771_v52, %v761_v49  ;;  %v772_v56 = vmul.f32 0.044715, %v762_v53 }
 0x2d3   :  { %v767_v7 = vmul.f32 0.5, %v762_v53  ;;  %v753_v13 = vpop.f32.mrb[36].mxu0 }
 0x2d4   :  { %1445 = vtanh.f32 %v790_v54  ;;  %v777_v58 = vmul.f32 %v772_v56, %v762_v53  ;;  %v781_v59 = vmul.f32 %v776_v55, %v761_v49  ;;  %v754_v15 = vadd.f32 %v753_v13, %v697_v12  ;;  %v1087_v55 = vld [vmem:[%s1915_s0 + $0x38] sm:$0xff] }
 0x2d6   :  { %v782_v57 = vmul.f32 %v777_v58, %v762_v53  ;;  %v786_v60 = vadd.f32 %v781_v59, %v761_v49  ;;  %v763_v25 = vadd.f32 %v1689_v30, %v754_v15 }
 0x2d8   :  { %v787_v61 = vadd.f32 %v782_v57, %v762_v53  ;;  %v791_v63 = vmul.f32 0.7978846, %v786_v60  ;;  %v768_v35 = vmul.f32 0.5, %v763_v25 }
 0x2da   :  { %v792_v0 = vmul.f32 0.7978846, %v787_v61  ;;  %1447 = vtanh.f32 %v791_v63  ;;  %v1088_v63 = vld [vmem:[%s1915_s0 + $0x40] sm:$0xff] }
 0x2dc   :  { %v1444_v3 = vpop.eup %1443  ;;  %1449 = vtanh.f32 %v792_v0 }
 0x2dd   :  { %v799_v2 = vadd.f32 1.0, %v1444_v3 }
 0x2de   :  { %v1446_v4 = vpop.eup %1445 }
 0x2df   :  { %v800_v18 = vadd.f32 1.0, %v1446_v4  ;;  %v804_v20 = vmul.f32 %v799_v2, %v764_v14 }
 0x2e1   :  { %v805_v22 = vmul.f32 %v800_v18, %v765_v16 }
 0x2e3   :  { %v809_v24 = vpack.c.bf16 %v805_v22, %v804_v20 }
 0x2e4   :  { %v1448_v26 = vpop.eup %1447 }
 0x2e5   :  { %1349 = vmatmul.mubr.bf16.vlgmr.msra.gmra.mrb[36].mxu1 %v809_v24  ;;  %1377 = vmatmul.mubr.bf16.vlgmr.msra.gmra.mrb[40].mxu0 %v809_v24  ;;  %v801_v28 = vadd.f32 1.0, %v1448_v26 }
 0x2e6   :  { %v1450_v5 = vpop.eup %1449  ;;  %1352 = vmatprep.mubr.msk.bf16.mxu1 %vm1478_vm0, %v1477_v1  ;;  %1380 = vmatprep.mubr.msk.bf16.mxu0 %vm1478_vm0, %v1477_v1 }
 0x2e7   :  { %v802_v8 = vadd.f32 1.0, %v1450_v5  ;;  %1389 = vmatpush3.bf16.msra.mxu1 %v1699_v48  ;;  %v806_v9 = vmul.f32 %v801_v28, %v766_v6  ;;  %v1330_v48 = vpop.f32.mrb[37].mxu0 }
 0x2e8   :  { %1390 = vmatprep.subr.bf16.mxu1 %v1477_v1  ;;  %v756_v21 = vpop.f32.mrb[38].mxu0 }
 0x2e9   :  { %v807_v10 = vmul.f32 %v802_v8, %v767_v7  ;;  %v1331_v29 = vpop.f32.mrb[39].mxu0  ;;  %v1089_v7 = vld [vmem:[%s1915_s0 + $0x48] sm:$0xf] }
 0x2eb   :  { %v810_v11 = vpack.c.bf16 %v807_v10, %v806_v9  ;;  %1391 = vmatpush3.bf16.msra.mxu1 %v1722_v62  ;;  %v773_v62 = vmul.f32 0.044715, %v763_v25 }
 0x2ed   :  { %1353 = vmatmul.mubr.bf16.gmra.mrb[40].mxu1 %v810_v11  ;;  %1381 = vmatmul.mubr.bf16.gmra.mrb[44].mxu0 %v810_v11  ;;  %v778_v31 = vmul.f32 %v773_v62, %v763_v25 }
 0x2ee   :  { %1356 = vmatprep.mubr.msk.bf16.mxu1 %vm1478_vm0, %v1477_v1  ;;  %1384 = vmatprep.mubr.msk.bf16.mxu0 %vm1478_vm0, %v1477_v1 }
 0x2ef   :  { %v783_v32 = vmul.f32 %v778_v31, %v763_v25 }
 0x2f1   :  { %v788_v33 = vadd.f32 %v783_v32, %v763_v25 }
 0x2f3   :  { %v793_v34 = vmul.f32 0.7978846, %v788_v33 }
 0x2f5   :  { %1451 = vtanh.f32 %v793_v34 }
 0x2ff   :  { %v1452_v36 = vpop.eup %1451 }
 0x300   :  { %v803_v37 = vadd.f32 1.0, %v1452_v36 }
 0x302   :  { %v808_v39 = vmul.f32 %v803_v37, %v768_v35 }
 0x304   :  { %v811_v40 = vpack.c.bf16 %v808_v39, %v808_v39 }
 0x306   :  { %1357 = vmatmul.mubr.bf16.gmra.mrb[44].mxu1 %v811_v40  ;;  %1385 = vmatmul.mubr.bf16.gmra.mrb[48].mxu0 %v811_v40 }
 0x307   :  { %1392 = vmatprep.mubr.msk.bf16.mxu1 %vm1478_vm0, %v1477_v1  ;;  %v1086_v1 = vld [vmem:[%s1915_s0 + $0x30] sm:$0xff] }
 0x3b8   :  { %v894_v41 = vpop.f32.mrb[36].mxu1  ;;  %v949_v30 = vpop.f32.mrb[40].mxu0 }
 0x3b9   :  { %v1350_v43 = vpop.f32.mrb[37].mxu1  ;;  %v1378_v44 = vpop.f32.mrb[41].mxu0 }
 0x3ba   :  { %v896_v45 = vpop.f32.mrb[38].mxu1  ;;  %v951_v46 = vpop.f32.mrb[42].mxu0 }
 0x3bb   :  { %v952_v47 = vadd.f32 %v951_v46, %v896_v45  ;;  %v1351_v49 = vpop.f32.mrb[39].mxu1  ;;  %v1379_v50 = vpop.f32.mrb[43].mxu0 }
 0x3bd   :  { %v970_v42 = vadd.f32 %v1757_v23, %v952_v47 }
 0x3bf   :  { %v974_v0 = vadd.f32 %v1086_v1, %v970_v42 }
 0x3c0   :  { %v901_v51 = vpop.f32.mrb[40].mxu1  ;;  %v956_v38 = vpop.f32.mrb[44].mxu0 }
 0x3c1   :  { %v957_v52 = vadd.f32 %v956_v38, %v901_v51  ;;  %v1354_v53 = vpop.f32.mrb[41].mxu1  ;;  %v1382_v54 = vpop.f32.mrb[45].mxu0 }
 0x3c2   :  { %v904_v56 = vpop.f32.mrb[42].mxu1  ;;  %v959_v58 = vpop.f32.mrb[46].mxu0 }
 0x3c3   :  { %v971_v59 = vadd.f32 %v1757_v23, %v957_v52  ;;  %v960_v57 = vadd.f32 %v959_v58, %v904_v56  ;;  %v1355_v60 = vpop.f32.mrb[43].mxu1  ;;  %v1383_v61 = vpop.f32.mrb[47].mxu0 }
 0x3c5   :  { %v975_v3 = vadd.f32 %v1087_v55, %v971_v59  ;;  %v972_v2 = vadd.f32 %v1757_v23, %v960_v57 }
 0x3c7   :  { %v978_v4 = vpack.c.bf16 %v975_v3, %v974_v0  ;;  %v976_v14 = vadd.f32 %v1088_v63, %v972_v2 }
 0x3c9   :  { %v979_v16 = vpack.c.bf16 %v976_v14, %v976_v14  ;;  %1033 = vst.msk [vmem:[#allocation2 + $0x5] sm:$0xf8] %vm586_vm2, %v976_v14  ;;  %v982_v18 = vrot.slane %v978_v4, 1 }
 0x3cb   :  { %v983_v20 = vrot.slane %v979_v16, 1 }
 0x3cd   :  { %v984_v22 = vsel %vm523_vm3, %v982_v18, %v983_v20 }
 0x3ce   :  { %1393 = vmatmul.mubr.msk.bf16.vlgmr.msra.gmra.mrb[48].mxu1 %vm106_vm1, %v984_v22 }
 0x3d9   :  { %v909_v24 = vpop.f32.mrb[44].mxu1  ;;  %v964_v26 = vpop.f32.mrb[48].mxu0 }
 0x3da   :  { %v965_v28 = vadd.f32 %v964_v26, %v909_v24  ;;  %v1358_v5 = vpop.f32.mrb[45].mxu1  ;;  %v1386_v6 = vpop.f32.mrb[49].mxu0 }
 0x3db   :  { %v912_v8 = vpop.f32.mrb[46].mxu1  ;;  %v967_v9 = vpop.f32.mrb[50].mxu0 }
 0x3dc   :  { %v973_v10 = vadd.f32 %v1757_v23, %v965_v28  ;;  %v1359_v11 = vpop.f32.mrb[47].mxu1  ;;  %v1387_v12 = vpop.f32.mrb[51].mxu0 }
 0x3de   :  { %v977_v13 = vadd.f32 %v1089_v7, %v973_v10 }
 0x3e0   :  { %1034 = vst.msk [vmem:[#allocation2 + $0xd] sm:$0x7] %vm588_vm4, %v977_v13 }
 0x3e1   :  { %1464 = shalt.err (!%p1461_p4)
}
 0x3e2   :  { %s1465_s25 = scalar_lea.hbm %s1925_s10, 256 }
 0x3e3   :  { %p1466_p5 = scmp.ne.s32.totalorder %s1925_s10, %s1465_s25  ;;  %p1469_p6 = scmp.lt.u32.totalorder %s1465_s25, %s1925_s10 }
 0x3e5   :  { %p1471_p7 = pnand %p1469_p6, %p1466_p5 }
 0x3e7   :  { %1474 = shalt.err (!%p1471_p7)
}
 0x3e8   :  { %s1480_s30 = smov 128   ;;  %s1481_s11 = smov 8  }
 0x3e9   :  { %1048 = dma.vmem_to_hbm [thread:$0]  %s1043_s24, 256, %s1925_s10, [#allocation3], %s1480_s30, %s1480_s30, %s1481_s11  }
 0x4a1   :  { %v1022_v23 = vpop.f32.mrb[48].mxu1 }
 0x4a2   :  { %1132 = vst.msk [vmem:[%s1924_s9 + $0x10] sm:$0xff] %vm583_vm5, %v1022_v23  ;;  %v1394_v15 = vpop.f32.mrb[49].mxu1 }
 0x4a3   :  { %v1025_v17 = vpop.f32.mrb[50].mxu1 }
 0x4a4   :  { %1133 = vst.msk [vmem:[%s1924_s9 + $0x18] sm:$0xff] %vm583_vm5, %v1025_v17  ;;  %v1395_v48 = vpop.f32.mrb[51].mxu1 }
 0x4a5   :  { %1475 = dma.done.wait [#allocation3], 256  }
 0x4a6   :  { %1476 = vsyncadd [#allocation3], 4294967040 }
 0x4a7   :  { %1054 = vsyncpa [#allocation3], 1 }

// kernel: model_forward.6
= control target key start
LH: loop header
LB: loop body
LE: loop exit
PB: predicated region body
PF: predicated region fallthrough
CT: control target
= control target key end

     0   :  { %vm106_vm0 = vcmask 261120   ;;  %vm119_vm1 = vcmask 257024   ;;  %v3722_v35 = vmov 0.0   ;;  %vm3723_vm2 = vmmov 0   ;;  %s5211_s0 = inlined_call_operand.vmem [shape: f32[2,36,32], index: 0, kind: input, shape index: {}]   ;;  %s5212_s4 = inlined_call_operand.vmem [shape: bf16[32,32], index: 4, kind: input, shape index: {}]   ;;  %s5213_s5 = inlined_call_operand.vmem [shape: bf16[32,32], index: 5, kind: input, shape index: {}]   ;;  %s5214_s6 = inlined_call_operand.vmem [shape: bf16[32,32], index: 6, kind: input, shape index: {}]   ;;  %s5215_s2 = inlined_call_operand.vmem [shape: f32[1,32], index: 2, kind: input, shape index: {}]   ;;  %s5216_s3 = inlined_call_operand.vmem [shape: f32[1,32], index: 3, kind: input, shape index: {}]   ;;  %s5217_s7 = inlined_call_operand.vmem [shape: f32[1,32], index: 7, kind: input, shape index: {}]   ;;  %s5218_s8 = inlined_call_operand.vmem [shape: f32[1,32], index: 8, kind: input, shape index: {}]   ;;  %s5219_s1 = inlined_call_operand.vmem [shape: f32[36,36], index: 1, kind: input, shape index: {}]   ;;  %s5220_s9 = inlined_call_operand.vmem [shape: bf16[32,32], index: 9, kind: input, shape index: {}]   ;;  %s5221_s10 = inlined_call_operand.vmem [shape: f32[1,32], index: 10, kind: input, shape index: {}]   ;;  %s5222_s13 = inlined_call_operand.vmem [shape: f32[2,36,32], index: 13, kind: output, shape index: {0}]   ;;  %s5223_s11 = inlined_call_operand.vmem [shape: f32[1,32], index: 11, kind: input, shape index: {}]   ;;  %s5224_s12 = inlined_call_operand.vmem [shape: f32[1,32], index: 12, kind: input, shape index: {}]   ;;  %s5225_s14 = inlined_call_operand.vmem [shape: f32[2,36,32], index: 14, kind: output, shape index: {1}]  }
   0x1   :  { %v101_v0 = vld [vmem:[%s5211_s0] sm:$0xff]  ;;  %v103_v1 = vld [vmem:[%s5211_s0 + $0x10] sm:$0xff]  ;;  %v102_v2 = vld [vmem:[%s5211_s0 + $0x8] sm:$0xff]  ;;  %2998 = vmatprep.subr.bf16.mxu0 %v3722_v35  ;;  %3014 = vmatprep.subr.bf16.mxu1 %v3722_v35  ;;  %vm731_vm10 = vcmask 1041408   ;;  %vm520_vm14 = vcmask 293888   ;;  %vm533_vm15 = vcmask 289792  }
   0x2   :  { %v107_v3 = vsel %vm106_vm0, %v101_v0, 0.0  ;;  %v113_v4 = vsel %vm106_vm0, %v103_v1, 0.0  ;;  %v104_v5 = vld [vmem:[%s5211_s0 + $0x18] sm:$0xff]  ;;  %v110_v6 = vsel %vm106_vm0, %v102_v2, 0.0  ;;  %v105_v8 = vld [vmem:[%s5211_s0 + $0x20] sm:$0xf]  ;;  %3002 = vmatprep.mubr.msk.bf16.mxu0 %vm3723_vm2, %v3722_v35  ;;  %3018 = vmatprep.mubr.msk.bf16.mxu1 %vm3723_vm2, %v3722_v35 }
   0x3   :  { %108 = vadd.xlane.f32.xlu0 %v107_v3  ;;  %114 = vadd.xlane.f32.xlu1 %v113_v4  ;;  %v116_v7 = vsel %vm106_vm0, %v104_v5, 0.0  ;;  %v120_v9 = vsel %vm119_vm1, %v105_v8, 0.0  ;;  %v3488_v36 = vld [vmem:[%s5212_s4] sm:$0xff]   ;;  %v3490_v38 = vld [vmem:[%s5212_s4 + $0x8] sm:$0xff]  }
   0x4   :  { %v3489_v37 = vld [vmem:[%s5213_s5] sm:$0xff]   ;;  %2999 = vmatpush3.bf16.msra.mxu0 %v3488_v36  ;;  %v3491_v39 = vld [vmem:[%s5213_s5 + $0x8] sm:$0xff]  }
   0x5   :  { %3015 = vmatpush3.bf16.msra.mxu1 %v3489_v37  ;;  %3000 = vmatprep.subr.bf16.mxu0 %v3722_v35  ;;  %v2760_v57 = vld [vmem:[%s5215_s2] ss:$0 sm:$0xff] }
   0x6   :  { %3016 = vmatprep.subr.bf16.mxu1 %v3722_v35  ;;  %v2761_v62 = vld [vmem:[%s5216_s3] ss:$0 sm:$0xff] }
   0x7   :  { %111 = vadd.xlane.f32.xlu0 %v110_v6  ;;  %117 = vadd.xlane.f32.xlu1 %v116_v7  ;;  %v3492_v7 = vld [vmem:[%s5214_s6] sm:$0xff]  }
   0x8   :  { %3001 = vmatpush3.bf16.msra.mxu0 %v3490_v38 }
   0x9   :  { %3017 = vmatpush3.bf16.msra.mxu1 %v3491_v39  ;;  %3030 = vmatprep.subr.bf16.mxu0 %v3722_v35 }
   0xa   :  { %3046 = vmatprep.subr.bf16.mxu1 %v3722_v35 }
   0xb   :  { %121 = vadd.xlane.f32.xlu0 %v120_v9 }
  0x90   :  { %v109_v10 = vpop.xlane.xlu0 %108  ;;  %v115_v11 = vpop.xlane.xlu1 %114 }
  0x91   :  { %v124_v12 = vmul.f32 0.03125, %v109_v10  ;;  %v126_v13 = vmul.f32 0.03125, %v115_v11 }
  0x93   :  { %v3819_v14 = vsub.f32 %v101_v0, %v124_v12  ;;  %v3821_v15 = vsub.f32 %v103_v1, %v126_v13  ;;  %v3493_v12 = vld [vmem:[%s5214_s6 + $0x8] sm:$0xff]  }
  0x94   :  { %v112_v16 = vpop.xlane.xlu0 %111  ;;  %v118_v17 = vpop.xlane.xlu1 %117 }
  0x95   :  { %v125_v18 = vmul.f32 0.03125, %v112_v16  ;;  %v127_v19 = vmul.f32 0.03125, %v118_v17  ;;  %v134_v20 = vmul.f32 %v3819_v14, %v3819_v14  ;;  %v136_v21 = vmul.f32 %v3821_v15, %v3821_v15 }
  0x97   :  { %v3827_v22 = vsub.f32 %v102_v2, %v125_v18  ;;  %v3829_v23 = vsub.f32 %v104_v5, %v127_v19  ;;  %v139_v24 = vsel %vm106_vm0, %v134_v20, 0.0  ;;  %v145_v27 = vsel %vm106_vm0, %v136_v21, 0.0  ;;  %v3915_v18 = vld [vmem:[%s5217_s7] ss:$0 sm:$0xff] }
  0x98   :  { %140 = vadd.xlane.f32.xlu1 %v139_v24  ;;  %v122_v25 = vpop.xlane.xlu0 %121 }
  0x99   :  { %v128_v26 = vmul.f32 0.03125, %v122_v25  ;;  %v135_v28 = vmul.f32 %v3827_v22, %v3827_v22  ;;  %v137_v29 = vmul.f32 %v3829_v23, %v3829_v23 }
  0x9b   :  { %v3837_v30 = vsub.f32 %v105_v8, %v128_v26  ;;  %v142_v31 = vsel %vm106_vm0, %v135_v28, 0.0  ;;  %v148_v32 = vsel %vm106_vm0, %v137_v29, 0.0 }
  0x9c   :  { %146 = vadd.xlane.f32.xlu1 %v145_v27  ;;  %143 = vadd.xlane.f32.xlu0 %v142_v31 }
  0x9d   :  { %v138_v33 = vmul.f32 %v3837_v30, %v3837_v30 }
  0x9f   :  { %v151_v34 = vsel %vm119_vm1, %v138_v33, 0.0 }
  0xa0   :  { %149 = vadd.xlane.f32.xlu0 %v148_v32  ;;  %152 = vadd.xlane.f32.xlu1 %v151_v34  ;;  %v52_v32 = vlaneseq }
  0xa2   :  { %v3928_v38 = vand.u32 127, %v52_v32 }
  0xa4   :  { %vm60_vm3 = vcmp.ge.s32.totalorder %v3928_v38, 8  ;;  %vm61_vm4 = vcmp.lt.s32.totalorder %v3928_v38, 16  ;;  %vm55_vm5 = vcmp.lt.s32.totalorder %v3928_v38, 8  ;;  %vm66_vm7 = vcmp.ge.s32.totalorder %v3928_v38, 16 }
  0xa5   :  { %vm62_vm6 = vmand %vm60_vm3, %vm61_vm4  ;;  %vm67_vm8 = vcmp.lt.s32.totalorder %v3928_v38, 24  ;;  %vm72_vm11 = vcmp.ge.s32.totalorder %v3928_v38, 24  ;;  %vm73_vm12 = vcmp.lt.s32.totalorder %v3928_v38, 32 }
  0xa6   :  { %vm68_vm9 = vmand %vm66_vm7, %vm67_vm8 }
  0xa7   :  { %vm74_vm13 = vmand %vm72_vm11, %vm73_vm12 }
 0x125   :  { %v141_v40 = vpop.xlane.xlu1 %140 }
 0x126   :  { %v154_v41 = vmul.f32 0.03125, %v141_v40 }
 0x128   :  { %v159_v42 = vadd.f32 1e-05, %v154_v41 }
 0x129   :  { %v147_v43 = vpop.xlane.xlu1 %146  ;;  %v144_v44 = vpop.xlane.xlu0 %143 }
 0x12a   :  { %3496 = vrsqrt.f32 %v159_v42  ;;  %v156_v45 = vmul.f32 0.03125, %v147_v43  ;;  %v155_v46 = vmul.f32 0.03125, %v144_v44 }
 0x12c   :  { %v160_v47 = vadd.f32 1e-05, %v155_v46  ;;  %v161_v48 = vadd.f32 1e-05, %v156_v45 }
 0x12d   :  { %v153_v49 = vpop.xlane.xlu1 %152  ;;  %v150_v50 = vpop.xlane.xlu0 %149 }
 0x12e   :  { %v157_v51 = vmul.f32 0.03125, %v150_v50  ;;  %3498 = vrsqrt.f32 %v160_v47  ;;  %v158_v52 = vmul.f32 0.03125, %v153_v49 }
 0x12f   :  { %3500 = vrsqrt.f32 %v161_v48 }
 0x130   :  { %v162_v53 = vadd.f32 1e-05, %v157_v51  ;;  %v163_v54 = vadd.f32 1e-05, %v158_v52 }
 0x132   :  { %3502 = vrsqrt.f32 %v162_v53 }
 0x133   :  { %3504 = vrsqrt.f32 %v163_v54 }
 0x134   :  { %v3497_v55 = vpop.eup %3496 }
 0x135   :  { %v169_v56 = vmul.f32 %v3497_v55, %v3819_v14 }
 0x137   :  { %v180_v60 = vmul.f32 %v2760_v57, %v169_v56 }
 0x138   :  { %v3499_v58 = vpop.eup %3498 }
 0x139   :  { %v170_v59 = vmul.f32 %v3499_v58, %v3827_v22  ;;  %v3501_v61 = vpop.eup %3500  ;;  %v191_v1 = vadd.f32 %v2761_v62, %v180_v60  ;;  %v2757_v58 = vsel %vm62_vm6, 1.0, %v3722_v35 }
 0x13a   :  { %v171_v3 = vmul.f32 %v3501_v61, %v3821_v15  ;;  %v3953_v61 = vpack.c.bf16 %v2757_v58, %v2757_v58 }
 0x13b   :  { %v181_v63 = vmul.f32 %v2760_v57, %v170_v59 }
 0x13c   :  { %v3503_v0 = vpop.eup %3502  ;;  %v182_v9 = vmul.f32 %v2760_v57, %v171_v3 }
 0x13d   :  { %v192_v2 = vadd.f32 %v2761_v62, %v181_v63  ;;  %v172_v4 = vmul.f32 %v3503_v0, %v3829_v23  ;;  %v3505_v8 = vpop.eup %3504 }
 0x13e   :  { %v173_v11 = vmul.f32 %v3505_v8, %v3837_v30  ;;  %v193_v13 = vadd.f32 %v2761_v62, %v182_v9 }
 0x13f   :  { %v196_v5 = vpack.c.bf16 %v192_v2, %v191_v1  ;;  %v183_v6 = vmul.f32 %v2760_v57, %v172_v4 }
 0x140   :  { %v184_v15 = vmul.f32 %v2760_v57, %v173_v11  ;;  %v2756_v57 = vsel %vm55_vm5, 1.0, %v3722_v35 }
 0x141   :  { %3003 = vmatmul.mubr.msk.bf16.vlgmr.msra.gmra.mrb[0].mxu0 %vm106_vm0, %v196_v5  ;;  %3019 = vmatmul.mubr.msk.bf16.vlgmr.msra.gmra.mrb[0].mxu1 %vm106_vm0, %v196_v5  ;;  %v194_v10 = vadd.f32 %v2761_v62, %v183_v6  ;;  %v3951_v60 = vpack.c.bf16 %v2756_v57, %v2756_v57 }
 0x142   :  { %3006 = vmatprep.mubr.msk.bf16.mxu0 %vm3723_vm2, %v3722_v35  ;;  %3022 = vmatprep.mubr.msk.bf16.mxu1 %vm3723_vm2, %v3722_v35  ;;  %v195_v16 = vadd.f32 %v2761_v62, %v184_v15  ;;  %v2773_v62 = vld [vmem:[%s5218_s8] ss:$0 sm:$0xff] }
 0x143   :  { %3031 = vmatpush3.bf16.msra.mxu0 %v3492_v7  ;;  %v197_v14 = vpack.c.bf16 %v194_v10, %v193_v13 }
 0x144   :  { %3032 = vmatprep.subr.bf16.mxu0 %v3722_v35  ;;  %v198_v17 = vpack.c.bf16 %v195_v16, %v195_v16 }
 0x147   :  { %3033 = vmatpush3.bf16.msra.mxu0 %v3493_v12 }
 0x148   :  { %3064 = vmatprep.subr.bf16.mxu0 %v3722_v35 }
 0x149   :  { %3007 = vmatmul.mubr.msk.bf16.gmra.mrb[4].mxu0 %vm106_vm0, %v197_v14  ;;  %3023 = vmatmul.mubr.msk.bf16.gmra.mrb[4].mxu1 %vm106_vm0, %v197_v14 }
 0x14a   :  { %3010 = vmatprep.mubr.msk.bf16.mxu0 %vm3723_vm2, %v3722_v35  ;;  %3026 = vmatprep.mubr.msk.bf16.mxu1 %vm3723_vm2, %v3722_v35 }
 0x151   :  { %3011 = vmatmul.mubr.msk.bf16.gmra.mrb[8].mxu0 %vm106_vm0, %v198_v17  ;;  %3027 = vmatmul.mubr.msk.bf16.gmra.mrb[8].mxu1 %vm106_vm0, %v198_v17 }
 0x152   :  { %3034 = vmatprep.mubr.msk.bf16.mxu0 %vm3723_vm2, %v3722_v35  ;;  %3052 = vmatprep.mubr.msk.bf16.mxu1 %vm3723_vm2, %v3722_v35 }
 0x159   :  { %3035 = vmatmul.mubr.msk.bf16.vlgmr.msra.gmra.mrb[12].mxu0 %vm106_vm0, %v196_v5 }
 0x15a   :  { %3038 = vmatprep.mubr.msk.bf16.mxu0 %vm3723_vm2, %v3722_v35 }
 0x161   :  { %3039 = vmatmul.mubr.msk.bf16.gmra.mrb[16].mxu0 %vm106_vm0, %v197_v14 }
 0x162   :  { %3042 = vmatprep.mubr.msk.bf16.mxu0 %vm3723_vm2, %v3722_v35 }
 0x169   :  { %3043 = vmatmul.mubr.msk.bf16.gmra.mrb[20].mxu0 %vm106_vm0, %v198_v17 }
 0x16a   :  { %3070 = vmatprep.mubr.msk.bf16.mxu0 %vm3723_vm2, %v3722_v35 }
 0x214   :  { %v260_v19 = vpop.f32.mrb[0].mxu0  ;;  %v331_v20 = vpop.f32.mrb[0].mxu1 }
 0x215   :  { %v3004_v21 = vpop.f32.mrb[1].mxu0  ;;  %v3020_v22 = vpop.f32.mrb[1].mxu1  ;;  %v261_v25 = vadd.f32 %v3915_v18, %v260_v19 }
 0x216   :  { %v263_v23 = vpop.f32.mrb[2].mxu0  ;;  %v334_v24 = vpop.f32.mrb[2].mxu1 }
 0x217   :  { %v264_v26 = vadd.f32 %v3915_v18, %v263_v23  ;;  %v353_v27 = vpack.c.bf16 %v334_v24, %v331_v20  ;;  %v3005_v28 = vpop.f32.mrb[3].mxu0  ;;  %v3021_v29 = vpop.f32.mrb[3].mxu1 }
 0x218   :  { %v2758_v29 = vsel %vm68_vm9, 1.0, %v3722_v35 }
 0x219   :  { %v3919_v30 = vpack.c.bf16 %v264_v26, %v261_v25  ;;  %v3922_v31 = vsel %vm106_vm0, %v353_v27, 0 }
 0x21a   :  { %3047 = vmatpush3.bf16.xpose.msra.mxu1 %v3922_v31  ;;  %3065 = vmatpush3.bf16.xpose.msra.mxu0 %v3922_v31 }
 0x21b   :  { %3048 = vmatprep.subr.bf16.mxu1 %v3722_v35  ;;  %3066 = vmatprep.subr.bf16.mxu0 %v3722_v35  ;;  %v433_v2 = vmul.bf16 %v3919_v30, %v3951_v60  ;;  %v583_v3 = vmul.bf16 %v3919_v30, %v3953_v61 }
 0x21c   :  { %v268_v33 = vpop.f32.mrb[4].mxu0  ;;  %v339_v34 = vpop.f32.mrb[4].mxu1 }
 0x21d   :  { %v3008_v36 = vpop.f32.mrb[5].mxu0  ;;  %v3024_v37 = vpop.f32.mrb[5].mxu1  ;;  %v269_v41 = vadd.f32 %v3915_v18, %v268_v33  ;;  %v4009_v33 = vpack.c.bf16 %v2758_v29, %v2758_v29 }
 0x21e   :  { %v271_v39 = vpop.f32.mrb[6].mxu0  ;;  %v342_v40 = vpop.f32.mrb[6].mxu1 }
 0x21f   :  { %v272_v42 = vadd.f32 %v3915_v18, %v271_v39  ;;  %v354_v43 = vpack.c.bf16 %v342_v40, %v339_v34  ;;  %v3009_v44 = vpop.f32.mrb[7].mxu0  ;;  %v3025_v45 = vpop.f32.mrb[7].mxu1  ;;  %v859_v36 = vmul.bf16 %v3919_v30, %v4009_v33  ;;  %v2759_v39 = vsel %vm74_vm13, 1.0, %v3722_v35 }
 0x220   :  { %v4038_v38 = vpack.c.bf16 %v2759_v39, %v2759_v39  ;;  %v4058_v44 = vld [vmem:[%s5219_s1] sm:$0xff] }
 0x221   :  { %v3932_v46 = vpack.c.bf16 %v272_v42, %v269_v41  ;;  %v3935_v47 = vsel %vm106_vm0, %v354_v43, 0 }
 0x222   :  { %3049 = vmatpush3.bf16.xpose.msra.mxu1 %v3935_v47  ;;  %3067 = vmatpush3.bf16.xpose.msra.mxu0 %v3935_v47  ;;  %v1071_v40 = vmul.bf16 %v3919_v30, %v4038_v38 }
 0x223   :  { %3050 = vmatprep.subr.bf16.mxu1 %v3722_v35  ;;  %3068 = vmatprep.subr.bf16.mxu0 %v3722_v35  ;;  %v434_v12 = vmul.bf16 %v3932_v46, %v3951_v60  ;;  %v584_v17 = vmul.bf16 %v3932_v46, %v3953_v61  ;;  %v860_v37 = vmul.bf16 %v3932_v46, %v4009_v33 }
 0x224   :  { %v276_v48 = vpop.f32.mrb[8].mxu0  ;;  %v347_v49 = vpop.f32.mrb[8].mxu1  ;;  %v1072_v41 = vmul.bf16 %v3932_v46, %v4038_v38 }
 0x225   :  { %v355_v50 = vpack.c.bf16 %v347_v49, %v347_v49  ;;  %v3012_v51 = vpop.f32.mrb[9].mxu0  ;;  %v3028_v52 = vpop.f32.mrb[9].mxu1  ;;  %v277_v13 = vadd.f32 %v3915_v18, %v276_v48 }
 0x226   :  { %v279_v53 = vpop.f32.mrb[10].mxu0  ;;  %v350_v54 = vpop.f32.mrb[10].mxu1 }
 0x227   :  { %v3013_v55 = vpop.f32.mrb[11].mxu0  ;;  %v3029_v56 = vpop.f32.mrb[11].mxu1  ;;  %v3947_v59 = vsel %vm106_vm0, %v355_v50, 0  ;;  %v284_v18 = vpack.c.bf16 %v277_v13, %v277_v13  ;;  %v4063_v50 = vld [vmem:[%s5219_s1 + $0x8] sm:$0xff] }
 0x229   :  { %v435_v27 = vmul.bf16 %v284_v18, %v3951_v60  ;;  %v585_v28 = vmul.bf16 %v284_v18, %v3953_v61  ;;  %v1073_v42 = vmul.bf16 %v284_v18, %v4038_v38 }
 0x22a   :  { %3051 = vmatpush3.bf16.xpose.msra.mxu1 %v3947_v59  ;;  %3069 = vmatpush3.bf16.xpose.msra.mxu0 %v3947_v59 }
 0x22b   :  { %3118 = vmatprep.subr.bf16.mxu0 %v3722_v35  ;;  %3082 = vmatprep.subr.bf16.mxu1 %v3722_v35 }
 0x22c   :  { %v408_v63 = vpop.f32.mrb[12].mxu0 }
 0x22d   :  { %v3036_v0 = vpop.f32.mrb[13].mxu0  ;;  %v409_v4 = vadd.f32 %v2773_v62, %v408_v63 }
 0x22e   :  { %v411_v1 = vpop.f32.mrb[14].mxu0 }
 0x22f   :  { %v412_v5 = vadd.f32 %v2773_v62, %v411_v1  ;;  %v3037_v6 = vpop.f32.mrb[15].mxu0 }
 0x231   :  { %v3964_v7 = vpack.c.bf16 %v412_v5, %v409_v4  ;;  %3053 = vmatmul.mubr.msk.bf16.vlgmr.msra.gmra.mrb[12].mxu1 %vm106_vm0, %v433_v2  ;;  %3071 = vmatmul.mubr.msk.bf16.vlgmr.msra.gmra.mrb[24].mxu0 %vm106_vm0, %v583_v3  ;;  %v4083_v4 = vld [vmem:[%s5219_s1 + $0x18] sm:$0xff] }
 0x232   :  { %3119 = vmatpush3.bf16.xpose.msra.mxu0 %v3922_v31  ;;  %3056 = vmatprep.mubr.msk.bf16.mxu1 %vm3723_vm2, %v3722_v35 }
 0x233   :  { %v719_v8 = vmul.bf16 %v3964_v7, %v3953_v61  ;;  %3074 = vmatprep.mubr.msk.bf16.mxu0 %vm3723_vm2, %v3722_v35  ;;  %3120 = vmatprep.subr.bf16.mxu0 %v3722_v35 }
 0x234   :  { %v416_v9 = vpop.f32.mrb[16].mxu0 }
 0x235   :  { %v3040_v10 = vpop.f32.mrb[17].mxu0  ;;  %3083 = vmatpush3.bf16.msra.mxu1 %v719_v8  ;;  %v417_v14 = vadd.f32 %v2773_v62, %v416_v9 }
 0x236   :  { %v419_v11 = vpop.f32.mrb[18].mxu0  ;;  %3084 = vmatprep.subr.bf16.mxu1 %v3722_v35 }
 0x237   :  { %v420_v15 = vadd.f32 %v2773_v62, %v419_v11  ;;  %v3041_v16 = vpop.f32.mrb[19].mxu0 }
 0x239   :  { %v3982_v19 = vpack.c.bf16 %v420_v15, %v417_v14  ;;  %3057 = vmatmul.mubr.msk.bf16.gmra.mrb[16].mxu1 %vm106_vm0, %v434_v12  ;;  %3075 = vmatmul.mubr.msk.bf16.gmra.mrb[28].mxu0 %vm106_vm0, %v584_v17 }
 0x23a   :  { %3121 = vmatpush3.bf16.xpose.msra.mxu0 %v3935_v47  ;;  %3060 = vmatprep.mubr.msk.bf16.mxu1 %vm3723_vm2, %v3722_v35 }
 0x23b   :  { %v720_v20 = vmul.bf16 %v3982_v19, %v3953_v61  ;;  %3078 = vmatprep.mubr.msk.bf16.mxu0 %vm3723_vm2, %v3722_v35  ;;  %3122 = vmatprep.subr.bf16.mxu0 %v3722_v35 }
 0x23c   :  { %v424_v21 = vpop.f32.mrb[20].mxu0 }
 0x23d   :  { %v425_v22 = vadd.f32 %v2773_v62, %v424_v21  ;;  %v3044_v23 = vpop.f32.mrb[21].mxu0  ;;  %3085 = vmatpush3.bf16.msra.mxu1 %v720_v20  ;;  %v4078_v62 = vld [vmem:[%s5219_s1 + $0x10] sm:$0xff] }
 0x23e   :  { %v427_v24 = vpop.f32.mrb[22].mxu0  ;;  %3086 = vmatprep.subr.bf16.mxu1 %v3722_v35 }
 0x23f   :  { %v3997_v25 = vpack.c.bf16 %v425_v22, %v425_v22  ;;  %v3045_v26 = vpop.f32.mrb[23].mxu0 }
 0x241   :  { %3061 = vmatmul.mubr.msk.bf16.gmra.mrb[20].mxu1 %vm106_vm0, %v435_v27  ;;  %3079 = vmatmul.mubr.msk.bf16.gmra.mrb[32].mxu0 %vm106_vm0, %v585_v28  ;;  %v721_v32 = vmul.bf16 %v3997_v25, %v3953_v61 }
 0x242   :  { %3123 = vmatpush3.bf16.xpose.msra.mxu0 %v3947_v59  ;;  %3124 = vmatprep.mubr.msk.bf16.mxu0 %vm3723_vm2, %v3722_v35 }
 0x243   :  { %v733_v34 = vsel %vm731_vm10, %v721_v32, 0  ;;  %3154 = vmatprep.subr.bf16.mxu0 %v3722_v35  ;;  %3088 = vmatprep.mubr.msk.bf16.mxu1 %vm3723_vm2, %v3722_v35 }
 0x244   :  { %3087 = vmatpush3.bf16.msra.mxu1 %v733_v34 }
 0x245   :  { %3100 = vmatprep.subr.bf16.mxu1 %v3722_v35 }
 0x249   :  { %3125 = vmatmul.mubr.msk.bf16.vlgmr.msra.gmra.mrb[36].mxu0 %vm106_vm0, %v859_v36 }
 0x24a   :  { %3155 = vmatpush3.bf16.xpose.msra.mxu0 %v3922_v31  ;;  %3128 = vmatprep.mubr.msk.bf16.mxu0 %vm3723_vm2, %v3722_v35  ;;  %v861_v31 = vmul.bf16 %v284_v18, %v4009_v33  ;;  %v4101_v18 = vld [vmem:[%s5219_s1 + $0x20] sm:$0xf] }
 0x24b   :  { %3156 = vmatprep.subr.bf16.mxu0 %v3722_v35 }
 0x251   :  { %3129 = vmatmul.mubr.msk.bf16.gmra.mrb[40].mxu0 %vm106_vm0, %v860_v37 }
 0x252   :  { %3157 = vmatpush3.bf16.xpose.msra.mxu0 %v3935_v47  ;;  %3132 = vmatprep.mubr.msk.bf16.mxu0 %vm3723_vm2, %v3722_v35 }
 0x253   :  { %3158 = vmatprep.subr.bf16.mxu0 %v3722_v35 }
 0x259   :  { %3133 = vmatmul.mubr.msk.bf16.gmra.mrb[44].mxu0 %vm106_vm0, %v861_v31 }
 0x25a   :  { %3159 = vmatpush3.bf16.xpose.msra.mxu0 %v3947_v59  ;;  %3160 = vmatprep.mubr.msk.bf16.mxu0 %vm3723_vm2, %v3722_v35 }
 0x25b   :  { %3190 = vmatprep.subr.bf16.mxu0 %v3722_v35 }
 0x261   :  { %3161 = vmatmul.mubr.msk.bf16.vlgmr.msra.gmra.mrb[48].mxu0 %vm106_vm0, %v1071_v40 }
 0x262   :  { %3164 = vmatprep.mubr.msk.bf16.mxu0 %vm3723_vm2, %v3722_v35 }
 0x269   :  { %3165 = vmatmul.mubr.msk.bf16.gmra.mrb[52].mxu0 %vm106_vm0, %v1072_v41 }
 0x26a   :  { %3168 = vmatprep.mubr.msk.bf16.mxu0 %vm3723_vm2, %v3722_v35 }
 0x271   :  { %3169 = vmatmul.mubr.msk.bf16.gmra.mrb[56].mxu0 %vm106_vm0, %v1073_v42 }
 0x272   :  { %3194 = vmatprep.mubr.msk.bf16.mxu0 %vm3723_vm2, %v3722_v35 }
 0x304   :  { %v488_v30 = vpop.f32.mrb[12].mxu1  ;;  %v629_v43 = vpop.f32.mrb[24].mxu0 }
 0x305   :  { %v651_v45 = vmul.f32 0.35355338, %v629_v43  ;;  %v3054_v46 = vpop.f32.mrb[13].mxu1  ;;  %v3072_v47 = vpop.f32.mrb[25].mxu0  ;;  %v510_v5 = vmul.f32 0.35355338, %v488_v30 }
 0x306   :  { %v491_v48 = vpop.f32.mrb[14].mxu1  ;;  %v632_v49 = vpop.f32.mrb[26].mxu0 }
 0x307   :  { %v652_v51 = vmul.f32 0.35355338, %v632_v49  ;;  %v3055_v52 = vpop.f32.mrb[15].mxu1  ;;  %v3073_v53 = vpop.f32.mrb[27].mxu0  ;;  %v4066_v54 = vadd.f32 %v651_v45, %v4058_v44  ;;  %v4096_v15 = vadd.f32 %v510_v5, %v4058_v44  ;;  %v511_v20 = vmul.f32 0.35355338, %v491_v48 }
 0x309   :  { %v661_v55 = vsel %vm520_vm14, %v4066_v54, -inf  ;;  %v4071_v56 = vadd.f32 %v652_v51, %v4063_v50  ;;  %v521_v32 = vsel %vm520_vm14, %v4096_v15, -inf  ;;  %v4114_v39 = vadd.f32 %v511_v20, %v4063_v50 }
 0x30a   :  { %662 = vmax.xlane.f32.xlu0 %v661_v55 }
 0x30b   :  { %v664_v57 = vsel %vm520_vm14, %v4071_v56, -inf  ;;  %v524_v45 = vsel %vm520_vm14, %v4114_v39, -inf }
 0x30c   :  { %v496_v58 = vpop.f32.mrb[16].mxu1  ;;  %665 = vmax.xlane.f32.xlu1 %v664_v57  ;;  %v637_v59 = vpop.f32.mrb[28].mxu0 }
 0x30d   :  { %v653_v63 = vmul.f32 0.35355338, %v637_v59  ;;  %v3058_v0 = vpop.f32.mrb[17].mxu1  ;;  %v3076_v1 = vpop.f32.mrb[29].mxu0  ;;  %v512_v13 = vmul.f32 0.35355338, %v496_v58 }
 0x30e   :  { %v499_v2 = vpop.f32.mrb[18].mxu1  ;;  %v640_v3 = vpop.f32.mrb[30].mxu0 }
 0x30f   :  { %v654_v6 = vmul.f32 0.35355338, %v640_v3  ;;  %v3059_v8 = vpop.f32.mrb[19].mxu1  ;;  %v3077_v9 = vpop.f32.mrb[31].mxu0  ;;  %v4086_v10 = vadd.f32 %v653_v63, %v4078_v62  ;;  %v4109_v36 = vadd.f32 %v512_v13, %v4078_v62  ;;  %v513_v37 = vmul.f32 0.35355338, %v499_v2 }
 0x311   :  { %v667_v11 = vsel %vm520_vm14, %v4086_v10, -inf  ;;  %v4091_v12 = vadd.f32 %v654_v6, %v4083_v4  ;;  %v527_v40 = vsel %vm520_vm14, %v4109_v36, -inf  ;;  %v4124_v46 = vadd.f32 %v513_v37, %v4083_v4 }
 0x312   :  { %668 = vmax.xlane.f32.xlu0 %v667_v11 }
 0x313   :  { %v670_v14 = vsel %vm520_vm14, %v4091_v12, -inf  ;;  %v530_v52 = vsel %vm520_vm14, %v4124_v46, -inf }
 0x314   :  { %v504_v16 = vpop.f32.mrb[20].mxu1  ;;  %671 = vmax.xlane.f32.xlu1 %v670_v14  ;;  %v645_v17 = vpop.f32.mrb[32].mxu0 }
 0x315   :  { %v655_v21 = vmul.f32 0.35355338, %v645_v17  ;;  %v3062_v22 = vpop.f32.mrb[21].mxu1  ;;  %v3080_v23 = vpop.f32.mrb[33].mxu0  ;;  %v514_v27 = vmul.f32 0.35355338, %v504_v16 }
 0x316   :  { %v507_v24 = vpop.f32.mrb[22].mxu1  ;;  %v648_v26 = vpop.f32.mrb[34].mxu0 }
 0x317   :  { %v3063_v28 = vpop.f32.mrb[23].mxu1  ;;  %v3081_v29 = vpop.f32.mrb[35].mxu0  ;;  %v4106_v34 = vadd.f32 %v655_v21, %v4101_v18  ;;  %v4119_v41 = vadd.f32 %v514_v27, %v4101_v18 }
 0x318   :  { %522 = vmax.xlane.f32.xlu1 %v521_v32 }
 0x319   :  { %v673_v31 = vsel %vm533_vm15, %v4106_v34, -inf  ;;  %v534_v51 = vsel %vm533_vm15, %v4119_v41, -inf }
 0x31a   :  { %674 = vmax.xlane.f32.xlu0 %v673_v31 }
 0x31c   :  { %528 = vmax.xlane.f32.xlu1 %v527_v40  ;;  %v905_v42 = vpop.f32.mrb[36].mxu0 }
 0x31d   :  { %v927_v30 = vmul.f32 0.35355338, %v905_v42  ;;  %v3126_v43 = vpop.f32.mrb[37].mxu0 }
 0x31e   :  { %525 = vmax.xlane.f32.xlu0 %v524_v45  ;;  %v908_v47 = vpop.f32.mrb[38].mxu0 }
 0x31f   :  { %v928_v48 = vmul.f32 0.35355338, %v908_v47  ;;  %v3127_v49 = vpop.f32.mrb[39].mxu0  ;;  %v4134_v55 = vadd.f32 %v927_v30, %v4058_v44 }
 0x320   :  { %535 = vmax.xlane.f32.xlu1 %v534_v51 }
 0x321   :  { %v4131_v53 = vadd.f32 %v928_v48, %v4063_v50  ;;  %v937_v0 = vsel %vm520_vm14, %v4134_v55, -inf }
 0x322   :  { %531 = vmax.xlane.f32.xlu0 %v530_v52 }
 0x323   :  { %v940_v57 = vsel %vm520_vm14, %v4131_v53, -inf }
 0x324   :  { %941 = vmax.xlane.f32.xlu1 %v940_v57  ;;  %v913_v58 = vpop.f32.mrb[40].mxu0 }
 0x325   :  { %v929_v59 = vmul.f32 0.35355338, %v913_v58  ;;  %v3130_v63 = vpop.f32.mrb[41].mxu0 }
 0x326   :  { %938 = vmax.xlane.f32.xlu0 %v937_v0  ;;  %v916_v1 = vpop.f32.mrb[42].mxu0 }
 0x327   :  { %v930_v2 = vmul.f32 0.35355338, %v916_v1  ;;  %v3131_v3 = vpop.f32.mrb[43].mxu0  ;;  %v4141_v5 = vadd.f32 %v929_v59, %v4078_v62 }
 0x329   :  { %v943_v6 = vsel %vm520_vm14, %v4141_v5, -inf  ;;  %v4146_v8 = vadd.f32 %v930_v2, %v4083_v4 }
 0x32a   :  { %944 = vmax.xlane.f32.xlu0 %v943_v6 }
 0x32b   :  { %v946_v9 = vsel %vm520_vm14, %v4146_v8, -inf }
 0x32c   :  { %947 = vmax.xlane.f32.xlu1 %v946_v9  ;;  %v921_v11 = vpop.f32.mrb[44].mxu0 }
 0x32d   :  { %v931_v13 = vmul.f32 0.35355338, %v921_v11  ;;  %v3134_v14 = vpop.f32.mrb[45].mxu0 }
 0x32e   :  { %v924_v16 = vpop.f32.mrb[46].mxu0 }
 0x32f   :  { %v3135_v17 = vpop.f32.mrb[47].mxu0  ;;  %v4151_v20 = vadd.f32 %v931_v13, %v4101_v18 }
 0x331   :  { %v949_v21 = vsel %vm533_vm15, %v4151_v20, -inf }
 0x332   :  { %950 = vmax.xlane.f32.xlu0 %v949_v21 }
 0x334   :  { %v1117_v22 = vpop.f32.mrb[48].mxu0 }
 0x335   :  { %v1139_v23 = vmul.f32 0.35355338, %v1117_v22  ;;  %v3162_v24 = vpop.f32.mrb[49].mxu0 }
 0x336   :  { %v1120_v26 = vpop.f32.mrb[50].mxu0 }
 0x337   :  { %v1140_v27 = vmul.f32 0.35355338, %v1120_v26  ;;  %v3163_v28 = vpop.f32.mrb[51].mxu0  ;;  %v4156_v29 = vadd.f32 %v1139_v23, %v4058_v44 }
 0x339   :  { %v1149_v32 = vsel %vm520_vm14, %v4156_v29, -inf  ;;  %v4161_v37 = vadd.f32 %v1140_v27, %v4063_v50 }
 0x33a   :  { %1150 = vmax.xlane.f32.xlu1 %v1149_v32 }
 0x33b   :  { %v1152_v31 = vsel %vm520_vm14, %v4161_v37, -inf }
 0x33c   :  { %1153 = vmax.xlane.f32.xlu0 %v1152_v31  ;;  %v1125_v40 = vpop.f32.mrb[52].mxu0 }
 0x33d   :  { %v1141_v42 = vmul.f32 0.35355338, %v1125_v40  ;;  %v3166_v30 = vpop.f32.mrb[53].mxu0 }
 0x33e   :  { %v1128_v43 = vpop.f32.mrb[54].mxu0 }
 0x33f   :  { %v1142_v45 = vmul.f32 0.35355338, %v1128_v43  ;;  %v3167_v47 = vpop.f32.mrb[55].mxu0  ;;  %v4166_v44 = vadd.f32 %v1141_v42, %v4078_v62 }
 0x341   :  { %v1155_v48 = vsel %vm520_vm14, %v4166_v44, -inf  ;;  %v4171_v50 = vadd.f32 %v1142_v45, %v4083_v4 }
 0x342   :  { %1156 = vmax.xlane.f32.xlu1 %v1155_v48 }
 0x343   :  { %v1158_v49 = vsel %vm520_vm14, %v4171_v50, -inf }
 0x344   :  { %1159 = vmax.xlane.f32.xlu0 %v1158_v49  ;;  %v1133_v51 = vpop.f32.mrb[56].mxu0 }
 0x345   :  { %v3170_v52 = vpop.f32.mrb[57].mxu0  ;;  %v1143_v13 = vmul.f32 0.35355338, %v1133_v51 }
 0x346   :  { %v1136_v57 = vpop.f32.mrb[58].mxu0 }
 0x347   :  { %v3171_v58 = vpop.f32.mrb[59].mxu0  ;;  %v4185_v22 = vadd.f32 %v1143_v13, %v4101_v18 }
 0x349   :  { %v1161_v18 = vsel %vm533_vm15, %v4185_v22, -inf }
 0x397   :  { %v663_v59 = vpop.xlane.xlu0 %662 }
 0x398   :  { %v676_v63 = vsub.f32 %v4066_v54, %v663_v59 }
 0x399   :  { %v666_v62 = vpop.xlane.xlu1 %665 }
 0x39a   :  { %v681_v0 = vmul.f32 1.442695, %v676_v63  ;;  %v677_v1 = vsub.f32 %v4071_v56, %v666_v62 }
 0x39c   :  { %3506 = vpow2.f32 %v681_v0  ;;  %v683_v2 = vmul.f32 1.442695, %v677_v1 }
 0x39e   :  { %3508 = vpow2.f32 %v683_v2 }
 0x39f   :  { %v669_v4 = vpop.xlane.xlu0 %668 }
 0x3a0   :  { %v678_v3 = vsub.f32 %v4086_v10, %v669_v4 }
 0x3a1   :  { %v672_v6 = vpop.xlane.xlu1 %671 }
 0x3a2   :  { %v685_v9 = vmul.f32 1.442695, %v678_v3  ;;  %v679_v11 = vsub.f32 %v4091_v12, %v672_v6 }
 0x3a4   :  { %3510 = vpow2.f32 %v685_v9  ;;  %v687_v14 = vmul.f32 1.442695, %v679_v11 }
 0x3a5   :  { %v523_v16 = vpop.xlane.xlu1 %522 }
 0x3a6   :  { %v4179_v17 = vpop.eup %3506  ;;  %3512 = vpow2.f32 %v687_v14  ;;  %v537_v54 = vsub.f32 %v4096_v15, %v523_v16 }
 0x3a7   :  { %v675_v56 = vpop.xlane.xlu0 %674  ;;  %v691_v21 = vsel %vm520_vm14, %v4179_v17, 0.0 }
 0x3a8   :  { %v4187_v10 = vpop.eup %3508  ;;  %v542_v23 = vmul.f32 1.442695, %v537_v54  ;;  %v680_v12 = vsub.f32 %v4106_v34, %v675_v56  ;;  %692 = vadd.xlane.f32.xlu1 %v691_v21 }
 0x3a9   :  { %v529_v24 = vpop.xlane.xlu1 %528  ;;  %v694_v26 = vsel %vm520_vm14, %v4187_v10, 0.0 }
 0x3aa   :  { %3514 = vpow2.f32 %v542_v23  ;;  %v689_v27 = vmul.f32 1.442695, %v680_v12  ;;  %v539_v15 = vsub.f32 %v4109_v36, %v529_v24  ;;  %695 = vadd.xlane.f32.xlu0 %v694_v26 }
 0x3ab   :  { %v526_v28 = vpop.xlane.xlu0 %525 }
 0x3ac   :  { %3516 = vpow2.f32 %v689_v27  ;;  %v546_v32 = vmul.f32 1.442695, %v539_v15  ;;  %v538_v31 = vsub.f32 %v4114_v39, %v526_v28  ;;  %1162 = vmax.xlane.f32.xlu1 %v1161_v18 }
 0x3ad   :  { %v536_v34 = vpop.xlane.xlu1 %535 }
 0x3ae   :  { %v4196_v40 = vpop.eup %3510  ;;  %3518 = vpow2.f32 %v546_v32  ;;  %v544_v42 = vmul.f32 1.442695, %v538_v31  ;;  %v541_v30 = vsub.f32 %v4119_v41, %v536_v34 }
 0x3af   :  { %v532_v43 = vpop.xlane.xlu0 %531  ;;  %v697_v36 = vsel %vm520_vm14, %v4196_v40, 0.0 }
 0x3b0   :  { %v4201_v45 = vpop.eup %3512  ;;  %3520 = vpow2.f32 %v544_v42  ;;  %v550_v47 = vmul.f32 1.442695, %v541_v30  ;;  %v540_v48 = vsub.f32 %v4124_v46, %v532_v43  ;;  %698 = vadd.xlane.f32.xlu0 %v697_v36 }
 0x3b1   :  { %v942_v39 = vpop.xlane.xlu1 %941  ;;  %v700_v49 = vsel %vm520_vm14, %v4201_v45, 0.0 }
 0x3b2   :  { %3522 = vpow2.f32 %v550_v47  ;;  %v548_v51 = vmul.f32 1.442695, %v540_v48  ;;  %v953_v52 = vsub.f32 %v4131_v53, %v942_v39  ;;  %701 = vadd.xlane.f32.xlu1 %v700_v49 }
 0x3b3   :  { %v939_v41 = vpop.xlane.xlu0 %938 }
 0x3b4   :  { %v4207_v57 = vpop.eup %3514  ;;  %3524 = vpow2.f32 %v548_v51  ;;  %v959_v58 = vmul.f32 1.442695, %v953_v52  ;;  %v952_v59 = vsub.f32 %v4134_v55, %v939_v41 }
 0x3b5   :  { %v552_v46 = vsel %vm520_vm14, %v4207_v57, 0.0 }
 0x3b6   :  { %v4212_v63 = vpop.eup %3516  ;;  %3526 = vpow2.f32 %v959_v58  ;;  %v957_v62 = vmul.f32 1.442695, %v952_v59  ;;  %553 = vadd.xlane.f32.xlu1 %v552_v46  ;;  %v4276_v46 = vld [vmem:[%s5211_s0 + $0x28] sm:$0xff] }
 0x3b7   :  { %v945_v0 = vpop.xlane.xlu0 %944  ;;  %v703_v53 = vsel %vm533_vm15, %v4212_v63, 0.0 }
 0x3b8   :  { %v4216_v1 = vpop.eup %3518  ;;  %3528 = vpow2.f32 %v957_v62  ;;  %v954_v2 = vsub.f32 %v4141_v5, %v945_v0  ;;  %704 = vadd.xlane.f32.xlu0 %v703_v53  ;;  %v1477_v0 = vsel %vm106_vm0, %v4276_v46, 0.0  ;;  %v4285_v53 = vld [vmem:[%s5211_s0 + $0x38] sm:$0xff] }
 0x3b9   :  { %v948_v4 = vpop.xlane.xlu1 %947  ;;  %v558_v55 = vsel %vm520_vm14, %v4216_v1, 0.0 }
 0x3ba   :  { %v4221_v3 = vpop.eup %3520  ;;  %v961_v6 = vmul.f32 1.442695, %v954_v2  ;;  %v955_v9 = vsub.f32 %v4146_v8, %v948_v4  ;;  %559 = vadd.xlane.f32.xlu1 %v558_v55  ;;  %v1483_v2 = vsel %vm106_vm0, %v4285_v53, 0.0  ;;  %v4292_v4 = vld [vmem:[%s5211_s0 + $0x48] sm:$0xf] }
 0x3bb   :  { %v555_v11 = vsel %vm520_vm14, %v4221_v3, 0.0  ;;  %v1489_v55 = vsel %vm119_vm1, %v4292_v4, 0.0 }
 0x3bc   :  { %v4226_v13 = vpop.eup %3522  ;;  %3530 = vpow2.f32 %v961_v6  ;;  %v963_v14 = vmul.f32 1.442695, %v955_v9  ;;  %556 = vadd.xlane.f32.xlu0 %v555_v11 }
 0x3bd   :  { %v564_v5 = vsel %vm533_vm15, %v4226_v13, 0.0 }
 0x3be   :  { %v4230_v16 = vpop.eup %3524  ;;  %3532 = vpow2.f32 %v963_v14  ;;  %565 = vadd.xlane.f32.xlu1 %v564_v5 }
 0x3bf   :  { %v951_v54 = vpop.xlane.xlu0 %950  ;;  %v561_v8 = vsel %vm520_vm14, %v4230_v16, 0.0 }
 0x3c0   :  { %v4234_v56 = vpop.eup %3526  ;;  %v956_v21 = vsub.f32 %v4151_v20, %v951_v54  ;;  %562 = vadd.xlane.f32.xlu0 %v561_v8 }
 0x3c1   :  { %v970_v23 = vsel %vm520_vm14, %v4234_v56, 0.0 }
 0x3c2   :  { %v4239_v12 = vpop.eup %3528  ;;  %v965_v24 = vmul.f32 1.442695, %v956_v21  ;;  %971 = vadd.xlane.f32.xlu1 %v970_v23 }
 0x3c3   :  { %v967_v26 = vsel %vm520_vm14, %v4239_v12, 0.0 }
 0x3c4   :  { %3534 = vpow2.f32 %v965_v24  ;;  %968 = vadd.xlane.f32.xlu0 %v967_v26 }
 0x3c6   :  { %v4243_v27 = vpop.eup %3530 }
 0x3c7   :  { %v1151_v15 = vpop.xlane.xlu1 %1150  ;;  %v973_v28 = vsel %vm520_vm14, %v4243_v27, 0.0 }
 0x3c8   :  { %v4247_v20 = vpop.eup %3532  ;;  %v1164_v18 = vsub.f32 %v4156_v29, %v1151_v15  ;;  %974 = vadd.xlane.f32.xlu0 %v973_v28 }
 0x3c9   :  { %v1154_v32 = vpop.xlane.xlu0 %1153  ;;  %v976_v31 = vsel %vm520_vm14, %v4247_v20, 0.0 }
 0x3ca   :  { %v1169_v34 = vmul.f32 1.442695, %v1164_v18  ;;  %v1165_v42 = vsub.f32 %v4161_v37, %v1154_v32  ;;  %977 = vadd.xlane.f32.xlu1 %v976_v31  ;;  %v580_v18 = vmul.bf16 %v3964_v7, %v3951_v60 }
 0x3cc   :  { %3536 = vpow2.f32 %v1169_v34  ;;  %v1171_v30 = vmul.f32 1.442695, %v1165_v42  ;;  %v581_v42 = vmul.bf16 %v3982_v19, %v3951_v60 }
 0x3ce   :  { %v4253_v43 = vpop.eup %3534  ;;  %3538 = vpow2.f32 %v1171_v30 }
 0x3cf   :  { %v1157_v36 = vpop.xlane.xlu1 %1156  ;;  %v979_v47 = vsel %vm533_vm15, %v4253_v43, 0.0 }
 0x3d0   :  { %v1166_v29 = vsub.f32 %v4166_v44, %v1157_v36  ;;  %980 = vadd.xlane.f32.xlu0 %v979_v47 }
 0x3d1   :  { %v1160_v48 = vpop.xlane.xlu0 %1159 }
 0x3d2   :  { %v1173_v39 = vmul.f32 1.442695, %v1166_v29  ;;  %v1167_v49 = vsub.f32 %v4171_v50, %v1160_v48  ;;  %v582_v48 = vmul.bf16 %v3997_v25, %v3951_v60 }
 0x3d4   :  { %3540 = vpow2.f32 %v1173_v39  ;;  %v1175_v51 = vmul.f32 1.442695, %v1167_v49  ;;  %v4325_v39 = vld [vmem:[%s5211_s0 + $0x40] sm:$0xff] }
 0x3d6   :  { %v4259_v37 = vpop.eup %3536  ;;  %3542 = vpow2.f32 %v1175_v51 }
 0x3d7   :  { %v1179_v52 = vsel %vm520_vm14, %v4259_v37, 0.0 }
 0x3d8   :  { %v4263_v41 = vpop.eup %3538  ;;  %1180 = vadd.xlane.f32.xlu1 %v1179_v52 }
 0x3d9   :  { %v1182_v58 = vsel %vm520_vm14, %v4263_v41, 0.0 }
 0x3da   :  { %1183 = vadd.xlane.f32.xlu0 %v1182_v58 }
 0x3de   :  { %v4267_v44 = vpop.eup %3540 }
 0x3df   :  { %v1185_v50 = vsel %vm520_vm14, %v4267_v44, 0.0 }
 0x3e0   :  { %v4271_v59 = vpop.eup %3542  ;;  %1186 = vadd.xlane.f32.xlu1 %v1185_v50 }
 0x3e1   :  { %v1188_v62 = vsel %vm520_vm14, %v4271_v59, 0.0 }
 0x3e2   :  { %1189 = vadd.xlane.f32.xlu0 %v1188_v62 }
 0x3e6   :  { %1478 = vadd.xlane.f32.xlu0 %v1477_v0 }
 0x3ea   :  { %1484 = vadd.xlane.f32.xlu0 %v1483_v2 }
 0x3ee   :  { %1490 = vadd.xlane.f32.xlu0 %v1489_v55 }
 0x435   :  { %v693_v6 = vpop.xlane.xlu1 %692 }
 0x436   :  { %3544 = vrcp.f32 %v693_v6 }
 0x437   :  { %v696_v9 = vpop.xlane.xlu0 %695 }
 0x438   :  { %3546 = vrcp.f32 %v696_v9 }
 0x439   :  { %v1163_v11 = vpop.xlane.xlu1 %1162 }
 0x43a   :  { %v1168_v14 = vsub.f32 %v4185_v22, %v1163_v11 }
 0x43c   :  { %v1177_v5 = vmul.f32 1.442695, %v1168_v14 }
 0x43d   :  { %v699_v54 = vpop.xlane.xlu0 %698 }
 0x43e   :  { %3548 = vpow2.f32 %v1177_v5  ;;  %v995_v5 = vmul.bf16 %v3964_v7, %v4009_v33 }
 0x43f   :  { %3550 = vrcp.f32 %v699_v54  ;;  %v702_v8 = vpop.xlane.xlu1 %701 }
 0x440   :  { %v3545_v21 = vpop.eup %3544  ;;  %3552 = vrcp.f32 %v702_v8 }
 0x441   :  { %v711_v24 = vmul.f32 %v3545_v21, %v4179_v17  ;;  %v4309_v17 = vld [vmem:[%s5211_s0 + $0x30] sm:$0xff] }
 0x442   :  { %v3547_v23 = vpop.eup %3546  ;;  %v1480_v36 = vsel %vm106_vm0, %v4309_v17, 0.0 }
 0x443   :  { %v712_v26 = vmul.f32 %v3547_v23, %v4187_v10  ;;  %v554_v30 = vpop.xlane.xlu1 %553 }
 0x445   :  { %v716_v15 = vpack.c.bf16 %v712_v26, %v711_v24  ;;  %v705_v28 = vpop.xlane.xlu0 %704  ;;  %v997_v24 = vmul.bf16 %v3997_v25, %v4009_v33 }
 0x446   :  { %3554 = vrcp.f32 %v705_v28 }
 0x447   :  { %3089 = vmatmul.mubr.msk.bf16.vlgmr.msra.gmra.mrb[24].mxu1 %vm520_vm14, %v716_v15  ;;  %v560_v50 = vpop.xlane.xlu1 %559 }
 0x448   :  { %v4302_v22 = vpop.eup %3548  ;;  %3101 = vmatpush3.bf16.msra.mxu1 %v580_v18  ;;  %3092 = vmatprep.mubr.msk.bf16.mxu1 %vm3723_vm2, %v3722_v35 }
 0x449   :  { %v3551_v10 = vpop.eup %3550  ;;  %v557_v32 = vpop.xlane.xlu0 %556  ;;  %3102 = vmatprep.subr.bf16.mxu1 %v3722_v35  ;;  %v1191_v31 = vsel %vm533_vm15, %v4302_v22, 0.0 }
 0x44a   :  { %v3553_v34 = vpop.eup %3552  ;;  %1192 = vadd.xlane.f32.xlu1 %v1191_v31  ;;  %v713_v47 = vmul.f32 %v3551_v10, %v4196_v40  ;;  %3556 = vrcp.f32 %v557_v32  ;;  %v801_v40 = vsel %vm731_vm10, %v582_v48, 0 }
 0x44b   :  { %v714_v29 = vmul.f32 %v3553_v34, %v4201_v45  ;;  %3558 = vrcp.f32 %v554_v30  ;;  %v1486_v45 = vsel %vm106_vm0, %v4325_v39, 0.0  ;;  %v566_v6 = vpop.xlane.xlu1 %565 }
 0x44c   :  { %3103 = vmatpush3.bf16.msra.mxu1 %v581_v42 }
 0x44d   :  { %3104 = vmatprep.subr.bf16.mxu1 %v3722_v35  ;;  %v717_v49 = vpack.c.bf16 %v714_v29, %v713_v47  ;;  %v563_v52 = vpop.xlane.xlu0 %562 }
 0x44e   :  { %1481 = vadd.xlane.f32.xlu1 %v1480_v36  ;;  %3560 = vrcp.f32 %v563_v52 }
 0x44f   :  { %3093 = vmatmul.mubr.msk.bf16.gmra.mrb[28].mxu1 %vm520_vm14, %v717_v49  ;;  %3562 = vrcp.f32 %v560_v50  ;;  %v972_v8 = vpop.xlane.xlu1 %971 }
 0x450   :  { %v3555_v51 = vpop.eup %3554  ;;  %3105 = vmatpush3.bf16.msra.mxu1 %v801_v40  ;;  %3096 = vmatprep.mubr.msk.bf16.mxu1 %vm3723_vm2, %v3722_v35  ;;  %3564 = vrcp.f32 %v566_v6  ;;  %v1207_v40 = vmul.bf16 %v3964_v7, %v4038_v38 }
 0x451   :  { %v715_v58 = vmul.f32 %v3555_v51, %v4212_v63  ;;  %3136 = vmatprep.subr.bf16.mxu1 %v3722_v35  ;;  %v969_v11 = vpop.xlane.xlu0 %968 }
 0x452   :  { %1487 = vadd.xlane.f32.xlu1 %v1486_v45  ;;  %3566 = vrcp.f32 %v969_v11 }
 0x453   :  { %v718_v62 = vpack.c.bf16 %v715_v58, %v715_v58  ;;  %3568 = vrcp.f32 %v972_v8  ;;  %v1208_v58 = vmul.bf16 %v3982_v19, %v4038_v38 }
 0x454   :  { %v3557_v0 = vpop.eup %3556 }
 0x455   :  { %v3559_v2 = vpop.eup %3558  ;;  %v573_v55 = vmul.f32 %v3557_v0, %v4221_v3  ;;  %v975_v21 = vpop.xlane.xlu0 %974 }
 0x456   :  { %v572_v9 = vmul.f32 %v3559_v2, %v4207_v57  ;;  %v996_v57 = vmul.bf16 %v3982_v19, %v4009_v33  ;;  %v1209_v2 = vmul.bf16 %v3997_v25, %v4038_v38 }
 0x457   :  { %3097 = vmatmul.mubr.msk.bf16.gmra.mrb[32].mxu1 %vm520_vm14, %v718_v62 }
 0x458   :  { %3106 = vmatprep.mubr.msk.bf16.mxu1 %vm3723_vm2, %v3722_v35  ;;  %v577_v63 = vpack.c.bf16 %v573_v55, %v572_v9  ;;  %v3561_v14 = vpop.eup %3560  ;;  %v1220_v25 = vsel %vm731_vm10, %v1209_v2, 0 }
 0x459   :  { %v3563_v54 = vpop.eup %3562  ;;  %v575_v3 = vmul.f32 %v3561_v14, %v4230_v16  ;;  %v1008_v16 = vsel %vm731_vm10, %v997_v24, 0 }
 0x45a   :  { %v574_v23 = vmul.f32 %v3563_v54, %v4216_v1  ;;  %v3565_v15 = vpop.eup %3564  ;;  %v978_v1 = vpop.xlane.xlu1 %977 }
 0x45b   :  { %v576_v18 = vmul.f32 %v3565_v15, %v4226_v13  ;;  %3570 = vrcp.f32 %v978_v1 }
 0x45c   :  { %v578_v26 = vpack.c.bf16 %v575_v3, %v574_v23  ;;  %v3567_v31 = vpop.eup %3566  ;;  %3572 = vrcp.f32 %v975_v21  ;;  %v3696_v23 = vld [vmem:[%s5213_s5] sm:$0xff]  }
 0x45d   :  { %v981_v28 = vpop.xlane.xlu0 %980  ;;  %v579_v32 = vpack.c.bf16 %v576_v18, %v576_v18  ;;  %v3569_v42 = vpop.eup %3568  ;;  %v987_v30 = vmul.f32 %v3567_v31, %v4239_v12 }
 0x45e   :  { %v988_v36 = vmul.f32 %v3569_v42, %v4234_v56  ;;  %3574 = vrcp.f32 %v981_v28 }
 0x45f   :  { %3107 = vmatmul.mubr.msk.bf16.vlgmr.msra.gmra.mrb[24].mxu1 %vm520_vm14, %v577_v63 }
 0x460   :  { %3137 = vmatpush3.bf16.msra.mxu1 %v995_v5  ;;  %3110 = vmatprep.mubr.msk.bf16.mxu1 %vm3723_vm2, %v3722_v35  ;;  %v992_v29 = vpack.c.bf16 %v988_v36, %v987_v30  ;;  %v4443_v30 = vld [vmem:[%s5220_s9 + $0x8] sm:$0xff]  }
 0x461   :  { %3138 = vmatprep.subr.bf16.mxu1 %v3722_v35 }
 0x464   :  { %3139 = vmatpush3.bf16.msra.mxu1 %v996_v57 }
 0x465   :  { %3140 = vmatprep.subr.bf16.mxu1 %v3722_v35  ;;  %v3571_v48 = vpop.eup %3570  ;;  %v1181_v50 = vpop.xlane.xlu1 %1180 }
 0x466   :  { %v3573_v51 = vpop.eup %3572  ;;  %v990_v12 = vmul.f32 %v3571_v48, %v4247_v20 }
 0x467   :  { %3111 = vmatmul.mubr.msk.bf16.gmra.mrb[28].mxu1 %vm520_vm14, %v578_v26  ;;  %v1184_v10 = vpop.xlane.xlu0 %1183  ;;  %v989_v0 = vmul.f32 %v3573_v51, %v4243_v27  ;;  %v3698_v51 = vld [vmem:[%s5212_s4] sm:$0xff]  }
 0x468   :  { %3141 = vmatpush3.bf16.msra.mxu1 %v1008_v16  ;;  %3114 = vmatprep.mubr.msk.bf16.mxu1 %vm3723_vm2, %v3722_v35  ;;  %3576 = vrcp.f32 %v1184_v10  ;;  %v3575_v6 = vpop.eup %3574 }
 0x469   :  { %3172 = vmatprep.subr.bf16.mxu1 %v3722_v35  ;;  %3578 = vrcp.f32 %v1181_v50  ;;  %v991_v63 = vmul.f32 %v3575_v6, %v4253_v43  ;;  %v3699_v50 = vld [vmem:[%s5212_s4 + $0x8] sm:$0xff]  }
 0x46b   :  { %v994_v14 = vpack.c.bf16 %v991_v63, %v991_v63 }
 0x46d   :  { %v1187_v11 = vpop.xlane.xlu1 %1186 }
 0x46f   :  { %v1190_v34 = vpop.xlane.xlu0 %1189  ;;  %3115 = vmatmul.mubr.msk.bf16.gmra.mrb[32].mxu1 %vm520_vm14, %v579_v32 }
 0x470   :  { %3142 = vmatprep.mubr.msk.bf16.mxu1 %vm3723_vm2, %v3722_v35  ;;  %3580 = vrcp.f32 %v1190_v34 }
 0x471   :  { %3582 = vrcp.f32 %v1187_v11 }
 0x472   :  { %v3577_v5 = vpop.eup %3576 }
 0x473   :  { %v1479_v47 = vpop.xlane.xlu0 %1478  ;;  %v3579_v54 = vpop.eup %3578  ;;  %v1200_v3 = vmul.f32 %v3577_v5, %v4263_v41 }
 0x474   :  { %v1492_v13 = vmul.f32 0.03125, %v1479_v47  ;;  %v1199_v43 = vmul.f32 %v3579_v54, %v4259_v37  ;;  %v3697_v37 = vld [vmem:[%s5213_s5 + $0x8] sm:$0xff]  }
 0x476   :  { %v4366_v49 = vsub.f32 %v4276_v46, %v1492_v13  ;;  %v1204_v57 = vpack.c.bf16 %v1200_v3, %v1199_v43  ;;  %v3700_v3 = vld [vmem:[%s5215_s2] ss:$0 sm:$0xff] }
 0x477   :  { %v1485_v45 = vpop.xlane.xlu0 %1484  ;;  %3143 = vmatmul.mubr.msk.bf16.vlgmr.msra.gmra.mrb[24].mxu1 %vm520_vm14, %v992_v29 }
 0x478   :  { %v1494_v52 = vmul.f32 0.03125, %v1485_v45  ;;  %3173 = vmatpush3.bf16.msra.mxu1 %v1207_v40  ;;  %v1502_v56 = vmul.f32 %v4366_v49, %v4366_v49  ;;  %3146 = vmatprep.mubr.msk.bf16.mxu1 %vm3723_vm2, %v3722_v35 }
 0x479   :  { %3174 = vmatprep.subr.bf16.mxu1 %v3722_v35 }
 0x47a   :  { %v4378_v46 = vsub.f32 %v4285_v53, %v1494_v52  ;;  %v1507_v7 = vsel %vm106_vm0, %v1502_v56, 0.0  ;;  %v993_v53 = vpack.c.bf16 %v990_v12, %v989_v0  ;;  %v3581_v8 = vpop.eup %3580 }
 0x47b   :  { %v1491_v62 = vpop.xlane.xlu0 %1490  ;;  %1508 = vadd.xlane.f32.xlu1 %v1507_v7  ;;  %v3583_v21 = vpop.eup %3582  ;;  %v1202_v24 = vmul.f32 %v3581_v8, %v4271_v59  ;;  %v4426_v59 = vld [vmem:[%s5220_s9] sm:$0xff]  }
 0x47c   :  { %v1496_v55 = vmul.f32 0.03125, %v1491_v62  ;;  %3175 = vmatpush3.bf16.msra.mxu1 %v1208_v58  ;;  %v1504_v20 = vmul.f32 %v4378_v46, %v4378_v46  ;;  %v1201_v41 = vmul.f32 %v3583_v21, %v4267_v44  ;;  %3191 = vmatpush3.bf16.msra.mxu0 %v4426_v59 }
 0x47d   :  { %3176 = vmatprep.subr.bf16.mxu1 %v3722_v35  ;;  %3192 = vmatprep.subr.bf16.mxu0 %v3722_v35 }
 0x47e   :  { %v4390_v19 = vsub.f32 %v4292_v4, %v1496_v55  ;;  %v1513_v9 = vsel %vm106_vm0, %v1504_v20, 0.0  ;;  %v1205_v26 = vpack.c.bf16 %v1202_v24, %v1201_v41  ;;  %v3701_v24 = vld [vmem:[%s5216_s3] ss:$0 sm:$0xff] }
 0x47f   :  { %1514 = vadd.xlane.f32.xlu1 %v1513_v9  ;;  %3147 = vmatmul.mubr.msk.bf16.gmra.mrb[28].mxu1 %vm520_vm14, %v993_v53 }
 0x480   :  { %3177 = vmatpush3.bf16.msra.mxu1 %v1220_v25  ;;  %v1506_v27 = vmul.f32 %v4390_v19, %v4390_v19  ;;  %3150 = vmatprep.mubr.msk.bf16.mxu1 %vm3723_vm2, %v3722_v35 }
 0x481   :  { %3222 = vmatprep.subr.bf16.mxu1 %v3722_v35  ;;  %3193 = vmatpush3.bf16.msra.mxu0 %v4443_v30 }
 0x482   :  { %v1519_v4 = vsel %vm119_vm1, %v1506_v27, 0.0  ;;  %3206 = vmatprep.subr.bf16.mxu0 %v3722_v35 }
 0x483   :  { %1520 = vadd.xlane.f32.xlu1 %v1519_v4 }
 0x487   :  { %3151 = vmatmul.mubr.msk.bf16.gmra.mrb[32].mxu1 %vm520_vm14, %v994_v14 }
 0x488   :  { %3178 = vmatprep.mubr.msk.bf16.mxu1 %vm3723_vm2, %v3722_v35 }
 0x48f   :  { %3179 = vmatmul.mubr.msk.bf16.vlgmr.msra.gmra.mrb[24].mxu1 %vm520_vm14, %v1204_v57 }
 0x490   :  { %3182 = vmatprep.mubr.msk.bf16.mxu1 %vm3723_vm2, %v3722_v35  ;;  %3223 = vmatpush3.bf16.msra.mxu1 %v3696_v23 }
 0x491   :  { %3224 = vmatprep.subr.bf16.mxu1 %v3722_v35 }
 0x494   :  { %3225 = vmatpush3.bf16.msra.mxu1 %v3697_v37 }
 0x495   :  { %3254 = vmatprep.subr.bf16.mxu1 %v3722_v35 }
 0x497   :  { %3183 = vmatmul.mubr.msk.bf16.gmra.mrb[28].mxu1 %vm520_vm14, %v1205_v26 }
 0x498   :  { %3186 = vmatprep.mubr.msk.bf16.mxu1 %vm3723_vm2, %v3722_v35 }
 0x4d7   :  { %v1193_v44 = vpop.xlane.xlu1 %1192 }
 0x4d8   :  { %3584 = vrcp.f32 %v1193_v44 }
 0x4db   :  { %v1482_v15 = vpop.xlane.xlu1 %1481 }
 0x4dc   :  { %v1493_v28 = vmul.f32 0.03125, %v1482_v15 }
 0x4de   :  { %v4431_v16 = vsub.f32 %v4309_v17, %v1493_v28 }
 0x4df   :  { %v1488_v1 = vpop.xlane.xlu1 %1487 }
 0x4e0   :  { %v1495_v18 = vmul.f32 0.03125, %v1488_v1  ;;  %v1503_v10 = vmul.f32 %v4431_v16, %v4431_v16 }
 0x4e2   :  { %v3585_v32 = vpop.eup %3584  ;;  %v4436_v31 = vsub.f32 %v4325_v39, %v1495_v18  ;;  %v1510_v34 = vsel %vm106_vm0, %v1503_v10, 0.0 }
 0x4e3   :  { %1511 = vadd.xlane.f32.xlu0 %v1510_v34  ;;  %v1203_v42 = vmul.f32 %v3585_v32, %v4302_v22 }
 0x4e4   :  { %v1505_v17 = vmul.f32 %v4436_v31, %v4436_v31 }
 0x4e5   :  { %v1206_v36 = vpack.c.bf16 %v1203_v42, %v1203_v42 }
 0x4e6   :  { %v1516_v47 = vsel %vm106_vm0, %v1505_v17, 0.0 }
 0x4e7   :  { %3187 = vmatmul.mubr.msk.bf16.gmra.mrb[32].mxu1 %vm520_vm14, %v1206_v36  ;;  %1517 = vadd.xlane.f32.xlu0 %v1516_v47 }
 0x4e8   :  { %3226 = vmatprep.mubr.msk.bf16.mxu1 %vm3723_vm2, %v3722_v35 }
 0x508   :  { %v1509_v13 = vpop.xlane.xlu1 %1508 }
 0x509   :  { %v1522_v45 = vmul.f32 0.03125, %v1509_v13  ;;  %v2803_v13 = vld [vmem:[%s5221_s10] ss:$0 sm:$0xff] }
 0x50b   :  { %v1527_v56 = vadd.f32 1e-05, %v1522_v45 }
 0x50c   :  { %v1515_v7 = vpop.xlane.xlu1 %1514 }
 0x50d   :  { %3586 = vrsqrt.f32 %v1527_v56  ;;  %v1524_v2 = vmul.f32 0.03125, %v1515_v7  ;;  %v3705_v7 = vld [vmem:[%s5211_s0 + $0x8] sm:$0xff] }
 0x50f   :  { %v1529_v6 = vadd.f32 1e-05, %v1524_v2 }
 0x510   :  { %v1521_v53 = vpop.xlane.xlu1 %1520 }
 0x511   :  { %v1526_v27 = vmul.f32 0.03125, %v1521_v53 }
 0x513   :  { %v1531_v14 = vadd.f32 1e-05, %v1526_v27 }
 0x517   :  { %v3587_v11 = vpop.eup %3586 }
 0x518   :  { %v1537_v5 = vmul.f32 %v3587_v11, %v4366_v49 }
 0x51a   :  { %v1542_v43 = vmul.f32 %v3700_v3, %v1537_v5 }
 0x51c   :  { %v1547_v41 = vadd.f32 %v3701_v24, %v1542_v43 }
 0x562   :  { %v1256_v22 = vpop.f32.mrb[24].mxu1 }
 0x563   :  { %v3180_v39 = vpop.f32.mrb[25].mxu1 }
 0x564   :  { %v1259_v29 = vpop.f32.mrb[26].mxu1  ;;  %v3703_v39 = vld [vmem:[%s5214_s6 + $0x8] sm:$0xff]  }
 0x565   :  { %v1283_v48 = vpack.c.bf16 %v1259_v29, %v1256_v22  ;;  %v3181_v40 = vpop.f32.mrb[27].mxu1  ;;  %v3702_v22 = vld [vmem:[%s5214_s6] sm:$0xff]  }
 0x567   :  { %3195 = vmatmul.mubr.msk.bf16.vlgmr.msra.gmra.mrb[60].mxu0 %vm106_vm0, %v1283_v48 }
 0x568   :  { %3198 = vmatprep.mubr.msk.bf16.mxu0 %vm3723_vm2, %v3722_v35  ;;  %3207 = vmatpush3.bf16.msra.mxu0 %v3698_v51  ;;  %v3704_v51 = vld [vmem:[%s5211_s0] sm:$0xff] }
 0x569   :  { %3208 = vmatprep.subr.bf16.mxu0 %v3722_v35 }
 0x56a   :  { %v1264_v52 = vpop.f32.mrb[28].mxu1 }
 0x56b   :  { %v3184_v12 = vpop.f32.mrb[29].mxu1 }
 0x56c   :  { %v1267_v58 = vpop.f32.mrb[30].mxu1  ;;  %3209 = vmatpush3.bf16.msra.mxu0 %v3699_v50 }
 0x56d   :  { %v1284_v62 = vpack.c.bf16 %v1267_v58, %v1264_v52  ;;  %v3185_v0 = vpop.f32.mrb[31].mxu1  ;;  %3238 = vmatprep.subr.bf16.mxu0 %v3722_v35 }
 0x56f   :  { %3199 = vmatmul.mubr.msk.bf16.gmra.mrb[64].mxu0 %vm106_vm0, %v1284_v62 }
 0x570   :  { %v1512_v55 = vpop.xlane.xlu0 %1511  ;;  %3202 = vmatprep.mubr.msk.bf16.mxu0 %vm3723_vm2, %v3722_v35 }
 0x571   :  { %v1523_v20 = vmul.f32 0.03125, %v1512_v55  ;;  %v3706_v55 = vld [vmem:[%s5211_s0 + $0x10] sm:$0xff] }
 0x573   :  { %v1528_v9 = vadd.f32 1e-05, %v1523_v20 }
 0x574   :  { %v1518_v25 = vpop.xlane.xlu0 %1517 }
 0x575   :  { %3588 = vrsqrt.f32 %v1528_v9  ;;  %v1525_v63 = vmul.f32 0.03125, %v1518_v25  ;;  %v3707_v9 = vld [vmem:[%s5211_s0 + $0x18] sm:$0xff] }
 0x576   :  { %3590 = vrsqrt.f32 %v1529_v6 }
 0x577   :  { %v1530_v4 = vadd.f32 1e-05, %v1525_v63 }
 0x579   :  { %3592 = vrsqrt.f32 %v1530_v4 }
 0x57a   :  { %3594 = vrsqrt.f32 %v1531_v14 }
 0x57f   :  { %v3589_v54 = vpop.eup %3588 }
 0x580   :  { %v1538_v57 = vmul.f32 %v3589_v54, %v4431_v16  ;;  %v3591_v8 = vpop.eup %3590 }
 0x581   :  { %v1539_v37 = vmul.f32 %v3591_v8, %v4378_v46 }
 0x582   :  { %v1543_v21 = vmul.f32 %v3700_v3, %v1538_v57 }
 0x583   :  { %v3593_v23 = vpop.eup %3592  ;;  %v1544_v1 = vmul.f32 %v3700_v3, %v1539_v37 }
 0x584   :  { %v1548_v49 = vadd.f32 %v3701_v24, %v1543_v21  ;;  %v1540_v26 = vmul.f32 %v3593_v23, %v4436_v31  ;;  %v3595_v28 = vpop.eup %3594 }
 0x585   :  { %v1541_v18 = vmul.f32 %v3595_v28, %v4390_v19  ;;  %v1549_v10 = vadd.f32 %v3701_v24, %v1544_v1 }
 0x586   :  { %v1552_v44 = vpack.c.bf16 %v1548_v49, %v1547_v41  ;;  %v1545_v15 = vmul.f32 %v3700_v3, %v1540_v26 }
 0x587   :  { %v1546_v34 = vmul.f32 %v3700_v3, %v1541_v18 }
 0x588   :  { %3227 = vmatmul.mubr.msk.bf16.vlgmr.msra.gmra.mrb[36].mxu1 %vm106_vm0, %v1552_v44  ;;  %v1550_v16 = vadd.f32 %v3701_v24, %v1545_v15 }
 0x589   :  { %3230 = vmatprep.mubr.msk.bf16.mxu1 %vm3723_vm2, %v3722_v35  ;;  %v1551_v46 = vadd.f32 %v3701_v24, %v1546_v34 }
 0x58a   :  { %v1553_v32 = vpack.c.bf16 %v1550_v16, %v1549_v10  ;;  %v3708_v16 = vld [vmem:[%s5211_s0 + $0x20] sm:$0xf] }
 0x58b   :  { %v1554_v31 = vpack.c.bf16 %v1551_v46, %v1551_v46 }
 0x590   :  { %3231 = vmatmul.mubr.msk.bf16.gmra.mrb[40].mxu1 %vm106_vm0, %v1553_v32 }
 0x591   :  { %3234 = vmatprep.mubr.msk.bf16.mxu1 %vm3723_vm2, %v3722_v35 }
 0x598   :  { %3235 = vmatmul.mubr.msk.bf16.gmra.mrb[44].mxu1 %vm106_vm0, %v1554_v31 }
 0x599   :  { %3260 = vmatprep.mubr.msk.bf16.mxu1 %vm3723_vm2, %v3722_v35 }
 0x5ba   :  { %v1272_v42 = vpop.f32.mrb[32].mxu1 }
 0x5bb   :  { %v1285_v17 = vpack.c.bf16 %v1272_v42, %v1272_v42  ;;  %v3188_v36 = vpop.f32.mrb[33].mxu1 }
 0x5bc   :  { %v1275_v47 = vpop.f32.mrb[34].mxu1 }
 0x5bd   :  { %v3189_v19 = vpop.f32.mrb[35].mxu1  ;;  %3203 = vmatmul.mubr.msk.bf16.gmra.mrb[68].mxu0 %vm106_vm0, %v1285_v17 }
 0x5be   :  { %3210 = vmatprep.mubr.msk.bf16.mxu0 %vm3723_vm2, %v3722_v35 }
 0x5c5   :  { %3211 = vmatmul.mubr.msk.bf16.vlgmr.msra.gmra.mrb[72].mxu0 %vm106_vm0, %v1552_v44 }
 0x5c6   :  { %3214 = vmatprep.mubr.msk.bf16.mxu0 %vm3723_vm2, %v3722_v35  ;;  %3239 = vmatpush3.bf16.msra.mxu0 %v3702_v22 }
 0x5c7   :  { %3240 = vmatprep.subr.bf16.mxu0 %v3722_v35 }
 0x5ca   :  { %3241 = vmatpush3.bf16.msra.mxu0 %v3703_v39 }
 0x5cb   :  { %3272 = vmatprep.subr.bf16.mxu0 %v3722_v35 }
 0x5cd   :  { %3215 = vmatmul.mubr.msk.bf16.gmra.mrb[76].mxu0 %vm106_vm0, %v1553_v32 }
 0x5ce   :  { %3218 = vmatprep.mubr.msk.bf16.mxu0 %vm3723_vm2, %v3722_v35 }
 0x5d5   :  { %3219 = vmatmul.mubr.msk.bf16.gmra.mrb[80].mxu0 %vm106_vm0, %v1554_v31 }
 0x5d6   :  { %3242 = vmatprep.mubr.msk.bf16.mxu0 %vm3723_vm2, %v3722_v35 }
 0x5dd   :  { %3243 = vmatmul.mubr.msk.bf16.vlgmr.msra.gmra.mrb[84].mxu0 %vm106_vm0, %v1552_v44 }
 0x5de   :  { %3246 = vmatprep.mubr.msk.bf16.mxu0 %vm3723_vm2, %v3722_v35 }
 0x5e5   :  { %3247 = vmatmul.mubr.msk.bf16.gmra.mrb[88].mxu0 %vm106_vm0, %v1553_v32 }
 0x5e6   :  { %3250 = vmatprep.mubr.msk.bf16.mxu0 %vm3723_vm2, %v3722_v35 }
 0x5ed   :  { %3251 = vmatmul.mubr.msk.bf16.gmra.mrb[92].mxu0 %vm106_vm0, %v1554_v31  ;;  %v3709_v31 = vld [vmem:[%s5217_s7] ss:$0 sm:$0xff] }
 0x5ee   :  { %3278 = vmatprep.mubr.msk.bf16.mxu0 %vm3723_vm2, %v3722_v35 }
 0x63a   :  { %v1347_v29 = vpop.f32.mrb[60].mxu0 }
 0x63b   :  { %v1348_v48 = vadd.f32 %v2803_v13, %v1347_v29  ;;  %v3196_v40 = vpop.f32.mrb[61].mxu0 }
 0x63c   :  { %v1350_v45 = vpop.f32.mrb[62].mxu0 }
 0x63d   :  { %v4522_v52 = vadd.f32 %v3704_v51, %v1348_v48  ;;  %v1351_v56 = vadd.f32 %v2803_v13, %v1350_v45  ;;  %v3197_v12 = vpop.f32.mrb[63].mxu0 }
 0x63f   :  { %1374 = vst.msk [vmem:[%s5222_s13] sm:$0xff] %vm106_vm0, %v4522_v52  ;;  %v4532_v58 = vadd.f32 %v3705_v7, %v1351_v56 }
 0x641   :  { %1375 = vst.msk [vmem:[%s5222_s13 + $0x8] sm:$0xff] %vm106_vm0, %v4532_v58 }
 0x642   :  { %v1355_v50 = vpop.f32.mrb[64].mxu0 }
 0x643   :  { %v1356_v62 = vadd.f32 %v2803_v13, %v1355_v50  ;;  %v3200_v0 = vpop.f32.mrb[65].mxu0 }
 0x644   :  { %v1358_v2 = vpop.f32.mrb[66].mxu0 }
 0x645   :  { %v4542_v20 = vadd.f32 %v3706_v55, %v1356_v62  ;;  %v1359_v53 = vadd.f32 %v2803_v13, %v1358_v2  ;;  %v3201_v6 = vpop.f32.mrb[67].mxu0 }
 0x647   :  { %1376 = vst.msk [vmem:[%s5222_s13 + $0x10] sm:$0xff] %vm106_vm0, %v4542_v20  ;;  %v4552_v25 = vadd.f32 %v3707_v9, %v1359_v53 }
 0x649   :  { %1377 = vst.msk [vmem:[%s5222_s13 + $0x18] sm:$0xff] %vm106_vm0, %v4552_v25 }
 0x65b   :  { %v1657_v27 = vpop.f32.mrb[36].mxu1 }
 0x65c   :  { %v3228_v63 = vpop.f32.mrb[37].mxu1 }
 0x65d   :  { %v1660_v4 = vpop.f32.mrb[38].mxu1 }
 0x65e   :  { %v1679_v11 = vpack.c.bf16 %v1660_v4, %v1657_v27  ;;  %v3229_v14 = vpop.f32.mrb[39].mxu1  ;;  %v3710_v4 = vld [vmem:[%s5218_s8] ss:$0 sm:$0xff] }
 0x660   :  { %v4560_v5 = vsel %vm106_vm0, %v1679_v11, 0 }
 0x661   :  { %3255 = vmatpush3.bf16.xpose.msra.mxu1 %v4560_v5  ;;  %3273 = vmatpush3.bf16.xpose.msra.mxu0 %v4560_v5 }
 0x662   :  { %3256 = vmatprep.subr.bf16.mxu1 %v3722_v35  ;;  %3274 = vmatprep.subr.bf16.mxu0 %v3722_v35 }
 0x663   :  { %v1665_v54 = vpop.f32.mrb[40].mxu1 }
 0x664   :  { %v3232_v3 = vpop.f32.mrb[41].mxu1 }
 0x665   :  { %v1668_v43 = vpop.f32.mrb[42].mxu1 }
 0x666   :  { %v1680_v57 = vpack.c.bf16 %v1668_v43, %v1665_v54  ;;  %v3233_v8 = vpop.f32.mrb[43].mxu1 }
 0x668   :  { %v4567_v21 = vsel %vm106_vm0, %v1680_v57, 0 }
 0x669   :  { %3257 = vmatpush3.bf16.xpose.msra.mxu1 %v4567_v21  ;;  %3275 = vmatpush3.bf16.xpose.msra.mxu0 %v4567_v21 }
 0x66a   :  { %3258 = vmatprep.subr.bf16.mxu1 %v3722_v35  ;;  %3276 = vmatprep.subr.bf16.mxu0 %v3722_v35 }
 0x66b   :  { %v1673_v23 = vpop.f32.mrb[44].mxu1 }
 0x66c   :  { %v1681_v24 = vpack.c.bf16 %v1673_v23, %v1673_v23  ;;  %v3236_v41 = vpop.f32.mrb[45].mxu1 }
 0x66d   :  { %v1676_v37 = vpop.f32.mrb[46].mxu1 }
 0x66e   :  { %v3237_v49 = vpop.f32.mrb[47].mxu1  ;;  %v4574_v26 = vsel %vm106_vm0, %v1681_v24, 0 }
 0x671   :  { %3259 = vmatpush3.bf16.xpose.msra.mxu1 %v4574_v26  ;;  %3277 = vmatpush3.bf16.xpose.msra.mxu0 %v4574_v26 }
 0x672   :  { %3326 = vmatprep.subr.bf16.mxu0 %v3722_v35  ;;  %3290 = vmatprep.subr.bf16.mxu1 %v3722_v35 }
 0x690   :  { %v1363_v44 = vpop.f32.mrb[68].mxu0 }
 0x691   :  { %v1364_v15 = vadd.f32 %v2803_v13, %v1363_v44  ;;  %v3204_v28 = vpop.f32.mrb[69].mxu0 }
 0x692   :  { %v1366_v1 = vpop.f32.mrb[70].mxu0 }
 0x693   :  { %v4583_v18 = vadd.f32 %v3708_v16, %v1364_v15  ;;  %v3205_v10 = vpop.f32.mrb[71].mxu0 }
 0x695   :  { %1378 = vst.msk [vmem:[%s5222_s13 + $0x20] sm:$0xf] %vm119_vm1, %v4583_v18 }
 0x698   :  { %v1598_v32 = vpop.f32.mrb[72].mxu0 }
 0x699   :  { %v3212_v34 = vpop.f32.mrb[73].mxu0  ;;  %v1599_v42 = vadd.f32 %v3709_v31, %v1598_v32 }
 0x69a   :  { %v1601_v46 = vpop.f32.mrb[74].mxu0 }
 0x69b   :  { %v1602_v17 = vadd.f32 %v3709_v31, %v1601_v46  ;;  %v3213_v36 = vpop.f32.mrb[75].mxu0 }
 0x69d   :  { %v4593_v47 = vpack.c.bf16 %v1602_v17, %v1599_v42 }
 0x69f   :  { %v1741_v19 = vmul.bf16 %v4593_v47, %v3951_v60  ;;  %v1889_v22 = vmul.bf16 %v4593_v47, %v3953_v61  ;;  %v2164_v43 = vmul.bf16 %v4593_v47, %v4009_v33 }
 0x6a0   :  { %v1606_v39 = vpop.f32.mrb[76].mxu0 }
 0x6a1   :  { %v3216_v13 = vpop.f32.mrb[77].mxu0  ;;  %3261 = vmatmul.mubr.msk.bf16.vlgmr.msra.gmra.mrb[48].mxu1 %vm106_vm0, %v1741_v19  ;;  %3279 = vmatmul.mubr.msk.bf16.vlgmr.msra.gmra.mrb[96].mxu0 %vm106_vm0, %v1889_v22  ;;  %v1607_v48 = vadd.f32 %v3709_v31, %v1606_v39 }
 0x6a2   :  { %3327 = vmatpush3.bf16.xpose.msra.mxu0 %v4560_v5  ;;  %v1609_v29 = vpop.f32.mrb[78].mxu0  ;;  %3264 = vmatprep.mubr.msk.bf16.mxu1 %vm3723_vm2, %v3722_v35 }
 0x6a3   :  { %v1610_v40 = vadd.f32 %v3709_v31, %v1609_v29  ;;  %v3217_v45 = vpop.f32.mrb[79].mxu0  ;;  %3282 = vmatprep.mubr.msk.bf16.mxu0 %vm3723_vm2, %v3722_v35  ;;  %3328 = vmatprep.subr.bf16.mxu0 %v3722_v35 }
 0x6a5   :  { %v4607_v51 = vpack.c.bf16 %v1610_v40, %v1607_v48  ;;  %v4696_v48 = vld [vmem:[%s5219_s1] sm:$0xff] }
 0x6a7   :  { %v1742_v56 = vmul.bf16 %v4607_v51, %v3951_v60  ;;  %v1890_v12 = vmul.bf16 %v4607_v51, %v3953_v61  ;;  %v2165_v28 = vmul.bf16 %v4607_v51, %v4009_v33 }
 0x6a8   :  { %v1614_v7 = vpop.f32.mrb[80].mxu0 }
 0x6a9   :  { %v1615_v50 = vadd.f32 %v3709_v31, %v1614_v7  ;;  %v3220_v62 = vpop.f32.mrb[81].mxu0  ;;  %3265 = vmatmul.mubr.msk.bf16.gmra.mrb[52].mxu1 %vm106_vm0, %v1742_v56  ;;  %3283 = vmatmul.mubr.msk.bf16.gmra.mrb[100].mxu0 %vm106_vm0, %v1890_v12 }
 0x6aa   :  { %3329 = vmatpush3.bf16.xpose.msra.mxu0 %v4567_v21  ;;  %v1617_v0 = vpop.f32.mrb[82].mxu0  ;;  %3268 = vmatprep.mubr.msk.bf16.mxu1 %vm3723_vm2, %v3722_v35 }
 0x6ab   :  { %v4618_v2 = vpack.c.bf16 %v1615_v50, %v1615_v50  ;;  %v3221_v55 = vpop.f32.mrb[83].mxu0  ;;  %3286 = vmatprep.mubr.msk.bf16.mxu0 %vm3723_vm2, %v3722_v35  ;;  %3330 = vmatprep.subr.bf16.mxu0 %v3722_v35 }
 0x6ad   :  { %v1743_v53 = vmul.bf16 %v4618_v2, %v3951_v60  ;;  %v1891_v6 = vmul.bf16 %v4618_v2, %v3953_v61  ;;  %v2166_v42 = vmul.bf16 %v4618_v2, %v4009_v33 }
 0x6b0   :  { %v1716_v9 = vpop.f32.mrb[84].mxu0 }
 0x6b1   :  { %v3244_v27 = vpop.f32.mrb[85].mxu0  ;;  %3269 = vmatmul.mubr.msk.bf16.gmra.mrb[56].mxu1 %vm106_vm0, %v1743_v53  ;;  %3287 = vmatmul.mubr.msk.bf16.gmra.mrb[104].mxu0 %vm106_vm0, %v1891_v6  ;;  %v1717_v11 = vadd.f32 %v3710_v4, %v1716_v9 }
 0x6b2   :  { %3331 = vmatpush3.bf16.xpose.msra.mxu0 %v4574_v26  ;;  %v1719_v63 = vpop.f32.mrb[86].mxu0  ;;  %3332 = vmatprep.mubr.msk.bf16.mxu0 %vm3723_vm2, %v3722_v35 }
 0x6b3   :  { %v1720_v14 = vadd.f32 %v3710_v4, %v1719_v63  ;;  %v3245_v54 = vpop.f32.mrb[87].mxu0  ;;  %3362 = vmatprep.subr.bf16.mxu0 %v3722_v35  ;;  %3296 = vmatprep.mubr.msk.bf16.mxu1 %vm3723_vm2, %v3722_v35 }
 0x6b4   :  { %v4726_v54 = vld [vmem:[%s5219_s1 + $0x18] sm:$0xff] }
 0x6b5   :  { %v4638_v3 = vpack.c.bf16 %v1720_v14, %v1717_v11 }
 0x6b7   :  { %v2025_v57 = vmul.bf16 %v4638_v3, %v3953_v61 }
 0x6b8   :  { %v1724_v8 = vpop.f32.mrb[88].mxu0 }
 0x6b9   :  { %v3248_v23 = vpop.f32.mrb[89].mxu0  ;;  %3291 = vmatpush3.bf16.msra.mxu1 %v2025_v57  ;;  %3333 = vmatmul.mubr.msk.bf16.vlgmr.msra.gmra.mrb[108].mxu0 %vm106_vm0, %v2164_v43  ;;  %v1725_v41 = vadd.f32 %v3710_v4, %v1724_v8 }
 0x6ba   :  { %3363 = vmatpush3.bf16.xpose.msra.mxu0 %v4560_v5  ;;  %v1727_v24 = vpop.f32.mrb[90].mxu0  ;;  %3292 = vmatprep.subr.bf16.mxu1 %v3722_v35 }
 0x6bb   :  { %v1728_v37 = vadd.f32 %v3710_v4, %v1727_v24  ;;  %v3249_v49 = vpop.f32.mrb[91].mxu0  ;;  %3336 = vmatprep.mubr.msk.bf16.mxu0 %vm3723_vm2, %v3722_v35  ;;  %3364 = vmatprep.subr.bf16.mxu0 %v3722_v35 }
 0x6bd   :  { %v4650_v44 = vpack.c.bf16 %v1728_v37, %v1725_v41 }
 0x6bf   :  { %v2026_v15 = vmul.bf16 %v4650_v44, %v3953_v61 }
 0x6c0   :  { %v1732_v5 = vpop.f32.mrb[92].mxu0 }
 0x6c1   :  { %v1733_v1 = vadd.f32 %v3710_v4, %v1732_v5  ;;  %v3252_v16 = vpop.f32.mrb[93].mxu0  ;;  %3293 = vmatpush3.bf16.msra.mxu1 %v2026_v15  ;;  %3337 = vmatmul.mubr.msk.bf16.gmra.mrb[112].mxu0 %vm106_vm0, %v2165_v28  ;;  %v4716_v4 = vld [vmem:[%s5219_s1 + $0x10] sm:$0xff] }
 0x6c2   :  { %3365 = vmatpush3.bf16.xpose.msra.mxu0 %v4567_v21  ;;  %v1735_v10 = vpop.f32.mrb[94].mxu0  ;;  %3294 = vmatprep.subr.bf16.mxu1 %v3722_v35  ;;  %v2377_v21 = vmul.bf16 %v4607_v51, %v4038_v38  ;;  %v4706_v51 = vld [vmem:[%s5219_s1 + $0x8] sm:$0xff] }
 0x6c3   :  { %v4659_v32 = vpack.c.bf16 %v1733_v1, %v1733_v1  ;;  %v3253_v34 = vpop.f32.mrb[95].mxu0  ;;  %3340 = vmatprep.mubr.msk.bf16.mxu0 %vm3723_vm2, %v3722_v35  ;;  %3366 = vmatprep.subr.bf16.mxu0 %v3722_v35 }
 0x6c5   :  { %v2027_v46 = vmul.bf16 %v4659_v32, %v3953_v61  ;;  %v2376_v61 = vmul.bf16 %v4593_v47, %v4038_v38 }
 0x6c7   :  { %v2038_v31 = vsel %vm731_vm10, %v2027_v46, 0 }
 0x6c8   :  { %3295 = vmatpush3.bf16.msra.mxu1 %v2038_v31  ;;  %v4741_v31 = vld [vmem:[%s5219_s1 + $0x20] sm:$0xf] }
 0x6c9   :  { %3341 = vmatmul.mubr.msk.bf16.gmra.mrb[116].mxu0 %vm106_vm0, %v2166_v42  ;;  %3308 = vmatprep.subr.bf16.mxu1 %v3722_v35 }
 0x6ca   :  { %3367 = vmatpush3.bf16.xpose.msra.mxu0 %v4574_v26  ;;  %3368 = vmatprep.mubr.msk.bf16.mxu0 %vm3723_vm2, %v3722_v35  ;;  %v2378_v26 = vmul.bf16 %v4618_v2, %v4038_v38 }
 0x6cb   :  { %3398 = vmatprep.subr.bf16.mxu0 %v3722_v35 }
 0x6d1   :  { %3369 = vmatmul.mubr.msk.bf16.vlgmr.msra.gmra.mrb[120].mxu0 %vm106_vm0, %v2376_v61 }
 0x6d2   :  { %3372 = vmatprep.mubr.msk.bf16.mxu0 %vm3723_vm2, %v3722_v35  ;;  %3399 = vmatpush3.bf16.msra.mxu0 %v4426_v59 }
 0x6d3   :  { %3400 = vmatprep.subr.bf16.mxu0 %v3722_v35 }
 0x6d6   :  { %3401 = vmatpush3.bf16.msra.mxu0 %v4443_v30 }
 0x6d9   :  { %3373 = vmatmul.mubr.msk.bf16.gmra.mrb[124].mxu0 %vm106_vm0, %v2377_v21 }
 0x6da   :  { %3376 = vmatprep.mubr.msk.bf16.mxu0 %vm3723_vm2, %v3722_v35 }
 0x6e1   :  { %3377 = vmatmul.mubr.msk.bf16.gmra.mrb[128].mxu0 %vm106_vm0, %v2378_v26 }
 0x6e2   :  { %3402 = vmatprep.mubr.msk.bf16.mxu0 %vm3723_vm2, %v3722_v35 }
 0x774   :  { %v1796_v59 = vpop.f32.mrb[48].mxu1  ;;  %v1935_v17 = vpop.f32.mrb[96].mxu0 }
 0x775   :  { %v1957_v36 = vmul.f32 0.35355338, %v1935_v17  ;;  %v3262_v30 = vpop.f32.mrb[49].mxu1  ;;  %v3280_v47 = vpop.f32.mrb[97].mxu0  ;;  %v1818_v6 = vmul.f32 0.35355338, %v1796_v59 }
 0x776   :  { %v1799_v19 = vpop.f32.mrb[50].mxu1  ;;  %v1938_v22 = vpop.f32.mrb[98].mxu0 }
 0x777   :  { %v1958_v39 = vmul.f32 0.35355338, %v1938_v22  ;;  %v3263_v13 = vpop.f32.mrb[51].mxu1  ;;  %v3281_v29 = vpop.f32.mrb[99].mxu0  ;;  %v4699_v40 = vadd.f32 %v4696_v48, %v1957_v36  ;;  %v4734_v23 = vadd.f32 %v4696_v48, %v1818_v6  ;;  %v1819_v37 = vmul.f32 0.35355338, %v1799_v19 }
 0x779   :  { %v1967_v45 = vsel %vm520_vm14, %v4699_v40, -inf  ;;  %v4709_v56 = vadd.f32 %v4706_v51, %v1958_v39  ;;  %v1828_v46 = vsel %vm520_vm14, %v4734_v23, -inf  ;;  %v4752_v59 = vadd.f32 %v4706_v51, %v1819_v37 }
 0x77a   :  { %1968 = vmax.xlane.f32.xlu0 %v1967_v45 }
 0x77b   :  { %v1970_v12 = vsel %vm520_vm14, %v4709_v56, -inf  ;;  %v1831_v22 = vsel %vm520_vm14, %v4752_v59, -inf }
 0x77c   :  { %v1804_v7 = vpop.f32.mrb[52].mxu1  ;;  %1971 = vmax.xlane.f32.xlu1 %v1970_v12  ;;  %v1943_v50 = vpop.f32.mrb[100].mxu0 }
 0x77d   :  { %v1959_v62 = vmul.f32 0.35355338, %v1943_v50  ;;  %v3266_v0 = vpop.f32.mrb[53].mxu1  ;;  %v3284_v2 = vpop.f32.mrb[101].mxu0  ;;  %v1820_v57 = vmul.f32 0.35355338, %v1804_v7 }
 0x77e   :  { %v1807_v55 = vpop.f32.mrb[54].mxu1  ;;  %v1946_v53 = vpop.f32.mrb[102].mxu0 }
 0x77f   :  { %v1960_v9 = vmul.f32 0.35355338, %v1946_v53  ;;  %v3267_v27 = vpop.f32.mrb[55].mxu1  ;;  %v3285_v63 = vpop.f32.mrb[103].mxu0  ;;  %v4719_v11 = vadd.f32 %v4716_v4, %v1959_v62  ;;  %v4747_v61 = vadd.f32 %v4716_v4, %v1820_v57  ;;  %v1821_v21 = vmul.f32 0.35355338, %v1807_v55 }
 0x781   :  { %v1973_v14 = vsel %vm520_vm14, %v4719_v11, -inf  ;;  %v4729_v43 = vadd.f32 %v4726_v54, %v1960_v9  ;;  %v1834_v17 = vsel %vm520_vm14, %v4747_v61, -inf  ;;  %v4762_v39 = vadd.f32 %v4726_v54, %v1821_v21 }
 0x782   :  { %1974 = vmax.xlane.f32.xlu0 %v1973_v14 }
 0x783   :  { %v1976_v8 = vsel %vm520_vm14, %v4729_v43, -inf  ;;  %v1837_v7 = vsel %vm520_vm14, %v4762_v39, -inf }
 0x784   :  { %v1812_v24 = vpop.f32.mrb[56].mxu1  ;;  %1977 = vmax.xlane.f32.xlu1 %v1976_v8  ;;  %v1951_v41 = vpop.f32.mrb[104].mxu0 }
 0x785   :  { %v1961_v49 = vmul.f32 0.35355338, %v1951_v41  ;;  %v3270_v15 = vpop.f32.mrb[57].mxu1  ;;  %v3288_v28 = vpop.f32.mrb[105].mxu0  ;;  %v1822_v16 = vmul.f32 0.35355338, %v1812_v24 }
 0x786   :  { %v1815_v5 = vpop.f32.mrb[58].mxu1  ;;  %v1954_v1 = vpop.f32.mrb[106].mxu0 }
 0x787   :  { %v3271_v10 = vpop.f32.mrb[59].mxu1  ;;  %v3289_v34 = vpop.f32.mrb[107].mxu0  ;;  %v4744_v42 = vadd.f32 %v4741_v31, %v1961_v49  ;;  %v4757_v36 = vadd.f32 %v4741_v31, %v1822_v16 }
 0x788   :  { %1829 = vmax.xlane.f32.xlu1 %v1828_v46 }
 0x789   :  { %v1979_v26 = vsel %vm533_vm15, %v4744_v42, -inf  ;;  %v1840_v12 = vsel %vm533_vm15, %v4757_v36, -inf }
 0x78a   :  { %1980 = vmax.xlane.f32.xlu0 %v1979_v26 }
 0x78c   :  { %1835 = vmax.xlane.f32.xlu1 %v1834_v17  ;;  %v2210_v30 = vpop.f32.mrb[108].mxu0 }
 0x78d   :  { %v2232_v47 = vmul.f32 0.35355338, %v2210_v30  ;;  %v3334_v19 = vpop.f32.mrb[109].mxu0 }
 0x78e   :  { %1832 = vmax.xlane.f32.xlu0 %v1831_v22  ;;  %v2213_v13 = vpop.f32.mrb[110].mxu0 }
 0x78f   :  { %v2233_v29 = vmul.f32 0.35355338, %v2213_v13  ;;  %v3335_v45 = vpop.f32.mrb[111].mxu0  ;;  %v4772_v62 = vadd.f32 %v4696_v48, %v2232_v47 }
 0x790   :  { %1841 = vmax.xlane.f32.xlu1 %v1840_v12 }
 0x791   :  { %v4769_v50 = vadd.f32 %v4706_v51, %v2233_v29  ;;  %v2242_v6 = vsel %vm520_vm14, %v4772_v62, -inf }
 0x792   :  { %1838 = vmax.xlane.f32.xlu0 %v1837_v7 }
 0x793   :  { %v2245_v0 = vsel %vm520_vm14, %v4769_v50, -inf }
 0x794   :  { %2246 = vmax.xlane.f32.xlu1 %v2245_v0  ;;  %v2218_v2 = vpop.f32.mrb[112].mxu0 }
 0x795   :  { %v2234_v55 = vmul.f32 0.35355338, %v2218_v2  ;;  %v3338_v53 = vpop.f32.mrb[113].mxu0 }
 0x796   :  { %2243 = vmax.xlane.f32.xlu0 %v2242_v6  ;;  %v2221_v9 = vpop.f32.mrb[114].mxu0 }
 0x797   :  { %v2235_v27 = vmul.f32 0.35355338, %v2221_v9  ;;  %v3339_v63 = vpop.f32.mrb[115].mxu0  ;;  %v4779_v14 = vadd.f32 %v4716_v4, %v2234_v55 }
 0x799   :  { %v2248_v57 = vsel %vm520_vm14, %v4779_v14, -inf  ;;  %v4784_v8 = vadd.f32 %v4726_v54, %v2235_v27 }
 0x79a   :  { %2249 = vmax.xlane.f32.xlu0 %v2248_v57 }
 0x79b   :  { %v2251_v24 = vsel %vm520_vm14, %v4784_v8, -inf }
 0x79c   :  { %2252 = vmax.xlane.f32.xlu1 %v2251_v24  ;;  %v2226_v41 = vpop.f32.mrb[116].mxu0 }
 0x79d   :  { %v2236_v37 = vmul.f32 0.35355338, %v2226_v41  ;;  %v3342_v49 = vpop.f32.mrb[117].mxu0 }
 0x79e   :  { %v2229_v15 = vpop.f32.mrb[118].mxu0 }
 0x79f   :  { %v3343_v28 = vpop.f32.mrb[119].mxu0  ;;  %v4789_v5 = vadd.f32 %v4741_v31, %v2236_v37 }
 0x7a1   :  { %v2254_v1 = vsel %vm533_vm15, %v4789_v5, -inf }
 0x7a2   :  { %2255 = vmax.xlane.f32.xlu0 %v2254_v1 }
 0x7a4   :  { %v2422_v16 = vpop.f32.mrb[120].mxu0 }
 0x7a5   :  { %v2444_v10 = vmul.f32 0.35355338, %v2422_v16  ;;  %v3370_v34 = vpop.f32.mrb[121].mxu0 }
 0x7a6   :  { %v2425_v46 = vpop.f32.mrb[122].mxu0 }
 0x7a7   :  { %v2445_v21 = vmul.f32 0.35355338, %v2425_v46  ;;  %v3371_v26 = vpop.f32.mrb[123].mxu0  ;;  %v4794_v17 = vadd.f32 %v4696_v48, %v2444_v10 }
 0x7a9   :  { %v2454_v30 = vsel %vm520_vm14, %v4794_v17, -inf  ;;  %v4799_v47 = vadd.f32 %v4706_v51, %v2445_v21 }
 0x7aa   :  { %2455 = vmax.xlane.f32.xlu1 %v2454_v30 }
 0x7ab   :  { %v2457_v19 = vsel %vm520_vm14, %v4799_v47, -inf }
 0x7ac   :  { %2458 = vmax.xlane.f32.xlu0 %v2457_v19  ;;  %v2430_v22 = vpop.f32.mrb[124].mxu0 }
 0x7ad   :  { %v2446_v13 = vmul.f32 0.35355338, %v2430_v22  ;;  %v3374_v29 = vpop.f32.mrb[125].mxu0 }
 0x7ae   :  { %v2433_v45 = vpop.f32.mrb[126].mxu0 }
 0x7af   :  { %v2447_v12 = vmul.f32 0.35355338, %v2433_v45  ;;  %v3375_v7 = vpop.f32.mrb[127].mxu0  ;;  %v4804_v48 = vadd.f32 %v4716_v4, %v2446_v13 }
 0x7b1   :  { %v2460_v0 = vsel %vm520_vm14, %v4804_v48, -inf  ;;  %v4809_v51 = vadd.f32 %v4726_v54, %v2447_v12 }
 0x7b2   :  { %2461 = vmax.xlane.f32.xlu1 %v2460_v0 }
 0x7b3   :  { %v2463_v2 = vsel %vm520_vm14, %v4809_v51, -inf }
 0x7b4   :  { %2464 = vmax.xlane.f32.xlu0 %v2463_v2  ;;  %v2438_v55 = vpop.f32.mrb[128].mxu0 }
 0x7b5   :  { %v3378_v53 = vpop.f32.mrb[129].mxu0  ;;  %v2448_v1 = vmul.f32 0.35355338, %v2438_v55 }
 0x7b6   :  { %v2441_v6 = vpop.f32.mrb[130].mxu0 }
 0x7b7   :  { %v3379_v9 = vpop.f32.mrb[131].mxu0  ;;  %v4823_v21 = vadd.f32 %v4741_v31, %v2448_v1 }
 0x7b9   :  { %v2466_v31 = vsel %vm533_vm15, %v4823_v21, -inf }
 0x807   :  { %v1969_v27 = vpop.xlane.xlu0 %1968 }
 0x808   :  { %v1982_v63 = vsub.f32 %v4699_v40, %v1969_v27 }
 0x809   :  { %v1972_v4 = vpop.xlane.xlu1 %1971 }
 0x80a   :  { %v1987_v57 = vmul.f32 1.442695, %v1982_v63  ;;  %v1983_v24 = vsub.f32 %v4709_v56, %v1972_v4 }
 0x80c   :  { %3596 = vpow2.f32 %v1987_v57  ;;  %v1989_v41 = vmul.f32 1.442695, %v1983_v24 }
 0x80e   :  { %3598 = vpow2.f32 %v1989_v41 }
 0x80f   :  { %v1975_v54 = vpop.xlane.xlu0 %1974 }
 0x810   :  { %v1984_v37 = vsub.f32 %v4719_v11, %v1975_v54 }
 0x811   :  { %v1978_v49 = vpop.xlane.xlu1 %1977 }
 0x812   :  { %v1991_v15 = vmul.f32 1.442695, %v1984_v37  ;;  %v1985_v28 = vsub.f32 %v4729_v43, %v1978_v49 }
 0x814   :  { %3600 = vpow2.f32 %v1991_v15  ;;  %v1993_v16 = vmul.f32 1.442695, %v1985_v28 }
 0x815   :  { %v1830_v10 = vpop.xlane.xlu1 %1829 }
 0x816   :  { %v4817_v34 = vpop.eup %3596  ;;  %3602 = vpow2.f32 %v1993_v16  ;;  %v1843_v40 = vsub.f32 %v4734_v23, %v1830_v10 }
 0x817   :  { %v1981_v56 = vpop.xlane.xlu0 %1980  ;;  %v1997_v46 = vsel %vm520_vm14, %v4817_v34, 0.0 }
 0x818   :  { %v4825_v11 = vpop.eup %3598  ;;  %v1848_v26 = vmul.f32 1.442695, %v1843_v40  ;;  %v1986_v43 = vsub.f32 %v4744_v42, %v1981_v56  ;;  %1998 = vadd.xlane.f32.xlu1 %v1997_v46 }
 0x819   :  { %v1836_v30 = vpop.xlane.xlu1 %1835  ;;  %v2000_v19 = vsel %vm520_vm14, %v4825_v11, 0.0 }
 0x81a   :  { %3604 = vpow2.f32 %v1848_v26  ;;  %v1995_v22 = vmul.f32 1.442695, %v1986_v43  ;;  %v1845_v23 = vsub.f32 %v4747_v61, %v1836_v30  ;;  %2001 = vadd.xlane.f32.xlu0 %v2000_v19 }
 0x81b   :  { %v1833_v13 = vpop.xlane.xlu0 %1832 }
 0x81c   :  { %3606 = vpow2.f32 %v1995_v22  ;;  %v1852_v29 = vmul.f32 1.442695, %v1845_v23  ;;  %v1844_v45 = vsub.f32 %v4752_v59, %v1833_v13  ;;  %2467 = vmax.xlane.f32.xlu1 %v2466_v31 }
 0x81d   :  { %v1842_v42 = vpop.xlane.xlu1 %1841 }
 0x81e   :  { %v4834_v12 = vpop.eup %3600  ;;  %3608 = vpow2.f32 %v1852_v29  ;;  %v1850_v7 = vmul.f32 1.442695, %v1844_v45  ;;  %v1847_v0 = vsub.f32 %v4757_v36, %v1842_v42 }
 0x81f   :  { %v1839_v2 = vpop.xlane.xlu0 %1838  ;;  %v2003_v61 = vsel %vm520_vm14, %v4834_v12, 0.0 }
 0x820   :  { %v4839_v55 = vpop.eup %3602  ;;  %3610 = vpow2.f32 %v1850_v7  ;;  %v1856_v53 = vmul.f32 1.442695, %v1847_v0  ;;  %v1846_v6 = vsub.f32 %v4762_v39, %v1839_v2  ;;  %2004 = vadd.xlane.f32.xlu0 %v2003_v61 }
 0x821   :  { %v2247_v59 = vpop.xlane.xlu1 %2246  ;;  %v2006_v9 = vsel %vm520_vm14, %v4839_v55, 0.0 }
 0x822   :  { %3612 = vpow2.f32 %v1856_v53  ;;  %v1854_v27 = vmul.f32 1.442695, %v1846_v6  ;;  %v2258_v63 = vsub.f32 %v4769_v50, %v2247_v59  ;;  %2007 = vadd.xlane.f32.xlu1 %v2006_v9 }
 0x823   :  { %v2244_v36 = vpop.xlane.xlu0 %2243 }
 0x824   :  { %v4845_v4 = vpop.eup %3604  ;;  %3614 = vpow2.f32 %v1854_v27  ;;  %v2264_v57 = vmul.f32 1.442695, %v2258_v63  ;;  %v2257_v24 = vsub.f32 %v4772_v62, %v2244_v36 }
 0x825   :  { %v1858_v39 = vsel %vm520_vm14, %v4845_v4, 0.0 }
 0x826   :  { %v4850_v41 = vpop.eup %3606  ;;  %3616 = vpow2.f32 %v2264_v57  ;;  %v2262_v54 = vmul.f32 1.442695, %v2257_v24  ;;  %1859 = vadd.xlane.f32.xlu1 %v1858_v39 }
 0x827   :  { %v2250_v37 = vpop.xlane.xlu0 %2249  ;;  %v2009_v50 = vsel %vm533_vm15, %v4850_v41, 0.0 }
 0x828   :  { %v4854_v49 = vpop.eup %3608  ;;  %3618 = vpow2.f32 %v2262_v54  ;;  %v2259_v15 = vsub.f32 %v4779_v14, %v2250_v37  ;;  %2010 = vadd.xlane.f32.xlu0 %v2009_v50 }
 0x829   :  { %v2253_v28 = vpop.xlane.xlu1 %2252  ;;  %v1864_v62 = vsel %vm520_vm14, %v4854_v49, 0.0 }
 0x82a   :  { %v4859_v1 = vpop.eup %3610  ;;  %v2266_v16 = vmul.f32 1.442695, %v2259_v15  ;;  %v2260_v10 = vsub.f32 %v4784_v8, %v2253_v28  ;;  %1865 = vadd.xlane.f32.xlu1 %v1864_v62  ;;  %v1379_v28 = vsel %vm106_vm0, %v4522_v52, 0.0  ;;  %v1385_v62 = vsel %vm106_vm0, %v4542_v20, 0.0 }
 0x82b   :  { %v1861_v40 = vsel %vm520_vm14, %v4859_v1, 0.0 }
 0x82c   :  { %v4864_v56 = vpop.eup %3612  ;;  %3620 = vpow2.f32 %v2266_v16  ;;  %v2268_v46 = vmul.f32 1.442695, %v2260_v10  ;;  %1862 = vadd.xlane.f32.xlu0 %v1861_v40  ;;  %v1391_v16 = vsel %vm119_vm1, %v4583_v18, 0.0 }
 0x82d   :  { %v1870_v14 = vsel %vm533_vm15, %v4864_v56, 0.0 }
 0x82e   :  { %v4868_v26 = vpop.eup %3614  ;;  %3622 = vpow2.f32 %v2268_v46  ;;  %1871 = vadd.xlane.f32.xlu1 %v1870_v14 }
 0x82f   :  { %v2256_v43 = vpop.xlane.xlu0 %2255  ;;  %v1867_v8 = vsel %vm520_vm14, %v4868_v26, 0.0 }
 0x830   :  { %v4872_v30 = vpop.eup %3616  ;;  %v2261_v19 = vsub.f32 %v4789_v5, %v2256_v43  ;;  %1868 = vadd.xlane.f32.xlu0 %v1867_v8 }
 0x831   :  { %v2275_v22 = vsel %vm520_vm14, %v4872_v30, 0.0 }
 0x832   :  { %v4877_v23 = vpop.eup %3618  ;;  %v2270_v13 = vmul.f32 1.442695, %v2261_v19  ;;  %2276 = vadd.xlane.f32.xlu1 %v2275_v22 }
 0x833   :  { %v2272_v31 = vsel %vm520_vm14, %v4877_v23, 0.0 }
 0x834   :  { %3624 = vpow2.f32 %v2270_v13  ;;  %2273 = vadd.xlane.f32.xlu0 %v2272_v31 }
 0x836   :  { %v4881_v29 = vpop.eup %3620 }
 0x837   :  { %v2456_v45 = vpop.xlane.xlu1 %2455  ;;  %v2278_v42 = vsel %vm520_vm14, %v4881_v29, 0.0 }
 0x838   :  { %v4885_v5 = vpop.eup %3622  ;;  %v2469_v7 = vsub.f32 %v4794_v17, %v2456_v45  ;;  %2279 = vadd.xlane.f32.xlu0 %v2278_v42 }
 0x839   :  { %v2459_v0 = vpop.xlane.xlu0 %2458  ;;  %v2281_v2 = vsel %vm520_vm14, %v4885_v5, 0.0 }
 0x83a   :  { %v2474_v61 = vmul.f32 1.442695, %v2469_v7  ;;  %v2470_v53 = vsub.f32 %v4799_v47, %v2459_v0  ;;  %2282 = vadd.xlane.f32.xlu1 %v2281_v2  ;;  %v1886_v0 = vmul.bf16 %v4638_v3, %v3951_v60 }
 0x83c   :  { %3626 = vpow2.f32 %v2474_v61  ;;  %v2476_v6 = vmul.f32 1.442695, %v2470_v53  ;;  %v1887_v53 = vmul.bf16 %v4650_v44, %v3951_v60 }
 0x83e   :  { %v4891_v59 = vpop.eup %3624  ;;  %3628 = vpow2.f32 %v2476_v6 }
 0x83f   :  { %v2462_v9 = vpop.xlane.xlu1 %2461  ;;  %v2284_v27 = vsel %vm533_vm15, %v4891_v59, 0.0 }
 0x840   :  { %v2471_v17 = vsub.f32 %v4804_v48, %v2462_v9  ;;  %2285 = vadd.xlane.f32.xlu0 %v2284_v27 }
 0x841   :  { %v2465_v63 = vpop.xlane.xlu0 %2464 }
 0x842   :  { %v2478_v36 = vmul.f32 1.442695, %v2471_v17  ;;  %v2472_v57 = vsub.f32 %v4809_v51, %v2465_v63  ;;  %v1888_v17 = vmul.bf16 %v4659_v32, %v3951_v60  ;;  %v1382_v63 = vsel %vm106_vm0, %v4532_v58, 0.0 }
 0x844   :  { %3630 = vpow2.f32 %v2478_v36  ;;  %v2480_v24 = vmul.f32 1.442695, %v2472_v57  ;;  %v2106_v57 = vsel %vm731_vm10, %v1888_v17, 0 }
 0x846   :  { %v4897_v47 = vpop.eup %3626  ;;  %3632 = vpow2.f32 %v2480_v24 }
 0x847   :  { %v2484_v39 = vsel %vm520_vm14, %v4897_v47, 0.0 }
 0x848   :  { %v4901_v54 = vpop.eup %3628  ;;  %2485 = vadd.xlane.f32.xlu1 %v2484_v39 }
 0x849   :  { %v2487_v37 = vsel %vm520_vm14, %v4901_v54, 0.0 }
 0x84a   :  { %2488 = vadd.xlane.f32.xlu0 %v2487_v37 }
 0x84e   :  { %v4905_v48 = vpop.eup %3630 }
 0x84f   :  { %v2490_v51 = vsel %vm520_vm14, %v4905_v48, 0.0 }
 0x850   :  { %v4909_v50 = vpop.eup %3632  ;;  %2491 = vadd.xlane.f32.xlu1 %v2490_v51 }
 0x851   :  { %v2493_v15 = vsel %vm520_vm14, %v4909_v50, 0.0 }
 0x852   :  { %2494 = vadd.xlane.f32.xlu0 %v2493_v15 }
 0x856   :  { %1380 = vadd.xlane.f32.xlu0 %v1379_v28 }
 0x85a   :  { %1386 = vadd.xlane.f32.xlu0 %v1385_v62 }
 0x85e   :  { %1392 = vadd.xlane.f32.xlu0 %v1391_v16 }
 0x8a5   :  { %v1999_v10 = vpop.xlane.xlu1 %1998 }
 0x8a6   :  { %3634 = vrcp.f32 %v1999_v10 }
 0x8a7   :  { %v2002_v40 = vpop.xlane.xlu0 %2001 }
 0x8a8   :  { %3636 = vrcp.f32 %v2002_v40  ;;  %v2300_v40 = vmul.bf16 %v4638_v3, %v4009_v33 }
 0x8a9   :  { %v2468_v46 = vpop.xlane.xlu1 %2467 }
 0x8aa   :  { %v2473_v14 = vsub.f32 %v4823_v21, %v2468_v46 }
 0x8ac   :  { %v2482_v43 = vmul.f32 1.442695, %v2473_v14 }
 0x8ad   :  { %v2005_v8 = vpop.xlane.xlu0 %2004 }
 0x8ae   :  { %3638 = vpow2.f32 %v2482_v43 }
 0x8af   :  { %3640 = vrcp.f32 %v2005_v8  ;;  %v2008_v19 = vpop.xlane.xlu1 %2007 }
 0x8b0   :  { %v3635_v22 = vpop.eup %3634  ;;  %3642 = vrcp.f32 %v2008_v19  ;;  %v2302_v19 = vmul.bf16 %v4659_v32, %v4009_v33 }
 0x8b1   :  { %v2017_v31 = vmul.f32 %v3635_v22, %v4817_v34 }
 0x8b2   :  { %v3637_v13 = vpop.eup %3636 }
 0x8b3   :  { %v2018_v45 = vmul.f32 %v3637_v13, %v4825_v11  ;;  %v1860_v6 = vpop.xlane.xlu1 %1859 }
 0x8b5   :  { %v2022_v42 = vpack.c.bf16 %v2018_v45, %v2017_v31  ;;  %v2011_v7 = vpop.xlane.xlu0 %2010 }
 0x8b6   :  { %3644 = vrcp.f32 %v2011_v7 }
 0x8b7   :  { %3297 = vmatmul.mubr.msk.bf16.vlgmr.msra.gmra.mrb[60].mxu1 %vm520_vm14, %v2022_v42  ;;  %v1866_v39 = vpop.xlane.xlu1 %1865 }
 0x8b8   :  { %v4925_v21 = vpop.eup %3638  ;;  %3309 = vmatpush3.bf16.msra.mxu1 %v1886_v0  ;;  %3300 = vmatprep.mubr.msk.bf16.mxu1 %vm3723_vm2, %v3722_v35 }
 0x8b9   :  { %v3641_v2 = vpop.eup %3640  ;;  %v1863_v61 = vpop.xlane.xlu0 %1862  ;;  %3310 = vmatprep.subr.bf16.mxu1 %v3722_v35  ;;  %v2496_v34 = vsel %vm533_vm15, %v4925_v21, 0.0 }
 0x8ba   :  { %v3643_v11 = vpop.eup %3642  ;;  %2497 = vadd.xlane.f32.xlu1 %v2496_v34  ;;  %v2019_v9 = vmul.f32 %v3641_v2, %v4834_v12  ;;  %3646 = vrcp.f32 %v1863_v61 }
 0x8bb   :  { %v2020_v27 = vmul.f32 %v3643_v11, %v4839_v55  ;;  %3648 = vrcp.f32 %v1860_v6  ;;  %v1388_v55 = vsel %vm106_vm0, %v4552_v25, 0.0  ;;  %v1872_v62 = vpop.xlane.xlu1 %1871  ;;  %v2512_v11 = vmul.bf16 %v4638_v3, %v4038_v38 }
 0x8bc   :  { %3311 = vmatpush3.bf16.msra.mxu1 %v1887_v53  ;;  %v2514_v3 = vmul.bf16 %v4659_v32, %v4038_v38 }
 0x8bd   :  { %3312 = vmatprep.subr.bf16.mxu1 %v3722_v35  ;;  %v2023_v36 = vpack.c.bf16 %v2020_v27, %v2019_v9  ;;  %v1869_v60 = vpop.xlane.xlu0 %1868 }
 0x8be   :  { %1383 = vadd.xlane.f32.xlu1 %v1382_v63  ;;  %3650 = vrcp.f32 %v1869_v60 }
 0x8bf   :  { %3301 = vmatmul.mubr.msk.bf16.gmra.mrb[64].mxu1 %vm520_vm14, %v2023_v36  ;;  %3652 = vrcp.f32 %v1866_v39  ;;  %v2277_v43 = vpop.xlane.xlu1 %2276 }
 0x8c0   :  { %v3645_v12 = vpop.eup %3644  ;;  %3313 = vmatpush3.bf16.msra.mxu1 %v2106_v57  ;;  %3304 = vmatprep.mubr.msk.bf16.mxu1 %vm3723_vm2, %v3722_v35  ;;  %3654 = vrcp.f32 %v1872_v62 }
 0x8c1   :  { %v2021_v24 = vmul.f32 %v3645_v12, %v4850_v41  ;;  %3344 = vmatprep.subr.bf16.mxu1 %v3722_v35  ;;  %v2274_v14 = vpop.xlane.xlu0 %2273 }
 0x8c2   :  { %1389 = vadd.xlane.f32.xlu1 %v1388_v55  ;;  %3656 = vrcp.f32 %v2274_v14 }
 0x8c3   :  { %v2024_v37 = vpack.c.bf16 %v2021_v24, %v2021_v24  ;;  %3658 = vrcp.f32 %v2277_v43 }
 0x8c4   :  { %v3647_v51 = vpop.eup %3646 }
 0x8c5   :  { %v3649_v15 = vpop.eup %3648  ;;  %v1879_v28 = vmul.f32 %v3647_v51, %v4859_v1 }
 0x8c6   :  { %v1878_v16 = vmul.f32 %v3649_v15, %v4845_v4  ;;  %v2301_v4 = vmul.bf16 %v4650_v44, %v4009_v33  ;;  %v2280_v33 = vpop.xlane.xlu0 %2279 }
 0x8c7   :  { %3305 = vmatmul.mubr.msk.bf16.gmra.mrb[68].mxu1 %vm520_vm14, %v2024_v37  ;;  %v2283_v31 = vpop.xlane.xlu1 %2282 }
 0x8c8   :  { %3314 = vmatprep.mubr.msk.bf16.mxu1 %vm3723_vm2, %v3722_v35  ;;  %v1883_v41 = vpack.c.bf16 %v1879_v28, %v1878_v16  ;;  %v3651_v10 = vpop.eup %3650  ;;  %3660 = vrcp.f32 %v2283_v31 }
 0x8c9   :  { %v3653_v46 = vpop.eup %3652  ;;  %v1881_v1 = vmul.f32 %v3651_v10, %v4868_v26  ;;  %v2313_v26 = vsel %vm731_vm10, %v2302_v19, 0  ;;  %3662 = vrcp.f32 %v2280_v33 }
 0x8ca   :  { %v1880_v8 = vmul.f32 %v3653_v46, %v4854_v49  ;;  %v3655_v13 = vpop.eup %3654 }
 0x8cb   :  { %v1882_v49 = vmul.f32 %v3655_v13, %v4864_v56 }
 0x8cc   :  { %v1884_v22 = vpack.c.bf16 %v1881_v1, %v1880_v8  ;;  %v3657_v42 = vpop.eup %3656 }
 0x8cd   :  { %v1885_v45 = vpack.c.bf16 %v1882_v49, %v1882_v49  ;;  %v3659_v7 = vpop.eup %3658  ;;  %v2292_v0 = vmul.f32 %v3657_v42, %v4877_v23  ;;  %v2286_v2 = vpop.xlane.xlu0 %2285 }
 0x8ce   :  { %v2293_v61 = vmul.f32 %v3659_v7, %v4872_v30  ;;  %3664 = vrcp.f32 %v2286_v2  ;;  %v2513_v30 = vmul.bf16 %v4650_v44, %v4038_v38 }
 0x8cf   :  { %3315 = vmatmul.mubr.msk.bf16.vlgmr.msra.gmra.mrb[60].mxu1 %vm520_vm14, %v1883_v41 }
 0x8d0   :  { %3345 = vmatpush3.bf16.msra.mxu1 %v2300_v40  ;;  %3318 = vmatprep.mubr.msk.bf16.mxu1 %vm3723_vm2, %v3722_v35  ;;  %v2297_v56 = vpack.c.bf16 %v2293_v61, %v2292_v0  ;;  %v3718_v0 = vld [vmem:[%s5211_s0 + $0x30] sm:$0xff] }
 0x8d1   :  { %3346 = vmatprep.subr.bf16.mxu1 %v3722_v35 }
 0x8d2   :  { %v3661_v34 = vpop.eup %3660 }
 0x8d3   :  { %v3663_v53 = vpop.eup %3662  ;;  %v2295_v23 = vmul.f32 %v3661_v34, %v4885_v5  ;;  %v2525_v5 = vsel %vm731_vm10, %v2514_v3, 0  ;;  %v3719_v3 = vld [vmem:[%s5211_s0 + $0x38] sm:$0xff] }
 0x8d4   :  { %3347 = vmatpush3.bf16.msra.mxu1 %v2301_v4  ;;  %v2294_v27 = vmul.f32 %v3663_v53, %v4881_v29 }
 0x8d5   :  { %3348 = vmatprep.subr.bf16.mxu1 %v3722_v35  ;;  %v2486_v9 = vpop.xlane.xlu1 %2485 }
 0x8d6   :  { %v2298_v17 = vpack.c.bf16 %v2295_v23, %v2294_v27 }
 0x8d7   :  { %3319 = vmatmul.mubr.msk.bf16.gmra.mrb[64].mxu1 %vm520_vm14, %v1884_v22  ;;  %v2489_v6 = vpop.xlane.xlu0 %2488 }
 0x8d8   :  { %3349 = vmatpush3.bf16.msra.mxu1 %v2313_v26  ;;  %3322 = vmatprep.mubr.msk.bf16.mxu1 %vm3723_vm2, %v3722_v35  ;;  %3666 = vrcp.f32 %v2489_v6  ;;  %v3665_v63 = vpop.eup %3664  ;;  %v3716_v26 = vld [vmem:[%s5221_s10] ss:$0 sm:$0xff] }
 0x8d9   :  { %3380 = vmatprep.subr.bf16.mxu1 %v3722_v35  ;;  %3668 = vrcp.f32 %v2486_v9  ;;  %v2296_v29 = vmul.f32 %v3665_v63, %v4891_v59 }
 0x8db   :  { %v2299_v38 = vpack.c.bf16 %v2296_v29, %v2296_v29  ;;  %v3720_v29 = vld [vmem:[%s5211_s0 + $0x40] sm:$0xff] }
 0x8dd   :  { %v2492_v36 = vpop.xlane.xlu1 %2491 }
 0x8df   :  { %3323 = vmatmul.mubr.msk.bf16.gmra.mrb[68].mxu1 %vm520_vm14, %v1885_v45  ;;  %v2495_v44 = vpop.xlane.xlu0 %2494 }
 0x8e0   :  { %3350 = vmatprep.mubr.msk.bf16.mxu1 %vm3723_vm2, %v3722_v35  ;;  %3670 = vrcp.f32 %v2495_v44 }
 0x8e1   :  { %3672 = vrcp.f32 %v2492_v36 }
 0x8e2   :  { %v3667_v32 = vpop.eup %3666 }
 0x8e3   :  { %v3669_v57 = vpop.eup %3668  ;;  %v2505_v12 = vmul.f32 %v3667_v32, %v4901_v54  ;;  %v1381_v22 = vpop.xlane.xlu0 %1380 }
 0x8e4   :  { %v2504_v60 = vmul.f32 %v3669_v57, %v4897_v47  ;;  %v1394_v34 = vmul.f32 0.03125, %v1381_v22 }
 0x8e6   :  { %v2509_v55 = vpack.c.bf16 %v2505_v12, %v2504_v60  ;;  %v5046_v9 = vsub.f32 %v4522_v52, %v1394_v34 }
 0x8e7   :  { %3351 = vmatmul.mubr.msk.bf16.vlgmr.msra.gmra.mrb[60].mxu1 %vm520_vm14, %v2297_v56  ;;  %v1387_v56 = vpop.xlane.xlu0 %1386 }
 0x8e8   :  { %3381 = vmatpush3.bf16.msra.mxu1 %v2512_v11  ;;  %3354 = vmatprep.mubr.msk.bf16.mxu1 %vm3723_vm2, %v3722_v35  ;;  %v1396_v27 = vmul.f32 0.03125, %v1387_v56  ;;  %v1404_v12 = vmul.f32 %v5046_v9, %v5046_v9 }
 0x8e9   :  { %3382 = vmatprep.subr.bf16.mxu1 %v3722_v35 }
 0x8ea   :  { %v3671_v24 = vpop.eup %3670 }
 0x8eb   :  { %v3673_v59 = vpop.eup %3672  ;;  %v2507_v39 = vmul.f32 %v3671_v24, %v4909_v50  ;;  %v1393_v44 = vpop.xlane.xlu0 %1392 }
 0x8ec   :  { %3383 = vmatpush3.bf16.msra.mxu1 %v2513_v30  ;;  %v2506_v37 = vmul.f32 %v3673_v59, %v4905_v48  ;;  %v1398_v32 = vmul.f32 0.03125, %v1393_v44 }
 0x8ed   :  { %3384 = vmatprep.subr.bf16.mxu1 %v3722_v35 }
 0x8ee   :  { %v2510_v51 = vpack.c.bf16 %v2507_v39, %v2506_v37  ;;  %v5070_v60 = vsub.f32 %v4583_v18, %v1398_v32 }
 0x8ef   :  { %3355 = vmatmul.mubr.msk.bf16.gmra.mrb[64].mxu1 %vm520_vm14, %v2298_v17 }
 0x8f0   :  { %3385 = vmatpush3.bf16.msra.mxu1 %v2525_v5  ;;  %3358 = vmatprep.mubr.msk.bf16.mxu1 %vm3723_vm2, %v3722_v35  ;;  %v1408_v59 = vmul.f32 %v5070_v60, %v5070_v60 }
 0x8f2   :  { %v1421_v39 = vsel %vm119_vm1, %v1408_v59, 0.0 }
 0x8f7   :  { %3359 = vmatmul.mubr.msk.bf16.gmra.mrb[68].mxu1 %vm520_vm14, %v2299_v38  ;;  %v5060_v38 = vsub.f32 %v4542_v20, %v1396_v27 }
 0x8f8   :  { %3386 = vmatprep.mubr.msk.bf16.mxu1 %vm3723_vm2, %v3722_v35 }
 0x8f9   :  { %v1406_v20 = vmul.f32 %v5060_v38, %v5060_v38 }
 0x8fb   :  { %v1415_v24 = vsel %vm106_vm0, %v1406_v20, 0.0 }
 0x8ff   :  { %3387 = vmatmul.mubr.msk.bf16.vlgmr.msra.gmra.mrb[60].mxu1 %vm520_vm14, %v2509_v55  ;;  %v1409_v55 = vsel %vm106_vm0, %v1404_v12, 0.0 }
 0x900   :  { %3390 = vmatprep.mubr.msk.bf16.mxu1 %vm3723_vm2, %v3722_v35 }
 0x907   :  { %3391 = vmatmul.mubr.msk.bf16.gmra.mrb[64].mxu1 %vm520_vm14, %v2510_v51 }
 0x908   :  { %3394 = vmatprep.mubr.msk.bf16.mxu1 %vm3723_vm2, %v3722_v35 }
 0x947   :  { %v2498_v54 = vpop.xlane.xlu1 %2497 }
 0x948   :  { %3674 = vrcp.f32 %v2498_v54 }
 0x94b   :  { %v1384_v37 = vpop.xlane.xlu1 %1383 }
 0x94c   :  { %v1395_v51 = vmul.f32 0.03125, %v1384_v37 }
 0x94f   :  { %v1390_v54 = vpop.xlane.xlu1 %1389 }
 0x952   :  { %v3675_v47 = vpop.eup %3674 }
 0x953   :  { %v2508_v15 = vmul.f32 %v3675_v47, %v4925_v21  ;;  %v5080_v47 = vsub.f32 %v4532_v58, %v1395_v51 }
 0x955   :  { %v2511_v28 = vpack.c.bf16 %v2508_v15, %v2508_v15  ;;  %v1397_v15 = vmul.f32 0.03125, %v1390_v54 }
 0x957   :  { %3395 = vmatmul.mubr.msk.bf16.gmra.mrb[68].mxu1 %vm520_vm14, %v2511_v28 }
 0x9d2   :  { %v2561_v62 = vpop.f32.mrb[60].mxu1 }
 0x9d3   :  { %v3388_v16 = vpop.f32.mrb[61].mxu1 }
 0x9d4   :  { %v2564_v41 = vpop.f32.mrb[62].mxu1 }
 0x9d5   :  { %v2588_v50 = vpack.c.bf16 %v2564_v41, %v2561_v62  ;;  %v3389_v10 = vpop.f32.mrb[63].mxu1  ;;  %v3721_v41 = vld [vmem:[%s5211_s0 + $0x48] sm:$0xf] }
 0x9d7   :  { %3403 = vmatmul.mubr.msk.bf16.vlgmr.msra.gmra.mrb[132].mxu0 %vm106_vm0, %v2588_v50 }
 0x9d8   :  { %3406 = vmatprep.mubr.msk.bf16.mxu0 %vm3723_vm2, %v3722_v35 }
 0x9da   :  { %v2569_v48 = vpop.f32.mrb[64].mxu1 }
 0x9db   :  { %v3392_v40 = vpop.f32.mrb[65].mxu1 }
 0x9dc   :  { %v2572_v46 = vpop.f32.mrb[66].mxu1  ;;  %v1405_v40 = vmul.f32 %v5080_v47, %v5080_v47 }
 0x9dd   :  { %v2589_v14 = vpack.c.bf16 %v2572_v46, %v2569_v48  ;;  %v3393_v1 = vpop.f32.mrb[67].mxu1  ;;  %v5088_v48 = vsub.f32 %v4552_v25, %v1397_v15 }
 0x9de   :  { %v1412_v46 = vsel %vm106_vm0, %v1405_v40, 0.0 }
 0x9df   :  { %3407 = vmatmul.mubr.msk.bf16.gmra.mrb[136].mxu0 %vm106_vm0, %v2589_v14  ;;  %v1407_v14 = vmul.f32 %v5088_v48, %v5088_v48 }
 0x9e0   :  { %3410 = vmatprep.mubr.msk.bf16.mxu0 %vm3723_vm2, %v3722_v35  ;;  %v3717_v35 = vld [vmem:[%s5211_s0 + $0x28] sm:$0xff] }
 0x9e1   :  { %v1418_v25 = vsel %vm106_vm0, %v1407_v14, 0.0 }
 0xa2a   :  { %v2577_v21 = vpop.f32.mrb[68].mxu1 }
 0xa2b   :  { %v2590_v4 = vpack.c.bf16 %v2577_v21, %v2577_v21  ;;  %v3396_v43 = vpop.f32.mrb[69].mxu1 }
 0xa2c   :  { %v2580_v8 = vpop.f32.mrb[70].mxu1 }
 0xa2d   :  { %v3397_v19 = vpop.f32.mrb[71].mxu1  ;;  %3411 = vmatmul.mubr.msk.bf16.gmra.mrb[140].mxu0 %vm106_vm0, %v2590_v4 }
 0xaaa   :  { %v2634_v13 = vpop.f32.mrb[132].mxu0 }
 0xaab   :  { %v2635_v31 = vadd.f32 %v3716_v26, %v2634_v13  ;;  %v3404_v49 = vpop.f32.mrb[133].mxu0 }
 0xaac   :  { %v2637_v33 = vpop.f32.mrb[134].mxu0 }
 0xaad   :  { %v5024_v45 = vadd.f32 %v3717_v35, %v2635_v31  ;;  %v2638_v42 = vadd.f32 %v3716_v26, %v2637_v33  ;;  %v3405_v7 = vpop.f32.mrb[135].mxu0 }
 0xaaf   :  { %2852 = vst.msk [vmem:[%s5222_s13 + $0x28] sm:$0xff] %vm106_vm0, %v5024_v45  ;;  %v5034_v2 = vadd.f32 %v3718_v0, %v2638_v42  ;;  %v2667_v61 = vsel %vm106_vm0, %v5024_v45, 0.0 }
 0xab0   :  { %2668 = vadd.xlane.f32.xlu1 %v2667_v61 }
 0xab1   :  { %2853 = vst.msk [vmem:[%s5222_s13 + $0x30] sm:$0xff] %vm106_vm0, %v5034_v2  ;;  %v2670_v11 = vsel %vm106_vm0, %v5034_v2, 0.0 }
 0xab2   :  { %2671 = vadd.xlane.f32.xlu0 %v2670_v11  ;;  %v2642_v53 = vpop.f32.mrb[136].mxu0 }
 0xab3   :  { %v2643_v6 = vadd.f32 %v3716_v26, %v2642_v53  ;;  %v3408_v23 = vpop.f32.mrb[137].mxu0 }
 0xab4   :  { %v2645_v30 = vpop.f32.mrb[138].mxu0 }
 0xab5   :  { %v2658_v17 = vadd.f32 %v3719_v3, %v2643_v6  ;;  %v2646_v63 = vadd.f32 %v3716_v26, %v2645_v30  ;;  %v3409_v5 = vpop.f32.mrb[139].mxu0 }
 0xab6   :  { %v5128_v5 = vld [vmem:[%s5223_s11] ss:$0 sm:$0xff] }
 0xab7   :  { %2854 = vst.msk [vmem:[%s5222_s13 + $0x38] sm:$0xff] %vm106_vm0, %v2658_v17  ;;  %v2659_v52 = vadd.f32 %v3720_v29, %v2646_v63  ;;  %v2673_v36 = vsel %vm106_vm0, %v2658_v17, 0.0  ;;  %v5134_v29 = vld [vmem:[%s5224_s12] ss:$0 sm:$0xff] }
 0xab8   :  { %2674 = vadd.xlane.f32.xlu1 %v2673_v36 }
 0xab9   :  { %2855 = vst.msk [vmem:[%s5222_s13 + $0x40] sm:$0xff] %vm106_vm0, %v2659_v52  ;;  %v2676_v57 = vsel %vm106_vm0, %v2659_v52, 0.0 }
 0xaba   :  { %2677 = vadd.xlane.f32.xlu0 %v2676_v57 }
 0xabe   :  { %1410 = vadd.xlane.f32.xlu0 %v1409_v55 }
 0xac2   :  { %1416 = vadd.xlane.f32.xlu0 %v1415_v24 }
 0xac6   :  { %1422 = vadd.xlane.f32.xlu0 %v1421_v39 }
 0xb00   :  { %v2650_v18 = vpop.f32.mrb[140].mxu0 }
 0xb01   :  { %v2651_v28 = vadd.f32 %v3716_v26, %v2650_v18  ;;  %v3412_v62 = vpop.f32.mrb[141].mxu0 }
 0xb02   :  { %v2653_v16 = vpop.f32.mrb[142].mxu0 }
 0xb03   :  { %v5085_v50 = vadd.f32 %v3721_v41, %v2651_v28  ;;  %v3413_v10 = vpop.f32.mrb[143].mxu0 }
 0xb05   :  { %2856 = vst.msk [vmem:[%s5222_s13 + $0x48] sm:$0xf] %vm119_vm1, %v5085_v50  ;;  %v2679_v58 = vsel %vm119_vm1, %v5085_v50, 0.0 }
 0xb06   :  { %2680 = vadd.xlane.f32.xlu1 %v2679_v58 }
 0xb0a   :  { %1413 = vadd.xlane.f32.xlu1 %v1412_v46 }
 0xb0e   :  { %1419 = vadd.xlane.f32.xlu1 %v1418_v25 }
 0xb3d   :  { %v2669_v1 = vpop.xlane.xlu1 %2668 }
 0xb3e   :  { %v2682_v21 = vmul.f32 0.03125, %v2669_v1 }
 0xb3f   :  { %v2672_v4 = vpop.xlane.xlu0 %2671 }
 0xb40   :  { %v5104_v43 = vsub.f32 %v5024_v45, %v2682_v21  ;;  %v2683_v8 = vmul.f32 0.03125, %v2672_v4 }
 0xb42   :  { %v5107_v19 = vsub.f32 %v5034_v2, %v2683_v8  ;;  %v2692_v22 = vmul.f32 %v5104_v43, %v5104_v43 }
 0xb44   :  { %v2697_v13 = vsel %vm106_vm0, %v2692_v22, 0.0  ;;  %v2693_v26 = vmul.f32 %v5107_v19, %v5107_v19 }
 0xb45   :  { %v2675_v31 = vpop.xlane.xlu1 %2674  ;;  %2698 = vadd.xlane.f32.xlu1 %v2697_v13 }
 0xb46   :  { %v2684_v49 = vmul.f32 0.03125, %v2675_v31  ;;  %v2700_v33 = vsel %vm106_vm0, %v2693_v26, 0.0 }
 0xb47   :  { %2701 = vadd.xlane.f32.xlu0 %v2700_v33  ;;  %v2678_v35 = vpop.xlane.xlu0 %2677 }
 0xb48   :  { %v5115_v45 = vsub.f32 %v2658_v17, %v2684_v49  ;;  %v2685_v42 = vmul.f32 0.03125, %v2678_v35 }
 0xb4a   :  { %v5117_v7 = vsub.f32 %v2659_v52, %v2685_v42  ;;  %v2694_v0 = vmul.f32 %v5115_v45, %v5115_v45 }
 0xb4b   :  { %v1411_v2 = vpop.xlane.xlu0 %1410 }
 0xb4c   :  { %v1424_v61 = vmul.f32 0.03125, %v1411_v2  ;;  %v2703_v56 = vsel %vm106_vm0, %v2694_v0, 0.0  ;;  %v2695_v34 = vmul.f32 %v5117_v7, %v5117_v7 }
 0xb4d   :  { %2704 = vadd.xlane.f32.xlu1 %v2703_v56 }
 0xb4e   :  { %v1429_v11 = vadd.f32 1e-05, %v1424_v61  ;;  %v2706_v53 = vsel %vm106_vm0, %v2695_v34, 0.0 }
 0xb4f   :  { %2707 = vadd.xlane.f32.xlu0 %v2706_v53  ;;  %v1417_v6 = vpop.xlane.xlu0 %1416 }
 0xb50   :  { %3676 = vrsqrt.f32 %v1429_v11  ;;  %v1426_v23 = vmul.f32 0.03125, %v1417_v6 }
 0xb52   :  { %v1431_v30 = vadd.f32 1e-05, %v1426_v23 }
 0xb53   :  { %v1423_v27 = vpop.xlane.xlu0 %1422 }
 0xb54   :  { %3678 = vrsqrt.f32 %v1431_v30  ;;  %v1428_v3 = vmul.f32 0.03125, %v1423_v27 }
 0xb56   :  { %v1433_v17 = vadd.f32 1e-05, %v1428_v3 }
 0xb58   :  { %3680 = vrsqrt.f32 %v1433_v17 }
 0xb5a   :  { %v3677_v63 = vpop.eup %3676 }
 0xb5b   :  { %v1439_v44 = vmul.f32 %v3677_v63, %v5046_v9 }
 0xb5d   :  { %v1450_v52 = vmul.f32 %v5128_v5, %v1439_v44 }
 0xb5e   :  { %v3679_v36 = vpop.eup %3678 }
 0xb5f   :  { %v1461_v32 = vadd.f32 %v5134_v29, %v1450_v52  ;;  %v1441_v57 = vmul.f32 %v3679_v36, %v5060_v38 }
 0xb61   :  { %1466 = vst.msk [vmem:[%s5225_s14] sm:$0xff] %vm106_vm0, %v1461_v32  ;;  %v1452_v12 = vmul.f32 %v5128_v5, %v1441_v57 }
 0xb62   :  { %v3681_v9 = vpop.eup %3680 }
 0xb63   :  { %v1463_v55 = vadd.f32 %v5134_v29, %v1452_v12  ;;  %v1443_v20 = vmul.f32 %v3681_v9, %v5070_v60 }
 0xb65   :  { %1468 = vst.msk [vmem:[%s5225_s14 + $0x10] sm:$0xff] %vm106_vm0, %v1463_v55  ;;  %v1454_v24 = vmul.f32 %v5128_v5, %v1443_v20 }
 0xb67   :  { %v1465_v38 = vadd.f32 %v5134_v29, %v1454_v24 }
 0xb69   :  { %1470 = vst.msk [vmem:[%s5225_s14 + $0x20] sm:$0xf] %vm119_vm1, %v1465_v38 }
 0xb93   :  { %v2681_v59 = vpop.xlane.xlu1 %2680 }
 0xb94   :  { %v2686_v39 = vmul.f32 0.03125, %v2681_v59 }
 0xb96   :  { %v5157_v37 = vsub.f32 %v5085_v50, %v2686_v39 }
 0xb97   :  { %v1414_v60 = vpop.xlane.xlu1 %1413 }
 0xb98   :  { %v1425_v51 = vmul.f32 0.03125, %v1414_v60  ;;  %v2696_v54 = vmul.f32 %v5157_v37, %v5157_v37 }
 0xb9a   :  { %v1430_v18 = vadd.f32 1e-05, %v1425_v51  ;;  %v2709_v15 = vsel %vm119_vm1, %v2696_v54, 0.0 }
 0xb9b   :  { %2710 = vadd.xlane.f32.xlu1 %v2709_v15  ;;  %v1420_v28 = vpop.xlane.xlu1 %1419 }
 0xb9c   :  { %3682 = vrsqrt.f32 %v1430_v18  ;;  %v1427_v62 = vmul.f32 0.03125, %v1420_v28 }
 0xb9e   :  { %v1432_v16 = vadd.f32 1e-05, %v1427_v62 }
 0xba0   :  { %3684 = vrsqrt.f32 %v1432_v16 }
 0xba6   :  { %v3683_v41 = vpop.eup %3682 }
 0xba7   :  { %v1440_v10 = vmul.f32 %v3683_v41, %v5080_v47 }
 0xba9   :  { %v1451_v50 = vmul.f32 %v5128_v5, %v1440_v10 }
 0xbaa   :  { %v3685_v58 = vpop.eup %3684 }
 0xbab   :  { %v1462_v40 = vadd.f32 %v5134_v29, %v1451_v50  ;;  %v1442_v46 = vmul.f32 %v3685_v58, %v5088_v48 }
 0xbad   :  { %1467 = vst.msk [vmem:[%s5225_s14 + $0x8] sm:$0xff] %vm106_vm0, %v1462_v40  ;;  %v1453_v14 = vmul.f32 %v5128_v5, %v1442_v46 }
 0xbaf   :  { %v1464_v25 = vadd.f32 %v5134_v29, %v1453_v14 }
 0xbb1   :  { %1469 = vst.msk [vmem:[%s5225_s14 + $0x18] sm:$0xff] %vm106_vm0, %v1464_v25 }
 0xbd2   :  { %v2699_v47 = vpop.xlane.xlu1 %2698 }
 0xbd3   :  { %v2712_v1 = vmul.f32 0.03125, %v2699_v47 }
 0xbd4   :  { %v2702_v21 = vpop.xlane.xlu0 %2701 }
 0xbd5   :  { %v2717_v4 = vadd.f32 1e-05, %v2712_v1  ;;  %v2713_v8 = vmul.f32 0.03125, %v2702_v21 }
 0xbd7   :  { %3686 = vrsqrt.f32 %v2717_v4  ;;  %v2718_v48 = vadd.f32 1e-05, %v2713_v8 }
 0xbd9   :  { %3688 = vrsqrt.f32 %v2718_v48 }
 0xbda   :  { %v2705_v22 = vpop.xlane.xlu1 %2704 }
 0xbdb   :  { %v2714_v13 = vmul.f32 0.03125, %v2705_v22 }
 0xbdc   :  { %v2708_v26 = vpop.xlane.xlu0 %2707 }
 0xbdd   :  { %v2719_v31 = vadd.f32 1e-05, %v2714_v13  ;;  %v2715_v49 = vmul.f32 0.03125, %v2708_v26 }
 0xbdf   :  { %3690 = vrsqrt.f32 %v2719_v31  ;;  %v2720_v33 = vadd.f32 1e-05, %v2715_v49 }
 0xbe1   :  { %v3687_v35 = vpop.eup %3686  ;;  %3692 = vrsqrt.f32 %v2720_v33 }
 0xbe2   :  { %v2727_v42 = vmul.f32 %v3687_v35, %v5104_v43 }
 0xbe3   :  { %v3689_v0 = vpop.eup %3688 }
 0xbe4   :  { %v2732_v2 = vmul.f32 %v5128_v5, %v2727_v42  ;;  %v2728_v61 = vmul.f32 %v3689_v0, %v5107_v19 }
 0xbe6   :  { %v2737_v56 = vadd.f32 %v5134_v29, %v2732_v2  ;;  %v2733_v34 = vmul.f32 %v5128_v5, %v2728_v61 }
 0xbe8   :  { %2857 = vst.msk [vmem:[%s5225_s14 + $0x28] sm:$0xff] %vm106_vm0, %v2737_v56  ;;  %v2738_v11 = vadd.f32 %v5134_v29, %v2733_v34 }
 0xbe9   :  { %v3691_v53 = vpop.eup %3690 }
 0xbea   :  { %2858 = vst.msk [vmem:[%s5225_s14 + $0x30] sm:$0xff] %vm106_vm0, %v2738_v11  ;;  %v2729_v43 = vmul.f32 %v3691_v53, %v5115_v45 }
 0xbeb   :  { %v3693_v19 = vpop.eup %3692 }
 0xbec   :  { %v2734_v6 = vmul.f32 %v5128_v5, %v2729_v43  ;;  %v2730_v23 = vmul.f32 %v3693_v19, %v5117_v7 }
 0xbee   :  { %v2739_v30 = vadd.f32 %v5134_v29, %v2734_v6  ;;  %v2735_v27 = vmul.f32 %v5128_v5, %v2730_v23 }
 0xbf0   :  { %2859 = vst.msk [vmem:[%s5225_s14 + $0x38] sm:$0xff] %vm106_vm0, %v2739_v30  ;;  %v2740_v3 = vadd.f32 %v5134_v29, %v2735_v27 }
 0xbf2   :  { %2860 = vst.msk [vmem:[%s5225_s14 + $0x40] sm:$0xff] %vm106_vm0, %v2740_v3 }
 0xc28   :  { %v2711_v45 = vpop.xlane.xlu1 %2710 }
 0xc29   :  { %v2716_v17 = vmul.f32 0.03125, %v2711_v45 }
 0xc2b   :  { %v2721_v63 = vadd.f32 1e-05, %v2716_v17 }
 0xc2d   :  { %3694 = vrsqrt.f32 %v2721_v63 }
 0xc37   :  { %v3695_v7 = vpop.eup %3694 }
 0xc38   :  { %v2731_v44 = vmul.f32 %v3695_v7, %v5157_v37 }
 0xc3a   :  { %v2736_v52 = vmul.f32 %v5128_v5, %v2731_v44 }
 0xc3c   :  { %v2741_v36 = vadd.f32 %v5134_v29, %v2736_v52 }
 0xc3e   :  { %2861 = vst.msk [vmem:[%s5225_s14 + $0x48] sm:$0xf] %vm119_vm1, %v2741_v36 }

// kernel: model_forward.7
= control target key start
LH: loop header
LB: loop body
LE: loop exit
PB: predicated region body
PF: predicated region fallthrough
CT: control target
= control target key end

     0   :  { %v4970_v0 = vmov 0.0   ;;  %vm4971_vm0 = vmmov 0   ;;  %vm189_vm1 = vcmask 261120   ;;  %vm618_vm2 = vcmask 257024   ;;  %s6745_s2 = inlined_call_operand.vmem [shape: bf16[2,32,128], index: 2, kind: input, shape index: {}]   ;;  %s6746_s4 = inlined_call_operand.vmem [shape: bf16[32,128], index: 4, kind: input, shape index: {}]   ;;  %s6747_s1 = inlined_call_operand.vmem [shape: f32[2,36,32], index: 1, kind: input, shape index: {}]   ;;  %s6748_s3 = inlined_call_operand.vmem [shape: bf16[2,128,32], index: 3, kind: input, shape index: {}]   ;;  %s6749_s6 = inlined_call_operand.vmem [shape: bf16[128,32], index: 6, kind: input, shape index: {}]   ;;  %s6750_s5 = inlined_call_operand.vmem [shape: f32[1,128], index: 5, kind: input, shape index: {}]   ;;  %s6751_s7 = inlined_call_operand.vmem [shape: f32[1,32], index: 7, kind: input, shape index: {}]   ;;  %s6752_s0 = inlined_call_operand.vmem [shape: f32[2,36,32], index: 0, kind: input, shape index: {}]   ;;  %s6753_s12 = inlined_call_operand.vmem [shape: bf16[32,32], index: 12, kind: input, shape index: {}]   ;;  %s6754_s11 = inlined_call_operand.vmem [shape: bf16[32,32], index: 11, kind: input, shape index: {}]   ;;  %s6755_s13 = inlined_call_operand.vmem [shape: bf16[32,32], index: 13, kind: input, shape index: {}]   ;;  %s6756_s9 = inlined_call_operand.vmem [shape: f32[1,32], index: 9, kind: input, shape index: {}]   ;;  %s6757_s10 = inlined_call_operand.vmem [shape: f32[1,32], index: 10, kind: input, shape index: {}]   ;;  %s6758_s14 = inlined_call_operand.vmem [shape: f32[1,32], index: 14, kind: input, shape index: {}]   ;;  %s6759_s15 = inlined_call_operand.vmem [shape: f32[1,32], index: 15, kind: input, shape index: {}]   ;;  %s6760_s8 = inlined_call_operand.vmem [shape: f32[36,36], index: 8, kind: input, shape index: {}]   ;;  %s6761_s16 = inlined_call_operand.vmem [shape: bf16[32,32], index: 16, kind: input, shape index: {}]   ;;  %s6762_s17 = inlined_call_operand.vmem [shape: f32[1,32], index: 17, kind: input, shape index: {}]   ;;  %s6763_s20 = inlined_call_operand.vmem [shape: f32[2,36,32], index: 20, kind: output, shape index: {0}]   ;;  %s6764_s18 = inlined_call_operand.vmem [shape: f32[1,32], index: 18, kind: input, shape index: {}]   ;;  %s6765_s19 = inlined_call_operand.vmem [shape: f32[1,32], index: 19, kind: input, shape index: {}]   ;;  %s6766_s21 = inlined_call_operand.vmem [shape: f32[2,36,32], index: 21, kind: output, shape index: {1}]  }
   0x1   :  { %6773 = sst [smem:[#allocation2_spill]] %s6745_s2  ;;  %4017 = vmatprep.subr.bf16.mxu0 %v4970_v0  ;;  %4033 = vmatprep.subr.bf16.mxu1 %v4970_v0  ;;  %vm1230_vm10 = vcmask 1041408   ;;  %vm1019_vm14 = vcmask 293888   ;;  %vm1032_vm15 = vcmask 289792  }
   0x2   :  { %6774 = sst [smem:[#allocation3_spill]] %s6746_s4  ;;  %s6779_s26 = sld [smem:[#allocation2_spill]]  ;;  %4021 = vmatprep.mubr.msk.bf16.mxu0 %vm4971_vm0, %v4970_v0  ;;  %4037 = vmatprep.mubr.msk.bf16.mxu1 %vm4971_vm0, %v4970_v0 }
   0x3   :  { %6775 = sst [smem:[#allocation4_spill]] %s6747_s1  ;;  %s6780_s28 = sld [smem:[#allocation3_spill]] }
   0x4   :  { %6776 = sst [smem:[#allocation5_spill]] %s6748_s3  ;;  %s6781_s23 = sld [smem:[#allocation4_spill]] }
   0x5   :  { %6777 = sst [smem:[#allocation6_spill]] %s6749_s6 }
   0x6   :  { %6778 = sst [smem:[#allocation7_spill]] %s6750_s5  ;;  %s6782_s5 = sld [smem:[#allocation5_spill]] }
   0x7   :  { %s6783_s24 = sld [smem:[#allocation6_spill]]  ;;  %s6784_s1 = sld [smem:[#allocation7_spill]] }
   0x8   :  { %v4683_v1 = vld [vmem:[%s6779_s26] sm:$0xff]   ;;  %v4685_v3 = vld [vmem:[%s6779_s26 + $0x8] sm:$0xff]  }
   0x9   :  { %v4684_v2 = vld [vmem:[%s6780_s28] sm:$0xff]   ;;  %4018 = vmatpush3.bf16.msra.mxu0 %v4683_v1  ;;  %v4686_v4 = vld [vmem:[%s6780_s28 + $0x8] sm:$0xff]  }
   0xa   :  { %4034 = vmatpush3.bf16.msra.mxu1 %v4684_v2  ;;  %4019 = vmatprep.subr.bf16.mxu0 %v4970_v0  ;;  %v149_v5 = vld [vmem:[%s6781_s23] sm:$0xff]  ;;  %v150_v6 = vld [vmem:[%s6781_s23 + $0x8] sm:$0xff]  ;;  %v151_v8 = vld [vmem:[%s6781_s23 + $0x10] sm:$0xff] }
   0xb   :  { %4035 = vmatprep.subr.bf16.mxu1 %v4970_v0  ;;  %v174_v7 = vpack.c.bf16 %v150_v6, %v149_v5  ;;  %v152_v9 = vld [vmem:[%s6781_s23 + $0x18] sm:$0xff]  ;;  %v153_v11 = vld [vmem:[%s6781_s23 + $0x20] sm:$0xf] }
   0xc   :  { %v175_v10 = vpack.c.bf16 %v152_v9, %v151_v8  ;;  %v176_v12 = vpack.c.bf16 %v153_v11, %v153_v11  ;;  %v4687_v13 = vld [vmem:[%s6782_s5] sm:$0xff]   ;;  %v4689_v15 = vld [vmem:[%s6782_s5 + $0x8] sm:$0xff]   ;;  %v4691_v17 = vld [vmem:[%s6782_s5 + $0x10] sm:$0xff]  }
   0xd   :  { %4020 = vmatpush3.bf16.msra.mxu0 %v4685_v3  ;;  %v4688_v14 = vld [vmem:[%s6783_s24] sm:$0xff]   ;;  %v4690_v16 = vld [vmem:[%s6783_s24 + $0x8] sm:$0xff]   ;;  %v4692_v18 = vld [vmem:[%s6783_s24 + $0x10] sm:$0xff]  }
   0xe   :  { %4036 = vmatpush3.bf16.msra.mxu1 %v4686_v4  ;;  %4049 = vmatprep.subr.bf16.mxu0 %v4970_v0  ;;  %v4693_v19 = vld [vmem:[%s6782_s5 + $0x18] sm:$0xff]   ;;  %v4695_v21 = vld [vmem:[%s6782_s5 + $0x20] sm:$0xff]   ;;  %v4697_v23 = vld [vmem:[%s6782_s5 + $0x28] sm:$0xff]  }
   0xf   :  { %4077 = vmatprep.subr.bf16.mxu1 %v4970_v0  ;;  %v4694_v20 = vld [vmem:[%s6783_s24 + $0x18] sm:$0xff]   ;;  %v4696_v22 = vld [vmem:[%s6783_s24 + $0x20] sm:$0xff]   ;;  %v4698_v24 = vld [vmem:[%s6783_s24 + $0x28] sm:$0xff]  }
  0x10   :  { %4022 = vmatmul.mubr.msk.bf16.vlgmr.msra.gmra.mrb[0].mxu0 %vm189_vm1, %v174_v7  ;;  %v4699_v25 = vld [vmem:[%s6782_s5 + $0x30] sm:$0xff]   ;;  %v4701_v27 = vld [vmem:[%s6782_s5 + $0x38] sm:$0xff]   ;;  %v3656_v30 = vld [vmem:[%s6784_s1] ss:$0 sm:$0xff] }
  0x11   :  { %4038 = vmatmul.mubr.msk.bf16.vlgmr.msra.gmra.mrb[0].mxu1 %vm189_vm1, %v174_v7  ;;  %4025 = vmatprep.mubr.msk.bf16.mxu0 %vm4971_vm0, %v4970_v0  ;;  %v4700_v26 = vld [vmem:[%s6783_s24 + $0x30] sm:$0xff]   ;;  %v4702_v28 = vld [vmem:[%s6783_s24 + $0x38] sm:$0xff]  }
  0x12   :  { %4041 = vmatprep.mubr.msk.bf16.mxu1 %vm4971_vm0, %v4970_v0  ;;  %4050 = vmatpush3.bf16.msra.mxu0 %v4687_v13 }
  0x13   :  { %4078 = vmatpush3.bf16.msra.mxu1 %v4688_v14  ;;  %4051 = vmatprep.subr.bf16.mxu0 %v4970_v0 }
  0x14   :  { %4079 = vmatprep.subr.bf16.mxu1 %v4970_v0 }
  0x16   :  { %4052 = vmatpush3.bf16.msra.mxu0 %v4689_v15 }
  0x17   :  { %4080 = vmatpush3.bf16.msra.mxu1 %v4690_v16  ;;  %4053 = vmatprep.subr.bf16.mxu0 %v4970_v0 }
  0x18   :  { %4026 = vmatmul.mubr.msk.bf16.gmra.mrb[4].mxu0 %vm189_vm1, %v175_v10  ;;  %4081 = vmatprep.subr.bf16.mxu1 %v4970_v0 }
  0x19   :  { %4042 = vmatmul.mubr.msk.bf16.gmra.mrb[4].mxu1 %vm189_vm1, %v175_v10  ;;  %4029 = vmatprep.mubr.msk.bf16.mxu0 %vm4971_vm0, %v4970_v0 }
  0x1a   :  { %4045 = vmatprep.mubr.msk.bf16.mxu1 %vm4971_vm0, %v4970_v0  ;;  %4054 = vmatpush3.bf16.msra.mxu0 %v4691_v17 }
  0x1b   :  { %4082 = vmatpush3.bf16.msra.mxu1 %v4692_v18  ;;  %4055 = vmatprep.subr.bf16.mxu0 %v4970_v0 }
  0x1c   :  { %4083 = vmatprep.subr.bf16.mxu1 %v4970_v0 }
  0x1e   :  { %4056 = vmatpush3.bf16.msra.mxu0 %v4693_v19 }
  0x1f   :  { %4084 = vmatpush3.bf16.msra.mxu1 %v4694_v20  ;;  %4057 = vmatprep.subr.bf16.mxu0 %v4970_v0 }
  0x20   :  { %4030 = vmatmul.mubr.msk.bf16.gmra.mrb[8].mxu0 %vm189_vm1, %v176_v12  ;;  %4085 = vmatprep.subr.bf16.mxu1 %v4970_v0 }
  0x21   :  { %4046 = vmatmul.mubr.msk.bf16.gmra.mrb[8].mxu1 %vm189_vm1, %v176_v12  ;;  %4065 = vmatprep.mubr.msk.bf16.mxu0 %vm4971_vm0, %v4970_v0 }
  0x22   :  { %4093 = vmatprep.mubr.msk.bf16.mxu1 %vm4971_vm0, %v4970_v0  ;;  %4058 = vmatpush3.bf16.msra.mxu0 %v4695_v21 }
  0x23   :  { %4086 = vmatpush3.bf16.msra.mxu1 %v4696_v22  ;;  %4059 = vmatprep.subr.bf16.mxu0 %v4970_v0 }
  0x24   :  { %4087 = vmatprep.subr.bf16.mxu1 %v4970_v0 }
  0x26   :  { %4060 = vmatpush3.bf16.msra.mxu0 %v4697_v23 }
  0x27   :  { %4088 = vmatpush3.bf16.msra.mxu1 %v4698_v24  ;;  %4061 = vmatprep.subr.bf16.mxu0 %v4970_v0 }
  0x28   :  { %4089 = vmatprep.subr.bf16.mxu1 %v4970_v0 }
  0x2a   :  { %4062 = vmatpush3.bf16.msra.mxu0 %v4699_v25 }
  0x2b   :  { %4090 = vmatpush3.bf16.msra.mxu1 %v4700_v26  ;;  %4063 = vmatprep.subr.bf16.mxu0 %v4970_v0 }
  0x2c   :  { %4091 = vmatprep.subr.bf16.mxu1 %v4970_v0 }
  0x2e   :  { %4064 = vmatpush3.bf16.msra.mxu0 %v4701_v27 }
  0x2f   :  { %4092 = vmatpush3.bf16.msra.mxu1 %v4702_v28  ;;  %4105 = vmatprep.subr.bf16.mxu0 %v4970_v0 }
  0x30   :  { %4121 = vmatprep.subr.bf16.mxu1 %v4970_v0 }
  0xe3   :  { %v233_v29 = vpop.f32.mrb[0].mxu0 }
  0xe4   :  { %v301_v31 = vpop.f32.mrb[0].mxu1  ;;  %v4023_v32 = vpop.f32.mrb[1].mxu0 }
  0xe5   :  { %v302_v33 = vadd.f32 %v301_v31, %v233_v29  ;;  %v4039_v34 = vpop.f32.mrb[1].mxu1  ;;  %v236_v35 = vpop.f32.mrb[2].mxu0 }
  0xe6   :  { %v304_v36 = vpop.f32.mrb[2].mxu1  ;;  %v4024_v37 = vpop.f32.mrb[3].mxu0 }
  0xe7   :  { %v329_v38 = vadd.f32 %v3656_v30, %v302_v33  ;;  %v305_v39 = vadd.f32 %v304_v36, %v236_v35  ;;  %v4040_v40 = vpop.f32.mrb[3].mxu1 }
  0xe9   :  { %v339_v41 = vmul.f32 0.044715, %v329_v38  ;;  %v330_v42 = vadd.f32 %v3656_v30, %v305_v39  ;;  %v334_v28 = vmul.f32 0.5, %v329_v38 }
  0xeb   :  { %v344_v43 = vmul.f32 %v339_v41, %v329_v38  ;;  %v340_v44 = vmul.f32 0.044715, %v330_v42  ;;  %v241_v45 = vpop.f32.mrb[4].mxu0  ;;  %v335_v29 = vmul.f32 0.5, %v330_v42 }
  0xec   :  { %v309_v46 = vpop.f32.mrb[4].mxu1  ;;  %v4027_v47 = vpop.f32.mrb[5].mxu0 }
  0xed   :  { %v349_v48 = vmul.f32 %v344_v43, %v329_v38  ;;  %v345_v49 = vmul.f32 %v340_v44, %v330_v42  ;;  %v310_v50 = vadd.f32 %v309_v46, %v241_v45  ;;  %v4043_v51 = vpop.f32.mrb[5].mxu1  ;;  %v244_v52 = vpop.f32.mrb[6].mxu0 }
  0xee   :  { %v312_v53 = vpop.f32.mrb[6].mxu1  ;;  %v4028_v54 = vpop.f32.mrb[7].mxu0 }
  0xef   :  { %v354_v55 = vadd.f32 %v349_v48, %v329_v38  ;;  %v350_v56 = vmul.f32 %v345_v49, %v330_v42  ;;  %v331_v57 = vadd.f32 %v3656_v30, %v310_v50  ;;  %v313_v58 = vadd.f32 %v312_v53, %v244_v52  ;;  %v4044_v59 = vpop.f32.mrb[7].mxu1  ;;  %v3673_v50 = vld [vmem:[%s6751_s7] ss:$0 sm:$0xff] }
  0xf1   :  { %v359_v60 = vmul.f32 0.7978846, %v354_v55  ;;  %v355_v61 = vadd.f32 %v350_v56, %v330_v42  ;;  %v341_v62 = vmul.f32 0.044715, %v331_v57  ;;  %v332_v63 = vadd.f32 %v3656_v30, %v313_v58 }
  0xf2   :  { %v336_v39 = vmul.f32 0.5, %v331_v57 }
  0xf3   :  { %4721 = vtanh.f32 %v359_v60  ;;  %v360_v1 = vmul.f32 0.7978846, %v355_v61  ;;  %v346_v2 = vmul.f32 %v341_v62, %v331_v57  ;;  %v342_v3 = vmul.f32 0.044715, %v332_v63  ;;  %v249_v4 = vpop.f32.mrb[8].mxu0  ;;  %v145_v62 = vld [vmem:[%s6752_s0 + $0x8] sm:$0xff] }
  0xf4   :  { %v317_v5 = vpop.f32.mrb[8].mxu1  ;;  %v4031_v6 = vpop.f32.mrb[9].mxu0  ;;  %v337_v38 = vmul.f32 0.5, %v332_v63 }
  0xf5   :  { %4723 = vtanh.f32 %v360_v1  ;;  %v347_v7 = vmul.f32 %v342_v3, %v332_v63  ;;  %v318_v8 = vadd.f32 %v317_v5, %v249_v4  ;;  %v4047_v9 = vpop.f32.mrb[9].mxu1  ;;  %v252_v10 = vpop.f32.mrb[10].mxu0  ;;  %v351_v11 = vmul.f32 %v346_v2, %v331_v57 }
  0xf6   :  { %v320_v12 = vpop.f32.mrb[10].mxu1  ;;  %v4032_v13 = vpop.f32.mrb[11].mxu0 }
  0xf7   :  { %v333_v14 = vadd.f32 %v3656_v30, %v318_v8  ;;  %v4048_v15 = vpop.f32.mrb[11].mxu1  ;;  %v352_v16 = vmul.f32 %v347_v7, %v332_v63  ;;  %v356_v17 = vadd.f32 %v351_v11, %v331_v57  ;;  %v144_v57 = vld [vmem:[%s6752_s0] sm:$0xff]  ;;  %v146_v11 = vld [vmem:[%s6752_s0 + $0x10] sm:$0xff] }
  0xf9   :  { %v343_v18 = vmul.f32 0.044715, %v333_v14  ;;  %v357_v19 = vadd.f32 %v352_v16, %v332_v63  ;;  %v361_v20 = vmul.f32 0.7978846, %v356_v17  ;;  %v338_v45 = vmul.f32 0.5, %v333_v14  ;;  %v147_v17 = vld [vmem:[%s6752_s0 + $0x18] sm:$0xff] }
  0xfb   :  { %v362_v21 = vmul.f32 0.7978846, %v357_v19  ;;  %4725 = vtanh.f32 %v361_v20  ;;  %v348_v22 = vmul.f32 %v343_v18, %v333_v14 }
  0xfd   :  { %v4722_v23 = vpop.eup %4721  ;;  %4727 = vtanh.f32 %v362_v21  ;;  %v353_v24 = vmul.f32 %v348_v22, %v333_v14 }
  0xfe   :  { %v369_v25 = vadd.f32 1.0, %v4722_v23 }
  0xff   :  { %v4724_v26 = vpop.eup %4723  ;;  %v358_v27 = vadd.f32 %v353_v24, %v333_v14 }
 0x100   :  { %v370_v31 = vadd.f32 1.0, %v4724_v26  ;;  %v374_v30 = vmul.f32 %v369_v25, %v334_v28 }
 0x101   :  { %v363_v32 = vmul.f32 0.7978846, %v358_v27  ;;  %v148_v27 = vld [vmem:[%s6752_s0 + $0x20] sm:$0xf] }
 0x102   :  { %v375_v33 = vmul.f32 %v370_v31, %v335_v29 }
 0x103   :  { %4729 = vtanh.f32 %v363_v32 }
 0x104   :  { %v379_v34 = vpack.c.bf16 %v375_v33, %v374_v30 }
 0x105   :  { %v4726_v35 = vpop.eup %4725 }
 0x106   :  { %4066 = vmatmul.mubr.bf16.vlgmr.msra.gmra.mrb[12].mxu0 %v379_v34  ;;  %4094 = vmatmul.mubr.bf16.vlgmr.msra.gmra.mrb[12].mxu1 %v379_v34  ;;  %v371_v36 = vadd.f32 1.0, %v4726_v35 }
 0x107   :  { %v4728_v37 = vpop.eup %4727  ;;  %4069 = vmatprep.mubr.msk.bf16.mxu0 %vm4971_vm0, %v4970_v0  ;;  %4097 = vmatprep.mubr.msk.bf16.mxu1 %vm4971_vm0, %v4970_v0 }
 0x108   :  { %v372_v40 = vadd.f32 1.0, %v4728_v37  ;;  %v376_v41 = vmul.f32 %v371_v36, %v336_v39 }
 0x10a   :  { %v377_v42 = vmul.f32 %v372_v40, %v337_v38 }
 0x10c   :  { %v380_v43 = vpack.c.bf16 %v377_v42, %v376_v41 }
 0x10d   :  { %v4730_v44 = vpop.eup %4729 }
 0x10e   :  { %4070 = vmatmul.mubr.bf16.gmra.mrb[16].mxu0 %v380_v43  ;;  %4098 = vmatmul.mubr.bf16.gmra.mrb[16].mxu1 %v380_v43  ;;  %v373_v46 = vadd.f32 1.0, %v4730_v44 }
 0x10f   :  { %4073 = vmatprep.mubr.msk.bf16.mxu0 %vm4971_vm0, %v4970_v0  ;;  %4101 = vmatprep.mubr.msk.bf16.mxu1 %vm4971_vm0, %v4970_v0 }
 0x110   :  { %v378_v47 = vmul.f32 %v373_v46, %v338_v45 }
 0x112   :  { %v381_v48 = vpack.c.bf16 %v378_v47, %v378_v47 }
 0x116   :  { %4074 = vmatmul.mubr.bf16.gmra.mrb[20].mxu0 %v381_v48  ;;  %4102 = vmatmul.mubr.bf16.gmra.mrb[20].mxu1 %v381_v48 }
 0x117   :  { %4109 = vmatprep.mubr.msk.bf16.mxu0 %vm4971_vm0, %v4970_v0  ;;  %4125 = vmatprep.mubr.msk.bf16.mxu1 %vm4971_vm0, %v4970_v0 }
 0x1d9   :  { %v464_v49 = vpop.f32.mrb[12].mxu0  ;;  %v568_v51 = vpop.f32.mrb[12].mxu1 }
 0x1da   :  { %v569_v52 = vadd.f32 %v568_v51, %v464_v49  ;;  %v4067_v53 = vpop.f32.mrb[13].mxu0  ;;  %v4095_v54 = vpop.f32.mrb[13].mxu1 }
 0x1db   :  { %v467_v55 = vpop.f32.mrb[14].mxu0  ;;  %v571_v56 = vpop.f32.mrb[14].mxu1 }
 0x1dc   :  { %v596_v58 = vadd.f32 %v3673_v50, %v569_v52  ;;  %v572_v59 = vadd.f32 %v571_v56, %v467_v55  ;;  %v4068_v60 = vpop.f32.mrb[15].mxu0  ;;  %v4096_v61 = vpop.f32.mrb[15].mxu1 }
 0x1dd   :  { %v4703_v61 = vld [vmem:[%s6753_s12] sm:$0xff]  }
 0x1de   :  { %v597_v63 = vadd.f32 %v3673_v50, %v572_v59  ;;  %v5225_v1 = vadd.f32 %v596_v58, %v144_v57  ;;  %4122 = vmatpush3.bf16.msra.mxu1 %v4703_v61 }
 0x1df   :  { %4123 = vmatprep.subr.bf16.mxu1 %v4970_v0 }
 0x1e0   :  { %v5227_v2 = vadd.f32 %v597_v63, %v145_v62  ;;  %v606_v3 = vsel %vm189_vm1, %v5225_v1, 0.0  ;;  %v4705_v62 = vld [vmem:[%s6754_s11] sm:$0xff]   ;;  %v4704_v63 = vld [vmem:[%s6753_s12 + $0x8] sm:$0xff]  }
 0x1e1   :  { %v472_v4 = vpop.f32.mrb[16].mxu0  ;;  %v576_v5 = vpop.f32.mrb[16].mxu1  ;;  %607 = vadd.xlane.f32.xlu0 %v606_v3  ;;  %4106 = vmatpush3.bf16.msra.mxu0 %v4705_v62  ;;  %v4706_v3 = vld [vmem:[%s6754_s11 + $0x8] sm:$0xff]  }
 0x1e2   :  { %v577_v6 = vadd.f32 %v576_v5, %v472_v4  ;;  %v4071_v7 = vpop.f32.mrb[17].mxu0  ;;  %v4099_v8 = vpop.f32.mrb[17].mxu1  ;;  %v609_v16 = vsel %vm189_vm1, %v5227_v2, 0.0  ;;  %4107 = vmatprep.subr.bf16.mxu0 %v4970_v0  ;;  %4124 = vmatpush3.bf16.msra.mxu1 %v4704_v63  ;;  %v73_v63 = vlaneseq }
 0x1e3   :  { %v475_v9 = vpop.f32.mrb[18].mxu0  ;;  %v579_v10 = vpop.f32.mrb[18].mxu1  ;;  %4153 = vmatprep.subr.bf16.mxu1 %v4970_v0 }
 0x1e4   :  { %v598_v12 = vadd.f32 %v3673_v50, %v577_v6  ;;  %v580_v13 = vadd.f32 %v579_v10, %v475_v9  ;;  %v4072_v14 = vpop.f32.mrb[19].mxu0  ;;  %v4100_v15 = vpop.f32.mrb[19].mxu1 }
 0x1e5   :  { %610 = vadd.xlane.f32.xlu0 %v609_v16  ;;  %4108 = vmatpush3.bf16.msra.mxu0 %v4706_v3 }
 0x1e6   :  { %v599_v18 = vadd.f32 %v3673_v50, %v580_v13  ;;  %v5239_v19 = vadd.f32 %v598_v12, %v146_v11  ;;  %4137 = vmatprep.subr.bf16.mxu0 %v4970_v0 }
 0x1e8   :  { %v5241_v20 = vadd.f32 %v599_v18, %v147_v17  ;;  %v612_v21 = vsel %vm189_vm1, %v5239_v19, 0.0 }
 0x1e9   :  { %v480_v22 = vpop.f32.mrb[20].mxu0  ;;  %v584_v23 = vpop.f32.mrb[20].mxu1  ;;  %613 = vadd.xlane.f32.xlu1 %v612_v21  ;;  %v3674_v21 = vld [vmem:[%s6756_s9] ss:$0 sm:$0xff] }
 0x1ea   :  { %v585_v24 = vadd.f32 %v584_v23, %v480_v22  ;;  %v4075_v25 = vpop.f32.mrb[21].mxu0  ;;  %v4103_v26 = vpop.f32.mrb[21].mxu1  ;;  %v615_v33 = vsel %vm189_vm1, %v5241_v20, 0.0 }
 0x1eb   :  { %v483_v28 = vpop.f32.mrb[22].mxu0  ;;  %v587_v29 = vpop.f32.mrb[22].mxu1 }
 0x1ec   :  { %v600_v31 = vadd.f32 %v3673_v50, %v585_v24  ;;  %v4076_v32 = vpop.f32.mrb[23].mxu0  ;;  %v4104_v30 = vpop.f32.mrb[23].mxu1 }
 0x1ed   :  { %616 = vadd.xlane.f32.xlu1 %v615_v33 }
 0x1ee   :  { %v5250_v34 = vadd.f32 %v600_v31, %v148_v27  ;;  %v3675_v27 = vld [vmem:[%s6757_s10] ss:$0 sm:$0xff] }
 0x1f0   :  { %v619_v35 = vsel %vm618_vm2, %v5250_v34, 0.0 }
 0x1f1   :  { %620 = vadd.xlane.f32.xlu0 %v619_v35  ;;  %v4707_v35 = vld [vmem:[%s6755_s13] sm:$0xff]  }
 0x26e   :  { %v608_v36 = vpop.xlane.xlu0 %607 }
 0x26f   :  { %v623_v37 = vmul.f32 0.03125, %v608_v36 }
 0x271   :  { %v628_v39 = vsub.f32 %v5225_v1, %v623_v37 }
 0x272   :  { %v611_v38 = vpop.xlane.xlu0 %610 }
 0x273   :  { %v624_v40 = vmul.f32 0.03125, %v611_v38  ;;  %v633_v41 = vmul.f32 %v628_v39, %v628_v39 }
 0x275   :  { %v5256_v42 = vsub.f32 %v5227_v2, %v624_v40  ;;  %v638_v43 = vsel %vm189_vm1, %v633_v41, 0.0  ;;  %v4708_v40 = vld [vmem:[%s6755_s13 + $0x8] sm:$0xff]  }
 0x276   :  { %v614_v44 = vpop.xlane.xlu1 %613  ;;  %639 = vadd.xlane.f32.xlu1 %v638_v43 }
 0x277   :  { %v625_v45 = vmul.f32 0.03125, %v614_v44  ;;  %v634_v46 = vmul.f32 %v5256_v42, %v5256_v42 }
 0x279   :  { %v5262_v47 = vsub.f32 %v5239_v19, %v625_v45  ;;  %v641_v48 = vsel %vm189_vm1, %v634_v46, 0.0 }
 0x27a   :  { %v617_v49 = vpop.xlane.xlu1 %616  ;;  %642 = vadd.xlane.f32.xlu0 %v641_v48 }
 0x27b   :  { %v626_v50 = vmul.f32 0.03125, %v617_v49  ;;  %v635_v51 = vmul.f32 %v5262_v47, %v5262_v47  ;;  %v5344_v49 = vld [vmem:[%s6758_s14] ss:$0 sm:$0xff] }
 0x27d   :  { %v5268_v52 = vsub.f32 %v5241_v20, %v626_v50  ;;  %v644_v53 = vsel %vm189_vm1, %v635_v51, 0.0 }
 0x27e   :  { %645 = vadd.xlane.f32.xlu1 %v644_v53  ;;  %v621_v54 = vpop.xlane.xlu0 %620 }
 0x27f   :  { %v627_v55 = vmul.f32 0.03125, %v621_v54  ;;  %v636_v56 = vmul.f32 %v5268_v52, %v5268_v52 }
 0x281   :  { %v5274_v57 = vsub.f32 %v5250_v34, %v627_v55  ;;  %v647_v58 = vsel %vm189_vm1, %v636_v56, 0.0 }
 0x282   :  { %648 = vadd.xlane.f32.xlu0 %v647_v58 }
 0x283   :  { %v637_v59 = vmul.f32 %v5274_v57, %v5274_v57 }
 0x285   :  { %v650_v60 = vsel %vm618_vm2, %v637_v59, 0.0 }
 0x286   :  { %651 = vadd.xlane.f32.xlu1 %v650_v60 }
 0x303   :  { %v640_v4 = vpop.xlane.xlu1 %639 }
 0x304   :  { %v653_v5 = vmul.f32 0.03125, %v640_v4 }
 0x306   :  { %v658_v6 = vadd.f32 1e-05, %v653_v5 }
 0x307   :  { %v643_v7 = vpop.xlane.xlu0 %642 }
 0x308   :  { %4731 = vrsqrt.f32 %v658_v6  ;;  %v654_v8 = vmul.f32 0.03125, %v643_v7  ;;  %v5357_v7 = vand.u32 127, %v73_v63 }
 0x30a   :  { %v659_v9 = vadd.f32 1e-05, %v654_v8  ;;  %vm81_vm3 = vcmp.ge.s32.totalorder %v5357_v7, 8  ;;  %vm82_vm4 = vcmp.lt.s32.totalorder %v5357_v7, 16  ;;  %vm76_vm5 = vcmp.lt.s32.totalorder %v5357_v7, 8 }
 0x30b   :  { %v646_v10 = vpop.xlane.xlu1 %645  ;;  %vm83_vm6 = vmand %vm81_vm3, %vm82_vm4  ;;  %vm87_vm7 = vcmp.ge.s32.totalorder %v5357_v7, 16  ;;  %vm88_vm8 = vcmp.lt.s32.totalorder %v5357_v7, 24  ;;  %vm93_vm11 = vcmp.ge.s32.totalorder %v5357_v7, 24  ;;  %vm94_vm12 = vcmp.lt.s32.totalorder %v5357_v7, 32 }
 0x30c   :  { %4733 = vrsqrt.f32 %v659_v9  ;;  %v655_v11 = vmul.f32 0.03125, %v646_v10  ;;  %vm89_vm9 = vmand %vm87_vm7, %vm88_vm8 }
 0x30d   :  { %vm95_vm13 = vmand %vm93_vm11, %vm94_vm12 }
 0x30e   :  { %v660_v12 = vadd.f32 1e-05, %v655_v11 }
 0x30f   :  { %v649_v13 = vpop.xlane.xlu0 %648 }
 0x310   :  { %4735 = vrsqrt.f32 %v660_v12  ;;  %v656_v14 = vmul.f32 0.03125, %v649_v13 }
 0x312   :  { %v4732_v15 = vpop.eup %4731  ;;  %v661_v16 = vadd.f32 1e-05, %v656_v14 }
 0x313   :  { %v668_v17 = vmul.f32 %v4732_v15, %v628_v39  ;;  %v652_v18 = vpop.xlane.xlu1 %651 }
 0x314   :  { %4737 = vrsqrt.f32 %v661_v16  ;;  %v657_v22 = vmul.f32 0.03125, %v652_v18 }
 0x315   :  { %v679_v25 = vmul.f32 %v3674_v21, %v668_v17 }
 0x316   :  { %v4734_v23 = vpop.eup %4733  ;;  %v662_v24 = vadd.f32 1e-05, %v657_v22 }
 0x317   :  { %v669_v26 = vmul.f32 %v4734_v23, %v5256_v42  ;;  %v690_v31 = vadd.f32 %v3675_v27, %v679_v25 }
 0x318   :  { %4739 = vrsqrt.f32 %v662_v24 }
 0x319   :  { %v680_v28 = vmul.f32 %v3674_v21, %v669_v26 }
 0x31a   :  { %v4736_v29 = vpop.eup %4735 }
 0x31b   :  { %v691_v32 = vadd.f32 %v3675_v27, %v680_v28  ;;  %v670_v30 = vmul.f32 %v4736_v29, %v5262_v47  ;;  %v3642_v28 = vsel %vm76_vm5, 1.0, %v4970_v0  ;;  %v3643_v29 = vsel %vm83_vm6, 1.0, %v4970_v0 }
 0x31d   :  { %v695_v33 = vpack.c.bf16 %v691_v32, %v690_v31  ;;  %v681_v39 = vmul.f32 %v3674_v21, %v670_v30  ;;  %v5380_v32 = vpack.c.bf16 %v3642_v28, %v3642_v28  ;;  %v5382_v30 = vpack.c.bf16 %v3643_v29, %v3643_v29 }
 0x31e   :  { %v4738_v36 = vpop.eup %4737 }
 0x31f   :  { %4110 = vmatmul.mubr.msk.bf16.vlgmr.msra.gmra.mrb[24].mxu0 %vm189_vm1, %v695_v33  ;;  %4126 = vmatmul.mubr.msk.bf16.vlgmr.msra.gmra.mrb[24].mxu1 %vm189_vm1, %v695_v33  ;;  %v671_v37 = vmul.f32 %v4738_v36, %v5268_v52  ;;  %v692_v42 = vadd.f32 %v3675_v27, %v681_v39 }
 0x320   :  { %4113 = vmatprep.mubr.msk.bf16.mxu0 %vm4971_vm0, %v4970_v0  ;;  %4129 = vmatprep.mubr.msk.bf16.mxu1 %vm4971_vm0, %v4970_v0 }
 0x321   :  { %v682_v38 = vmul.f32 %v3674_v21, %v671_v37  ;;  %4138 = vmatpush3.bf16.msra.mxu0 %v4707_v35 }
 0x322   :  { %v4740_v41 = vpop.eup %4739  ;;  %4139 = vmatprep.subr.bf16.mxu0 %v4970_v0 }
 0x323   :  { %v693_v43 = vadd.f32 %v3675_v27, %v682_v38  ;;  %v672_v44 = vmul.f32 %v4740_v41, %v5274_v57 }
 0x325   :  { %v696_v45 = vpack.c.bf16 %v693_v43, %v692_v42  ;;  %v683_v46 = vmul.f32 %v3674_v21, %v672_v44  ;;  %4140 = vmatpush3.bf16.msra.mxu0 %v4708_v40 }
 0x326   :  { %4171 = vmatprep.subr.bf16.mxu0 %v4970_v0 }
 0x327   :  { %4114 = vmatmul.mubr.msk.bf16.gmra.mrb[28].mxu0 %vm189_vm1, %v696_v45  ;;  %4130 = vmatmul.mubr.msk.bf16.gmra.mrb[28].mxu1 %vm189_vm1, %v696_v45  ;;  %v694_v47 = vadd.f32 %v3675_v27, %v683_v46 }
 0x328   :  { %4117 = vmatprep.mubr.msk.bf16.mxu0 %vm4971_vm0, %v4970_v0  ;;  %4133 = vmatprep.mubr.msk.bf16.mxu1 %vm4971_vm0, %v4970_v0 }
 0x329   :  { %v697_v48 = vpack.c.bf16 %v694_v47, %v694_v47 }
 0x32f   :  { %4118 = vmatmul.mubr.msk.bf16.gmra.mrb[32].mxu0 %vm189_vm1, %v697_v48  ;;  %4134 = vmatmul.mubr.msk.bf16.gmra.mrb[32].mxu1 %vm189_vm1, %v697_v48 }
 0x330   :  { %4141 = vmatprep.mubr.msk.bf16.mxu0 %vm4971_vm0, %v4970_v0  ;;  %4159 = vmatprep.mubr.msk.bf16.mxu1 %vm4971_vm0, %v4970_v0 }
 0x337   :  { %4142 = vmatmul.mubr.msk.bf16.vlgmr.msra.gmra.mrb[36].mxu0 %vm189_vm1, %v695_v33  ;;  %v3687_v33 = vld [vmem:[%s6759_s15] ss:$0 sm:$0xff] }
 0x338   :  { %4145 = vmatprep.mubr.msk.bf16.mxu0 %vm4971_vm0, %v4970_v0 }
 0x33f   :  { %4146 = vmatmul.mubr.msk.bf16.gmra.mrb[40].mxu0 %vm189_vm1, %v696_v45 }
 0x340   :  { %4149 = vmatprep.mubr.msk.bf16.mxu0 %vm4971_vm0, %v4970_v0 }
 0x347   :  { %4150 = vmatmul.mubr.msk.bf16.gmra.mrb[44].mxu0 %vm189_vm1, %v697_v48 }
 0x348   :  { %4177 = vmatprep.mubr.msk.bf16.mxu0 %vm4971_vm0, %v4970_v0 }
 0x3f2   :  { %v759_v50 = vpop.f32.mrb[24].mxu0  ;;  %v830_v51 = vpop.f32.mrb[24].mxu1 }
 0x3f3   :  { %v4111_v52 = vpop.f32.mrb[25].mxu0  ;;  %v4127_v53 = vpop.f32.mrb[25].mxu1  ;;  %v760_v56 = vadd.f32 %v5344_v49, %v759_v50 }
 0x3f4   :  { %v762_v54 = vpop.f32.mrb[26].mxu0  ;;  %v833_v55 = vpop.f32.mrb[26].mxu1 }
 0x3f5   :  { %v763_v57 = vadd.f32 %v5344_v49, %v762_v54  ;;  %v852_v58 = vpack.c.bf16 %v833_v55, %v830_v51  ;;  %v4112_v59 = vpop.f32.mrb[27].mxu0  ;;  %v4128_v60 = vpop.f32.mrb[27].mxu1 }
 0x3f7   :  { %v5348_v61 = vpack.c.bf16 %v763_v57, %v760_v56  ;;  %v5351_v62 = vsel %vm189_vm1, %v852_v58, 0 }
 0x3f8   :  { %4154 = vmatpush3.bf16.xpose.msra.mxu1 %v5351_v62  ;;  %4172 = vmatpush3.bf16.xpose.msra.mxu0 %v5351_v62 }
 0x3f9   :  { %4155 = vmatprep.subr.bf16.mxu1 %v4970_v0  ;;  %4173 = vmatprep.subr.bf16.mxu0 %v4970_v0  ;;  %v932_v39 = vmul.bf16 %v5348_v61, %v5380_v32  ;;  %v1082_v38 = vmul.bf16 %v5348_v61, %v5382_v30 }
 0x3fa   :  { %v767_v3 = vpop.f32.mrb[28].mxu0  ;;  %v838_v4 = vpop.f32.mrb[28].mxu1 }
 0x3fb   :  { %v4115_v5 = vpop.f32.mrb[29].mxu0  ;;  %v4131_v6 = vpop.f32.mrb[29].mxu1  ;;  %v768_v10 = vadd.f32 %v5344_v49, %v767_v3 }
 0x3fc   :  { %v770_v8 = vpop.f32.mrb[30].mxu0  ;;  %v841_v9 = vpop.f32.mrb[30].mxu1  ;;  %v3644_v6 = vsel %vm89_vm9, 1.0, %v4970_v0 }
 0x3fd   :  { %v771_v11 = vadd.f32 %v5344_v49, %v770_v8  ;;  %v853_v12 = vpack.c.bf16 %v841_v9, %v838_v4  ;;  %v4116_v13 = vpop.f32.mrb[31].mxu0  ;;  %v4132_v14 = vpop.f32.mrb[31].mxu1  ;;  %v5438_v9 = vpack.c.bf16 %v3644_v6, %v3644_v6 }
 0x3fe   :  { %v3645_v13 = vsel %vm95_vm13, 1.0, %v4970_v0 }
 0x3ff   :  { %v5361_v15 = vpack.c.bf16 %v771_v11, %v768_v10  ;;  %v5364_v16 = vsel %vm189_vm1, %v853_v12, 0  ;;  %v1358_v11 = vmul.bf16 %v5348_v61, %v5438_v9  ;;  %v5467_v7 = vpack.c.bf16 %v3645_v13, %v3645_v13 }
 0x400   :  { %4156 = vmatpush3.bf16.xpose.msra.mxu1 %v5364_v16  ;;  %4174 = vmatpush3.bf16.xpose.msra.mxu0 %v5364_v16 }
 0x401   :  { %4157 = vmatprep.subr.bf16.mxu1 %v4970_v0  ;;  %4175 = vmatprep.subr.bf16.mxu0 %v4970_v0  ;;  %v933_v48 = vmul.bf16 %v5361_v15, %v5380_v32  ;;  %v1083_v54 = vmul.bf16 %v5361_v15, %v5382_v30  ;;  %v1359_v12 = vmul.bf16 %v5361_v15, %v5438_v9 }
 0x402   :  { %v775_v17 = vpop.f32.mrb[32].mxu0  ;;  %v846_v18 = vpop.f32.mrb[32].mxu1  ;;  %v1570_v14 = vmul.bf16 %v5348_v61, %v5467_v7 }
 0x403   :  { %v854_v21 = vpack.c.bf16 %v846_v18, %v846_v18  ;;  %v4119_v22 = vpop.f32.mrb[33].mxu0  ;;  %v4135_v23 = vpop.f32.mrb[33].mxu1  ;;  %v776_v50 = vadd.f32 %v5344_v49, %v775_v17 }
 0x404   :  { %v778_v24 = vpop.f32.mrb[34].mxu0  ;;  %v849_v25 = vpop.f32.mrb[34].mxu1 }
 0x405   :  { %v4120_v26 = vpop.f32.mrb[35].mxu0  ;;  %v4136_v27 = vpop.f32.mrb[35].mxu1  ;;  %v5376_v31 = vsel %vm189_vm1, %v854_v21, 0  ;;  %v783_v49 = vpack.c.bf16 %v776_v50, %v776_v50  ;;  %v5487_v21 = vld [vmem:[%s6760_s8] sm:$0xff] }
 0x406   :  { %v5492_v26 = vld [vmem:[%s6760_s8 + $0x8] sm:$0xff] }
 0x407   :  { %v934_v4 = vmul.bf16 %v783_v49, %v5380_v32  ;;  %v1084_v5 = vmul.bf16 %v783_v49, %v5382_v30  ;;  %v1572_v17 = vmul.bf16 %v783_v49, %v5467_v7 }
 0x408   :  { %4158 = vmatpush3.bf16.xpose.msra.mxu1 %v5376_v31  ;;  %4176 = vmatpush3.bf16.xpose.msra.mxu0 %v5376_v31 }
 0x409   :  { %4225 = vmatprep.subr.bf16.mxu0 %v4970_v0  ;;  %4189 = vmatprep.subr.bf16.mxu1 %v4970_v0 }
 0x40a   :  { %v907_v35 = vpop.f32.mrb[36].mxu0 }
 0x40b   :  { %v4143_v36 = vpop.f32.mrb[37].mxu0  ;;  %v908_v40 = vadd.f32 %v3687_v33, %v907_v35 }
 0x40c   :  { %v910_v37 = vpop.f32.mrb[38].mxu0 }
 0x40d   :  { %v911_v41 = vadd.f32 %v3687_v33, %v910_v37  ;;  %v4144_v42 = vpop.f32.mrb[39].mxu0 }
 0x40f   :  { %v5393_v43 = vpack.c.bf16 %v911_v41, %v908_v40  ;;  %4160 = vmatmul.mubr.msk.bf16.vlgmr.msra.gmra.mrb[36].mxu1 %vm189_vm1, %v932_v39  ;;  %4178 = vmatmul.mubr.msk.bf16.vlgmr.msra.gmra.mrb[48].mxu0 %vm189_vm1, %v1082_v38  ;;  %v5507_v38 = vld [vmem:[%s6760_s8 + $0x10] sm:$0xff] }
 0x410   :  { %4226 = vmatpush3.bf16.xpose.msra.mxu0 %v5351_v62  ;;  %4163 = vmatprep.mubr.msk.bf16.mxu1 %vm4971_vm0, %v4970_v0 }
 0x411   :  { %v1218_v44 = vmul.bf16 %v5393_v43, %v5382_v30  ;;  %4181 = vmatprep.mubr.msk.bf16.mxu0 %vm4971_vm0, %v4970_v0  ;;  %4227 = vmatprep.subr.bf16.mxu0 %v4970_v0 }
 0x412   :  { %v915_v45 = vpop.f32.mrb[40].mxu0 }
 0x413   :  { %v4147_v46 = vpop.f32.mrb[41].mxu0  ;;  %4190 = vmatpush3.bf16.msra.mxu1 %v1218_v44  ;;  %v916_v51 = vadd.f32 %v3687_v33, %v915_v45 }
 0x414   :  { %v918_v47 = vpop.f32.mrb[42].mxu0  ;;  %4191 = vmatprep.subr.bf16.mxu1 %v4970_v0  ;;  %v5512_v46 = vld [vmem:[%s6760_s8 + $0x18] sm:$0xff] }
 0x415   :  { %v919_v52 = vadd.f32 %v3687_v33, %v918_v47  ;;  %v4148_v53 = vpop.f32.mrb[43].mxu0 }
 0x417   :  { %v5411_v55 = vpack.c.bf16 %v919_v52, %v916_v51  ;;  %4164 = vmatmul.mubr.msk.bf16.gmra.mrb[40].mxu1 %vm189_vm1, %v933_v48  ;;  %4182 = vmatmul.mubr.msk.bf16.gmra.mrb[52].mxu0 %vm189_vm1, %v1083_v54 }
 0x418   :  { %4228 = vmatpush3.bf16.xpose.msra.mxu0 %v5364_v16  ;;  %4167 = vmatprep.mubr.msk.bf16.mxu1 %vm4971_vm0, %v4970_v0 }
 0x419   :  { %v1219_v56 = vmul.bf16 %v5411_v55, %v5382_v30  ;;  %4185 = vmatprep.mubr.msk.bf16.mxu0 %vm4971_vm0, %v4970_v0  ;;  %4229 = vmatprep.subr.bf16.mxu0 %v4970_v0 }
 0x41a   :  { %v923_v57 = vpop.f32.mrb[44].mxu0 }
 0x41b   :  { %v924_v58 = vadd.f32 %v3687_v33, %v923_v57  ;;  %v4151_v59 = vpop.f32.mrb[45].mxu0  ;;  %4192 = vmatpush3.bf16.msra.mxu1 %v1219_v56 }
 0x41c   :  { %v926_v60 = vpop.f32.mrb[46].mxu0  ;;  %4193 = vmatprep.subr.bf16.mxu1 %v4970_v0 }
 0x41d   :  { %v5426_v63 = vpack.c.bf16 %v924_v58, %v924_v58  ;;  %v4152_v3 = vpop.f32.mrb[47].mxu0  ;;  %v5530_v60 = vld [vmem:[%s6760_s8 + $0x20] sm:$0xf] }
 0x41f   :  { %4168 = vmatmul.mubr.msk.bf16.gmra.mrb[44].mxu1 %vm189_vm1, %v934_v4  ;;  %4186 = vmatmul.mubr.msk.bf16.gmra.mrb[56].mxu0 %vm189_vm1, %v1084_v5  ;;  %v1220_v8 = vmul.bf16 %v5426_v63, %v5382_v30 }
 0x420   :  { %4230 = vmatpush3.bf16.xpose.msra.mxu0 %v5376_v31  ;;  %4231 = vmatprep.mubr.msk.bf16.mxu0 %vm4971_vm0, %v4970_v0 }
 0x421   :  { %v1232_v10 = vsel %vm1230_vm10, %v1220_v8, 0  ;;  %4261 = vmatprep.subr.bf16.mxu0 %v4970_v0  ;;  %4195 = vmatprep.mubr.msk.bf16.mxu1 %vm4971_vm0, %v4970_v0 }
 0x422   :  { %4194 = vmatpush3.bf16.msra.mxu1 %v1232_v10 }
 0x423   :  { %4207 = vmatprep.subr.bf16.mxu1 %v4970_v0 }
 0x427   :  { %4232 = vmatmul.mubr.msk.bf16.vlgmr.msra.gmra.mrb[60].mxu0 %vm189_vm1, %v1358_v11 }
 0x428   :  { %4262 = vmatpush3.bf16.xpose.msra.mxu0 %v5351_v62  ;;  %4235 = vmatprep.mubr.msk.bf16.mxu0 %vm4971_vm0, %v4970_v0  ;;  %v1360_v62 = vmul.bf16 %v783_v49, %v5438_v9 }
 0x429   :  { %4263 = vmatprep.subr.bf16.mxu0 %v4970_v0 }
 0x42f   :  { %4236 = vmatmul.mubr.msk.bf16.gmra.mrb[64].mxu0 %vm189_vm1, %v1359_v12 }
 0x430   :  { %4264 = vmatpush3.bf16.xpose.msra.mxu0 %v5364_v16  ;;  %4239 = vmatprep.mubr.msk.bf16.mxu0 %vm4971_vm0, %v4970_v0  ;;  %v1571_v16 = vmul.bf16 %v5361_v15, %v5467_v7 }
 0x431   :  { %4265 = vmatprep.subr.bf16.mxu0 %v4970_v0 }
 0x437   :  { %4240 = vmatmul.mubr.msk.bf16.gmra.mrb[68].mxu0 %vm189_vm1, %v1360_v62 }
 0x438   :  { %4266 = vmatpush3.bf16.xpose.msra.mxu0 %v5376_v31  ;;  %4267 = vmatprep.mubr.msk.bf16.mxu0 %vm4971_vm0, %v4970_v0 }
 0x439   :  { %4297 = vmatprep.subr.bf16.mxu0 %v4970_v0 }
 0x43f   :  { %4268 = vmatmul.mubr.msk.bf16.vlgmr.msra.gmra.mrb[72].mxu0 %vm189_vm1, %v1570_v14 }
 0x440   :  { %4271 = vmatprep.mubr.msk.bf16.mxu0 %vm4971_vm0, %v4970_v0 }
 0x447   :  { %4272 = vmatmul.mubr.msk.bf16.gmra.mrb[76].mxu0 %vm189_vm1, %v1571_v16 }
 0x448   :  { %4275 = vmatprep.mubr.msk.bf16.mxu0 %vm4971_vm0, %v4970_v0 }
 0x44f   :  { %4276 = vmatmul.mubr.msk.bf16.gmra.mrb[80].mxu0 %vm189_vm1, %v1572_v17 }
 0x450   :  { %4301 = vmatprep.mubr.msk.bf16.mxu0 %vm4971_vm0, %v4970_v0 }
 0x4e2   :  { %v987_v61 = vpop.f32.mrb[36].mxu1  ;;  %v1128_v18 = vpop.f32.mrb[48].mxu0 }
 0x4e3   :  { %v1150_v15 = vmul.f32 0.35355338, %v1128_v18  ;;  %v4161_v22 = vpop.f32.mrb[37].mxu1  ;;  %v4179_v23 = vpop.f32.mrb[49].mxu0  ;;  %v1009_v47 = vmul.f32 0.35355338, %v987_v61 }
 0x4e4   :  { %v990_v24 = vpop.f32.mrb[38].mxu1  ;;  %v1131_v25 = vpop.f32.mrb[50].mxu0 }
 0x4e5   :  { %v1151_v27 = vmul.f32 0.35355338, %v1131_v25  ;;  %v4162_v28 = vpop.f32.mrb[39].mxu1  ;;  %v4180_v29 = vpop.f32.mrb[51].mxu0  ;;  %v5495_v31 = vadd.f32 %v1150_v15, %v5487_v21  ;;  %v5525_v57 = vadd.f32 %v1009_v47, %v5487_v21  ;;  %v1010_v3 = vmul.f32 0.35355338, %v990_v24 }
 0x4e7   :  { %v1160_v33 = vsel %vm1019_vm14, %v5495_v31, -inf  ;;  %v5500_v35 = vadd.f32 %v1151_v27, %v5492_v26  ;;  %v1020_v13 = vsel %vm1019_vm14, %v5525_v57, -inf  ;;  %v5543_v18 = vadd.f32 %v1010_v3, %v5492_v26 }
 0x4e8   :  { %1161 = vmax.xlane.f32.xlu0 %v1160_v33 }
 0x4e9   :  { %v1163_v36 = vsel %vm1019_vm14, %v5500_v35, -inf  ;;  %v1023_v27 = vsel %vm1019_vm14, %v5543_v18, -inf }
 0x4ea   :  { %v995_v37 = vpop.f32.mrb[40].mxu1  ;;  %1164 = vmax.xlane.f32.xlu1 %v1163_v36  ;;  %v1136_v39 = vpop.f32.mrb[52].mxu0 }
 0x4eb   :  { %v1152_v40 = vmul.f32 0.35355338, %v1136_v39  ;;  %v4165_v41 = vpop.f32.mrb[41].mxu1  ;;  %v4183_v42 = vpop.f32.mrb[53].mxu0  ;;  %v1011_v49 = vmul.f32 0.35355338, %v995_v37 }
 0x4ec   :  { %v998_v44 = vpop.f32.mrb[42].mxu1  ;;  %v1139_v45 = vpop.f32.mrb[54].mxu0 }
 0x4ed   :  { %v1153_v48 = vmul.f32 0.35355338, %v1139_v45  ;;  %v4166_v50 = vpop.f32.mrb[43].mxu1  ;;  %v4184_v51 = vpop.f32.mrb[55].mxu0  ;;  %v5515_v52 = vadd.f32 %v1152_v40, %v5507_v38  ;;  %v5538_v16 = vadd.f32 %v1011_v49, %v5507_v38  ;;  %v1012_v17 = vmul.f32 0.35355338, %v998_v44 }
 0x4ef   :  { %v1166_v53 = vsel %vm1019_vm14, %v5515_v52, -inf  ;;  %v5520_v54 = vadd.f32 %v1153_v48, %v5512_v46  ;;  %v1026_v15 = vsel %vm1019_vm14, %v5538_v16, -inf  ;;  %v5553_v28 = vadd.f32 %v1012_v17, %v5512_v46 }
 0x4f0   :  { %1167 = vmax.xlane.f32.xlu0 %v1166_v53 }
 0x4f1   :  { %v1169_v56 = vsel %vm1019_vm14, %v5520_v54, -inf  ;;  %v1029_v39 = vsel %vm1019_vm14, %v5553_v28, -inf }
 0x4f2   :  { %v1003_v58 = vpop.f32.mrb[44].mxu1  ;;  %1170 = vmax.xlane.f32.xlu1 %v1169_v56  ;;  %v1144_v59 = vpop.f32.mrb[56].mxu0 }
 0x4f3   :  { %v1154_v4 = vmul.f32 0.35355338, %v1144_v59  ;;  %v4169_v5 = vpop.f32.mrb[45].mxu1  ;;  %v4187_v6 = vpop.f32.mrb[57].mxu0  ;;  %v1013_v11 = vmul.f32 0.35355338, %v1003_v58 }
 0x4f4   :  { %v1006_v8 = vpop.f32.mrb[46].mxu1  ;;  %v1147_v10 = vpop.f32.mrb[58].mxu0 }
 0x4f5   :  { %v4170_v12 = vpop.f32.mrb[47].mxu1  ;;  %v4188_v62 = vpop.f32.mrb[59].mxu0  ;;  %v5535_v14 = vadd.f32 %v1154_v4, %v5530_v60  ;;  %v5548_v22 = vadd.f32 %v1013_v11, %v5530_v60 }
 0x4f6   :  { %1021 = vmax.xlane.f32.xlu1 %v1020_v13 }
 0x4f7   :  { %v1172_v61 = vsel %vm1032_vm15, %v5535_v14, -inf  ;;  %v1033_v37 = vsel %vm1032_vm15, %v5548_v22, -inf }
 0x4f8   :  { %1173 = vmax.xlane.f32.xlu0 %v1172_v61 }
 0x4fa   :  { %1027 = vmax.xlane.f32.xlu1 %v1026_v15  ;;  %v1404_v23 = vpop.f32.mrb[60].mxu0 }
 0x4fb   :  { %v1426_v24 = vmul.f32 0.35355338, %v1404_v23  ;;  %v4233_v25 = vpop.f32.mrb[61].mxu0 }
 0x4fc   :  { %1024 = vmax.xlane.f32.xlu0 %v1023_v27  ;;  %v1407_v29 = vpop.f32.mrb[62].mxu0 }
 0x4fd   :  { %v1427_v33 = vmul.f32 0.35355338, %v1407_v29  ;;  %v4234_v36 = vpop.f32.mrb[63].mxu0  ;;  %v5563_v41 = vadd.f32 %v1426_v24, %v5487_v21 }
 0x4fe   :  { %1034 = vmax.xlane.f32.xlu1 %v1033_v37 }
 0x4ff   :  { %v5560_v40 = vadd.f32 %v1427_v33, %v5492_v26  ;;  %v1436_v48 = vsel %vm1019_vm14, %v5563_v41, -inf }
 0x500   :  { %1030 = vmax.xlane.f32.xlu0 %v1029_v39 }
 0x501   :  { %v1439_v42 = vsel %vm1019_vm14, %v5560_v40, -inf }
 0x502   :  { %1440 = vmax.xlane.f32.xlu1 %v1439_v42  ;;  %v1412_v44 = vpop.f32.mrb[64].mxu0 }
 0x503   :  { %v1428_v45 = vmul.f32 0.35355338, %v1412_v44  ;;  %v4237_v47 = vpop.f32.mrb[65].mxu0 }
 0x504   :  { %1437 = vmax.xlane.f32.xlu0 %v1436_v48  ;;  %v1415_v50 = vpop.f32.mrb[66].mxu0 }
 0x505   :  { %v1429_v51 = vmul.f32 0.35355338, %v1415_v50  ;;  %v4238_v53 = vpop.f32.mrb[67].mxu0  ;;  %v5570_v49 = vadd.f32 %v1428_v45, %v5507_v38 }
 0x507   :  { %v1442_v56 = vsel %vm1019_vm14, %v5570_v49, -inf  ;;  %v5575_v58 = vadd.f32 %v1429_v51, %v5512_v46 }
 0x508   :  { %1443 = vmax.xlane.f32.xlu0 %v1442_v56 }
 0x509   :  { %v1445_v59 = vsel %vm1019_vm14, %v5575_v58, -inf }
 0x50a   :  { %1446 = vmax.xlane.f32.xlu1 %v1445_v59  ;;  %v1420_v3 = vpop.f32.mrb[68].mxu0 }
 0x50b   :  { %v1430_v4 = vmul.f32 0.35355338, %v1420_v3  ;;  %v4241_v5 = vpop.f32.mrb[69].mxu0 }
 0x50c   :  { %v1423_v6 = vpop.f32.mrb[70].mxu0 }
 0x50d   :  { %v4242_v8 = vpop.f32.mrb[71].mxu0  ;;  %v5580_v10 = vadd.f32 %v1430_v4, %v5530_v60 }
 0x50f   :  { %v1448_v11 = vsel %vm1032_vm15, %v5580_v10, -inf }
 0x510   :  { %1449 = vmax.xlane.f32.xlu0 %v1448_v11 }
 0x512   :  { %v1616_v12 = vpop.f32.mrb[72].mxu0 }
 0x513   :  { %v1638_v62 = vmul.f32 0.35355338, %v1616_v12  ;;  %v4269_v13 = vpop.f32.mrb[73].mxu0 }
 0x514   :  { %v1619_v17 = vpop.f32.mrb[74].mxu0 }
 0x515   :  { %v1639_v61 = vmul.f32 0.35355338, %v1619_v17  ;;  %v4270_v15 = vpop.f32.mrb[75].mxu0  ;;  %v5585_v23 = vadd.f32 %v1638_v62, %v5487_v21 }
 0x517   :  { %v1648_v24 = vsel %vm1019_vm14, %v5585_v23, -inf  ;;  %v5590_v25 = vadd.f32 %v1639_v61, %v5492_v26 }
 0x518   :  { %1649 = vmax.xlane.f32.xlu1 %v1648_v24 }
 0x519   :  { %v1651_v27 = vsel %vm1019_vm14, %v5590_v25, -inf }
 0x51a   :  { %1652 = vmax.xlane.f32.xlu0 %v1651_v27  ;;  %v1624_v29 = vpop.f32.mrb[76].mxu0 }
 0x51b   :  { %v1640_v33 = vmul.f32 0.35355338, %v1624_v29  ;;  %v4273_v36 = vpop.f32.mrb[77].mxu0 }
 0x51c   :  { %v1627_v37 = vpop.f32.mrb[78].mxu0 }
 0x51d   :  { %v1641_v39 = vmul.f32 0.35355338, %v1627_v37  ;;  %v4274_v42 = vpop.f32.mrb[79].mxu0  ;;  %v5595_v21 = vadd.f32 %v1640_v33, %v5507_v38 }
 0x51f   :  { %v1654_v44 = vsel %vm1019_vm14, %v5595_v21, -inf  ;;  %v5600_v26 = vadd.f32 %v1641_v39, %v5512_v46 }
 0x520   :  { %1655 = vmax.xlane.f32.xlu1 %v1654_v44 }
 0x521   :  { %v1657_v45 = vsel %vm1019_vm14, %v5600_v26, -inf }
 0x522   :  { %1658 = vmax.xlane.f32.xlu0 %v1657_v45  ;;  %v1632_v47 = vpop.f32.mrb[80].mxu0 }
 0x523   :  { %v4277_v48 = vpop.f32.mrb[81].mxu0  ;;  %v1642_v12 = vmul.f32 0.35355338, %v1632_v47 }
 0x524   :  { %v1635_v50 = vpop.f32.mrb[82].mxu0 }
 0x525   :  { %v4278_v51 = vpop.f32.mrb[83].mxu0  ;;  %v5614_v15 = vadd.f32 %v1642_v12, %v5530_v60 }
 0x527   :  { %v1660_v60 = vsel %vm1032_vm15, %v5614_v15, -inf }
 0x575   :  { %v1162_v53 = vpop.xlane.xlu0 %1161 }
 0x576   :  { %v1175_v56 = vsub.f32 %v5495_v31, %v1162_v53 }
 0x577   :  { %v1165_v38 = vpop.xlane.xlu1 %1164 }
 0x578   :  { %v1180_v59 = vmul.f32 1.442695, %v1175_v56  ;;  %v1176_v3 = vsub.f32 %v5500_v35, %v1165_v38 }
 0x57a   :  { %4741 = vpow2.f32 %v1180_v59  ;;  %v1182_v4 = vmul.f32 1.442695, %v1176_v3 }
 0x57c   :  { %4743 = vpow2.f32 %v1182_v4 }
 0x57d   :  { %v1168_v46 = vpop.xlane.xlu0 %1167 }
 0x57e   :  { %v1177_v5 = vsub.f32 %v5515_v52, %v1168_v46 }
 0x57f   :  { %v1171_v6 = vpop.xlane.xlu1 %1170 }
 0x580   :  { %v1184_v8 = vmul.f32 1.442695, %v1177_v5  ;;  %v1178_v11 = vsub.f32 %v5520_v54, %v1171_v6 }
 0x582   :  { %4745 = vpow2.f32 %v1184_v8  ;;  %v1186_v62 = vmul.f32 1.442695, %v1178_v11 }
 0x583   :  { %v1022_v13 = vpop.xlane.xlu1 %1021 }
 0x584   :  { %v5608_v17 = vpop.eup %4741  ;;  %4747 = vpow2.f32 %v1186_v62  ;;  %v1036_v31 = vsub.f32 %v5525_v57, %v1022_v13 }
 0x585   :  { %v1174_v35 = vpop.xlane.xlu0 %1173  ;;  %v1190_v61 = vsel %vm1019_vm14, %v5608_v17, 0.0 }
 0x586   :  { %v5616_v52 = vpop.eup %4743  ;;  %v1041_v24 = vmul.f32 1.442695, %v1036_v31  ;;  %v1179_v54 = vsub.f32 %v5535_v14, %v1174_v35  ;;  %1191 = vadd.xlane.f32.xlu1 %v1190_v61 }
 0x587   :  { %v1028_v27 = vpop.xlane.xlu1 %1027  ;;  %v1193_v29 = vsel %vm1019_vm14, %v5616_v52, 0.0 }
 0x588   :  { %4749 = vpow2.f32 %v1041_v24  ;;  %v1188_v33 = vmul.f32 1.442695, %v1179_v54  ;;  %v1038_v57 = vsub.f32 %v5538_v16, %v1028_v27  ;;  %1194 = vadd.xlane.f32.xlu0 %v1193_v29 }
 0x589   :  { %v1025_v36 = vpop.xlane.xlu0 %1024 }
 0x58a   :  { %4751 = vpow2.f32 %v1188_v33  ;;  %v1045_v37 = vmul.f32 1.442695, %v1038_v57  ;;  %v1037_v39 = vsub.f32 %v5543_v18, %v1025_v36  ;;  %1661 = vmax.xlane.f32.xlu1 %v1660_v60 }
 0x58b   :  { %v1035_v14 = vpop.xlane.xlu1 %1034 }
 0x58c   :  { %v5625_v42 = vpop.eup %4745  ;;  %4753 = vpow2.f32 %v1045_v37  ;;  %v1043_v44 = vmul.f32 1.442695, %v1037_v39  ;;  %v1040_v45 = vsub.f32 %v5548_v22, %v1035_v14 }
 0x58d   :  { %v1031_v47 = vpop.xlane.xlu0 %1030  ;;  %v1196_v16 = vsel %vm1019_vm14, %v5625_v42, 0.0 }
 0x58e   :  { %v5630_v48 = vpop.eup %4747  ;;  %4755 = vpow2.f32 %v1043_v44  ;;  %v1049_v50 = vmul.f32 1.442695, %v1040_v45  ;;  %v1039_v51 = vsub.f32 %v5553_v28, %v1031_v47  ;;  %1197 = vadd.xlane.f32.xlu0 %v1196_v16 }
 0x58f   :  { %v1441_v18 = vpop.xlane.xlu1 %1440  ;;  %v1199_v53 = vsel %vm1019_vm14, %v5630_v48, 0.0 }
 0x590   :  { %4757 = vpow2.f32 %v1049_v50  ;;  %v1047_v56 = vmul.f32 1.442695, %v1039_v51  ;;  %v1452_v38 = vsub.f32 %v5560_v40, %v1441_v18  ;;  %1200 = vadd.xlane.f32.xlu1 %v1199_v53 }
 0x591   :  { %v1438_v22 = vpop.xlane.xlu0 %1437 }
 0x592   :  { %v5636_v59 = vpop.eup %4749  ;;  %4759 = vpow2.f32 %v1047_v56  ;;  %v1458_v3 = vmul.f32 1.442695, %v1452_v38  ;;  %v1451_v4 = vsub.f32 %v5563_v41, %v1438_v22 }
 0x593   :  { %v1051_v28 = vsel %vm1019_vm14, %v5636_v59, 0.0 }
 0x594   :  { %v5641_v46 = vpop.eup %4751  ;;  %4761 = vpow2.f32 %v1458_v3  ;;  %v1456_v5 = vmul.f32 1.442695, %v1451_v4  ;;  %1052 = vadd.xlane.f32.xlu1 %v1051_v28 }
 0x595   :  { %v1444_v6 = vpop.xlane.xlu0 %1443  ;;  %v1202_v40 = vsel %vm1032_vm15, %v5641_v46, 0.0 }
 0x596   :  { %v5645_v8 = vpop.eup %4753  ;;  %4763 = vpow2.f32 %v1456_v5  ;;  %v1453_v11 = vsub.f32 %v5570_v49, %v1444_v6  ;;  %1203 = vadd.xlane.f32.xlu0 %v1202_v40 }
 0x597   :  { %v1447_v12 = vpop.xlane.xlu1 %1446  ;;  %v1057_v41 = vsel %vm1019_vm14, %v5645_v8, 0.0 }
 0x598   :  { %v5650_v62 = vpop.eup %4755  ;;  %v1460_v13 = vmul.f32 1.442695, %v1453_v11  ;;  %v1454_v31 = vsub.f32 %v5575_v58, %v1447_v12  ;;  %1058 = vadd.xlane.f32.xlu1 %v1057_v41 }
 0x599   :  { %v1054_v35 = vsel %vm1019_vm14, %v5650_v62, 0.0 }
 0x59a   :  { %v5655_v61 = vpop.eup %4757  ;;  %4765 = vpow2.f32 %v1460_v13  ;;  %v1462_v24 = vmul.f32 1.442695, %v1454_v31  ;;  %1055 = vadd.xlane.f32.xlu0 %v1054_v35 }
 0x59b   :  { %v1063_v49 = vsel %vm1032_vm15, %v5655_v61, 0.0 }
 0x59c   :  { %v5659_v54 = vpop.eup %4759  ;;  %4767 = vpow2.f32 %v1462_v24  ;;  %1064 = vadd.xlane.f32.xlu1 %v1063_v49 }
 0x59d   :  { %v1450_v27 = vpop.xlane.xlu0 %1449  ;;  %v1060_v58 = vsel %vm1019_vm14, %v5659_v54, 0.0 }
 0x59e   :  { %v5663_v29 = vpop.eup %4761  ;;  %v1455_v33 = vsub.f32 %v5580_v10, %v1450_v27  ;;  %1061 = vadd.xlane.f32.xlu0 %v1060_v58 }
 0x59f   :  { %v1469_v57 = vsel %vm1019_vm14, %v5663_v29, 0.0 }
 0x5a0   :  { %v5668_v36 = vpop.eup %4763  ;;  %v1464_v60 = vmul.f32 1.442695, %v1455_v33  ;;  %1470 = vadd.xlane.f32.xlu1 %v1469_v57 }
 0x5a1   :  { %v1466_v37 = vsel %vm1019_vm14, %v5668_v36, 0.0 }
 0x5a2   :  { %4769 = vpow2.f32 %v1464_v60  ;;  %1467 = vadd.xlane.f32.xlu0 %v1466_v37 }
 0x5a4   :  { %v5672_v39 = vpop.eup %4765 }
 0x5a5   :  { %v1650_v14 = vpop.xlane.xlu1 %1649  ;;  %v1472_v44 = vsel %vm1019_vm14, %v5672_v39, 0.0 }
 0x5a6   :  { %v5676_v10 = vpop.eup %4767  ;;  %v1663_v45 = vsub.f32 %v5585_v23, %v1650_v14  ;;  %1473 = vadd.xlane.f32.xlu0 %v1472_v44  ;;  %v1079_v44 = vmul.bf16 %v5393_v43, %v5380_v32 }
 0x5a7   :  { %v1653_v47 = vpop.xlane.xlu0 %1652  ;;  %v1475_v16 = vsel %vm1019_vm14, %v5676_v10, 0.0 }
 0x5a8   :  { %v1668_v50 = vmul.f32 1.442695, %v1663_v45  ;;  %v1664_v51 = vsub.f32 %v5590_v25, %v1653_v47  ;;  %1476 = vadd.xlane.f32.xlu1 %v1475_v16  ;;  %v1080_v16 = vmul.bf16 %v5411_v55, %v5380_v32 }
 0x5aa   :  { %4771 = vpow2.f32 %v1668_v50  ;;  %v1670_v18 = vmul.f32 1.442695, %v1664_v51 }
 0x5ac   :  { %v5682_v53 = vpop.eup %4769  ;;  %4773 = vpow2.f32 %v1670_v18 }
 0x5ad   :  { %v1656_v56 = vpop.xlane.xlu1 %1655  ;;  %v1478_v38 = vsel %vm1032_vm15, %v5682_v53, 0.0 }
 0x5ae   :  { %v1665_v23 = vsub.f32 %v5595_v21, %v1656_v56  ;;  %1479 = vadd.xlane.f32.xlu0 %v1478_v38  ;;  %v1081_v56 = vmul.bf16 %v5426_v63, %v5380_v32 }
 0x5af   :  { %v1659_v22 = vpop.xlane.xlu0 %1658 }
 0x5b0   :  { %v1672_v3 = vmul.f32 1.442695, %v1665_v23  ;;  %v1666_v4 = vsub.f32 %v5600_v26, %v1659_v22  ;;  %v1300_v23 = vsel %vm1230_vm10, %v1081_v56, 0 }
 0x5b2   :  { %4775 = vpow2.f32 %v1672_v3  ;;  %v1674_v28 = vmul.f32 1.442695, %v1666_v4 }
 0x5b4   :  { %v5688_v25 = vpop.eup %4771  ;;  %4777 = vpow2.f32 %v1674_v28 }
 0x5b5   :  { %v1678_v5 = vsel %vm1019_vm14, %v5688_v25, 0.0 }
 0x5b6   :  { %v5692_v6 = vpop.eup %4773  ;;  %1679 = vadd.xlane.f32.xlu1 %v1678_v5 }
 0x5b7   :  { %v1681_v40 = vsel %vm1019_vm14, %v5692_v6, 0.0 }
 0x5b8   :  { %1682 = vadd.xlane.f32.xlu0 %v1681_v40 }
 0x5bc   :  { %v5696_v21 = vpop.eup %4775 }
 0x5bd   :  { %v1684_v26 = vsel %vm1019_vm14, %v5696_v21, 0.0 }
 0x5be   :  { %v5700_v11 = vpop.eup %4777  ;;  %1685 = vadd.xlane.f32.xlu1 %v1684_v26 }
 0x5bf   :  { %v1687_v12 = vsel %vm1019_vm14, %v5700_v11, 0.0 }
 0x5c0   :  { %1688 = vadd.xlane.f32.xlu0 %v1687_v12 }
 0x613   :  { %v1192_v41 = vpop.xlane.xlu1 %1191 }
 0x614   :  { %4779 = vrcp.f32 %v1192_v41 }
 0x615   :  { %v1195_v13 = vpop.xlane.xlu0 %1194 }
 0x616   :  { %4781 = vrcp.f32 %v1195_v13  ;;  %v1494_v13 = vmul.bf16 %v5393_v43, %v5438_v9 }
 0x617   :  { %v1662_v31 = vpop.xlane.xlu1 %1661 }
 0x618   :  { %v1667_v35 = vsub.f32 %v5614_v15, %v1662_v31 }
 0x61a   :  { %v1676_v24 = vmul.f32 1.442695, %v1667_v35 }
 0x61b   :  { %v1198_v49 = vpop.xlane.xlu0 %1197 }
 0x61c   :  { %4783 = vpow2.f32 %v1676_v24 }
 0x61d   :  { %4785 = vrcp.f32 %v1198_v49  ;;  %v1201_v27 = vpop.xlane.xlu1 %1200 }
 0x61e   :  { %v4780_v58 = vpop.eup %4779  ;;  %4787 = vrcp.f32 %v1201_v27  ;;  %v1496_v27 = vmul.bf16 %v5426_v63, %v5438_v9 }
 0x61f   :  { %v1210_v57 = vmul.f32 %v4780_v58, %v5608_v17 }
 0x620   :  { %v4782_v33 = vpop.eup %4781 }
 0x621   :  { %v1211_v60 = vmul.f32 %v4782_v33, %v5616_v52  ;;  %v1053_v50 = vpop.xlane.xlu1 %1052 }
 0x623   :  { %v1215_v37 = vpack.c.bf16 %v1211_v60, %v1210_v57  ;;  %v1204_v14 = vpop.xlane.xlu0 %1203 }
 0x624   :  { %4789 = vrcp.f32 %v1204_v14 }
 0x625   :  { %4196 = vmatmul.mubr.msk.bf16.vlgmr.msra.gmra.mrb[48].mxu1 %vm1019_vm14, %v1215_v37  ;;  %v1059_v3 = vpop.xlane.xlu1 %1058 }
 0x626   :  { %v5710_v15 = vpop.eup %4783  ;;  %4208 = vmatpush3.bf16.msra.mxu1 %v1079_v44  ;;  %4199 = vmatprep.mubr.msk.bf16.mxu1 %vm4971_vm0, %v4970_v0 }
 0x627   :  { %v4786_v45 = vpop.eup %4785  ;;  %v1056_v47 = vpop.xlane.xlu0 %1055  ;;  %4209 = vmatprep.subr.bf16.mxu1 %v4970_v0  ;;  %v1690_v17 = vsel %vm1032_vm15, %v5710_v15, 0.0 }
 0x628   :  { %v4788_v52 = vpop.eup %4787  ;;  %1691 = vadd.xlane.f32.xlu1 %v1690_v17  ;;  %v1212_v51 = vmul.f32 %v4786_v45, %v5625_v42  ;;  %4791 = vrcp.f32 %v1056_v47 }
 0x629   :  { %v1213_v18 = vmul.f32 %v4788_v52, %v5630_v48  ;;  %4793 = vrcp.f32 %v1053_v50  ;;  %v1065_v26 = vpop.xlane.xlu1 %1064  ;;  %v1706_v50 = vmul.bf16 %v5393_v43, %v5467_v7  ;;  %v1708_v43 = vmul.bf16 %v5426_v63, %v5467_v7 }
 0x62a   :  { %4210 = vmatpush3.bf16.msra.mxu1 %v1080_v16 }
 0x62b   :  { %4211 = vmatprep.subr.bf16.mxu1 %v4970_v0  ;;  %v1216_v38 = vpack.c.bf16 %v1213_v18, %v1212_v51  ;;  %v1062_v42 = vpop.xlane.xlu0 %1061 }
 0x62c   :  { %4795 = vrcp.f32 %v1062_v42 }
 0x62d   :  { %4200 = vmatmul.mubr.msk.bf16.gmra.mrb[52].mxu1 %vm1019_vm14, %v1216_v38  ;;  %4797 = vrcp.f32 %v1059_v3  ;;  %v1471_v24 = vpop.xlane.xlu1 %1470 }
 0x62e   :  { %v4790_v22 = vpop.eup %4789  ;;  %4212 = vmatpush3.bf16.msra.mxu1 %v1300_v23  ;;  %4203 = vmatprep.mubr.msk.bf16.mxu1 %vm4971_vm0, %v4970_v0  ;;  %4799 = vrcp.f32 %v1065_v26  ;;  %v4941_v26 = vld [vmem:[%s6780_s28] sm:$0xff]  }
 0x62f   :  { %v1214_v48 = vmul.f32 %v4790_v22, %v5641_v46  ;;  %4243 = vmatprep.subr.bf16.mxu1 %v4970_v0  ;;  %v1468_v35 = vpop.xlane.xlu0 %1467 }
 0x630   :  { %4801 = vrcp.f32 %v1468_v35  ;;  %v3730_v35 = vld [vmem:[%s6781_s23 + $0x28] sm:$0xff] }
 0x631   :  { %v1217_v4 = vpack.c.bf16 %v1214_v48, %v1214_v48  ;;  %4803 = vrcp.f32 %v1471_v24  ;;  %v3732_v24 = vld [vmem:[%s6781_s23 + $0x38] sm:$0xff] }
 0x632   :  { %v4792_v28 = vpop.eup %4791 }
 0x633   :  { %v4794_v5 = vpop.eup %4793  ;;  %v1072_v40 = vmul.f32 %v4792_v28, %v5650_v62  ;;  %v1474_v37 = vpop.xlane.xlu0 %1473 }
 0x634   :  { %v1071_v12 = vmul.f32 %v4794_v5, %v5636_v59  ;;  %v1495_v59 = vmul.bf16 %v5411_v55, %v5438_v9 }
 0x635   :  { %4204 = vmatmul.mubr.msk.bf16.gmra.mrb[56].mxu1 %vm1019_vm14, %v1217_v4  ;;  %v1477_v57 = vpop.xlane.xlu1 %1476 }
 0x636   :  { %4213 = vmatprep.mubr.msk.bf16.mxu1 %vm4971_vm0, %v4970_v0  ;;  %v1076_v46 = vpack.c.bf16 %v1072_v40, %v1071_v12  ;;  %v4796_v41 = vpop.eup %4795  ;;  %4805 = vrcp.f32 %v1477_v57 }
 0x637   :  { %v4798_v31 = vpop.eup %4797  ;;  %v1074_v62 = vmul.f32 %v4796_v41, %v5659_v54  ;;  %v1507_v54 = vsel %vm1230_vm10, %v1496_v27, 0  ;;  %4807 = vrcp.f32 %v1474_v37  ;;  %v4944_v27 = vld [vmem:[%s6783_s24 + $0x8] sm:$0xff]  }
 0x638   :  { %v1073_v49 = vmul.f32 %v4798_v31, %v5645_v8  ;;  %v4800_v33 = vpop.eup %4799  ;;  %v4709_v8 = vld [vmem:[%s6761_s16] sm:$0xff]   ;;  %v4948_v37 = vld [vmem:[%s6783_s24 + $0x28] sm:$0xff]  }
 0x639   :  { %v1075_v60 = vmul.f32 %v4800_v33, %v5655_v61  ;;  %4298 = vmatpush3.bf16.msra.mxu0 %v4709_v8  ;;  %v4945_v33 = vld [vmem:[%s6783_s24 + $0x10] sm:$0xff]   ;;  %v3734_v8 = vld [vmem:[%s6781_s23 + $0x48] sm:$0xf] }
 0x63a   :  { %v1077_v58 = vpack.c.bf16 %v1074_v62, %v1073_v49  ;;  %4299 = vmatprep.subr.bf16.mxu0 %v4970_v0  ;;  %v4802_v44 = vpop.eup %4801  ;;  %v3733_v49 = vld [vmem:[%s6781_s23 + $0x40] sm:$0xff]  ;;  %v2006_v57 = vpack.c.bf16 %v3734_v8, %v3734_v8 }
 0x63b   :  { %v1078_v14 = vpack.c.bf16 %v1075_v60, %v1075_v60  ;;  %v4804_v45 = vpop.eup %4803  ;;  %v1486_v47 = vmul.f32 %v4802_v44, %v5668_v36  ;;  %v1480_v17 = vpop.xlane.xlu0 %1479  ;;  %v4947_v60 = vld [vmem:[%s6783_s24 + $0x20] sm:$0xff]   ;;  %v4950_v44 = vld [vmem:[%s6783_s24 + $0x38] sm:$0xff]  }
 0x63c   :  { %v1487_v61 = vmul.f32 %v4804_v45, %v5663_v29  ;;  %4809 = vrcp.f32 %v1480_v17  ;;  %v1707_v29 = vmul.bf16 %v5411_v55, %v5467_v7 }
 0x63d   :  { %4214 = vmatmul.mubr.msk.bf16.vlgmr.msra.gmra.mrb[48].mxu1 %vm1019_vm14, %v1076_v46 }
 0x63e   :  { %4244 = vmatpush3.bf16.msra.mxu1 %v1494_v13  ;;  %4217 = vmatprep.mubr.msk.bf16.mxu1 %vm4971_vm0, %v4970_v0  ;;  %v1491_v52 = vpack.c.bf16 %v1487_v61, %v1486_v47  ;;  %v4711_v61 = vld [vmem:[%s6779_s26 + $0x10] sm:$0xff]  }
 0x63f   :  { %4245 = vmatprep.subr.bf16.mxu1 %v4970_v0 }
 0x640   :  { %v4806_v16 = vpop.eup %4805 }
 0x641   :  { %v4808_v51 = vpop.eup %4807  ;;  %v1489_v36 = vmul.f32 %v4806_v16, %v5676_v10  ;;  %v1719_v10 = vsel %vm1230_vm10, %v1708_v43, 0 }
 0x642   :  { %4246 = vmatpush3.bf16.msra.mxu1 %v1495_v59  ;;  %v1488_v38 = vmul.f32 %v4808_v51, %v5672_v39  ;;  %v4943_v59 = vld [vmem:[%s6783_s24] sm:$0xff]  }
 0x643   :  { %4247 = vmatprep.subr.bf16.mxu1 %v4970_v0  ;;  %v1680_v56 = vpop.xlane.xlu1 %1679 }
 0x644   :  { %v1492_v23 = vpack.c.bf16 %v1489_v36, %v1488_v38 }
 0x645   :  { %4218 = vmatmul.mubr.msk.bf16.gmra.mrb[52].mxu1 %vm1019_vm14, %v1077_v58  ;;  %v1683_v18 = vpop.xlane.xlu0 %1682  ;;  %v2005_v58 = vpack.c.bf16 %v3733_v49, %v3732_v24 }
 0x646   :  { %4248 = vmatpush3.bf16.msra.mxu1 %v1507_v54  ;;  %4221 = vmatprep.mubr.msk.bf16.mxu1 %vm4971_vm0, %v4970_v0  ;;  %4811 = vrcp.f32 %v1683_v18  ;;  %v4810_v22 = vpop.eup %4809  ;;  %v4946_v54 = vld [vmem:[%s6783_s24 + $0x18] sm:$0xff]  }
 0x647   :  { %4279 = vmatprep.subr.bf16.mxu1 %v4970_v0  ;;  %4813 = vrcp.f32 %v1680_v56  ;;  %v1490_v39 = vmul.f32 %v4810_v22, %v5682_v53 }
 0x649   :  { %v1493_v42 = vpack.c.bf16 %v1490_v39, %v1490_v39 }
 0x64b   :  { %v1686_v63 = vpop.xlane.xlu1 %1685 }
 0x64d   :  { %4222 = vmatmul.mubr.msk.bf16.gmra.mrb[56].mxu1 %vm1019_vm14, %v1078_v14  ;;  %v1689_v55 = vpop.xlane.xlu0 %1688  ;;  %v4949_v14 = vld [vmem:[%s6783_s24 + $0x30] sm:$0xff]  }
 0x64e   :  { %4249 = vmatprep.mubr.msk.bf16.mxu1 %vm4971_vm0, %v4970_v0  ;;  %4815 = vrcp.f32 %v1689_v55 }
 0x64f   :  { %4817 = vrcp.f32 %v1686_v63 }
 0x650   :  { %v4812_v48 = vpop.eup %4811 }
 0x651   :  { %v4814_v3 = vpop.eup %4813  ;;  %v1699_v4 = vmul.f32 %v4812_v48, %v5692_v6  ;;  %v4713_v48 = vld [vmem:[%s6782_s5 + $0x40] sm:$0xff]  }
 0x652   :  { %v1698_v28 = vmul.f32 %v4814_v3, %v5688_v25  ;;  %v4942_v25 = vld [vmem:[%s6780_s28 + $0x8] sm:$0xff]  }
 0x654   :  { %v1703_v5 = vpack.c.bf16 %v1699_v4, %v1698_v28  ;;  %v4714_v4 = vld [vmem:[%s6782_s5 + $0x48] sm:$0xff]  }
 0x655   :  { %4250 = vmatmul.mubr.msk.bf16.vlgmr.msra.gmra.mrb[48].mxu1 %vm1019_vm14, %v1491_v52 }
 0x656   :  { %4280 = vmatpush3.bf16.msra.mxu1 %v1706_v50  ;;  %4253 = vmatprep.mubr.msk.bf16.mxu1 %vm4971_vm0, %v4970_v0  ;;  %v4712_v50 = vld [vmem:[%s6779_s26 + $0x18] sm:$0xff]  }
 0x657   :  { %4281 = vmatprep.subr.bf16.mxu1 %v4970_v0 }
 0x658   :  { %v4816_v40 = vpop.eup %4815 }
 0x659   :  { %v4818_v53 = vpop.eup %4817  ;;  %v1701_v12 = vmul.f32 %v4816_v40, %v5700_v11 }
 0x65a   :  { %4282 = vmatpush3.bf16.msra.mxu1 %v1707_v29  ;;  %v1700_v6 = vmul.f32 %v4818_v53, %v5696_v21  ;;  %v5807_v21 = vld [vmem:[%s6761_s16 + $0x8] sm:$0xff]   ;;  %v4715_v53 = vld [vmem:[%s6782_s5 + $0x50] sm:$0xff]  }
 0x65b   :  { %4283 = vmatprep.subr.bf16.mxu1 %v4970_v0  ;;  %4300 = vmatpush3.bf16.msra.mxu0 %v5807_v21 }
 0x65c   :  { %v1704_v46 = vpack.c.bf16 %v1701_v12, %v1700_v6  ;;  %4313 = vmatprep.subr.bf16.mxu0 %v4970_v0  ;;  %v4717_v6 = vld [vmem:[%s6782_s5 + $0x60] sm:$0xff]  }
 0x65d   :  { %4254 = vmatmul.mubr.msk.bf16.gmra.mrb[52].mxu1 %vm1019_vm14, %v1492_v23 }
 0x65e   :  { %4284 = vmatpush3.bf16.msra.mxu1 %v1719_v10  ;;  %4257 = vmatprep.mubr.msk.bf16.mxu1 %vm4971_vm0, %v4970_v0 }
 0x65f   :  { %4329 = vmatprep.subr.bf16.mxu1 %v4970_v0 }
 0x665   :  { %4258 = vmatmul.mubr.msk.bf16.gmra.mrb[56].mxu1 %vm1019_vm14, %v1493_v42 }
 0x666   :  { %4285 = vmatprep.mubr.msk.bf16.mxu1 %vm4971_vm0, %v4970_v0 }
 0x66d   :  { %4286 = vmatmul.mubr.msk.bf16.vlgmr.msra.gmra.mrb[48].mxu1 %vm1019_vm14, %v1703_v5 }
 0x66e   :  { %4289 = vmatprep.mubr.msk.bf16.mxu1 %vm4971_vm0, %v4970_v0  ;;  %4330 = vmatpush3.bf16.msra.mxu1 %v4941_v26  ;;  %v4716_v26 = vld [vmem:[%s6782_s5 + $0x58] sm:$0xff]  }
 0x66f   :  { %4331 = vmatprep.subr.bf16.mxu1 %v4970_v0 }
 0x672   :  { %4332 = vmatpush3.bf16.msra.mxu1 %v4942_v25 }
 0x673   :  { %4373 = vmatprep.subr.bf16.mxu1 %v4970_v0 }
 0x675   :  { %4290 = vmatmul.mubr.msk.bf16.gmra.mrb[52].mxu1 %vm1019_vm14, %v1704_v46 }
 0x676   :  { %4293 = vmatprep.mubr.msk.bf16.mxu1 %vm4971_vm0, %v4970_v0 }
 0x6b5   :  { %v1692_v41 = vpop.xlane.xlu1 %1691 }
 0x6b6   :  { %4819 = vrcp.f32 %v1692_v41 }
 0x6c0   :  { %v4820_v11 = vpop.eup %4819 }
 0x6c1   :  { %v1702_v13 = vmul.f32 %v4820_v11, %v5710_v15  ;;  %v3731_v15 = vld [vmem:[%s6781_s23 + $0x30] sm:$0xff]  ;;  %v4718_v11 = vld [vmem:[%s6782_s5 + $0x68] sm:$0xff]  }
 0x6c2   :  { %v5820_v62 = vpack.c.bf16 %v3731_v15, %v3730_v35  ;;  %v3717_v35 = vld [vmem:[%s6762_s17] ss:$0 sm:$0xff] }
 0x6c3   :  { %v1705_v31 = vpack.c.bf16 %v1702_v13, %v1702_v13  ;;  %v4719_v13 = vld [vmem:[%s6782_s5 + $0x70] sm:$0xff]  }
 0x6c5   :  { %4294 = vmatmul.mubr.msk.bf16.gmra.mrb[56].mxu1 %vm1019_vm14, %v1705_v31  ;;  %v4720_v31 = vld [vmem:[%s6782_s5 + $0x78] sm:$0xff]  }
 0x6c6   :  { %4333 = vmatprep.mubr.msk.bf16.mxu1 %vm4971_vm0, %v4970_v0 }
 0x6cd   :  { %4334 = vmatmul.mubr.msk.bf16.vlgmr.msra.gmra.mrb[60].mxu1 %vm189_vm1, %v5820_v62 }
 0x6ce   :  { %4337 = vmatprep.mubr.msk.bf16.mxu1 %vm4971_vm0, %v4970_v0  ;;  %4374 = vmatpush3.bf16.msra.mxu1 %v4943_v59 }
 0x6cf   :  { %4375 = vmatprep.subr.bf16.mxu1 %v4970_v0 }
 0x6d2   :  { %4376 = vmatpush3.bf16.msra.mxu1 %v4944_v27 }
 0x6d3   :  { %4377 = vmatprep.subr.bf16.mxu1 %v4970_v0 }
 0x6d5   :  { %4338 = vmatmul.mubr.msk.bf16.gmra.mrb[64].mxu1 %vm189_vm1, %v2005_v58 }
 0x6d6   :  { %4341 = vmatprep.mubr.msk.bf16.mxu1 %vm4971_vm0, %v4970_v0  ;;  %4378 = vmatpush3.bf16.msra.mxu1 %v4945_v33 }
 0x6d7   :  { %4379 = vmatprep.subr.bf16.mxu1 %v4970_v0 }
 0x6da   :  { %4380 = vmatpush3.bf16.msra.mxu1 %v4946_v54 }
 0x6db   :  { %4381 = vmatprep.subr.bf16.mxu1 %v4970_v0 }
 0x6dd   :  { %4342 = vmatmul.mubr.msk.bf16.gmra.mrb[68].mxu1 %vm189_vm1, %v2006_v57 }
 0x6de   :  { %4382 = vmatpush3.bf16.msra.mxu1 %v4947_v60  ;;  %4389 = vmatprep.mubr.msk.bf16.mxu1 %vm4971_vm0, %v4970_v0 }
 0x6df   :  { %4383 = vmatprep.subr.bf16.mxu1 %v4970_v0 }
 0x6e2   :  { %4384 = vmatpush3.bf16.msra.mxu1 %v4948_v37 }
 0x6e3   :  { %4385 = vmatprep.subr.bf16.mxu1 %v4970_v0 }
 0x6e6   :  { %4386 = vmatpush3.bf16.msra.mxu1 %v4949_v14 }
 0x6e7   :  { %4387 = vmatprep.subr.bf16.mxu1 %v4970_v0 }
 0x6ea   :  { %4388 = vmatpush3.bf16.msra.mxu1 %v4950_v44 }
 0x6eb   :  { %4417 = vmatprep.subr.bf16.mxu1 %v4970_v0 }
 0x740   :  { %v1755_v45 = vpop.f32.mrb[48].mxu1 }
 0x741   :  { %v4287_v47 = vpop.f32.mrb[49].mxu1 }
 0x742   :  { %v1758_v17 = vpop.f32.mrb[50].mxu1 }
 0x743   :  { %v1782_v52 = vpack.c.bf16 %v1758_v17, %v1755_v45  ;;  %v4288_v16 = vpop.f32.mrb[51].mxu1 }
 0x745   :  { %4302 = vmatmul.mubr.msk.bf16.vlgmr.msra.gmra.mrb[84].mxu0 %vm189_vm1, %v1782_v52 }
 0x746   :  { %4305 = vmatprep.mubr.msk.bf16.mxu0 %vm4971_vm0, %v4970_v0  ;;  %4314 = vmatpush3.bf16.msra.mxu0 %v4711_v61 }
 0x747   :  { %4315 = vmatprep.subr.bf16.mxu0 %v4970_v0 }
 0x748   :  { %v1763_v51 = vpop.f32.mrb[52].mxu1 }
 0x749   :  { %v4291_v18 = vpop.f32.mrb[53].mxu1 }
 0x74a   :  { %v1766_v36 = vpop.f32.mrb[54].mxu1  ;;  %4316 = vmatpush3.bf16.msra.mxu0 %v4712_v50 }
 0x74b   :  { %v1783_v29 = vpack.c.bf16 %v1766_v36, %v1763_v51  ;;  %v4292_v56 = vpop.f32.mrb[55].mxu1  ;;  %4345 = vmatprep.subr.bf16.mxu0 %v4970_v0  ;;  %v4951_v51 = vld [vmem:[%s6784_s1] ss:$0 sm:$0xff] }
 0x74d   :  { %4306 = vmatmul.mubr.msk.bf16.gmra.mrb[88].mxu0 %vm189_vm1, %v1783_v29 }
 0x74e   :  { %4309 = vmatprep.mubr.msk.bf16.mxu0 %vm4971_vm0, %v4970_v0 }
 0x798   :  { %v1771_v38 = vpop.f32.mrb[56].mxu1 }
 0x799   :  { %v1784_v43 = vpack.c.bf16 %v1771_v38, %v1771_v38  ;;  %v4295_v23 = vpop.f32.mrb[57].mxu1 }
 0x79a   :  { %v1774_v22 = vpop.f32.mrb[58].mxu1 }
 0x79b   :  { %v4296_v10 = vpop.f32.mrb[59].mxu1  ;;  %4310 = vmatmul.mubr.msk.bf16.gmra.mrb[92].mxu0 %vm189_vm1, %v1784_v43 }
 0x79c   :  { %4317 = vmatprep.mubr.msk.bf16.mxu0 %vm4971_vm0, %v4970_v0 }
 0x7a0   :  { %v5900_v55 = vpop.f32.mrb[60].mxu1 }
 0x7a1   :  { %v4335_v39 = vpop.f32.mrb[61].mxu1 }
 0x7a2   :  { %v5902_v63 = vpop.f32.mrb[62].mxu1 }
 0x7a3   :  { %4318 = vmatmul.mubr.msk.bf16.vlgmr.msra.gmra.mrb[96].mxu0 %vm189_vm1, %v5820_v62  ;;  %v4336_v42 = vpop.f32.mrb[63].mxu1 }
 0x7a4   :  { %4321 = vmatprep.mubr.msk.bf16.mxu0 %vm4971_vm0, %v4970_v0  ;;  %4346 = vmatpush3.bf16.msra.mxu0 %v4713_v48 }
 0x7a5   :  { %4347 = vmatprep.subr.bf16.mxu0 %v4970_v0 }
 0x7a8   :  { %v5908_v3 = vpop.f32.mrb[64].mxu1  ;;  %4348 = vmatpush3.bf16.msra.mxu0 %v4714_v4 }
 0x7a9   :  { %v4339_v28 = vpop.f32.mrb[65].mxu1  ;;  %4349 = vmatprep.subr.bf16.mxu0 %v4970_v0 }
 0x7aa   :  { %v5913_v5 = vpop.f32.mrb[66].mxu1 }
 0x7ab   :  { %4322 = vmatmul.mubr.msk.bf16.gmra.mrb[100].mxu0 %vm189_vm1, %v2005_v58  ;;  %v4340_v40 = vpop.f32.mrb[67].mxu1 }
 0x7ac   :  { %4325 = vmatprep.mubr.msk.bf16.mxu0 %vm4971_vm0, %v4970_v0  ;;  %4350 = vmatpush3.bf16.msra.mxu0 %v4715_v53 }
 0x7ad   :  { %4351 = vmatprep.subr.bf16.mxu0 %v4970_v0 }
 0x7b0   :  { %4352 = vmatpush3.bf16.msra.mxu0 %v4716_v26  ;;  %v5923_v12 = vpop.f32.mrb[68].mxu1 }
 0x7b1   :  { %4353 = vmatprep.subr.bf16.mxu0 %v4970_v0  ;;  %v4343_v25 = vpop.f32.mrb[69].mxu1 }
 0x7b2   :  { %v2137_v46 = vpop.f32.mrb[70].mxu1 }
 0x7b3   :  { %4326 = vmatmul.mubr.msk.bf16.gmra.mrb[104].mxu0 %vm189_vm1, %v2006_v57  ;;  %v4344_v41 = vpop.f32.mrb[71].mxu1 }
 0x7b4   :  { %4361 = vmatprep.mubr.msk.bf16.mxu0 %vm4971_vm0, %v4970_v0  ;;  %4354 = vmatpush3.bf16.msra.mxu0 %v4717_v6 }
 0x7b5   :  { %4355 = vmatprep.subr.bf16.mxu0 %v4970_v0 }
 0x7b8   :  { %4356 = vmatpush3.bf16.msra.mxu0 %v4718_v11 }
 0x7b9   :  { %4357 = vmatprep.subr.bf16.mxu0 %v4970_v0 }
 0x7bc   :  { %4358 = vmatpush3.bf16.msra.mxu0 %v4719_v13 }
 0x7bd   :  { %4359 = vmatprep.subr.bf16.mxu0 %v4970_v0 }
 0x7c0   :  { %4360 = vmatpush3.bf16.msra.mxu0 %v4720_v31 }
 0x7c1   :  { %4401 = vmatprep.subr.bf16.mxu0 %v4970_v0 }
 0x818   :  { %v1846_v15 = vpop.f32.mrb[84].mxu0 }
 0x819   :  { %v1847_v62 = vadd.f32 %v3717_v35, %v1846_v15  ;;  %v4303_v59 = vpop.f32.mrb[85].mxu0 }
 0x81a   :  { %v1849_v24 = vpop.f32.mrb[86].mxu0 }
 0x81b   :  { %v5946_v49 = vadd.f32 %v1847_v62, %v5225_v1  ;;  %v1850_v27 = vadd.f32 %v3717_v35, %v1849_v24  ;;  %v4304_v58 = vpop.f32.mrb[87].mxu0 }
 0x81d   :  { %1873 = vst.msk [vmem:[%s6763_s20] sm:$0xff] %vm189_vm1, %v5946_v49  ;;  %v5954_v33 = vadd.f32 %v1850_v27, %v5227_v2 }
 0x81f   :  { %1874 = vst.msk [vmem:[%s6763_s20 + $0x8] sm:$0xff] %vm189_vm1, %v5954_v33 }
 0x820   :  { %v1854_v54 = vpop.f32.mrb[88].mxu0 }
 0x821   :  { %v1855_v1 = vadd.f32 %v3717_v35, %v1854_v54  ;;  %v4307_v8 = vpop.f32.mrb[89].mxu0 }
 0x822   :  { %v1857_v57 = vpop.f32.mrb[90].mxu0 }
 0x823   :  { %v5962_v60 = vadd.f32 %v1855_v1, %v5239_v19  ;;  %v1858_v37 = vadd.f32 %v3717_v35, %v1857_v57  ;;  %v4308_v14 = vpop.f32.mrb[91].mxu0 }
 0x825   :  { %1875 = vst.msk [vmem:[%s6763_s20 + $0x10] sm:$0xff] %vm189_vm1, %v5962_v60  ;;  %v5970_v2 = vadd.f32 %v1858_v37, %v5241_v20 }
 0x827   :  { %1876 = vst.msk [vmem:[%s6763_s20 + $0x18] sm:$0xff] %vm189_vm1, %v5970_v2 }
 0x86e   :  { %v1862_v44 = vpop.f32.mrb[92].mxu0 }
 0x86f   :  { %v1863_v19 = vadd.f32 %v3717_v35, %v1862_v44  ;;  %v4311_v45 = vpop.f32.mrb[93].mxu0 }
 0x870   :  { %v1865_v47 = vpop.f32.mrb[94].mxu0 }
 0x871   :  { %v5978_v17 = vadd.f32 %v1863_v19, %v5250_v34  ;;  %v4312_v61 = vpop.f32.mrb[95].mxu0 }
 0x873   :  { %1877 = vst.msk [vmem:[%s6763_s20 + $0x20] sm:$0xf] %vm618_vm2, %v5978_v17 }
 0x876   :  { %v2062_v20 = vpop.f32.mrb[96].mxu0 }
 0x877   :  { %v2119_v52 = vadd.f32 %v5900_v55, %v2062_v20  ;;  %v4319_v16 = vpop.f32.mrb[97].mxu0 }
 0x878   :  { %v2065_v50 = vpop.f32.mrb[98].mxu0 }
 0x879   :  { %v2140_v18 = vadd.f32 %v4951_v51, %v2119_v52  ;;  %v2122_v34 = vadd.f32 %v5902_v63, %v2065_v50  ;;  %v4320_v36 = vpop.f32.mrb[99].mxu0 }
 0x87b   :  { %v2150_v29 = vmul.f32 0.044715, %v2140_v18  ;;  %v2141_v56 = vadd.f32 %v4951_v51, %v2122_v34 }
 0x87d   :  { %v2155_v38 = vmul.f32 %v2150_v29, %v2140_v18  ;;  %v2151_v43 = vmul.f32 0.044715, %v2141_v56  ;;  %v2146_v47 = vmul.f32 0.5, %v2141_v56 }
 0x87e   :  { %v2070_v23 = vpop.f32.mrb[100].mxu0 }
 0x87f   :  { %v2160_v22 = vmul.f32 %v2155_v38, %v2140_v18  ;;  %v2156_v10 = vmul.f32 %v2151_v43, %v2141_v56  ;;  %v2127_v39 = vadd.f32 %v5908_v3, %v2070_v23  ;;  %v4323_v55 = vpop.f32.mrb[101].mxu0  ;;  %v4952_v38 = vld [vmem:[%s6753_s12] sm:$0xff]  }
 0x880   :  { %v2073_v42 = vpop.f32.mrb[102].mxu0  ;;  %v4953_v43 = vld [vmem:[%s6754_s11] sm:$0xff]   ;;  %v4955_v55 = vld [vmem:[%s6754_s11 + $0x8] sm:$0xff]  }
 0x881   :  { %v2165_v48 = vadd.f32 %v2160_v22, %v2140_v18  ;;  %v2161_v4 = vmul.f32 %v2156_v10, %v2141_v56  ;;  %v2142_v28 = vadd.f32 %v4951_v51, %v2127_v39  ;;  %v2130_v40 = vadd.f32 %v5913_v5, %v2073_v42  ;;  %v4324_v53 = vpop.f32.mrb[103].mxu0  ;;  %v4954_v39 = vld [vmem:[%s6753_s12 + $0x8] sm:$0xff]  }
 0x883   :  { %v2170_v26 = vmul.f32 0.7978846, %v2165_v48  ;;  %v2166_v63 = vadd.f32 %v2161_v4, %v2141_v56  ;;  %v2152_v6 = vmul.f32 0.044715, %v2142_v28  ;;  %v2143_v25 = vadd.f32 %v4951_v51, %v2130_v40 }
 0x884   :  { %v2147_v29 = vmul.f32 0.5, %v2142_v28 }
 0x885   :  { %4821 = vtanh.f32 %v2170_v26  ;;  %v2171_v46 = vmul.f32 0.7978846, %v2166_v63  ;;  %v2157_v41 = vmul.f32 %v2152_v6, %v2142_v28  ;;  %v2153_v11 = vmul.f32 0.044715, %v2143_v25 }
 0x886   :  { %v2078_v13 = vpop.f32.mrb[104].mxu0 }
 0x887   :  { %4823 = vtanh.f32 %v2171_v46  ;;  %v2158_v31 = vmul.f32 %v2153_v11, %v2143_v25  ;;  %v2135_v3 = vadd.f32 %v5923_v12, %v2078_v13  ;;  %v4327_v35 = vpop.f32.mrb[105].mxu0  ;;  %v2162_v15 = vmul.f32 %v2157_v41, %v2142_v28  ;;  %v3725_v46 = vld [vmem:[%s6752_s0 + $0x28] sm:$0xff]  ;;  %v4956_v13 = vld [vmem:[%s6751_s7] ss:$0 sm:$0xff] }
 0x888   :  { %v2081_v62 = vpop.f32.mrb[106].mxu0  ;;  %v2145_v12 = vmul.f32 0.5, %v2140_v18  ;;  %v2148_v18 = vmul.f32 0.5, %v2143_v25 }
 0x889   :  { %v2144_v59 = vadd.f32 %v4951_v51, %v2135_v3  ;;  %v4328_v24 = vpop.f32.mrb[107].mxu0  ;;  %v2163_v5 = vmul.f32 %v2158_v31, %v2143_v25  ;;  %v2167_v27 = vadd.f32 %v2162_v15, %v2142_v28  ;;  %v3726_v62 = vld [vmem:[%s6752_s0 + $0x30] sm:$0xff] }
 0x88b   :  { %v2154_v58 = vmul.f32 0.044715, %v2144_v59  ;;  %v2168_v54 = vadd.f32 %v2163_v5, %v2143_v25  ;;  %v2172_v1 = vmul.f32 0.7978846, %v2167_v27  ;;  %v2149_v48 = vmul.f32 0.5, %v2144_v59 }
 0x88d   :  { %v2173_v8 = vmul.f32 0.7978846, %v2168_v54  ;;  %4825 = vtanh.f32 %v2172_v1  ;;  %v2159_v57 = vmul.f32 %v2154_v58, %v2144_v59 }
 0x88f   :  { %v4822_v37 = vpop.eup %4821  ;;  %4827 = vtanh.f32 %v2173_v8  ;;  %v2164_v14 = vmul.f32 %v2159_v57, %v2144_v59 }
 0x890   :  { %v2180_v44 = vadd.f32 1.0, %v4822_v37 }
 0x891   :  { %v4824_v19 = vpop.eup %4823  ;;  %v2169_v45 = vadd.f32 %v2164_v14, %v2144_v59  ;;  %v3727_v14 = vld [vmem:[%s6752_s0 + $0x38] sm:$0xff] }
 0x892   :  { %v2181_v61 = vadd.f32 1.0, %v4824_v19  ;;  %v2185_v52 = vmul.f32 %v2180_v44, %v2145_v12 }
 0x893   :  { %v2174_v20 = vmul.f32 0.7978846, %v2169_v45 }
 0x894   :  { %v2186_v16 = vmul.f32 %v2181_v61, %v2146_v47 }
 0x895   :  { %4829 = vtanh.f32 %v2174_v20  ;;  %v3728_v20 = vld [vmem:[%s6752_s0 + $0x40] sm:$0xff] }
 0x896   :  { %v2190_v50 = vpack.c.bf16 %v2186_v16, %v2185_v52 }
 0x897   :  { %v4826_v51 = vpop.eup %4825 }
 0x898   :  { %4362 = vmatmul.mubr.bf16.vlgmr.msra.gmra.mrb[108].mxu0 %v2190_v50  ;;  %4390 = vmatmul.mubr.bf16.vlgmr.msra.gmra.mrb[72].mxu1 %v2190_v50  ;;  %v2182_v34 = vadd.f32 1.0, %v4826_v51 }
 0x899   :  { %v4828_v36 = vpop.eup %4827  ;;  %4365 = vmatprep.mubr.msk.bf16.mxu0 %vm4971_vm0, %v4970_v0  ;;  %4393 = vmatprep.mubr.msk.bf16.mxu1 %vm4971_vm0, %v4970_v0 }
 0x89a   :  { %v2183_v56 = vadd.f32 1.0, %v4828_v36  ;;  %4418 = vmatpush3.bf16.msra.mxu1 %v4952_v38  ;;  %4402 = vmatpush3.bf16.msra.mxu0 %v4953_v43  ;;  %v2187_v23 = vmul.f32 %v2182_v34, %v2147_v29  ;;  %v3729_v43 = vld [vmem:[%s6752_s0 + $0x48] sm:$0xf] }
 0x89b   :  { %4419 = vmatprep.subr.bf16.mxu1 %v4970_v0  ;;  %4403 = vmatprep.subr.bf16.mxu0 %v4970_v0 }
 0x89c   :  { %v2188_v22 = vmul.f32 %v2183_v56, %v2148_v18 }
 0x89e   :  { %v2191_v10 = vpack.c.bf16 %v2188_v22, %v2187_v23  ;;  %4420 = vmatpush3.bf16.msra.mxu1 %v4954_v39  ;;  %4404 = vmatpush3.bf16.msra.mxu0 %v4955_v55 }
 0x89f   :  { %v4830_v42 = vpop.eup %4829  ;;  %4433 = vmatprep.subr.bf16.mxu0 %v4970_v0  ;;  %4449 = vmatprep.subr.bf16.mxu1 %v4970_v0 }
 0x8a0   :  { %4366 = vmatmul.mubr.bf16.gmra.mrb[112].mxu0 %v2191_v10  ;;  %4394 = vmatmul.mubr.bf16.gmra.mrb[76].mxu1 %v2191_v10  ;;  %v2184_v4 = vadd.f32 1.0, %v4830_v42 }
 0x8a1   :  { %4369 = vmatprep.mubr.msk.bf16.mxu0 %vm4971_vm0, %v4970_v0  ;;  %4397 = vmatprep.mubr.msk.bf16.mxu1 %vm4971_vm0, %v4970_v0 }
 0x8a2   :  { %v2189_v28 = vmul.f32 %v2184_v4, %v2149_v48 }
 0x8a4   :  { %v2192_v40 = vpack.c.bf16 %v2189_v28, %v2189_v28 }
 0x8a8   :  { %4370 = vmatmul.mubr.bf16.gmra.mrb[116].mxu0 %v2192_v40  ;;  %4398 = vmatmul.mubr.bf16.gmra.mrb[80].mxu1 %v2192_v40 }
 0x8a9   :  { %4405 = vmatprep.mubr.msk.bf16.mxu0 %vm4971_vm0, %v4970_v0  ;;  %4421 = vmatprep.mubr.msk.bf16.mxu1 %vm4971_vm0, %v4970_v0 }
 0x96b   :  { %v2275_v53 = vpop.f32.mrb[108].mxu0  ;;  %v2331_v26 = vpop.f32.mrb[72].mxu1 }
 0x96c   :  { %v2332_v63 = vadd.f32 %v2331_v26, %v2275_v53  ;;  %v4363_v6 = vpop.f32.mrb[109].mxu0  ;;  %v4391_v25 = vpop.f32.mrb[73].mxu1 }
 0x96d   :  { %v2278_v41 = vpop.f32.mrb[110].mxu0  ;;  %v2334_v11 = vpop.f32.mrb[74].mxu1 }
 0x96e   :  { %v2353_v31 = vadd.f32 %v4956_v13, %v2332_v63  ;;  %v2335_v3 = vadd.f32 %v2334_v11, %v2278_v41  ;;  %v4364_v35 = vpop.f32.mrb[111].mxu0  ;;  %v4392_v15 = vpop.f32.mrb[75].mxu1 }
 0x970   :  { %v6030_v59 = vadd.f32 %v3725_v46, %v2353_v31  ;;  %v2354_v24 = vadd.f32 %v4956_v13, %v2335_v3 }
 0x972   :  { %v6032_v5 = vadd.f32 %v3726_v62, %v2354_v24  ;;  %v2363_v27 = vsel %vm189_vm1, %v6030_v59, 0.0 }
 0x973   :  { %v2339_v58 = vpop.f32.mrb[76].mxu1  ;;  %2364 = vadd.xlane.f32.xlu0 %v2363_v27  ;;  %v2283_v54 = vpop.f32.mrb[112].mxu0 }
 0x974   :  { %v2340_v1 = vadd.f32 %v2339_v58, %v2283_v54  ;;  %v4367_v8 = vpop.f32.mrb[113].mxu0  ;;  %v4395_v57 = vpop.f32.mrb[77].mxu1  ;;  %v2366_v37 = vsel %vm189_vm1, %v6032_v5, 0.0 }
 0x975   :  { %v2342_v44 = vpop.f32.mrb[78].mxu1  ;;  %2367 = vadd.xlane.f32.xlu1 %v2366_v37  ;;  %v2286_v19 = vpop.f32.mrb[114].mxu0 }
 0x976   :  { %v2355_v45 = vadd.f32 %v4956_v13, %v2340_v1  ;;  %v2343_v12 = vadd.f32 %v2342_v44, %v2286_v19  ;;  %v4368_v47 = vpop.f32.mrb[115].mxu0  ;;  %v4396_v61 = vpop.f32.mrb[79].mxu1 }
 0x978   :  { %v6044_v52 = vadd.f32 %v3727_v14, %v2355_v45  ;;  %v2356_v16 = vadd.f32 %v4956_v13, %v2343_v12 }
 0x97a   :  { %v6046_v50 = vadd.f32 %v3728_v20, %v2356_v16  ;;  %v2369_v51 = vsel %vm189_vm1, %v6044_v52, 0.0 }
 0x97b   :  { %v2347_v34 = vpop.f32.mrb[80].mxu1  ;;  %2370 = vadd.xlane.f32.xlu0 %v2369_v51  ;;  %v2291_v36 = vpop.f32.mrb[116].mxu0 }
 0x97c   :  { %v2348_v29 = vadd.f32 %v2347_v34, %v2291_v36  ;;  %v4371_v18 = vpop.f32.mrb[117].mxu0  ;;  %v4399_v56 = vpop.f32.mrb[81].mxu1  ;;  %v2372_v38 = vsel %vm189_vm1, %v6046_v50, 0.0 }
 0x97d   :  { %v2350_v23 = vpop.f32.mrb[82].mxu1  ;;  %2373 = vadd.xlane.f32.xlu1 %v2372_v38  ;;  %v2294_v22 = vpop.f32.mrb[118].mxu0 }
 0x97e   :  { %v2357_v10 = vadd.f32 %v4956_v13, %v2348_v29  ;;  %v4372_v39 = vpop.f32.mrb[119].mxu0  ;;  %v4400_v55 = vpop.f32.mrb[83].mxu1  ;;  %v4957_v23 = vld [vmem:[%s6756_s9] ss:$0 sm:$0xff] }
 0x980   :  { %v6055_v42 = vadd.f32 %v3729_v43, %v2357_v10 }
 0x982   :  { %v2375_v48 = vsel %vm618_vm2, %v6055_v42, 0.0 }
 0x983   :  { %2376 = vadd.xlane.f32.xlu0 %v2375_v48  ;;  %v4958_v48 = vld [vmem:[%s6757_s10] ss:$0 sm:$0xff] }
 0xa00   :  { %v2365_v4 = vpop.xlane.xlu0 %2364 }
 0xa01   :  { %v2378_v28 = vmul.f32 0.03125, %v2365_v4 }
 0xa02   :  { %v2368_v40 = vpop.xlane.xlu1 %2367 }
 0xa03   :  { %v2383_v53 = vsub.f32 %v6030_v59, %v2378_v28  ;;  %v2379_v26 = vmul.f32 0.03125, %v2368_v40 }
 0xa05   :  { %v2384_v63 = vsub.f32 %v6032_v5, %v2379_v26  ;;  %v2388_v6 = vmul.f32 %v2383_v53, %v2383_v53 }
 0xa07   :  { %v2393_v25 = vsel %vm189_vm1, %v2388_v6, 0.0  ;;  %v2389_v46 = vmul.f32 %v2384_v63, %v2384_v63 }
 0xa08   :  { %v2371_v41 = vpop.xlane.xlu0 %2370  ;;  %2394 = vadd.xlane.f32.xlu1 %v2393_v25 }
 0xa09   :  { %v2380_v11 = vmul.f32 0.03125, %v2371_v41  ;;  %v2396_v13 = vsel %vm189_vm1, %v2389_v46, 0.0  ;;  %v4959_v41 = vld [vmem:[%s6755_s13] sm:$0xff]  }
 0xa0a   :  { %v2374_v31 = vpop.xlane.xlu1 %2373  ;;  %2397 = vadd.xlane.f32.xlu0 %v2396_v13 }
 0xa0b   :  { %v2385_v3 = vsub.f32 %v6044_v52, %v2380_v11  ;;  %v2381_v35 = vmul.f32 0.03125, %v2374_v31 }
 0xa0d   :  { %v2386_v15 = vsub.f32 %v6046_v50, %v2381_v35  ;;  %v2390_v62 = vmul.f32 %v2385_v3, %v2385_v3 }
 0xa0f   :  { %v2399_v24 = vsel %vm189_vm1, %v2390_v62, 0.0  ;;  %v2391_v27 = vmul.f32 %v2386_v15, %v2386_v15 }
 0xa10   :  { %2400 = vadd.xlane.f32.xlu1 %v2399_v24  ;;  %v2377_v58 = vpop.xlane.xlu0 %2376 }
 0xa11   :  { %v2382_v54 = vmul.f32 0.03125, %v2377_v58  ;;  %v2402_v1 = vsel %vm189_vm1, %v2391_v27, 0.0 }
 0xa12   :  { %2403 = vadd.xlane.f32.xlu0 %v2402_v1 }
 0xa13   :  { %v2387_v8 = vsub.f32 %v6055_v42, %v2382_v54 }
 0xa15   :  { %v2392_v57 = vmul.f32 %v2387_v8, %v2387_v8 }
 0xa17   :  { %v2405_v37 = vsel %vm618_vm2, %v2392_v57, 0.0 }
 0xa18   :  { %2406 = vadd.xlane.f32.xlu1 %v2405_v37 }
 0xa95   :  { %v2395_v14 = vpop.xlane.xlu1 %2394 }
 0xa96   :  { %v2408_v44 = vmul.f32 0.03125, %v2395_v14  ;;  %v6113_v14 = vld [vmem:[%s6758_s14] ss:$0 sm:$0xff] }
 0xa97   :  { %v2398_v19 = vpop.xlane.xlu0 %2397 }
 0xa98   :  { %v2413_v45 = vadd.f32 1e-05, %v2408_v44  ;;  %v2409_v12 = vmul.f32 0.03125, %v2398_v19 }
 0xa9a   :  { %4831 = vrsqrt.f32 %v2413_v45  ;;  %v2414_v47 = vadd.f32 1e-05, %v2409_v12 }
 0xa9c   :  { %4833 = vrsqrt.f32 %v2414_v47 }
 0xa9d   :  { %v2401_v61 = vpop.xlane.xlu1 %2400 }
 0xa9e   :  { %v2410_v20 = vmul.f32 0.03125, %v2401_v61 }
 0xa9f   :  { %v2404_v16 = vpop.xlane.xlu0 %2403 }
 0xaa0   :  { %v2415_v51 = vadd.f32 1e-05, %v2410_v20  ;;  %v2411_v34 = vmul.f32 0.03125, %v2404_v16 }
 0xaa2   :  { %4835 = vrsqrt.f32 %v2415_v51  ;;  %v2416_v36 = vadd.f32 1e-05, %v2411_v34 }
 0xaa4   :  { %v4832_v29 = vpop.eup %4831  ;;  %4837 = vrsqrt.f32 %v2416_v36 }
 0xaa5   :  { %v2423_v18 = vmul.f32 %v4832_v29, %v2383_v53  ;;  %v2407_v56 = vpop.xlane.xlu1 %2406 }
 0xaa6   :  { %v4834_v38 = vpop.eup %4833  ;;  %v2412_v43 = vmul.f32 0.03125, %v2407_v56 }
 0xaa7   :  { %v2428_v22 = vmul.f32 %v4957_v23, %v2423_v18  ;;  %v2424_v10 = vmul.f32 %v4834_v38, %v2384_v63 }
 0xaa8   :  { %v2417_v39 = vadd.f32 1e-05, %v2412_v43 }
 0xaa9   :  { %v2429_v55 = vmul.f32 %v4957_v23, %v2424_v10  ;;  %v2433_v4 = vadd.f32 %v4958_v48, %v2428_v22 }
 0xaaa   :  { %4839 = vrsqrt.f32 %v2417_v39 }
 0xaab   :  { %v2434_v28 = vadd.f32 %v4958_v48, %v2429_v55 }
 0xaac   :  { %v4836_v40 = vpop.eup %4835 }
 0xaad   :  { %v2425_v53 = vmul.f32 %v4836_v40, %v2385_v3  ;;  %v2438_v26 = vpack.c.bf16 %v2434_v28, %v2433_v4 }
 0xaae   :  { %v4838_v6 = vpop.eup %4837 }
 0xaaf   :  { %v2426_v25 = vmul.f32 %v4838_v6, %v2386_v15  ;;  %4406 = vmatmul.mubr.msk.bf16.vlgmr.msra.gmra.mrb[120].mxu0 %vm189_vm1, %v2438_v26  ;;  %4422 = vmatmul.mubr.msk.bf16.vlgmr.msra.gmra.mrb[84].mxu1 %vm189_vm1, %v2438_v26  ;;  %v2430_v46 = vmul.f32 %v4957_v23, %v2425_v53  ;;  %v4960_v15 = vld [vmem:[%s6755_s13 + $0x8] sm:$0xff]  }
 0xab0   :  { %4409 = vmatprep.mubr.msk.bf16.mxu0 %vm4971_vm0, %v4970_v0  ;;  %4425 = vmatprep.mubr.msk.bf16.mxu1 %vm4971_vm0, %v4970_v0 }
 0xab1   :  { %v2431_v63 = vmul.f32 %v4957_v23, %v2426_v25  ;;  %4434 = vmatpush3.bf16.msra.mxu0 %v4959_v41  ;;  %v2435_v11 = vadd.f32 %v4958_v48, %v2430_v46 }
 0xab2   :  { %4435 = vmatprep.subr.bf16.mxu0 %v4970_v0 }
 0xab3   :  { %v2436_v13 = vadd.f32 %v4958_v48, %v2431_v63 }
 0xab4   :  { %v4840_v31 = vpop.eup %4839 }
 0xab5   :  { %v2439_v3 = vpack.c.bf16 %v2436_v13, %v2435_v11  ;;  %v2427_v35 = vmul.f32 %v4840_v31, %v2387_v8  ;;  %4436 = vmatpush3.bf16.msra.mxu0 %v4960_v15 }
 0xab6   :  { %4467 = vmatprep.subr.bf16.mxu0 %v4970_v0 }
 0xab7   :  { %4410 = vmatmul.mubr.msk.bf16.gmra.mrb[124].mxu0 %vm189_vm1, %v2439_v3  ;;  %4426 = vmatmul.mubr.msk.bf16.gmra.mrb[88].mxu1 %vm189_vm1, %v2439_v3  ;;  %v2432_v62 = vmul.f32 %v4957_v23, %v2427_v35 }
 0xab8   :  { %4413 = vmatprep.mubr.msk.bf16.mxu0 %vm4971_vm0, %v4970_v0  ;;  %4429 = vmatprep.mubr.msk.bf16.mxu1 %vm4971_vm0, %v4970_v0 }
 0xab9   :  { %v2437_v24 = vadd.f32 %v4958_v48, %v2432_v62 }
 0xabb   :  { %v2440_v27 = vpack.c.bf16 %v2437_v24, %v2437_v24 }
 0xabf   :  { %4414 = vmatmul.mubr.msk.bf16.gmra.mrb[128].mxu0 %vm189_vm1, %v2440_v27  ;;  %4430 = vmatmul.mubr.msk.bf16.gmra.mrb[92].mxu1 %vm189_vm1, %v2440_v27 }
 0xac0   :  { %4437 = vmatprep.mubr.msk.bf16.mxu0 %vm4971_vm0, %v4970_v0  ;;  %4455 = vmatprep.mubr.msk.bf16.mxu1 %vm4971_vm0, %v4970_v0 }
 0xac7   :  { %4438 = vmatmul.mubr.msk.bf16.vlgmr.msra.gmra.mrb[132].mxu0 %vm189_vm1, %v2438_v26 }
 0xac8   :  { %4441 = vmatprep.mubr.msk.bf16.mxu0 %vm4971_vm0, %v4970_v0 }
 0xacf   :  { %4442 = vmatmul.mubr.msk.bf16.gmra.mrb[136].mxu0 %vm189_vm1, %v2439_v3  ;;  %v4962_v3 = vld [vmem:[%s6759_s15] ss:$0 sm:$0xff] }
 0xad0   :  { %4445 = vmatprep.mubr.msk.bf16.mxu0 %vm4971_vm0, %v4970_v0 }
 0xad7   :  { %4446 = vmatmul.mubr.msk.bf16.gmra.mrb[140].mxu0 %vm189_vm1, %v2440_v27 }
 0xad8   :  { %4473 = vmatprep.mubr.msk.bf16.mxu0 %vm4971_vm0, %v4970_v0 }
 0xb82   :  { %v2484_v58 = vpop.f32.mrb[120].mxu0  ;;  %v2543_v54 = vpop.f32.mrb[84].mxu1 }
 0xb83   :  { %v4407_v1 = vpop.f32.mrb[121].mxu0  ;;  %v4423_v8 = vpop.f32.mrb[85].mxu1  ;;  %v2485_v44 = vadd.f32 %v6113_v14, %v2484_v58 }
 0xb84   :  { %v2487_v57 = vpop.f32.mrb[122].mxu0  ;;  %v2546_v37 = vpop.f32.mrb[86].mxu1 }
 0xb85   :  { %v2488_v19 = vadd.f32 %v6113_v14, %v2487_v57  ;;  %v2565_v45 = vpack.c.bf16 %v2546_v37, %v2543_v54  ;;  %v4408_v12 = vpop.f32.mrb[123].mxu0  ;;  %v4424_v47 = vpop.f32.mrb[87].mxu1 }
 0xb87   :  { %v6117_v61 = vpack.c.bf16 %v2488_v19, %v2485_v44  ;;  %v6120_v20 = vsel %vm189_vm1, %v2565_v45, 0 }
 0xb88   :  { %4450 = vmatpush3.bf16.xpose.msra.mxu1 %v6120_v20  ;;  %4468 = vmatpush3.bf16.xpose.msra.mxu0 %v6120_v20 }
 0xb89   :  { %4451 = vmatprep.subr.bf16.mxu1 %v4970_v0  ;;  %4469 = vmatprep.subr.bf16.mxu0 %v4970_v0  ;;  %v2627_v13 = vmul.bf16 %v6117_v61, %v5380_v32  ;;  %v2775_v31 = vmul.bf16 %v6117_v61, %v5382_v30 }
 0xb8a   :  { %v2492_v16 = vpop.f32.mrb[124].mxu0  ;;  %v2551_v51 = vpop.f32.mrb[88].mxu1 }
 0xb8b   :  { %v4411_v34 = vpop.f32.mrb[125].mxu0  ;;  %v4427_v36 = vpop.f32.mrb[89].mxu1  ;;  %v2493_v56 = vadd.f32 %v6113_v14, %v2492_v16 }
 0xb8c   :  { %v2495_v29 = vpop.f32.mrb[126].mxu0  ;;  %v2554_v18 = vpop.f32.mrb[90].mxu1 }
 0xb8d   :  { %v2496_v38 = vadd.f32 %v6113_v14, %v2495_v29  ;;  %v2566_v43 = vpack.c.bf16 %v2554_v18, %v2551_v51  ;;  %v4412_v23 = vpop.f32.mrb[127].mxu0  ;;  %v4428_v22 = vpop.f32.mrb[91].mxu1 }
 0xb8e   :  { %v3050_v22 = vmul.bf16 %v6117_v61, %v5438_v9 }
 0xb8f   :  { %v6128_v10 = vpack.c.bf16 %v2496_v38, %v2493_v56  ;;  %v6131_v39 = vsel %vm189_vm1, %v2566_v43, 0 }
 0xb90   :  { %4452 = vmatpush3.bf16.xpose.msra.mxu1 %v6131_v39  ;;  %4470 = vmatpush3.bf16.xpose.msra.mxu0 %v6131_v39 }
 0xb91   :  { %4453 = vmatprep.subr.bf16.mxu1 %v4970_v0  ;;  %4471 = vmatprep.subr.bf16.mxu0 %v4970_v0  ;;  %v2628_v8 = vmul.bf16 %v6128_v10, %v5380_v32  ;;  %v2776_v45 = vmul.bf16 %v6128_v10, %v5382_v30 }
 0xb92   :  { %v2500_v55 = vpop.f32.mrb[128].mxu0  ;;  %v2559_v48 = vpop.f32.mrb[92].mxu1 }
 0xb93   :  { %v2567_v4 = vpack.c.bf16 %v2559_v48, %v2559_v48  ;;  %v4415_v28 = vpop.f32.mrb[129].mxu0  ;;  %v4431_v40 = vpop.f32.mrb[93].mxu1  ;;  %v2501_v57 = vadd.f32 %v6113_v14, %v2500_v55  ;;  %v3263_v48 = vmul.bf16 %v6128_v10, %v5467_v7 }
 0xb94   :  { %v2503_v53 = vpop.f32.mrb[130].mxu0  ;;  %v2562_v26 = vpop.f32.mrb[94].mxu1 }
 0xb95   :  { %v4416_v6 = vpop.f32.mrb[131].mxu0  ;;  %v4432_v25 = vpop.f32.mrb[95].mxu1  ;;  %v6138_v46 = vsel %vm189_vm1, %v2567_v4, 0  ;;  %v2508_v47 = vpack.c.bf16 %v2501_v57, %v2501_v57 }
 0xb97   :  { %v2629_v56 = vmul.bf16 %v2508_v47, %v5380_v32  ;;  %v2777_v38 = vmul.bf16 %v2508_v47, %v5382_v30  ;;  %v3052_v55 = vmul.bf16 %v2508_v47, %v5438_v9 }
 0xb98   :  { %4454 = vmatpush3.bf16.xpose.msra.mxu1 %v6138_v46  ;;  %4472 = vmatpush3.bf16.xpose.msra.mxu0 %v6138_v46 }
 0xb99   :  { %4521 = vmatprep.subr.bf16.mxu0 %v4970_v0  ;;  %4485 = vmatprep.subr.bf16.mxu1 %v4970_v0 }
 0xb9a   :  { %v2602_v63 = vpop.f32.mrb[132].mxu0 }
 0xb9b   :  { %v4439_v41 = vpop.f32.mrb[133].mxu0  ;;  %v2603_v35 = vadd.f32 %v4962_v3, %v2602_v63  ;;  %v6240_v63 = vld [vmem:[%s6760_s8] sm:$0xff] }
 0xb9c   :  { %v2605_v11 = vpop.f32.mrb[134].mxu0 }
 0xb9d   :  { %v2606_v15 = vadd.f32 %v4962_v3, %v2605_v11  ;;  %v4440_v62 = vpop.f32.mrb[135].mxu0 }
 0xb9f   :  { %v6151_v24 = vpack.c.bf16 %v2606_v15, %v2603_v35  ;;  %4456 = vmatmul.mubr.msk.bf16.vlgmr.msra.gmra.mrb[96].mxu1 %vm189_vm1, %v2627_v13  ;;  %4474 = vmatmul.mubr.msk.bf16.vlgmr.msra.gmra.mrb[144].mxu0 %vm189_vm1, %v2775_v31  ;;  %v6250_v13 = vld [vmem:[%s6760_s8 + $0x8] sm:$0xff] }
 0xba0   :  { %4522 = vmatpush3.bf16.xpose.msra.mxu0 %v6120_v20  ;;  %4459 = vmatprep.mubr.msk.bf16.mxu1 %vm4971_vm0, %v4970_v0 }
 0xba1   :  { %v2911_v27 = vmul.bf16 %v6151_v24, %v5382_v30  ;;  %4477 = vmatprep.mubr.msk.bf16.mxu0 %vm4971_vm0, %v4970_v0  ;;  %4523 = vmatprep.subr.bf16.mxu0 %v4970_v0 }
 0xba2   :  { %v2610_v58 = vpop.f32.mrb[136].mxu0 }
 0xba3   :  { %v4443_v54 = vpop.f32.mrb[137].mxu0  ;;  %4486 = vmatpush3.bf16.msra.mxu1 %v2911_v27  ;;  %v2611_v37 = vadd.f32 %v4962_v3, %v2610_v58 }
 0xba4   :  { %v2613_v1 = vpop.f32.mrb[138].mxu0  ;;  %4487 = vmatprep.subr.bf16.mxu1 %v4970_v0 }
 0xba5   :  { %v2614_v44 = vadd.f32 %v4962_v3, %v2613_v1  ;;  %v4444_v19 = vpop.f32.mrb[139].mxu0 }
 0xba6   :  { %v6260_v19 = vld [vmem:[%s6760_s8 + $0x10] sm:$0xff] }
 0xba7   :  { %v6169_v12 = vpack.c.bf16 %v2614_v44, %v2611_v37  ;;  %4460 = vmatmul.mubr.msk.bf16.gmra.mrb[100].mxu1 %vm189_vm1, %v2628_v8  ;;  %4478 = vmatmul.mubr.msk.bf16.gmra.mrb[148].mxu0 %vm189_vm1, %v2776_v45 }
 0xba8   :  { %4524 = vmatpush3.bf16.xpose.msra.mxu0 %v6131_v39  ;;  %4463 = vmatprep.mubr.msk.bf16.mxu1 %vm4971_vm0, %v4970_v0 }
 0xba9   :  { %v2912_v14 = vmul.bf16 %v6169_v12, %v5382_v30  ;;  %4481 = vmatprep.mubr.msk.bf16.mxu0 %vm4971_vm0, %v4970_v0  ;;  %4525 = vmatprep.subr.bf16.mxu0 %v4970_v0 }
 0xbaa   :  { %v2618_v16 = vpop.f32.mrb[140].mxu0 }
 0xbab   :  { %v2619_v51 = vadd.f32 %v4962_v3, %v2618_v16  ;;  %v4447_v34 = vpop.f32.mrb[141].mxu0  ;;  %4488 = vmatpush3.bf16.msra.mxu1 %v2912_v14  ;;  %v6270_v14 = vld [vmem:[%s6760_s8 + $0x18] sm:$0xff] }
 0xbac   :  { %v2621_v36 = vpop.f32.mrb[142].mxu0  ;;  %4489 = vmatprep.subr.bf16.mxu1 %v4970_v0 }
 0xbad   :  { %v6182_v29 = vpack.c.bf16 %v2619_v51, %v2619_v51  ;;  %v4448_v18 = vpop.f32.mrb[143].mxu0 }
 0xbaf   :  { %4464 = vmatmul.mubr.msk.bf16.gmra.mrb[104].mxu1 %vm189_vm1, %v2629_v56  ;;  %4482 = vmatmul.mubr.msk.bf16.gmra.mrb[152].mxu0 %vm189_vm1, %v2777_v38  ;;  %v2913_v43 = vmul.bf16 %v6182_v29, %v5382_v30  ;;  %v3051_v30 = vmul.bf16 %v6128_v10, %v5438_v9 }
 0xbb0   :  { %4526 = vmatpush3.bf16.xpose.msra.mxu0 %v6138_v46  ;;  %4527 = vmatprep.mubr.msk.bf16.mxu0 %vm4971_vm0, %v4970_v0 }
 0xbb1   :  { %v2924_v23 = vsel %vm1230_vm10, %v2913_v43, 0  ;;  %4557 = vmatprep.subr.bf16.mxu0 %v4970_v0  ;;  %4491 = vmatprep.mubr.msk.bf16.mxu1 %vm4971_vm0, %v4970_v0 }
 0xbb2   :  { %4490 = vmatpush3.bf16.msra.mxu1 %v2924_v23 }
 0xbb3   :  { %4503 = vmatprep.subr.bf16.mxu1 %v4970_v0 }
 0xbb7   :  { %4528 = vmatmul.mubr.msk.bf16.vlgmr.msra.gmra.mrb[156].mxu0 %vm189_vm1, %v3050_v22 }
 0xbb8   :  { %4558 = vmatpush3.bf16.xpose.msra.mxu0 %v6120_v20  ;;  %4531 = vmatprep.mubr.msk.bf16.mxu0 %vm4971_vm0, %v4970_v0  ;;  %v3262_v20 = vmul.bf16 %v6117_v61, %v5467_v7  ;;  %v3264_v61 = vmul.bf16 %v2508_v47, %v5467_v7 }
 0xbb9   :  { %4559 = vmatprep.subr.bf16.mxu0 %v4970_v0 }
 0xbbf   :  { %4532 = vmatmul.mubr.msk.bf16.gmra.mrb[160].mxu0 %vm189_vm1, %v3051_v30 }
 0xbc0   :  { %4560 = vmatpush3.bf16.xpose.msra.mxu0 %v6131_v39  ;;  %4535 = vmatprep.mubr.msk.bf16.mxu0 %vm4971_vm0, %v4970_v0  ;;  %v4963_v39 = vld [vmem:[%s6761_s16] sm:$0xff]  }
 0xbc1   :  { %4561 = vmatprep.subr.bf16.mxu0 %v4970_v0 }
 0xbc7   :  { %4536 = vmatmul.mubr.msk.bf16.gmra.mrb[164].mxu0 %vm189_vm1, %v3052_v55 }
 0xbc8   :  { %4562 = vmatpush3.bf16.xpose.msra.mxu0 %v6138_v46  ;;  %4563 = vmatprep.mubr.msk.bf16.mxu0 %vm4971_vm0, %v4970_v0 }
 0xbc9   :  { %4593 = vmatprep.subr.bf16.mxu0 %v4970_v0 }
 0xbcf   :  { %4564 = vmatmul.mubr.msk.bf16.vlgmr.msra.gmra.mrb[168].mxu0 %vm189_vm1, %v3262_v20 }
 0xbd0   :  { %4567 = vmatprep.mubr.msk.bf16.mxu0 %vm4971_vm0, %v4970_v0  ;;  %4594 = vmatpush3.bf16.msra.mxu0 %v4963_v39 }
 0xbd1   :  { %4595 = vmatprep.subr.bf16.mxu0 %v4970_v0 }
 0xbd4   :  { %4596 = vmatpush3.bf16.msra.mxu0 %v5807_v21 }
 0xbd7   :  { %4568 = vmatmul.mubr.msk.bf16.gmra.mrb[172].mxu0 %vm189_vm1, %v3263_v48 }
 0xbd8   :  { %4571 = vmatprep.mubr.msk.bf16.mxu0 %vm4971_vm0, %v4970_v0 }
 0xbdf   :  { %4572 = vmatmul.mubr.msk.bf16.gmra.mrb[176].mxu0 %vm189_vm1, %v3264_v61 }
 0xbe0   :  { %4597 = vmatprep.mubr.msk.bf16.mxu0 %vm4971_vm0, %v4970_v0 }
 0xc72   :  { %v2682_v4 = vpop.f32.mrb[96].mxu1  ;;  %v2821_v28 = vpop.f32.mrb[144].mxu0 }
 0xc73   :  { %v2843_v40 = vmul.f32 0.35355338, %v2821_v28  ;;  %v4457_v53 = vpop.f32.mrb[97].mxu1  ;;  %v4475_v21 = vpop.f32.mrb[145].mxu0  ;;  %v2704_v8 = vmul.f32 0.35355338, %v2682_v4 }
 0xc74   :  { %v2685_v26 = vpop.f32.mrb[98].mxu1  ;;  %v2824_v6 = vpop.f32.mrb[146].mxu0  ;;  %v6285_v4 = vld [vmem:[%s6760_s8 + $0x20] sm:$0xf] }
 0xc75   :  { %v2844_v10 = vmul.f32 0.35355338, %v2824_v6  ;;  %v4458_v25 = vpop.f32.mrb[99].mxu1  ;;  %v4476_v46 = vpop.f32.mrb[147].mxu0  ;;  %v6243_v41 = vadd.f32 %v6240_v63, %v2843_v40  ;;  %v6278_v36 = vadd.f32 %v6240_v63, %v2704_v8  ;;  %v2705_v38 = vmul.f32 0.35355338, %v2685_v26 }
 0xc77   :  { %v2853_v11 = vsel %vm1019_vm14, %v6243_v41, -inf  ;;  %v6253_v31 = vadd.f32 %v6250_v13, %v2844_v10  ;;  %v2714_v61 = vsel %vm1019_vm14, %v6278_v36, -inf  ;;  %v6296_v26 = vadd.f32 %v6250_v13, %v2705_v38 }
 0xc78   :  { %2854 = vmax.xlane.f32.xlu0 %v2853_v11 }
 0xc79   :  { %v2856_v3 = vsel %vm1019_vm14, %v6253_v31, -inf }
 0xc7a   :  { %v2690_v35 = vpop.f32.mrb[100].mxu1  ;;  %2857 = vmax.xlane.f32.xlu1 %v2856_v3  ;;  %v2829_v15 = vpop.f32.mrb[148].mxu0  ;;  %v2717_v3 = vsel %vm1019_vm14, %v6296_v26, -inf }
 0xc7b   :  { %v2845_v62 = vmul.f32 0.35355338, %v2829_v15  ;;  %v4461_v27 = vpop.f32.mrb[101].mxu1  ;;  %v4479_v58 = vpop.f32.mrb[149].mxu0  ;;  %v2706_v51 = vmul.f32 0.35355338, %v2690_v35 }
 0xc7c   :  { %v2693_v54 = vpop.f32.mrb[102].mxu1  ;;  %v2832_v1 = vpop.f32.mrb[150].mxu0 }
 0xc7d   :  { %v2846_v57 = vmul.f32 0.35355338, %v2832_v1  ;;  %v4462_v37 = vpop.f32.mrb[103].mxu1  ;;  %v4480_v44 = vpop.f32.mrb[151].mxu0  ;;  %v6263_v45 = vadd.f32 %v6260_v19, %v2845_v62  ;;  %v6291_v40 = vadd.f32 %v6260_v19, %v2706_v51  ;;  %v2707_v53 = vmul.f32 0.35355338, %v2693_v54 }
 0xc7f   :  { %v2859_v47 = vsel %vm1019_vm14, %v6263_v45, -inf  ;;  %v6273_v16 = vadd.f32 %v6270_v14, %v2846_v57  ;;  %v2720_v6 = vsel %vm1019_vm14, %v6291_v40, -inf  ;;  %v6306_v35 = vadd.f32 %v6270_v14, %v2707_v53 }
 0xc80   :  { %2860 = vmax.xlane.f32.xlu0 %v2859_v47 }
 0xc81   :  { %v2862_v34 = vsel %vm1019_vm14, %v6273_v16, -inf  ;;  %v2723_v54 = vsel %vm1019_vm14, %v6306_v35, -inf }
 0xc82   :  { %v2698_v18 = vpop.f32.mrb[104].mxu1  ;;  %2863 = vmax.xlane.f32.xlu1 %v2862_v34  ;;  %v2837_v56 = vpop.f32.mrb[152].mxu0 }
 0xc83   :  { %v2847_v43 = vmul.f32 0.35355338, %v2837_v56  ;;  %v4465_v23 = vpop.f32.mrb[105].mxu1  ;;  %v4483_v22 = vpop.f32.mrb[153].mxu0  ;;  %v2708_v20 = vmul.f32 0.35355338, %v2698_v18 }
 0xc84   :  { %v2701_v30 = vpop.f32.mrb[106].mxu1  ;;  %v2840_v55 = vpop.f32.mrb[154].mxu0 }
 0xc85   :  { %v4466_v39 = vpop.f32.mrb[107].mxu1  ;;  %v4484_v48 = vpop.f32.mrb[155].mxu0  ;;  %v6288_v28 = vadd.f32 %v6285_v4, %v2847_v43  ;;  %v6301_v10 = vadd.f32 %v6285_v4, %v2708_v20 }
 0xc86   :  { %2715 = vmax.xlane.f32.xlu1 %v2714_v61 }
 0xc87   :  { %v2865_v21 = vsel %vm1032_vm15, %v6288_v28, -inf  ;;  %v2726_v58 = vsel %vm1032_vm15, %v6301_v10, -inf }
 0xc88   :  { %2866 = vmax.xlane.f32.xlu0 %v2865_v21 }
 0xc8a   :  { %2721 = vmax.xlane.f32.xlu1 %v2720_v6  ;;  %v3096_v25 = vpop.f32.mrb[156].mxu0 }
 0xc8b   :  { %v3118_v46 = vmul.f32 0.35355338, %v3096_v25  ;;  %v4529_v11 = vpop.f32.mrb[157].mxu0 }
 0xc8c   :  { %2718 = vmax.xlane.f32.xlu0 %v2717_v3  ;;  %v3099_v15 = vpop.f32.mrb[158].mxu0 }
 0xc8d   :  { %v3119_v62 = vmul.f32 0.35355338, %v3099_v15  ;;  %v4530_v27 = vpop.f32.mrb[159].mxu0  ;;  %v6316_v8 = vadd.f32 %v6240_v63, %v3118_v46 }
 0xc8e   :  { %2727 = vmax.xlane.f32.xlu1 %v2726_v58 }
 0xc8f   :  { %v6313_v1 = vadd.f32 %v6250_v13, %v3119_v62  ;;  %v3128_v51 = vsel %vm1019_vm14, %v6316_v8, -inf }
 0xc90   :  { %2724 = vmax.xlane.f32.xlu0 %v2723_v54 }
 0xc91   :  { %v3131_v57 = vsel %vm1019_vm14, %v6313_v1, -inf }
 0xc92   :  { %3132 = vmax.xlane.f32.xlu1 %v3131_v57  ;;  %v3104_v37 = vpop.f32.mrb[160].mxu0 }
 0xc93   :  { %v3120_v44 = vmul.f32 0.35355338, %v3104_v37  ;;  %v4533_v47 = vpop.f32.mrb[161].mxu0 }
 0xc94   :  { %3129 = vmax.xlane.f32.xlu0 %v3128_v51  ;;  %v3107_v34 = vpop.f32.mrb[162].mxu0 }
 0xc95   :  { %v3121_v18 = vmul.f32 0.35355338, %v3107_v34  ;;  %v4534_v56 = vpop.f32.mrb[163].mxu0  ;;  %v6323_v38 = vadd.f32 %v6260_v19, %v3120_v44 }
 0xc97   :  { %v3134_v43 = vsel %vm1019_vm14, %v6323_v38, -inf  ;;  %v6328_v23 = vadd.f32 %v6270_v14, %v3121_v18 }
 0xc98   :  { %3135 = vmax.xlane.f32.xlu0 %v3134_v43 }
 0xc99   :  { %v3137_v22 = vsel %vm1019_vm14, %v6328_v23, -inf }
 0xc9a   :  { %3138 = vmax.xlane.f32.xlu1 %v3137_v22  ;;  %v3112_v30 = vpop.f32.mrb[164].mxu0 }
 0xc9b   :  { %v3122_v55 = vmul.f32 0.35355338, %v3112_v30  ;;  %v4537_v20 = vpop.f32.mrb[165].mxu0 }
 0xc9c   :  { %v3115_v39 = vpop.f32.mrb[166].mxu0 }
 0xc9d   :  { %v4538_v48 = vpop.f32.mrb[167].mxu0  ;;  %v6333_v61 = vadd.f32 %v6285_v4, %v3122_v55 }
 0xc9f   :  { %v3140_v53 = vsel %vm1032_vm15, %v6333_v61, -inf }
 0xca0   :  { %3141 = vmax.xlane.f32.xlu0 %v3140_v53 }
 0xca2   :  { %v3308_v21 = vpop.f32.mrb[168].mxu0 }
 0xca3   :  { %v3330_v6 = vmul.f32 0.35355338, %v3308_v21  ;;  %v4565_v25 = vpop.f32.mrb[169].mxu0 }
 0xca4   :  { %v3311_v46 = vpop.f32.mrb[170].mxu0 }
 0xca5   :  { %v3331_v11 = vmul.f32 0.35355338, %v3311_v46  ;;  %v4566_v3 = vpop.f32.mrb[171].mxu0  ;;  %v6338_v15 = vadd.f32 %v6240_v63, %v3330_v6 }
 0xca7   :  { %v3340_v62 = vsel %vm1019_vm14, %v6338_v15, -inf  ;;  %v6343_v27 = vadd.f32 %v6250_v13, %v3331_v11 }
 0xca8   :  { %3341 = vmax.xlane.f32.xlu1 %v3340_v62 }
 0xca9   :  { %v3343_v58 = vsel %vm1019_vm14, %v6343_v27, -inf }
 0xcaa   :  { %3344 = vmax.xlane.f32.xlu0 %v3343_v58  ;;  %v3316_v54 = vpop.f32.mrb[172].mxu0 }
 0xcab   :  { %v3332_v57 = vmul.f32 0.35355338, %v3316_v54  ;;  %v4569_v37 = vpop.f32.mrb[173].mxu0 }
 0xcac   :  { %v3319_v44 = vpop.f32.mrb[174].mxu0 }
 0xcad   :  { %v3333_v47 = vmul.f32 0.35355338, %v3319_v44  ;;  %v4570_v51 = vpop.f32.mrb[175].mxu0  ;;  %v6348_v63 = vadd.f32 %v6260_v19, %v3332_v57 }
 0xcaf   :  { %v3346_v34 = vsel %vm1019_vm14, %v6348_v63, -inf  ;;  %v6353_v13 = vadd.f32 %v6270_v14, %v3333_v47 }
 0xcb0   :  { %3347 = vmax.xlane.f32.xlu1 %v3346_v34 }
 0xcb1   :  { %v3349_v18 = vsel %vm1019_vm14, %v6353_v13, -inf }
 0xcb2   :  { %3350 = vmax.xlane.f32.xlu0 %v3349_v18  ;;  %v3324_v56 = vpop.f32.mrb[176].mxu0 }
 0xcb3   :  { %v4573_v43 = vpop.f32.mrb[177].mxu0  ;;  %v3334_v11 = vmul.f32 0.35355338, %v3324_v56 }
 0xcb4   :  { %v3327_v22 = vpop.f32.mrb[178].mxu0 }
 0xcb5   :  { %v4574_v30 = vpop.f32.mrb[179].mxu0  ;;  %v6367_v57 = vadd.f32 %v6285_v4, %v3334_v11 }
 0xcb7   :  { %v3352_v4 = vsel %vm1032_vm15, %v6367_v57, -inf }
 0xd05   :  { %v2855_v55 = vpop.xlane.xlu0 %2854 }
 0xd06   :  { %v2868_v20 = vsub.f32 %v6243_v41, %v2855_v55 }
 0xd07   :  { %v2858_v19 = vpop.xlane.xlu1 %2857 }
 0xd08   :  { %v2873_v39 = vmul.f32 1.442695, %v2868_v20  ;;  %v2869_v48 = vsub.f32 %v6253_v31, %v2858_v19 }
 0xd0a   :  { %4841 = vpow2.f32 %v2873_v39  ;;  %v2875_v53 = vmul.f32 1.442695, %v2869_v48 }
 0xd0c   :  { %4843 = vpow2.f32 %v2875_v53 }
 0xd0d   :  { %v2861_v14 = vpop.xlane.xlu0 %2860 }
 0xd0e   :  { %v2870_v21 = vsub.f32 %v6263_v45, %v2861_v14 }
 0xd0f   :  { %v2864_v6 = vpop.xlane.xlu1 %2863 }
 0xd10   :  { %v2877_v25 = vmul.f32 1.442695, %v2870_v21  ;;  %v2871_v46 = vsub.f32 %v6273_v16, %v2864_v6 }
 0xd12   :  { %4845 = vpow2.f32 %v2877_v25  ;;  %v2879_v3 = vmul.f32 1.442695, %v2871_v46 }
 0xd13   :  { %v2716_v62 = vpop.xlane.xlu1 %2715 }
 0xd14   :  { %v6361_v58 = vpop.eup %4841  ;;  %4847 = vpow2.f32 %v2879_v3  ;;  %v2729_v41 = vsub.f32 %v6278_v36, %v2716_v62 }
 0xd15   :  { %v2867_v31 = vpop.xlane.xlu0 %2866  ;;  %v2883_v54 = vsel %vm1019_vm14, %v6361_v58, 0.0 }
 0xd16   :  { %v6369_v45 = vpop.eup %4843  ;;  %v2734_v37 = vmul.f32 1.442695, %v2729_v41  ;;  %v2872_v16 = vsub.f32 %v6288_v28, %v2867_v31  ;;  %2884 = vadd.xlane.f32.xlu1 %v2883_v54 }
 0xd17   :  { %v2722_v44 = vpop.xlane.xlu1 %2721  ;;  %v2886_v47 = vsel %vm1019_vm14, %v6369_v45, 0.0 }
 0xd18   :  { %4849 = vpow2.f32 %v2734_v37  ;;  %v2881_v51 = vmul.f32 1.442695, %v2872_v16  ;;  %v2731_v36 = vsub.f32 %v6291_v40, %v2722_v44  ;;  %2887 = vadd.xlane.f32.xlu0 %v2886_v47 }
 0xd19   :  { %v2719_v34 = vpop.xlane.xlu0 %2718 }
 0xd1a   :  { %4851 = vpow2.f32 %v2881_v51  ;;  %v2738_v18 = vmul.f32 1.442695, %v2731_v36  ;;  %v2730_v56 = vsub.f32 %v6296_v26, %v2719_v34  ;;  %3353 = vmax.xlane.f32.xlu1 %v3352_v4 }
 0xd1b   :  { %v2728_v28 = vpop.xlane.xlu1 %2727 }
 0xd1c   :  { %v6378_v43 = vpop.eup %4845  ;;  %4853 = vpow2.f32 %v2738_v18  ;;  %v2736_v22 = vmul.f32 1.442695, %v2730_v56  ;;  %v2733_v30 = vsub.f32 %v6301_v10, %v2728_v28 }
 0xd1d   :  { %v2725_v55 = vpop.xlane.xlu0 %2724  ;;  %v2889_v40 = vsel %vm1019_vm14, %v6378_v43, 0.0 }
 0xd1e   :  { %v6383_v20 = vpop.eup %4847  ;;  %4855 = vpow2.f32 %v2736_v22  ;;  %v2742_v19 = vmul.f32 1.442695, %v2733_v30  ;;  %v2732_v39 = vsub.f32 %v6306_v35, %v2725_v55  ;;  %2890 = vadd.xlane.f32.xlu0 %v2889_v40 }
 0xd1f   :  { %v3133_v26 = vpop.xlane.xlu1 %3132  ;;  %v2892_v48 = vsel %vm1019_vm14, %v6383_v20, 0.0 }
 0xd20   :  { %4857 = vpow2.f32 %v2742_v19  ;;  %v2740_v53 = vmul.f32 1.442695, %v2732_v39  ;;  %v3144_v14 = vsub.f32 %v6313_v1, %v3133_v26  ;;  %2893 = vadd.xlane.f32.xlu1 %v2892_v48 }
 0xd21   :  { %v3130_v10 = vpop.xlane.xlu0 %3129 }
 0xd22   :  { %v6389_v21 = vpop.eup %4849  ;;  %4859 = vpow2.f32 %v2740_v53  ;;  %v3150_v6 = vmul.f32 1.442695, %v3144_v14  ;;  %v3143_v25 = vsub.f32 %v6316_v8, %v3130_v10 }
 0xd23   :  { %v2744_v35 = vsel %vm1019_vm14, %v6389_v21, 0.0 }
 0xd24   :  { %v6394_v46 = vpop.eup %4851  ;;  %4861 = vpow2.f32 %v3150_v6  ;;  %v3148_v11 = vmul.f32 1.442695, %v3143_v25  ;;  %2745 = vadd.xlane.f32.xlu1 %v2744_v35 }
 0xd25   :  { %v3136_v3 = vpop.xlane.xlu0 %3135  ;;  %v2895_v1 = vsel %vm1032_vm15, %v6394_v46, 0.0 }
 0xd26   :  { %v6398_v62 = vpop.eup %4853  ;;  %4863 = vpow2.f32 %v3148_v11  ;;  %v3145_v41 = vsub.f32 %v6323_v38, %v3136_v3  ;;  %2896 = vadd.xlane.f32.xlu0 %v2895_v1 }
 0xd27   :  { %v3139_v31 = vpop.xlane.xlu1 %3138  ;;  %v2750_v8 = vsel %vm1019_vm14, %v6398_v62, 0.0 }
 0xd28   :  { %v6403_v54 = vpop.eup %4855  ;;  %v3152_v37 = vmul.f32 1.442695, %v3145_v41  ;;  %v3146_v16 = vsub.f32 %v6328_v23, %v3139_v31  ;;  %2751 = vadd.xlane.f32.xlu1 %v2750_v8 }
 0xd29   :  { %v2747_v44 = vsel %vm1019_vm14, %v6403_v54, 0.0 }
 0xd2a   :  { %v6408_v47 = vpop.eup %4857  ;;  %4865 = vpow2.f32 %v3152_v37  ;;  %v3154_v51 = vmul.f32 1.442695, %v3146_v16  ;;  %2748 = vadd.xlane.f32.xlu0 %v2747_v44 }
 0xd2b   :  { %v2756_v38 = vsel %vm1032_vm15, %v6408_v47, 0.0 }
 0xd2c   :  { %v6412_v36 = vpop.eup %4859  ;;  %4867 = vpow2.f32 %v3154_v51  ;;  %2757 = vadd.xlane.f32.xlu1 %v2756_v38  ;;  %v1878_v51 = vsel %vm189_vm1, %v5946_v49, 0.0  ;;  %v1884_v38 = vsel %vm189_vm1, %v5962_v60, 0.0 }
 0xd2d   :  { %v3142_v34 = vpop.xlane.xlu0 %3141  ;;  %v2753_v23 = vsel %vm1019_vm14, %v6412_v36, 0.0 }
 0xd2e   :  { %v6416_v4 = vpop.eup %4861  ;;  %v3147_v18 = vsub.f32 %v6333_v61, %v3142_v34  ;;  %2754 = vadd.xlane.f32.xlu0 %v2753_v23  ;;  %v1890_v34 = vsel %vm618_vm2, %v5978_v17, 0.0 }
 0xd2f   :  { %v3161_v56 = vsel %vm1019_vm14, %v6416_v4, 0.0 }
 0xd30   :  { %v6421_v28 = vpop.eup %4863  ;;  %v3156_v22 = vmul.f32 1.442695, %v3147_v18  ;;  %3162 = vadd.xlane.f32.xlu1 %v3161_v56 }
 0xd31   :  { %v3158_v30 = vsel %vm1019_vm14, %v6421_v28, 0.0 }
 0xd32   :  { %4869 = vpow2.f32 %v3156_v22  ;;  %3159 = vadd.xlane.f32.xlu0 %v3158_v30 }
 0xd34   :  { %v6425_v55 = vpop.eup %4865 }
 0xd35   :  { %v3342_v40 = vpop.xlane.xlu1 %3341  ;;  %v3164_v19 = vsel %vm1019_vm14, %v6425_v55, 0.0 }
 0xd36   :  { %v6429_v61 = vpop.eup %4867  ;;  %v3355_v39 = vsub.f32 %v6338_v15, %v3342_v40  ;;  %3165 = vadd.xlane.f32.xlu0 %v3164_v19 }
 0xd37   :  { %v3345_v26 = vpop.xlane.xlu0 %3344  ;;  %v3167_v48 = vsel %vm1019_vm14, %v6429_v61, 0.0 }
 0xd38   :  { %v3360_v53 = vmul.f32 1.442695, %v3355_v39  ;;  %v3356_v14 = vsub.f32 %v6343_v27, %v3345_v26  ;;  %3168 = vadd.xlane.f32.xlu1 %v3167_v48 }
 0xd3a   :  { %4871 = vpow2.f32 %v3360_v53  ;;  %v3362_v10 = vmul.f32 1.442695, %v3356_v14 }
 0xd3c   :  { %v6435_v6 = vpop.eup %4869  ;;  %4873 = vpow2.f32 %v3362_v10 }
 0xd3d   :  { %v3348_v25 = vpop.xlane.xlu1 %3347  ;;  %v3170_v35 = vsel %vm1032_vm15, %v6435_v6, 0.0 }
 0xd3e   :  { %v3357_v15 = vsub.f32 %v6348_v63, %v3348_v25  ;;  %3171 = vadd.xlane.f32.xlu0 %v3170_v35  ;;  %v2772_v25 = vmul.bf16 %v6151_v24, %v5380_v32 }
 0xd3f   :  { %v3351_v11 = vpop.xlane.xlu0 %3350 }
 0xd40   :  { %v3364_v3 = vmul.f32 1.442695, %v3357_v15  ;;  %v3358_v1 = vsub.f32 %v6353_v13, %v3351_v11  ;;  %v2773_v11 = vmul.bf16 %v6169_v12, %v5380_v32 }
 0xd42   :  { %4875 = vpow2.f32 %v3364_v3  ;;  %v3366_v41 = vmul.f32 1.442695, %v3358_v1 }
 0xd44   :  { %v6441_v27 = vpop.eup %4871  ;;  %4877 = vpow2.f32 %v3366_v41 }
 0xd45   :  { %v3370_v31 = vsel %vm1019_vm14, %v6441_v27, 0.0 }
 0xd46   :  { %v6445_v8 = vpop.eup %4873  ;;  %3371 = vadd.xlane.f32.xlu1 %v3370_v31  ;;  %v2774_v31 = vmul.bf16 %v6182_v29, %v5380_v32 }
 0xd47   :  { %v3373_v37 = vsel %vm1019_vm14, %v6445_v8, 0.0 }
 0xd48   :  { %3374 = vadd.xlane.f32.xlu0 %v3373_v37  ;;  %v1881_v37 = vsel %vm189_vm1, %v5954_v33, 0.0 }
 0xd4c   :  { %v6449_v63 = vpop.eup %4875 }
 0xd4d   :  { %v3376_v13 = vsel %vm1019_vm14, %v6449_v63, 0.0 }
 0xd4e   :  { %v6453_v16 = vpop.eup %4877  ;;  %3377 = vadd.xlane.f32.xlu1 %v3376_v13 }
 0xd4f   :  { %v3379_v44 = vsel %vm1019_vm14, %v6453_v16, 0.0 }
 0xd50   :  { %3380 = vadd.xlane.f32.xlu0 %v3379_v44  ;;  %v2992_v44 = vsel %vm1230_vm10, %v2774_v31, 0  ;;  %v3398_v31 = vmul.bf16 %v6151_v24, %v5467_v7 }
 0xd54   :  { %1879 = vadd.xlane.f32.xlu0 %v1878_v51 }
 0xd58   :  { %1885 = vadd.xlane.f32.xlu0 %v1884_v38 }
 0xd5c   :  { %1891 = vadd.xlane.f32.xlu0 %v1890_v34 }
 0xda3   :  { %v2885_v23 = vpop.xlane.xlu1 %2884 }
 0xda4   :  { %4879 = vrcp.f32 %v2885_v23 }
 0xda5   :  { %v2888_v18 = vpop.xlane.xlu0 %2887 }
 0xda6   :  { %4881 = vrcp.f32 %v2888_v18 }
 0xda7   :  { %v3354_v56 = vpop.xlane.xlu1 %3353 }
 0xda8   :  { %v3359_v22 = vsub.f32 %v6367_v57, %v3354_v56 }
 0xdaa   :  { %v3368_v30 = vmul.f32 1.442695, %v3359_v22 }
 0xdab   :  { %v2891_v40 = vpop.xlane.xlu0 %2890 }
 0xdac   :  { %4883 = vpow2.f32 %v3368_v30 }
 0xdad   :  { %4885 = vrcp.f32 %v2891_v40  ;;  %v2894_v19 = vpop.xlane.xlu1 %2893 }
 0xdae   :  { %v4880_v39 = vpop.eup %4879  ;;  %4887 = vrcp.f32 %v2894_v19  ;;  %v3186_v19 = vmul.bf16 %v6151_v24, %v5438_v9  ;;  %v3400_v24 = vmul.bf16 %v6182_v29, %v5467_v7 }
 0xdaf   :  { %v2903_v48 = vmul.f32 %v4880_v39, %v6361_v58 }
 0xdb0   :  { %v4882_v26 = vpop.eup %4881 }
 0xdb1   :  { %v2904_v53 = vmul.f32 %v4882_v26, %v6369_v45  ;;  %v2746_v3 = vpop.xlane.xlu1 %2745 }
 0xdb3   :  { %v2908_v14 = vpack.c.bf16 %v2904_v53, %v2903_v48  ;;  %v2897_v10 = vpop.xlane.xlu0 %2896 }
 0xdb4   :  { %4889 = vrcp.f32 %v2897_v10 }
 0xdb5   :  { %4492 = vmatmul.mubr.msk.bf16.vlgmr.msra.gmra.mrb[108].mxu1 %vm1019_vm14, %v2908_v14  ;;  %v2752_v38 = vpop.xlane.xlu1 %2751  ;;  %v3188_v14 = vmul.bf16 %v6182_v29, %v5438_v9 }
 0xdb6   :  { %v6469_v57 = vpop.eup %4883  ;;  %4504 = vmatpush3.bf16.msra.mxu1 %v2772_v25  ;;  %4495 = vmatprep.mubr.msk.bf16.mxu1 %vm4971_vm0, %v4970_v0 }
 0xdb7   :  { %v4886_v35 = vpop.eup %4885  ;;  %v2749_v15 = vpop.xlane.xlu0 %2748  ;;  %4505 = vmatprep.subr.bf16.mxu1 %v4970_v0  ;;  %v3382_v58 = vsel %vm1032_vm15, %v6469_v57, 0.0 }
 0xdb8   :  { %v4888_v45 = vpop.eup %4887  ;;  %3383 = vadd.xlane.f32.xlu1 %v3382_v58  ;;  %v2905_v1 = vmul.f32 %v4886_v35, %v6378_v43  ;;  %4891 = vrcp.f32 %v2749_v15 }
 0xdb9   :  { %v2906_v41 = vmul.f32 %v4888_v45, %v6383_v20  ;;  %4893 = vrcp.f32 %v2746_v3  ;;  %v1887_v20 = vsel %vm189_vm1, %v5970_v2, 0.0  ;;  %v2758_v22 = vpop.xlane.xlu1 %2757 }
 0xdba   :  { %4506 = vmatpush3.bf16.msra.mxu1 %v2773_v11 }
 0xdbb   :  { %4507 = vmatprep.subr.bf16.mxu1 %v4970_v0  ;;  %v2909_v13 = vpack.c.bf16 %v2906_v41, %v2905_v1  ;;  %v2755_v32 = vpop.xlane.xlu0 %2754 }
 0xdbc   :  { %1882 = vadd.xlane.f32.xlu1 %v1881_v37  ;;  %4895 = vrcp.f32 %v2755_v32 }
 0xdbd   :  { %4496 = vmatmul.mubr.msk.bf16.gmra.mrb[112].mxu1 %vm1019_vm14, %v2909_v13  ;;  %4897 = vrcp.f32 %v2752_v38  ;;  %v3163_v48 = vpop.xlane.xlu1 %3162 }
 0xdbe   :  { %v4890_v43 = vpop.eup %4889  ;;  %4508 = vmatpush3.bf16.msra.mxu1 %v2992_v44  ;;  %4499 = vmatprep.mubr.msk.bf16.mxu1 %vm4971_vm0, %v4970_v0  ;;  %4899 = vrcp.f32 %v2758_v22 }
 0xdbf   :  { %v2907_v51 = vmul.f32 %v4890_v43, %v6394_v46  ;;  %4539 = vmatprep.subr.bf16.mxu1 %v4970_v0  ;;  %v3160_v26 = vpop.xlane.xlu0 %3159 }
 0xdc0   :  { %1888 = vadd.xlane.f32.xlu1 %v1887_v20  ;;  %4901 = vrcp.f32 %v3160_v26 }
 0xdc1   :  { %v2910_v34 = vpack.c.bf16 %v2907_v51, %v2907_v51  ;;  %4903 = vrcp.f32 %v3163_v48 }
 0xdc2   :  { %v4892_v23 = vpop.eup %4891 }
 0xdc3   :  { %v4894_v18 = vpop.eup %4893  ;;  %v2765_v56 = vmul.f32 %v4892_v23, %v6403_v54 }
 0xdc4   :  { %v2764_v30 = vmul.f32 %v4894_v18, %v6389_v21  ;;  %v3187_v21 = vmul.bf16 %v6169_v12, %v5438_v9  ;;  %v3166_v9 = vpop.xlane.xlu0 %3165 }
 0xdc5   :  { %4500 = vmatmul.mubr.msk.bf16.gmra.mrb[116].mxu1 %vm1019_vm14, %v2910_v34  ;;  %v3169_v35 = vpop.xlane.xlu1 %3168 }
 0xdc6   :  { %4509 = vmatprep.mubr.msk.bf16.mxu1 %vm4971_vm0, %v4970_v0  ;;  %v2769_v46 = vpack.c.bf16 %v2765_v56, %v2764_v30  ;;  %v4896_v40 = vpop.eup %4895  ;;  %4905 = vrcp.f32 %v3169_v35 }
 0xdc7   :  { %v4898_v39 = vpop.eup %4897  ;;  %v2767_v54 = vmul.f32 %v4896_v40, %v6412_v36  ;;  %v3199_v36 = vsel %vm1230_vm10, %v3188_v14, 0  ;;  %4907 = vrcp.f32 %v3166_v9 }
 0xdc8   :  { %v2766_v53 = vmul.f32 %v4898_v39, %v6398_v62  ;;  %v4900_v25 = vpop.eup %4899 }
 0xdc9   :  { %v2768_v62 = vmul.f32 %v4900_v25, %v6408_v47 }
 0xdca   :  { %v2770_v10 = vpack.c.bf16 %v2767_v54, %v2766_v53  ;;  %v4902_v58 = vpop.eup %4901 }
 0xdcb   :  { %v2771_v15 = vpack.c.bf16 %v2768_v62, %v2768_v62  ;;  %v4904_v45 = vpop.eup %4903  ;;  %v3178_v11 = vmul.f32 %v4902_v58, %v6421_v28  ;;  %v3172_v3 = vpop.xlane.xlu0 %3171  ;;  %v4969_v58 = vld [vmem:[%s6762_s17] ss:$0 sm:$0xff] }
 0xdcc   :  { %v3179_v1 = vmul.f32 %v4904_v45, %v6416_v4  ;;  %4909 = vrcp.f32 %v3172_v3  ;;  %v3399_v4 = vmul.bf16 %v6169_v12, %v5467_v7 }
 0xdcd   :  { %4510 = vmatmul.mubr.msk.bf16.vlgmr.msra.gmra.mrb[108].mxu1 %vm1019_vm14, %v2769_v46 }
 0xdce   :  { %4540 = vmatpush3.bf16.msra.mxu1 %v3186_v19  ;;  %4513 = vmatprep.mubr.msk.bf16.mxu1 %vm4971_vm0, %v4970_v0  ;;  %v3183_v47 = vpack.c.bf16 %v3179_v1, %v3178_v11 }
 0xdcf   :  { %4541 = vmatprep.subr.bf16.mxu1 %v4970_v0 }
 0xdd0   :  { %v4906_v41 = vpop.eup %4905 }
 0xdd1   :  { %v4908_v37 = vpop.eup %4907  ;;  %v3181_v28 = vmul.f32 %v4906_v41, %v6429_v61  ;;  %v3411_v61 = vsel %vm1230_vm10, %v3400_v24, 0 }
 0xdd2   :  { %4542 = vmatpush3.bf16.msra.mxu1 %v3187_v21  ;;  %v3180_v43 = vmul.f32 %v4908_v37, %v6425_v55 }
 0xdd3   :  { %4543 = vmatprep.subr.bf16.mxu1 %v4970_v0  ;;  %v3372_v44 = vpop.xlane.xlu1 %3371 }
 0xdd4   :  { %v3184_v32 = vpack.c.bf16 %v3181_v28, %v3180_v43 }
 0xdd5   :  { %4514 = vmatmul.mubr.msk.bf16.gmra.mrb[112].mxu1 %vm1019_vm14, %v2770_v10  ;;  %v3375_v13 = vpop.xlane.xlu0 %3374 }
 0xdd6   :  { %4544 = vmatpush3.bf16.msra.mxu1 %v3199_v36  ;;  %4517 = vmatprep.mubr.msk.bf16.mxu1 %vm4971_vm0, %v4970_v0  ;;  %4911 = vrcp.f32 %v3375_v13  ;;  %v4910_v20 = vpop.eup %4909 }
 0xdd7   :  { %4575 = vmatprep.subr.bf16.mxu1 %v4970_v0  ;;  %4913 = vrcp.f32 %v3372_v44  ;;  %v3182_v55 = vmul.f32 %v4910_v20, %v6435_v6 }
 0xdd9   :  { %v3185_v7 = vpack.c.bf16 %v3182_v55, %v3182_v55 }
 0xddb   :  { %v3378_v51 = vpop.xlane.xlu1 %3377 }
 0xddd   :  { %4518 = vmatmul.mubr.msk.bf16.gmra.mrb[116].mxu1 %vm1019_vm14, %v2771_v15  ;;  %v3381_v12 = vpop.xlane.xlu0 %3380 }
 0xdde   :  { %4545 = vmatprep.mubr.msk.bf16.mxu1 %vm4971_vm0, %v4970_v0  ;;  %4915 = vrcp.f32 %v3381_v12 }
 0xddf   :  { %4917 = vrcp.f32 %v3378_v51 }
 0xde0   :  { %v4912_v29 = vpop.eup %4911 }
 0xde1   :  { %v4914_v38 = vpop.eup %4913  ;;  %v3391_v34 = vmul.f32 %v4912_v29, %v6445_v8  ;;  %v1880_v9 = vpop.xlane.xlu0 %1879 }
 0xde2   :  { %v3390_v23 = vmul.f32 %v4914_v38, %v6441_v27  ;;  %v1893_v13 = vmul.f32 0.03125, %v1880_v9 }
 0xde4   :  { %v3395_v18 = vpack.c.bf16 %v3391_v34, %v3390_v23  ;;  %v6586_v43 = vsub.f32 %v5946_v49, %v1893_v13 }
 0xde5   :  { %4546 = vmatmul.mubr.msk.bf16.vlgmr.msra.gmra.mrb[108].mxu1 %vm1019_vm14, %v3183_v47  ;;  %v1886_v37 = vpop.xlane.xlu0 %1885 }
 0xde6   :  { %4576 = vmatpush3.bf16.msra.mxu1 %v3398_v31  ;;  %4549 = vmatprep.mubr.msk.bf16.mxu1 %vm4971_vm0, %v4970_v0  ;;  %v1895_v24 = vmul.f32 0.03125, %v1886_v37  ;;  %v1903_v29 = vmul.f32 %v6586_v43, %v6586_v43 }
 0xde7   :  { %4577 = vmatprep.subr.bf16.mxu1 %v4970_v0 }
 0xde8   :  { %v4916_v56 = vpop.eup %4915  ;;  %v1908_v38 = vsel %vm189_vm1, %v1903_v29, 0.0 }
 0xde9   :  { %v4918_v6 = vpop.eup %4917  ;;  %v3393_v22 = vmul.f32 %v4916_v56, %v6453_v16  ;;  %v1892_v12 = vpop.xlane.xlu0 %1891 }
 0xdea   :  { %4578 = vmatpush3.bf16.msra.mxu1 %v3399_v4  ;;  %v3392_v30 = vmul.f32 %v4918_v6, %v6449_v63  ;;  %v1897_v49 = vmul.f32 0.03125, %v1892_v12 }
 0xdeb   :  { %4579 = vmatprep.subr.bf16.mxu1 %v4970_v0 }
 0xdec   :  { %v3396_v46 = vpack.c.bf16 %v3393_v22, %v3392_v30 }
 0xded   :  { %4550 = vmatmul.mubr.msk.bf16.gmra.mrb[112].mxu1 %vm1019_vm14, %v3184_v32 }
 0xdee   :  { %4580 = vmatpush3.bf16.msra.mxu1 %v3411_v61  ;;  %4553 = vmatprep.mubr.msk.bf16.mxu1 %vm4971_vm0, %v4970_v0 }
 0xdf5   :  { %4554 = vmatmul.mubr.msk.bf16.gmra.mrb[116].mxu1 %vm1019_vm14, %v3185_v7  ;;  %v6596_v7 = vsub.f32 %v5962_v60, %v1895_v24 }
 0xdf6   :  { %4581 = vmatprep.mubr.msk.bf16.mxu1 %vm4971_vm0, %v4970_v0 }
 0xdf7   :  { %v1905_v60 = vmul.f32 %v6596_v7, %v6596_v7 }
 0xdf9   :  { %v1914_v34 = vsel %vm189_vm1, %v1905_v60, 0.0 }
 0xdfd   :  { %4582 = vmatmul.mubr.msk.bf16.vlgmr.msra.gmra.mrb[108].mxu1 %vm1019_vm14, %v3395_v18 }
 0xdfe   :  { %4585 = vmatprep.mubr.msk.bf16.mxu1 %vm4971_vm0, %v4970_v0 }
 0xe05   :  { %4586 = vmatmul.mubr.msk.bf16.gmra.mrb[112].mxu1 %vm1019_vm14, %v3396_v46 }
 0xe06   :  { %4589 = vmatprep.mubr.msk.bf16.mxu1 %vm4971_vm0, %v4970_v0 }
 0xe45   :  { %v3384_v8 = vpop.xlane.xlu1 %3383 }
 0xe46   :  { %4919 = vrcp.f32 %v3384_v8 }
 0xe49   :  { %v1883_v56 = vpop.xlane.xlu1 %1882 }
 0xe4a   :  { %v1894_v6 = vmul.f32 0.03125, %v1883_v56 }
 0xe4c   :  { %v6616_v30 = vsub.f32 %v5954_v33, %v1894_v6 }
 0xe4d   :  { %v1889_v22 = vpop.xlane.xlu1 %1888 }
 0xe4e   :  { %v1896_v46 = vmul.f32 0.03125, %v1889_v22 }
 0xe50   :  { %v4920_v27 = vpop.eup %4919 }
 0xe51   :  { %v3394_v40 = vmul.f32 %v4920_v27, %v6469_v57 }
 0xe53   :  { %v3397_v19 = vpack.c.bf16 %v3394_v40, %v3394_v40 }
 0xe55   :  { %4590 = vmatmul.mubr.msk.bf16.gmra.mrb[116].mxu1 %vm1019_vm14, %v3397_v19 }
 0xed0   :  { %v3447_v39 = vpop.f32.mrb[108].mxu1 }
 0xed1   :  { %v4583_v26 = vpop.f32.mrb[109].mxu1 }
 0xed2   :  { %v3450_v54 = vpop.f32.mrb[110].mxu1  ;;  %v6622_v26 = vsub.f32 %v5970_v2, %v1896_v46 }
 0xed3   :  { %v3474_v16 = vpack.c.bf16 %v3450_v54, %v3447_v39  ;;  %v4584_v21 = vpop.f32.mrb[111].mxu1  ;;  %v1904_v54 = vmul.f32 %v6616_v30, %v6616_v30 }
 0xed5   :  { %4598 = vmatmul.mubr.msk.bf16.vlgmr.msra.gmra.mrb[180].mxu0 %vm189_vm1, %v3474_v16  ;;  %v1906_v16 = vmul.f32 %v6622_v26, %v6622_v26 }
 0xed6   :  { %4601 = vmatprep.mubr.msk.bf16.mxu0 %vm4971_vm0, %v4970_v0 }
 0xed7   :  { %v1917_v2 = vsel %vm189_vm1, %v1906_v16, 0.0 }
 0xed8   :  { %v3455_v63 = vpop.f32.mrb[112].mxu1 }
 0xed9   :  { %v4587_v48 = vpop.f32.mrb[113].mxu1 }
 0xeda   :  { %v3458_v53 = vpop.f32.mrb[114].mxu1 }
 0xedb   :  { %v3475_v14 = vpack.c.bf16 %v3458_v53, %v3455_v63  ;;  %v4588_v10 = vpop.f32.mrb[115].mxu1 }
 0xedd   :  { %4602 = vmatmul.mubr.msk.bf16.gmra.mrb[184].mxu0 %vm189_vm1, %v3475_v14 }
 0xede   :  { %4605 = vmatprep.mubr.msk.bf16.mxu0 %vm4971_vm0, %v4970_v0 }
 0xf28   :  { %v3463_v57 = vpop.f32.mrb[116].mxu1 }
 0xf29   :  { %v3476_v25 = vpack.c.bf16 %v3463_v57, %v3463_v57  ;;  %v4591_v36 = vpop.f32.mrb[117].mxu1 }
 0xf2a   :  { %v3466_v35 = vpop.f32.mrb[118].mxu1 }
 0xf2b   :  { %v4592_v62 = vpop.f32.mrb[119].mxu1  ;;  %4606 = vmatmul.mubr.msk.bf16.gmra.mrb[188].mxu0 %vm189_vm1, %v3476_v25 }
 0xfa8   :  { %v3520_v15 = vpop.f32.mrb[180].mxu0 }
 0xfa9   :  { %v3521_v45 = vadd.f32 %v4969_v58, %v3520_v15  ;;  %v4599_v11 = vpop.f32.mrb[181].mxu0 }
 0xfaa   :  { %v3523_v3 = vpop.f32.mrb[182].mxu0 }
 0xfab   :  { %v6566_v1 = vadd.f32 %v3521_v45, %v6030_v59  ;;  %v3524_v0 = vadd.f32 %v4969_v58, %v3523_v3  ;;  %v4600_v47 = vpop.f32.mrb[183].mxu0 }
 0xfad   :  { %3807 = vst.msk [vmem:[%s6763_s20 + $0x28] sm:$0xff] %vm189_vm1, %v6566_v1  ;;  %v6574_v41 = vadd.f32 %v3524_v0, %v6032_v5  ;;  %v3553_v31 = vsel %vm189_vm1, %v6566_v1, 0.0 }
 0xfae   :  { %3554 = vadd.xlane.f32.xlu1 %v3553_v31 }
 0xfaf   :  { %3808 = vst.msk [vmem:[%s6763_s20 + $0x30] sm:$0xff] %vm189_vm1, %v6574_v41  ;;  %v3556_v59 = vsel %vm189_vm1, %v6574_v41, 0.0 }
 0xfb0   :  { %3557 = vadd.xlane.f32.xlu0 %v3556_v59  ;;  %v3528_v28 = vpop.f32.mrb[184].mxu0 }
 0xfb1   :  { %v3529_v4 = vadd.f32 %v4969_v58, %v3528_v28  ;;  %v4603_v5 = vpop.f32.mrb[185].mxu0 }
 0xfb2   :  { %v3531_v44 = vpop.f32.mrb[186].mxu0 }
 0xfb3   :  { %v3544_v32 = vadd.f32 %v3529_v4, %v6044_v52  ;;  %v3532_v20 = vadd.f32 %v4969_v58, %v3531_v44  ;;  %v4604_v61 = vpop.f32.mrb[187].mxu0 }
 0xfb4   :  { %v6668_v61 = vld [vmem:[%s6765_s19] ss:$0 sm:$0xff] }
 0xfb5   :  { %3809 = vst.msk [vmem:[%s6763_s20 + $0x38] sm:$0xff] %vm189_vm1, %v3544_v32  ;;  %v3545_v55 = vadd.f32 %v3532_v20, %v6046_v50  ;;  %v3559_v51 = vsel %vm189_vm1, %v3544_v32, 0.0  ;;  %v6606_v50 = vsub.f32 %v5978_v17, %v1897_v49 }
 0xfb6   :  { %3560 = vadd.xlane.f32.xlu1 %v3559_v51 }
 0xfb7   :  { %3810 = vst.msk [vmem:[%s6763_s20 + $0x40] sm:$0xff] %vm189_vm1, %v3545_v55  ;;  %v3562_v52 = vsel %vm189_vm1, %v3545_v55, 0.0  ;;  %v1907_v23 = vmul.f32 %v6606_v50, %v6606_v50 }
 0xfb8   :  { %3563 = vadd.xlane.f32.xlu0 %v3562_v52 }
 0xfb9   :  { %v1920_v18 = vsel %vm618_vm2, %v1907_v23, 0.0 }
 0xfbc   :  { %1909 = vadd.xlane.f32.xlu0 %v1908_v38 }
 0xfc0   :  { %1915 = vadd.xlane.f32.xlu0 %v1914_v34 }
 0xfc4   :  { %1921 = vadd.xlane.f32.xlu0 %v1920_v18 }
 0xffe   :  { %v3536_v17 = vpop.f32.mrb[188].mxu0 }
 0xfff   :  { %v3537_v8 = vadd.f32 %v4969_v58, %v3536_v17  ;;  %v4607_v27 = vpop.f32.mrb[189].mxu0 }
0x1000   :  { %v3539_v40 = vpop.f32.mrb[190].mxu0 }
0x1001   :  { %v6619_v19 = vadd.f32 %v3537_v8, %v6055_v42  ;;  %v4608_v39 = vpop.f32.mrb[191].mxu0  ;;  %v1911_v42 = vsel %vm189_vm1, %v1904_v54, 0.0 }
0x1003   :  { %3811 = vst.msk [vmem:[%s6763_s20 + $0x48] sm:$0xf] %vm618_vm2, %v6619_v19  ;;  %v3565_v33 = vsel %vm618_vm2, %v6619_v19, 0.0 }
0x1004   :  { %3566 = vadd.xlane.f32.xlu1 %v3565_v33 }
0x1008   :  { %1912 = vadd.xlane.f32.xlu1 %v1911_v42 }
0x100c   :  { %1918 = vadd.xlane.f32.xlu1 %v1917_v2 }
0x103b   :  { %v3555_v21 = vpop.xlane.xlu1 %3554 }
0x103c   :  { %v3568_v63 = vmul.f32 0.03125, %v3555_v21 }
0x103d   :  { %v3558_v48 = vpop.xlane.xlu0 %3557 }
0x103e   :  { %v6638_v53 = vsub.f32 %v6566_v1, %v3568_v63  ;;  %v3569_v14 = vmul.f32 0.03125, %v3558_v48 }
0x1040   :  { %v6641_v10 = vsub.f32 %v6574_v41, %v3569_v14  ;;  %v3578_v57 = vmul.f32 %v6638_v53, %v6638_v53 }
0x1042   :  { %v3583_v25 = vsel %vm189_vm1, %v3578_v57, 0.0  ;;  %v3579_v36 = vmul.f32 %v6641_v10, %v6641_v10 }
0x1043   :  { %v3561_v35 = vpop.xlane.xlu1 %3560  ;;  %3584 = vadd.xlane.f32.xlu1 %v3583_v25 }
0x1044   :  { %v3570_v62 = vmul.f32 0.03125, %v3561_v35  ;;  %v3586_v9 = vsel %vm189_vm1, %v3579_v36, 0.0 }
0x1045   :  { %3587 = vadd.xlane.f32.xlu0 %v3586_v9  ;;  %v3564_v15 = vpop.xlane.xlu0 %3563 }
0x1046   :  { %v6649_v58 = vsub.f32 %v3544_v32, %v3570_v62  ;;  %v3571_v45 = vmul.f32 0.03125, %v3564_v15  ;;  %v6662_v32 = vld [vmem:[%s6764_s18] ss:$0 sm:$0xff] }
0x1048   :  { %v6651_v11 = vsub.f32 %v3545_v55, %v3571_v45  ;;  %v3580_v3 = vmul.f32 %v6649_v58, %v6649_v58 }
0x1049   :  { %v1910_v1 = vpop.xlane.xlu0 %1909 }
0x104a   :  { %v1923_v0 = vmul.f32 0.03125, %v1910_v1  ;;  %v3589_v47 = vsel %vm189_vm1, %v3580_v3, 0.0  ;;  %v3581_v41 = vmul.f32 %v6651_v11, %v6651_v11 }
0x104b   :  { %3590 = vadd.xlane.f32.xlu1 %v3589_v47 }
0x104c   :  { %v1928_v31 = vadd.f32 1e-05, %v1923_v0  ;;  %v3592_v37 = vsel %vm189_vm1, %v3581_v41, 0.0 }
0x104d   :  { %3593 = vadd.xlane.f32.xlu0 %v3592_v37  ;;  %v1916_v13 = vpop.xlane.xlu0 %1915 }
0x104e   :  { %4921 = vrsqrt.f32 %v1928_v31  ;;  %v1925_v59 = vmul.f32 0.03125, %v1916_v13 }
0x1050   :  { %v1930_v28 = vadd.f32 1e-05, %v1925_v59 }
0x1051   :  { %v1922_v4 = vpop.xlane.xlu0 %1921 }
0x1052   :  { %4923 = vrsqrt.f32 %v1930_v28  ;;  %v1927_v5 = vmul.f32 0.03125, %v1922_v4 }
0x1054   :  { %v1932_v44 = vadd.f32 1e-05, %v1927_v5 }
0x1056   :  { %4925 = vrsqrt.f32 %v1932_v44 }
0x1058   :  { %v4922_v24 = vpop.eup %4921 }
0x1059   :  { %v1938_v20 = vmul.f32 %v4922_v24, %v6586_v43 }
0x105b   :  { %v1949_v12 = vmul.f32 %v6662_v32, %v1938_v20 }
0x105c   :  { %v4924_v55 = vpop.eup %4923 }
0x105d   :  { %v1960_v51 = vadd.f32 %v6668_v61, %v1949_v12  ;;  %v1940_v49 = vmul.f32 %v4924_v55, %v6596_v7 }
0x105f   :  { %1965 = vst.msk [vmem:[%s6766_s21] sm:$0xff] %vm189_vm1, %v1960_v51  ;;  %v1951_v52 = vmul.f32 %v6662_v32, %v1940_v49 }
0x1060   :  { %v4926_v43 = vpop.eup %4925 }
0x1061   :  { %v1962_v29 = vadd.f32 %v6668_v61, %v1951_v52  ;;  %v1942_v38 = vmul.f32 %v4926_v43, %v6606_v50 }
0x1063   :  { %1967 = vst.msk [vmem:[%s6766_s21 + $0x10] sm:$0xff] %vm189_vm1, %v1962_v29  ;;  %v1953_v60 = vmul.f32 %v6662_v32, %v1942_v38 }
0x1065   :  { %v1964_v7 = vadd.f32 %v6668_v61, %v1953_v60 }
0x1067   :  { %1969 = vst.msk [vmem:[%s6766_s21 + $0x20] sm:$0xf] %vm618_vm2, %v1964_v7 }
0x1091   :  { %v3567_v34 = vpop.xlane.xlu1 %3566 }
0x1092   :  { %v3572_v23 = vmul.f32 0.03125, %v3567_v34 }
0x1094   :  { %v6691_v18 = vsub.f32 %v6619_v19, %v3572_v23 }
0x1095   :  { %v1913_v50 = vpop.xlane.xlu1 %1912 }
0x1096   :  { %v1924_v56 = vmul.f32 0.03125, %v1913_v50  ;;  %v3582_v6 = vmul.f32 %v6691_v18, %v6691_v18 }
0x1098   :  { %v1929_v22 = vadd.f32 1e-05, %v1924_v56  ;;  %v3595_v17 = vsel %vm618_vm2, %v3582_v6, 0.0 }
0x1099   :  { %3596 = vadd.xlane.f32.xlu1 %v3595_v17  ;;  %v1919_v46 = vpop.xlane.xlu1 %1918 }
0x109a   :  { %4927 = vrsqrt.f32 %v1929_v22  ;;  %v1926_v8 = vmul.f32 0.03125, %v1919_v46 }
0x109c   :  { %v1931_v27 = vadd.f32 1e-05, %v1926_v8 }
0x109e   :  { %4929 = vrsqrt.f32 %v1931_v27 }
0x10a4   :  { %v4928_v40 = vpop.eup %4927 }
0x10a5   :  { %v1939_v39 = vmul.f32 %v4928_v40, %v6616_v30 }
0x10a7   :  { %v1950_v19 = vmul.f32 %v6662_v32, %v1939_v39 }
0x10a8   :  { %v4930_v33 = vpop.eup %4929 }
0x10a9   :  { %v1961_v54 = vadd.f32 %v6668_v61, %v1950_v19  ;;  %v1941_v42 = vmul.f32 %v4930_v33, %v6622_v26 }
0x10ab   :  { %1966 = vst.msk [vmem:[%s6766_s21 + $0x8] sm:$0xff] %vm189_vm1, %v1961_v54  ;;  %v1952_v16 = vmul.f32 %v6662_v32, %v1941_v42 }
0x10ad   :  { %v1963_v2 = vadd.f32 %v6668_v61, %v1952_v16 }
0x10af   :  { %1968 = vst.msk [vmem:[%s6766_s21 + $0x18] sm:$0xff] %vm189_vm1, %v1963_v2 }
0x10d0   :  { %v3585_v30 = vpop.xlane.xlu1 %3584 }
0x10d1   :  { %v3598_v21 = vmul.f32 0.03125, %v3585_v30 }
0x10d2   :  { %v3588_v63 = vpop.xlane.xlu0 %3587 }
0x10d3   :  { %v3603_v48 = vadd.f32 1e-05, %v3598_v21  ;;  %v3599_v14 = vmul.f32 0.03125, %v3588_v63 }
0x10d5   :  { %4931 = vrsqrt.f32 %v3603_v48  ;;  %v3604_v26 = vadd.f32 1e-05, %v3599_v14 }
0x10d7   :  { %4933 = vrsqrt.f32 %v3604_v26 }
0x10d8   :  { %v3591_v57 = vpop.xlane.xlu1 %3590 }
0x10d9   :  { %v3600_v25 = vmul.f32 0.03125, %v3591_v57 }
0x10da   :  { %v3594_v36 = vpop.xlane.xlu0 %3593 }
0x10db   :  { %v3605_v35 = vadd.f32 1e-05, %v3600_v25  ;;  %v3601_v62 = vmul.f32 0.03125, %v3594_v36 }
0x10dd   :  { %4935 = vrsqrt.f32 %v3605_v35  ;;  %v3606_v9 = vadd.f32 1e-05, %v3601_v62 }
0x10df   :  { %v4932_v15 = vpop.eup %4931  ;;  %4937 = vrsqrt.f32 %v3606_v9 }
0x10e0   :  { %v3613_v45 = vmul.f32 %v4932_v15, %v6638_v53 }
0x10e1   :  { %v4934_v3 = vpop.eup %4933 }
0x10e2   :  { %v3618_v1 = vmul.f32 %v6662_v32, %v3613_v45  ;;  %v3614_v0 = vmul.f32 %v4934_v3, %v6641_v10 }
0x10e4   :  { %v3623_v47 = vadd.f32 %v6668_v61, %v3618_v1  ;;  %v3619_v41 = vmul.f32 %v6662_v32, %v3614_v0 }
0x10e6   :  { %3812 = vst.msk [vmem:[%s6766_s21 + $0x28] sm:$0xff] %vm189_vm1, %v3623_v47  ;;  %v3624_v31 = vadd.f32 %v6668_v61, %v3619_v41 }
0x10e7   :  { %v4936_v37 = vpop.eup %4935 }
0x10e8   :  { %3813 = vst.msk [vmem:[%s6766_s21 + $0x30] sm:$0xff] %vm189_vm1, %v3624_v31  ;;  %v3615_v53 = vmul.f32 %v4936_v37, %v6649_v58 }
0x10e9   :  { %v4938_v10 = vpop.eup %4937 }
0x10ea   :  { %v3620_v13 = vmul.f32 %v6662_v32, %v3615_v53  ;;  %v3616_v59 = vmul.f32 %v4938_v10, %v6651_v11 }
0x10ec   :  { %v3625_v28 = vadd.f32 %v6668_v61, %v3620_v13  ;;  %v3621_v4 = vmul.f32 %v6662_v32, %v3616_v59 }
0x10ee   :  { %3814 = vst.msk [vmem:[%s6766_s21 + $0x38] sm:$0xff] %vm189_vm1, %v3625_v28  ;;  %v3626_v5 = vadd.f32 %v6668_v61, %v3621_v4 }
0x10f0   :  { %3815 = vst.msk [vmem:[%s6766_s21 + $0x40] sm:$0xff] %vm189_vm1, %v3626_v5 }
0x1126   :  { %v3597_v58 = vpop.xlane.xlu1 %3596 }
0x1127   :  { %v3602_v44 = vmul.f32 0.03125, %v3597_v58 }
0x1129   :  { %v3607_v24 = vadd.f32 1e-05, %v3602_v44 }
0x112b   :  { %4939 = vrsqrt.f32 %v3607_v24 }
0x1135   :  { %v4940_v11 = vpop.eup %4939 }
0x1136   :  { %v3617_v20 = vmul.f32 %v4940_v11, %v6691_v18 }
0x1138   :  { %v3622_v12 = vmul.f32 %v6662_v32, %v3617_v20 }
0x113a   :  { %v3627_v55 = vadd.f32 %v6668_v61, %v3622_v12 }
0x113c   :  { %3816 = vst.msk [vmem:[%s6766_s21 + $0x48] sm:$0xf] %vm618_vm2, %v3627_v55 }

</bundles_post_ra>
